<compile_context>
chip_gen: v6e
topology: v6e:2x2x1
jax: 0.10.0
libtpu: 0.0.40
codegen_flags: <defaults>
</compile_context>

<pallas_src>
import functools

import numpy as np
import jax
import jax.numpy as jnp
from jax import lax
from jax.experimental import pallas as pl
from jax.experimental.pallas import tpu as pltpu


# ----------------------------- Pallas kernel ---------------------------------
def _honet_kernel(x_ref, a1_ref, a2_ref, a3_ref, a4_ref, out_ref,
                  *, s1, s2, s3, s4, out_scale):
    """Whole HONet forward for one batch row-tile; 4 matmuls, fully VMEM-resident."""
    f32 = jnp.float32
    bf16 = jnp.bfloat16

    def q5(v):
        # Matches HONet._quantize (round then clip to [0, 31]); also subsumes the ReLU that
        # precedes it in the module, since the clip floor is 0.
        return jnp.clip(jnp.round(v), 0.0, 31.0)

    def layer(h, a_ref, scale):
        # scale -> quantize -> (conv as one dense matmul) -> relu+quantize
        hq = q5(h * scale).astype(bf16)                            # 5-bit ints, exact in bf16
        return q5(jnp.dot(hq, a_ref[...], preferred_element_type=f32))

    h = x_ref[...].astype(f32)          # (BT, 256)   raw input pixels
    h = layer(h, a1_ref, s1)            # (BT, 3136)  conv1: 1 ->16, 14x14
    h = layer(h, a2_ref, s2)            # (BT, 576)   conv2: 16->16, 6x6
    h = layer(h, a3_ref, s3)            # (BT, 144)   conv3: 16->16, 3x3
    h = layer(h, a4_ref, s4)            # (BT, 128)   conv4: 16->10 (lane-padded), 1x1
    out_ref[...] = (h * out_scale).astype(out_ref.dtype)   # padded lanes stay exactly 0


# ------------------------------ host-side glue --------------------------------
def _conv_gather(hi, wi, k, stride, pad):
    """0/1 tap gather matrices: (k*k, Ho*Wo, Hi*Wi); out-of-range (padding) taps are zero."""
    ho_n = (hi + 2 * pad - k) // stride + 1
    wo_n = (wi + 2 * pad - k) // stride + 1
    g = np.zeros((k * k, ho_n * wo_n, hi * wi), np.float32)
    for dy in range(k):
        for dx in range(k):
            t = dy * k + dx
            for oy in range(ho_n):
                for ox in range(wo_n):
                    y = oy * stride + dy - pad
                    x = ox * stride + dx - pad
                    if 0 <= y < hi and 0 <= x < wi:
                        g[t, oy * wo_n + ox, y * wi + x] = 1.0
    return g, ho_n, wo_n


def _dense_conv_operator(w_oihw, g):
    """Fold a 3x3 conv into one dense matrix.

    Input layout  column = m_in  * Cin  + c_in   (spatial row-major, channel-minor)
    Output layout column = m_out * Cout + c_out
    A[(m_in, c_in), (m_out, c_out)] = sum_t G[t, m_out, m_in] * W[t, c_in, c_out].
    For a 3x3 conv at most one tap connects any (m_in, m_out) pair, so every entry of A is a
    single weight value (exact in bf16 for small-integer weights).
    """
    k2, mo, mi = g.shape
    cout, cin = w_oihw.shape[0], w_oihw.shape[1]
    w_taps = jnp.transpose(w_oihw, (2, 3, 1, 0)).reshape(k2, cin, cout)   # tap t = dy*3 + dx
    a = jnp.einsum("tom,tic->mioc", jnp.asarray(g), w_taps)
    return a.reshape(mi * cin, mo * cout)


def honet_forward(x_nchw, params):
    B, cin, H, W = x_nchw.shape
    assert cin == 1

    # Combined scalar factors baked into the kernel (compile-time Python floats).
    s1 = (1.0 / params["input_scale"]) * (params["conv1_kernel_scale"] / params["conv1_result_scale"])
    s2 = params["input_scale"] * (params["conv2_kernel_scale"] / params["conv2_result_scale"])
    s3 = params["conv1_result_scale"] * (params["conv3_kernel_scale"] / params["conv3_result_scale"])
    s4 = params["conv2_result_scale"] * (params["conv4_kernel_scale"] / params["conv4_result_scale"])
    out_scale = params["conv3_result_scale"]

    # Spatial bookkeeping (conv1 s1p0, conv2 s2p0, conv3 s2p1, conv4 s1p0).
    g1_np, H1, W1 = _conv_gather(H, W, 3, 1, 0)
    g2_np, H2, W2 = _conv_gather(H1, W1, 3, 2, 0)
    g3_np, H3, W3 = _conv_gather(H2, W2, 3, 2, 1)
    g4_np, H4, W4 = _conv_gather(H3, W3, 3, 1, 0)
    assert H4 == 1 and W4 == 1, "wrapper assumes conv4 produces a 1x1 output (e.g. 16x16 input)"
    M0 = H * W
    M1, M2, M3 = H1 * W1, H2 * W2, H3 * W3

    # Per-layer dense operators, bf16 (exact for the 5-bit integer regime).
    a1 = _dense_conv_operator(params["w1"], g1_np).astype(jnp.bfloat16)   # (256, 3136)
    a2 = _dense_conv_operator(params["w2"], g2_np).astype(jnp.bfloat16)   # (3136, 576)
    a3 = _dense_conv_operator(params["w3"], g3_np).astype(jnp.bfloat16)   # (576, 144)
    a4 = _dense_conv_operator(params["w4"], g4_np)                        # (144, 10)
    a4 = jnp.pad(a4, ((0, 0), (0, 128 - a4.shape[-1]))).astype(jnp.bfloat16)  # lane-pad 10 -> 128

    # Flatten the input to (B, H*W) rows and pad the batch to a sublane-aligned row tile.
    x_flat = x_nchw[:, 0].reshape(B, M0).astype(jnp.float32)
    B_pad = max(8, ((B + 7) // 8) * 8)
    BT = min(B_pad, 128)
    if B_pad % BT:
        B_pad = ((B_pad + BT - 1) // BT) * BT
    x_flat = jnp.pad(x_flat, ((0, B_pad - B), (0, 0)))

    flops = 2 * B_pad * (M0 * M1 * 16 + M1 * 16 * M2 * 16 + M2 * 16 * M3 * 16 + M3 * 16 * 128)
    bytes_accessed = int(x_flat.size * 4
                         + (a1.size + a2.size + a3.size + a4.size) * 2
                         + B_pad * 128 * 4)

    out = pl.pallas_call(
        functools.partial(_honet_kernel, s1=s1, s2=s2, s3=s3, s4=s4, out_scale=out_scale),
        out_shape=jax.ShapeDtypeStruct((B_pad, 128), jnp.float32),
        grid=(B_pad // BT,),
        in_specs=[
            pl.BlockSpec((BT, M0), lambda b: (b, 0)),           # batch row-tile of pixels
            pl.BlockSpec(a1.shape, lambda b: (0, 0)),           # dense conv1 operator (resident)
            pl.BlockSpec(a2.shape, lambda b: (0, 0)),           # dense conv2 operator (resident)
            pl.BlockSpec(a3.shape, lambda b: (0, 0)),           # dense conv3 operator (resident)
            pl.BlockSpec(a4.shape, lambda b: (0, 0)),           # dense conv4 operator (resident)
        ],
        out_specs=pl.BlockSpec((BT, 128), lambda b: (b, 0)),
        compiler_params=pltpu.CompilerParams(
            dimension_semantics=("parallel",),
            vmem_limit_bytes=32 * 1024 * 1024),
        cost_estimate=pl.CostEstimate(flops=flops, transcendentals=0,
                                      bytes_accessed=bytes_accessed),
    )(x_flat, a1, a2, a3, a4)

    # Final 1x1x10 map: PyTorch .view(B, -1) == taking the 10 channels in order.
    return out[:B, :10]
    # TODO(synk): self.softmax is defined in __init__ but never used in forward; omitted.


# --------------------------- pure-JAX reference --------------------------------
def honet_reference(x_nchw, params):
    def quant(v):
        return jnp.clip(jnp.round(v), 0.0, 31.0)

    def conv(v, w, stride, pad):
        return lax.conv_general_dilated(
            v, w, (stride, stride), [(pad, pad), (pad, pad)],
            dimension_numbers=("NCHW", "OIHW", "NCHW"))

    x = x_nchw / params["input_scale"] * (params["conv1_kernel_scale"] / params["conv1_result_scale"])
    x = quant(jnp.maximum(conv(quant(x), params["w1"], 1, 0), 0.0))
    x = x * params["input_scale"] * (params["conv2_kernel_scale"] / params["conv2_result_scale"])
    x = quant(jnp.maximum(conv(quant(x), params["w2"], 2, 0), 0.0))
    x = x * params["conv1_result_scale"] * (params["conv3_kernel_scale"] / params["conv3_result_scale"])
    x = quant(jnp.maximum(conv(quant(x), params["w3"], 2, 1), 0.0))
    x = x * params["conv2_result_scale"] * (params["conv4_kernel_scale"] / params["conv4_result_scale"])
    x = quant(jnp.maximum(conv(quant(x), params["w4"], 1, 0), 0.0))
    x = x * params["conv3_result_scale"]
    return x.reshape(x.shape[0], -1)


# ----------------------------------- main ---------------------------------------
if __name__ == "__main__":
    key = jax.random.PRNGKey(0)
    k_in, k1, k2, k3, k4 = jax.random.split(key, 5)

    # Deterministic parameter init (shapes per HONet.__init__).  Weights are small
    # integer-valued floats ("5-bit CNN" style) so the low-precision MXU path is exact.
    params = {
        "input_scale": 2.0,
        "conv1_kernel_scale": 4.0, "conv1_result_scale": 2.0,
        "conv2_kernel_scale": 1.0, "conv2_result_scale": 4.0,
        "conv3_kernel_scale": 2.0, "conv3_result_scale": 8.0,
        "conv4_kernel_scale": 1.0, "conv4_result_scale": 2.0,
        "w1": jax.random.randint(k1, (16, 1, 3, 3), -2, 3).astype(jnp.float32),
        "w2": jax.random.randint(k2, (16, 16, 3, 3), -2, 3).astype(jnp.float32),
        "w3": jax.random.randint(k3, (16, 16, 3, 3), -2, 3).astype(jnp.float32),
        "w4": jax.random.randint(k4, (10, 16, 3, 3), -2, 3).astype(jnp.float32),
    }

    # Small input consistent with the module: batch=2, 1 channel, 16x16 spatial (NCHW).
    x = jax.random.uniform(k_in, (2, 1, 16, 16), jnp.float32) * 40.0

    out = jax.block_until_ready(honet_forward(x, params))
    ref = jax.block_until_ready(honet_reference(x, params))

    assert out.shape == ref.shape == (2, 10), (out.shape, ref.shape)
    assert jnp.allclose(out, ref, atol=1e-4), (out, ref)

    print("KERNEL_OK")
</pallas_src>

<mosaic_0001>
module attributes {stable_mosaic.version = 11 : i64} {
  func.func @_honet_kernel(%arg0: i32, %arg1: memref<8x256xf32, #tpu.memory_space<vmem>>, %arg2: memref<256x3136xbf16, #tpu.memory_space<vmem>>, %arg3: memref<3136x576xbf16, #tpu.memory_space<vmem>>, %arg4: memref<576x144xbf16, #tpu.memory_space<vmem>>, %arg5: memref<144x128xbf16, #tpu.memory_space<vmem>>, %arg6: memref<8x128xf32, #tpu.memory_space<vmem>>) attributes {dimension_semantics = [#tpu.dimension_semantics<parallel>], iteration_bounds = array<i64: 1>, scalar_prefetch = 0 : i64, scratch_operands = 0 : i64, tpu.core_type = #tpu.core_type<tc>, window_params = [{transform_indices = @transform_0, window_bounds = array<i64: 8, 256>}, {pipeline_mode = #tpu.pipeline_mode<synchronous>, transform_indices = @transform_1, window_bounds = array<i64: 256, 3136>}, {pipeline_mode = #tpu.pipeline_mode<synchronous>, transform_indices = @transform_2, window_bounds = array<i64: 3136, 576>}, {pipeline_mode = #tpu.pipeline_mode<synchronous>, transform_indices = @transform_3, window_bounds = array<i64: 576, 144>}, {pipeline_mode = #tpu.pipeline_mode<synchronous>, transform_indices = @transform_4, window_bounds = array<i64: 144, 128>}, {transform_indices = @transform_5, window_bounds = array<i64: 8, 128>}]} {
    %c0 = arith.constant 0 : index
    %c0_0 = arith.constant 0 : index
    %0 = vector.load %arg1[%c0, %c0_0] : memref<8x256xf32, #tpu.memory_space<vmem>>, vector<8x256xf32>
    %cst = arith.constant 1.000000e+00 : f32
    %1 = vector.broadcast %cst : f32 to vector<8x256xf32>
    %2 = arith.mulf %0, %1 : vector<8x256xf32>
    %3 = math.roundeven %2 : vector<8x256xf32>
    %cst_1 = arith.constant 0.000000e+00 : f32
    %cst_2 = arith.constant 3.100000e+01 : f32
    %4 = vector.broadcast %cst_1 : f32 to vector<8x256xf32>
    %5 = arith.maximumf %4, %3 : vector<8x256xf32>
    %6 = vector.broadcast %cst_2 : f32 to vector<8x256xf32>
    %7 = arith.minimumf %6, %5 : vector<8x256xf32>
    %8 = arith.truncf %7 : vector<8x256xf32> to vector<8x256xbf16>
    %c0_3 = arith.constant 0 : index
    %c0_4 = arith.constant 0 : index
    %9 = vector.load %arg2[%c0_3, %c0_4] : memref<256x3136xbf16, #tpu.memory_space<vmem>>, vector<256x3136xbf16>
    %cst_5 = arith.constant dense<0.000000e+00> : vector<8x3136xf32>
    %10 = tpu.matmul %8, %9, %cst_5 {dimension_numbers = #tpu.dot_dimension_numbers<[1], [0], [0], [1], [0, 0, 1, 1], [], []>} : vector<8x256xbf16>, vector<256x3136xbf16>, vector<8x3136xf32> -> vector<8x3136xf32>
    %11 = math.roundeven %10 : vector<8x3136xf32>
    %cst_6 = arith.constant 0.000000e+00 : f32
    %cst_7 = arith.constant 3.100000e+01 : f32
    %12 = vector.broadcast %cst_6 : f32 to vector<8x3136xf32>
    %13 = arith.maximumf %12, %11 : vector<8x3136xf32>
    %14 = vector.broadcast %cst_7 : f32 to vector<8x3136xf32>
    %15 = arith.minimumf %14, %13 : vector<8x3136xf32>
    %cst_8 = arith.constant 5.000000e-01 : f32
    %16 = vector.broadcast %cst_8 : f32 to vector<8x3136xf32>
    %17 = arith.mulf %15, %16 : vector<8x3136xf32>
    %18 = math.roundeven %17 : vector<8x3136xf32>
    %cst_9 = arith.constant 0.000000e+00 : f32
    %cst_10 = arith.constant 3.100000e+01 : f32
    %19 = vector.broadcast %cst_9 : f32 to vector<8x3136xf32>
    %20 = arith.maximumf %19, %18 : vector<8x3136xf32>
    %21 = vector.broadcast %cst_10 : f32 to vector<8x3136xf32>
    %22 = arith.minimumf %21, %20 : vector<8x3136xf32>
    %23 = arith.truncf %22 : vector<8x3136xf32> to vector<8x3136xbf16>
    %c0_11 = arith.constant 0 : index
    %c0_12 = arith.constant 0 : index
    %24 = vector.load %arg3[%c0_11, %c0_12] : memref<3136x576xbf16, #tpu.memory_space<vmem>>, vector<3136x576xbf16>
    %cst_13 = arith.constant dense<0.000000e+00> : vector<8x576xf32>
    %25 = tpu.matmul %23, %24, %cst_13 {dimension_numbers = #tpu.dot_dimension_numbers<[1], [0], [0], [1], [0, 0, 1, 1], [], []>} : vector<8x3136xbf16>, vector<3136x576xbf16>, vector<8x576xf32> -> vector<8x576xf32>
    %26 = math.roundeven %25 : vector<8x576xf32>
    %cst_14 = arith.constant 0.000000e+00 : f32
    %cst_15 = arith.constant 3.100000e+01 : f32
    %27 = vector.broadcast %cst_14 : f32 to vector<8x576xf32>
    %28 = arith.maximumf %27, %26 : vector<8x576xf32>
    %29 = vector.broadcast %cst_15 : f32 to vector<8x576xf32>
    %30 = arith.minimumf %29, %28 : vector<8x576xf32>
    %cst_16 = arith.constant 5.000000e-01 : f32
    %31 = vector.broadcast %cst_16 : f32 to vector<8x576xf32>
    %32 = arith.mulf %30, %31 : vector<8x576xf32>
    %33 = math.roundeven %32 : vector<8x576xf32>
    %cst_17 = arith.constant 0.000000e+00 : f32
    %cst_18 = arith.constant 3.100000e+01 : f32
    %34 = vector.broadcast %cst_17 : f32 to vector<8x576xf32>
    %35 = arith.maximumf %34, %33 : vector<8x576xf32>
    %36 = vector.broadcast %cst_18 : f32 to vector<8x576xf32>
    %37 = arith.minimumf %36, %35 : vector<8x576xf32>
    %38 = arith.truncf %37 : vector<8x576xf32> to vector<8x576xbf16>
    %c0_19 = arith.constant 0 : index
    %c0_20 = arith.constant 0 : index
    %39 = vector.load %arg4[%c0_19, %c0_20] : memref<576x144xbf16, #tpu.memory_space<vmem>>, vector<576x144xbf16>
    %cst_21 = arith.constant dense<0.000000e+00> : vector<8x144xf32>
    %40 = tpu.matmul %38, %39, %cst_21 {dimension_numbers = #tpu.dot_dimension_numbers<[1], [0], [0], [1], [0, 0, 1, 1], [], []>} : vector<8x576xbf16>, vector<576x144xbf16>, vector<8x144xf32> -> vector<8x144xf32>
    %41 = math.roundeven %40 : vector<8x144xf32>
    %cst_22 = arith.constant 0.000000e+00 : f32
    %cst_23 = arith.constant 3.100000e+01 : f32
    %42 = vector.broadcast %cst_22 : f32 to vector<8x144xf32>
    %43 = arith.maximumf %42, %41 : vector<8x144xf32>
    %44 = vector.broadcast %cst_23 : f32 to vector<8x144xf32>
    %45 = arith.minimumf %44, %43 : vector<8x144xf32>
    %cst_24 = arith.constant 2.000000e+00 : f32
    %46 = vector.broadcast %cst_24 : f32 to vector<8x144xf32>
    %47 = arith.mulf %45, %46 : vector<8x144xf32>
    %48 = math.roundeven %47 : vector<8x144xf32>
    %cst_25 = arith.constant 0.000000e+00 : f32
    %cst_26 = arith.constant 3.100000e+01 : f32
    %49 = vector.broadcast %cst_25 : f32 to vector<8x144xf32>
    %50 = arith.maximumf %49, %48 : vector<8x144xf32>
    %51 = vector.broadcast %cst_26 : f32 to vector<8x144xf32>
    %52 = arith.minimumf %51, %50 : vector<8x144xf32>
    %53 = arith.truncf %52 : vector<8x144xf32> to vector<8x144xbf16>
    %c0_27 = arith.constant 0 : index
    %c0_28 = arith.constant 0 : index
    %54 = vector.load %arg5[%c0_27, %c0_28] : memref<144x128xbf16, #tpu.memory_space<vmem>>, vector<144x128xbf16>
    %cst_29 = arith.constant dense<0.000000e+00> : vector<8x128xf32>
    %55 = tpu.matmul %53, %54, %cst_29 {dimension_numbers = #tpu.dot_dimension_numbers<[1], [0], [0], [1], [0, 0, 1, 1], [], []>} : vector<8x144xbf16>, vector<144x128xbf16>, vector<8x128xf32> -> vector<8x128xf32>
    %56 = math.roundeven %55 : vector<8x128xf32>
    %cst_30 = arith.constant 0.000000e+00 : f32
    %cst_31 = arith.constant 3.100000e+01 : f32
    %57 = vector.broadcast %cst_30 : f32 to vector<8x128xf32>
    %58 = arith.maximumf %57, %56 : vector<8x128xf32>
    %59 = vector.broadcast %cst_31 : f32 to vector<8x128xf32>
    %60 = arith.minimumf %59, %58 : vector<8x128xf32>
    %cst_32 = arith.constant 8.000000e+00 : f32
    %61 = vector.broadcast %cst_32 : f32 to vector<8x128xf32>
    %62 = arith.mulf %60, %61 : vector<8x128xf32>
    %c0_33 = arith.constant 0 : index
    %c0_34 = arith.constant 0 : index
    %63 = vector.load %arg6[%c0_33, %c0_34] : memref<8x128xf32, #tpu.memory_space<vmem>>, vector<8x128xf32>
    tpu.vector_store %arg6[%c0_33, %c0_34], %62 {strides = array<i32>} : memref<8x128xf32, #tpu.memory_space<vmem>>, vector<8x128xf32>,
    return
  }
  func.func @transform_0(%arg0: i32) -> (i32, i32) {
    %c0_i32 = arith.constant 0 : i32
    %c0_i32_0 = arith.constant 0 : i32
    return %arg0, %c0_i32 : i32, i32
  }
  func.func @transform_1(%arg0: i32) -> (i32, i32) {
    %c0_i32 = arith.constant 0 : i32
    %c0_i32_0 = arith.constant 0 : i32
    %c0_i32_1 = arith.constant 0 : i32
    return %c0_i32, %c0_i32_0 : i32, i32
  }
  func.func @transform_2(%arg0: i32) -> (i32, i32) {
    %c0_i32 = arith.constant 0 : i32
    %c0_i32_0 = arith.constant 0 : i32
    %c0_i32_1 = arith.constant 0 : i32
    return %c0_i32, %c0_i32_0 : i32, i32
  }
  func.func @transform_3(%arg0: i32) -> (i32, i32) {
    %c0_i32 = arith.constant 0 : i32
    %c0_i32_0 = arith.constant 0 : i32
    %c0_i32_1 = arith.constant 0 : i32
    return %c0_i32, %c0_i32_0 : i32, i32
  }
  func.func @transform_4(%arg0: i32) -> (i32, i32) {
    %c0_i32 = arith.constant 0 : i32
    %c0_i32_0 = arith.constant 0 : i32
    %c0_i32_1 = arith.constant 0 : i32
    return %c0_i32, %c0_i32_0 : i32, i32
  }
  func.func @transform_5(%arg0: i32) -> (i32, i32) {
    %c0_i32 = arith.constant 0 : i32
    %c0_i32_0 = arith.constant 0 : i32
    return %arg0, %c0_i32 : i32, i32
  }
}

</mosaic_0001>

<bundles_post_ra>
// kernel: tpu_custom_call.1
= control target key start
LH: loop header
LB: loop body
LE: loop exit
PB: predicated region body
PF: predicated region fallthrough
CT: control target
= control target key end

     0   :  { %s21432_s0 = inlined_call_operand.vmem [shape: f32[8,256], index: 0, kind: input, shape index: {}]   ;;  %s21433_s1 = inlined_call_operand.vmem [shape: bf16[256,3136], index: 1, kind: input, shape index: {}]   ;;  %s21434_s2 = inlined_call_operand.vmem [shape: bf16[3136,576], index: 2, kind: input, shape index: {}]   ;;  %s21435_s3 = inlined_call_operand.vmem [shape: bf16[576,144], index: 3, kind: input, shape index: {}]   ;;  %s21436_s4 = inlined_call_operand.vmem [shape: bf16[144,128], index: 4, kind: input, shape index: {}]   ;;  %s21437_s5 = inlined_call_operand.hbm [shape: f32[8,128], index: 5, kind: output, shape index: {}]  }
   0x1   :  { %v14116_v0 = vld [vmem:[%s21433_s1 + $0x57c] ss:$100 sps:$4 sm:$0xff]   ;;  %v14118_v1 = vld [vmem:[%s21433_s1 + $0x584] ss:$100 sps:$4 sm:$0xff]   ;;  %v14122_v4 = vld [vmem:[%s21433_s1 + $0x4b4] ss:$100 sps:$4 sm:$0xff]  }
   0x2   :  { %2464 = vmatprep.subr.bf16.mxu0 %v14116_v0  ;;  %v14120_v2 = vld [vmem:[%s21433_s1 + $0x578] ss:$100 sps:$4 sm:$0xff]   ;;  %v14121_v3 = vld [vmem:[%s21433_s1 + $0x580] ss:$100 sps:$4 sm:$0xff]   ;;  %2505 = vmatprep.subr.bf16.mxu1 %v14118_v1  ;;  %v14126_v6 = vld [vmem:[%s21433_s1 + $0x4b0] ss:$100 sps:$4 sm:$0xff]  }
   0x3   :  { %2465 = vmatpush1.bf16.msra.mxu0 %v14120_v2  ;;  %2506 = vmatpush1.bf16.msra.mxu1 %v14121_v3  ;;  %v14124_v5 = vld [vmem:[%s21433_s1 + $0x4bc] ss:$100 sps:$4 sm:$0xff]   ;;  %v14128_v8 = vld [vmem:[%s21433_s1 + $0x3ec] ss:$100 sps:$4 sm:$0xff]   ;;  %v14130_v9 = vld [vmem:[%s21433_s1 + $0x3f4] ss:$100 sps:$4 sm:$0xff]  }
   0x4   :  { %2466 = vmatprep.subr.bf16.mxu0 %v14122_v4  ;;  %v14127_v7 = vld [vmem:[%s21433_s1 + $0x4b8] ss:$100 sps:$4 sm:$0xff]   ;;  %2507 = vmatprep.subr.bf16.mxu1 %v14124_v5  ;;  %v14132_v10 = vld [vmem:[%s21433_s1 + $0x3e8] ss:$100 sps:$4 sm:$0xff]   ;;  %v14133_v11 = vld [vmem:[%s21433_s1 + $0x3f0] ss:$100 sps:$4 sm:$0xff]  }
   0x5   :  { %v14134_v12 = vld [vmem:[%s21433_s1 + $0x324] ss:$100 sps:$4 sm:$0xff]   ;;  %v14136_v13 = vld [vmem:[%s21433_s1 + $0x32c] ss:$100 sps:$4 sm:$0xff]   ;;  %v14140_v16 = vld [vmem:[%s21433_s1 + $0x25c] ss:$100 sps:$4 sm:$0xff]  }
   0x6   :  { %v14138_v14 = vld [vmem:[%s21433_s1 + $0x320] ss:$100 sps:$4 sm:$0xff]   ;;  %v14139_v15 = vld [vmem:[%s21433_s1 + $0x328] ss:$100 sps:$4 sm:$0xff]   ;;  %v14144_v18 = vld [vmem:[%s21433_s1 + $0x258] ss:$100 sps:$4 sm:$0xff]  }
   0x7   :  { %2467 = vmatpush1.bf16.msra.mxu0 %v14126_v6  ;;  %2508 = vmatpush1.bf16.msra.mxu1 %v14127_v7  ;;  %v14142_v17 = vld [vmem:[%s21433_s1 + $0x264] ss:$100 sps:$4 sm:$0xff]   ;;  %v14146_v20 = vld [vmem:[%s21433_s1 + $0x194] ss:$100 sps:$4 sm:$0xff]   ;;  %v14148_v21 = vld [vmem:[%s21433_s1 + $0x19c] ss:$100 sps:$4 sm:$0xff]  }
   0x8   :  { %2468 = vmatprep.subr.bf16.mxu0 %v14128_v8  ;;  %2509 = vmatprep.subr.bf16.mxu1 %v14130_v9  ;;  %v14145_v19 = vld [vmem:[%s21433_s1 + $0x260] ss:$100 sps:$4 sm:$0xff]   ;;  %v14150_v22 = vld [vmem:[%s21433_s1 + $0x190] ss:$100 sps:$4 sm:$0xff]   ;;  %v14151_v23 = vld [vmem:[%s21433_s1 + $0x198] ss:$100 sps:$4 sm:$0xff]  }
   0x9   :  { %v14152_v24 = vld [vmem:[%s21433_s1 + $0xcc] ss:$100 sps:$4 sm:$0xff]   ;;  %v14154_v25 = vld [vmem:[%s21433_s1 + $0xd4] ss:$100 sps:$4 sm:$0xff]   ;;  %v14158_v28 = vld [vmem:[%s21433_s1 + $0x4] ss:$100 sps:$4 sm:$0xff]  }
   0xa   :  { %v14156_v26 = vld [vmem:[%s21433_s1 + $0xc8] ss:$100 sps:$4 sm:$0xff]   ;;  %v14157_v27 = vld [vmem:[%s21433_s1 + $0xd0] ss:$100 sps:$4 sm:$0xff]   ;;  %v14162_v30 = vld [vmem:[%s21433_s1] ss:$100 sps:$4 sm:$0xff]  }
   0xb   :  { %2469 = vmatpush1.bf16.msra.mxu0 %v14132_v10  ;;  %2510 = vmatpush1.bf16.msra.mxu1 %v14133_v11  ;;  %v14160_v29 = vld [vmem:[%s21433_s1 + $0xc] ss:$100 sps:$4 sm:$0xff]   ;;  %v14164_v32 = vld [vmem:[%s21433_s1 + $0xbbc] ss:$100 sps:$4 sm:$0xff]   ;;  %v14166_v33 = vld [vmem:[%s21433_s1 + $0xbc4] ss:$100 sps:$4 sm:$0xff]  }
   0xc   :  { %2470 = vmatprep.subr.bf16.mxu0 %v14134_v12  ;;  %2511 = vmatprep.subr.bf16.mxu1 %v14136_v13  ;;  %v14163_v31 = vld [vmem:[%s21433_s1 + $0x8] ss:$100 sps:$4 sm:$0xff]   ;;  %v14168_v34 = vld [vmem:[%s21433_s1 + $0xbb8] ss:$100 sps:$4 sm:$0xff]   ;;  %v14169_v35 = vld [vmem:[%s21433_s1 + $0xbc0] ss:$100 sps:$4 sm:$0xff]  }
   0xd   :  { %v14170_v36 = vld [vmem:[%s21433_s1 + $0xaf4] ss:$100 sps:$4 sm:$0xff]   ;;  %v14172_v37 = vld [vmem:[%s21433_s1 + $0xafc] ss:$100 sps:$4 sm:$0xff]   ;;  %v14176_v40 = vld [vmem:[%s21433_s1 + $0xa2c] ss:$100 sps:$4 sm:$0xff]  }
   0xe   :  { %v14174_v38 = vld [vmem:[%s21433_s1 + $0xaf0] ss:$100 sps:$4 sm:$0xff]   ;;  %v14175_v39 = vld [vmem:[%s21433_s1 + $0xaf8] ss:$100 sps:$4 sm:$0xff]   ;;  %v14180_v42 = vld [vmem:[%s21433_s1 + $0xa28] ss:$100 sps:$4 sm:$0xff]  }
   0xf   :  { %2471 = vmatpush1.bf16.msra.mxu0 %v14138_v14  ;;  %2512 = vmatpush1.bf16.msra.mxu1 %v14139_v15  ;;  %v14178_v41 = vld [vmem:[%s21433_s1 + $0xa34] ss:$100 sps:$4 sm:$0xff]   ;;  %v14182_v44 = vld [vmem:[%s21433_s1 + $0x964] ss:$100 sps:$4 sm:$0xff]   ;;  %v14184_v45 = vld [vmem:[%s21433_s1 + $0x96c] ss:$100 sps:$4 sm:$0xff]  }
  0x10   :  { %2472 = vmatprep.subr.bf16.mxu0 %v14140_v16  ;;  %2513 = vmatprep.subr.bf16.mxu1 %v14142_v17  ;;  %v14181_v43 = vld [vmem:[%s21433_s1 + $0xa30] ss:$100 sps:$4 sm:$0xff]   ;;  %v14186_v46 = vld [vmem:[%s21433_s1 + $0x960] ss:$100 sps:$4 sm:$0xff]   ;;  %v14187_v47 = vld [vmem:[%s21433_s1 + $0x968] ss:$100 sps:$4 sm:$0xff]  }
  0x11   :  { %v23_v48 = vld [vmem:[%s21432_s0 + $0x8] sm:$0xff]  ;;  %v22_v50 = vld [vmem:[%s21432_s0] sm:$0xff]  ;;  %v14192_v58 = vld [vmem:[%s21433_s1 + $0x898] ss:$100 sps:$4 sm:$0xff]  }
  0x12   :  { %v13586_v49 = vcvt.f32.s32 %v23_v48  ;;  %v14188_v51 = vld [vmem:[%s21433_s1 + $0x89c] ss:$100 sps:$4 sm:$0xff]   ;;  %v13584_v52 = vand.u32 2147483647, %v23_v48  ;;  %v13578_v53 = vcvt.f32.s32 %v22_v50  ;;  %v14190_v54 = vld [vmem:[%s21433_s1 + $0x8a4] ss:$100 sps:$4 sm:$0xff]  }
  0x13   :  { %2473 = vmatpush1.bf16.msra.mxu0 %v14144_v18  ;;  %2514 = vmatpush1.bf16.msra.mxu1 %v14145_v19  ;;  %v13589_v56 = vand.u32 2147483648, %v23_v48  ;;  %v13576_v57 = vand.u32 2147483647, %v22_v50  ;;  %v13581_v60 = vand.u32 2147483648, %v22_v50  ;;  %v14193_v61 = vld [vmem:[%s21433_s1 + $0x8a0] ss:$100 sps:$4 sm:$0xff]  }
  0x14   :  { %2474 = vmatprep.subr.bf16.mxu0 %v14146_v20  ;;  %2515 = vmatprep.subr.bf16.mxu1 %v14148_v21  ;;  %v13587_v55 = vcvt.s32.f32 %v13586_v49  ;;  %v13579_v59 = vcvt.s32.f32 %v13578_v53  ;;  %v14194_v62 = vld [vmem:[%s21433_s1 + $0x7d4] ss:$100 sps:$4 sm:$0xff]   ;;  %vm13585_vm0 = vcmp.lt.f32.partialorder %v13584_v52, 8388608.0  ;;  %v14196_v1 = vld [vmem:[%s21433_s1 + $0x7dc] ss:$100 sps:$4 sm:$0xff]  }
  0x15   :  { %vm16421_vm1 = vcmp.lt.f32.partialorder %v13576_v57, 8388608.0  ;;  %v14198_v5 = vld [vmem:[%s21433_s1 + $0x7d0] ss:$100 sps:$4 sm:$0xff]   ;;  %v14199_v6 = vld [vmem:[%s21433_s1 + $0x7d8] ss:$100 sps:$4 sm:$0xff]  }
  0x16   :  { %v13588_v63 = vand.u32 2147483647, %v13587_v55  ;;  %v13580_v0 = vand.u32 2147483647, %v13579_v59  ;;  %v14200_v8 = vld [vmem:[%s21433_s1 + $0x70c] ss:$100 sps:$4 sm:$0xff]  }
  0x17   :  { %2475 = vmatpush1.bf16.msra.mxu0 %v14150_v22  ;;  %2516 = vmatpush1.bf16.msra.mxu1 %v14151_v23  ;;  %v14202_v11 = vld [vmem:[%s21433_s1 + $0x714] ss:$100 sps:$4 sm:$0xff]   ;;  %v14204_v13 = vld [vmem:[%s21433_s1 + $0x708] ss:$100 sps:$4 sm:$0xff]   ;;  %v14210_v19 = vld [vmem:[%s21433_s1 + $0x640] ss:$100 sps:$4 sm:$0xff]  }
  0x18   :  { %2476 = vmatprep.subr.bf16.mxu0 %v14152_v24  ;;  %2517 = vmatprep.subr.bf16.mxu1 %v14154_v25  ;;  %v13590_v2 = vor.u32 %v13589_v56, %v13588_v63  ;;  %v13582_v4 = vor.u32 %v13581_v60, %v13580_v0  ;;  %v14205_v14 = vld [vmem:[%s21433_s1 + $0x710] ss:$100 sps:$4 sm:$0xff]   ;;  %v14206_v16 = vld [vmem:[%s21433_s1 + $0x644] ss:$100 sps:$4 sm:$0xff]   ;;  %v14248_v49 = vld [vmem:[%s21433_s1 + $0xd8] ss:$100 sps:$4 sm:$0xff]  }
  0x19   :  { %v14208_v18 = vld [vmem:[%s21433_s1 + $0x64c] ss:$100 sps:$4 sm:$0xff]   ;;  %v14217_v23 = vld [vmem:[%s21433_s1 + $0x594] ss:$100 sps:$4 sm:$0xff]   ;;  %v14259_v52 = vld [vmem:[%s21433_s1 + $0x1c] ss:$100 sps:$4 sm:$0xff]  }
  0x1a   :  { %v13591_v7 = vsel %vm13585_vm0, %v13590_v2, %v23_v48  ;;  %v13583_v10 = vsel %vm16421_vm1, %v13582_v4, %v22_v50  ;;  %v14211_v20 = vld [vmem:[%s21433_s1 + $0x648] ss:$100 sps:$4 sm:$0xff]   ;;  %v14251_v50 = vld [vmem:[%s21433_s1 + $0xe0] ss:$100 sps:$4 sm:$0xff]   ;;  %v14254_v53 = vld [vmem:[%s21433_s1 + $0x10] ss:$100 sps:$4 sm:$0xff]  }
  0x1b   :  { %2477 = vmatpush1.bf16.msra.mxu0 %v14156_v26  ;;  %2518 = vmatpush1.bf16.msra.mxu1 %v14157_v27  ;;  %v27_v9 = vmax.f32 %v13591_v7, 0.0  ;;  %v26_v15 = vmax.f32 %v13583_v10, 0.0  ;;  %v14214_v22 = vld [vmem:[%s21433_s1 + $0x58c] ss:$100 sps:$4 sm:$0xff]   ;;  %v14220_v27 = vld [vmem:[%s21433_s1 + $0x4c4] ss:$100 sps:$4 sm:$0xff]  }
  0x1c   :  { %2478 = vmatprep.subr.bf16.mxu0 %v14158_v28  ;;  %2519 = vmatprep.subr.bf16.mxu1 %v14160_v29  ;;  %v14212_v25 = vld [vmem:[%s21433_s1 + $0x588] ss:$100 sps:$4 sm:$0xff]   ;;  %v14215_v26 = vld [vmem:[%s21433_s1 + $0x590] ss:$100 sps:$4 sm:$0xff]   ;;  %v14218_v29 = vld [vmem:[%s21433_s1 + $0x4c0] ss:$100 sps:$4 sm:$0xff]  }
  0x1d   :  { %v29_v12 = vmin.f32 %v27_v9, 31.0  ;;  %v28_v21 = vmin.f32 %v26_v15, 31.0  ;;  %v14223_v28 = vld [vmem:[%s21433_s1 + $0x4cc] ss:$100 sps:$4 sm:$0xff]   ;;  %v14253_v48 = vld [vmem:[%s21433_s1 + $0xe4] ss:$100 sps:$4 sm:$0xff]  }
  0x1e   :  { %v14262_v55 = vld [vmem:[%s21433_s1 + $0xbcc] ss:$100 sps:$4 sm:$0xff]   ;;  %v14265_v56 = vld [vmem:[%s21433_s1 + $0xbd4] ss:$100 sps:$4 sm:$0xff]   ;;  %v14268_v59 = vld [vmem:[%s21433_s1 + $0xb04] ss:$100 sps:$4 sm:$0xff]  }
  0x1f   :  { %2479 = vmatpush1.bf16.msra.mxu0 %v14162_v30  ;;  %2520 = vmatpush1.bf16.msra.mxu1 %v14163_v31  ;;  %v16448_v17 = vpack.c.bf16 %v29_v12, %v29_v12  ;;  %v16467_v24 = vpack.c.bf16 %v28_v21, %v28_v21  ;;  %v14221_v30 = vld [vmem:[%s21433_s1 + $0x4c8] ss:$100 sps:$4 sm:$0xff]   ;;  %v14226_v31 = vld [vmem:[%s21433_s1 + $0x3fc] ss:$100 sps:$4 sm:$0xff]   ;;  %v14280_v3 = vld [vmem:[%s21433_s1 + $0x974] ss:$100 sps:$4 sm:$0xff]  }
  0x20   :  { %2480 = vmatprep.subr.bf16.mxu0 %v14164_v32  ;;  %2521 = vmatprep.subr.bf16.mxu1 %v14166_v33  ;;  %v14229_v32 = vld [vmem:[%s21433_s1 + $0x404] ss:$100 sps:$4 sm:$0xff]   ;;  %v14224_v33 = vld [vmem:[%s21433_s1 + $0x3f8] ss:$100 sps:$4 sm:$0xff]   ;;  %v14271_v60 = vld [vmem:[%s21433_s1 + $0xb0c] ss:$100 sps:$4 sm:$0xff]  }
  0x21   :  { %2496 = vmatprep.mubr.bf16.mxu0 %v16448_v17  ;;  %2537 = vmatprep.mubr.bf16.mxu1 %v16448_v17  ;;  %v14260_v57 = vld [vmem:[%s21433_s1 + $0xbc8] ss:$100 sps:$4 sm:$0xff]   ;;  %v14274_v63 = vld [vmem:[%s21433_s1 + $0xa3c] ss:$100 sps:$4 sm:$0xff]   ;;  %v14287_v10 = vld [vmem:[%s21433_s1 + $0x8b0] ss:$100 sps:$4 sm:$0xff]  }
  0x22   :  { %v14277_v0 = vld [vmem:[%s21433_s1 + $0xa44] ss:$100 sps:$4 sm:$0xff]   ;;  %v14283_v4 = vld [vmem:[%s21433_s1 + $0x97c] ss:$100 sps:$4 sm:$0xff]   ;;  %v14286_v7 = vld [vmem:[%s21433_s1 + $0x8ac] ss:$100 sps:$4 sm:$0xff]  }
  0x23   :  { %2481 = vmatpush2.bf16.msra.mxu0 %v14168_v34  ;;  %2522 = vmatpush2.bf16.msra.mxu1 %v14169_v35  ;;  %v14227_v34 = vld [vmem:[%s21433_s1 + $0x400] ss:$100 sps:$4 sm:$0xff]   ;;  %v14232_v35 = vld [vmem:[%s21433_s1 + $0x334] ss:$100 sps:$4 sm:$0xff]   ;;  %v14284_v9 = vld [vmem:[%s21433_s1 + $0x8a8] ss:$100 sps:$4 sm:$0xff]  }
  0x24   :  { %2482 = vmatprep.subr.bf16.mxu0 %v14170_v36  ;;  %2523 = vmatprep.subr.bf16.mxu1 %v14172_v37  ;;  %v14235_v36 = vld [vmem:[%s21433_s1 + $0x33c] ss:$100 sps:$4 sm:$0xff]   ;;  %v14230_v37 = vld [vmem:[%s21433_s1 + $0x330] ss:$100 sps:$4 sm:$0xff]  }
  0x25   :  { %v14275_v2 = vld [vmem:[%s21433_s1 + $0xa40] ss:$100 sps:$4 sm:$0xff]   ;;  %v14295_v12 = vld [vmem:[%s21433_s1 + $0x7ec] ss:$100 sps:$4 sm:$0xff]  }
  0x26   :  { %v14298_v15 = vld [vmem:[%s21433_s1 + $0x71c] ss:$100 sps:$4 sm:$0xff]  }
  0x27   :  { %2483 = vmatpush2.bf16.msra.mxu0 %v14174_v38  ;;  %2524 = vmatpush2.bf16.msra.mxu1 %v14175_v39  ;;  %v14233_v38 = vld [vmem:[%s21433_s1 + $0x338] ss:$100 sps:$4 sm:$0xff]   ;;  %v14238_v39 = vld [vmem:[%s21433_s1 + $0x26c] ss:$100 sps:$4 sm:$0xff]  }
  0x28   :  { %2484 = vmatprep.subr.bf16.mxu0 %v14176_v40  ;;  %2525 = vmatprep.subr.bf16.mxu1 %v14178_v41  ;;  %v14241_v40 = vld [vmem:[%s21433_s1 + $0x274] ss:$100 sps:$4 sm:$0xff]   ;;  %v14236_v41 = vld [vmem:[%s21433_s1 + $0x268] ss:$100 sps:$4 sm:$0xff]   ;;  %v14307_v21 = vld [vmem:[%s21433_s1 + $0x65c] ss:$100 sps:$4 sm:$0xff]  }
  0x2b   :  { %2485 = vmatpush2.bf16.msra.mxu0 %v14180_v42  ;;  %2526 = vmatpush2.bf16.msra.mxu1 %v14181_v43  ;;  %v14239_v42 = vld [vmem:[%s21433_s1 + $0x270] ss:$100 sps:$4 sm:$0xff]   ;;  %v14244_v43 = vld [vmem:[%s21433_s1 + $0x1a4] ss:$100 sps:$4 sm:$0xff]  }
  0x2c   :  { %2486 = vmatprep.subr.bf16.mxu0 %v14182_v44  ;;  %2527 = vmatprep.subr.bf16.mxu1 %v14184_v45  ;;  %v14247_v44 = vld [vmem:[%s21433_s1 + $0x1ac] ss:$100 sps:$4 sm:$0xff]   ;;  %v14242_v45 = vld [vmem:[%s21433_s1 + $0x1a0] ss:$100 sps:$4 sm:$0xff]  }
  0x2f   :  { %2487 = vmatpush2.bf16.msra.mxu0 %v14186_v46  ;;  %2528 = vmatpush2.bf16.msra.mxu1 %v14187_v47  ;;  %v14245_v46 = vld [vmem:[%s21433_s1 + $0x1a8] ss:$100 sps:$4 sm:$0xff]   ;;  %v14250_v47 = vld [vmem:[%s21433_s1 + $0xdc] ss:$100 sps:$4 sm:$0xff]  }
  0x30   :  { %2488 = vmatprep.subr.bf16.mxu0 %v14188_v51  ;;  %2529 = vmatprep.subr.bf16.mxu1 %v14190_v54  ;;  %v14256_v51 = vld [vmem:[%s21433_s1 + $0x14] ss:$100 sps:$4 sm:$0xff]  }
  0x31   :  { %v14257_v54 = vld [vmem:[%s21433_s1 + $0x18] ss:$100 sps:$4 sm:$0xff]  }
  0x33   :  { %2489 = vmatpush2.bf16.msra.mxu0 %v14192_v58  ;;  %2530 = vmatpush2.bf16.msra.mxu1 %v14193_v61  ;;  %v14263_v58 = vld [vmem:[%s21433_s1 + $0xbd0] ss:$100 sps:$4 sm:$0xff]   ;;  %v14266_v61 = vld [vmem:[%s21433_s1 + $0xb00] ss:$100 sps:$4 sm:$0xff]  }
  0x34   :  { %2490 = vmatprep.subr.bf16.mxu0 %v14194_v62  ;;  %2531 = vmatprep.subr.bf16.mxu1 %v14196_v1  ;;  %v14269_v62 = vld [vmem:[%s21433_s1 + $0xb08] ss:$100 sps:$4 sm:$0xff]   ;;  %v14272_v1 = vld [vmem:[%s21433_s1 + $0xa38] ss:$100 sps:$4 sm:$0xff]  }
  0x37   :  { %2491 = vmatpush2.bf16.msra.mxu0 %v14198_v5  ;;  %2532 = vmatpush2.bf16.msra.mxu1 %v14199_v6  ;;  %v14278_v5 = vld [vmem:[%s21433_s1 + $0x970] ss:$100 sps:$4 sm:$0xff]   ;;  %v14281_v6 = vld [vmem:[%s21433_s1 + $0x978] ss:$100 sps:$4 sm:$0xff]  }
  0x38   :  { %2492 = vmatprep.subr.bf16.mxu0 %v14200_v8  ;;  %2533 = vmatprep.subr.bf16.mxu1 %v14202_v11  ;;  %v14289_v8 = vld [vmem:[%s21433_s1 + $0x8b4] ss:$100 sps:$4 sm:$0xff]   ;;  %v14292_v11 = vld [vmem:[%s21433_s1 + $0x7e4] ss:$100 sps:$4 sm:$0xff]  }
  0x3b   :  { %2493 = vmatpush2.bf16.msra.mxu0 %v14204_v13  ;;  %2534 = vmatpush2.bf16.msra.mxu1 %v14205_v14  ;;  %v14290_v13 = vld [vmem:[%s21433_s1 + $0x7e0] ss:$100 sps:$4 sm:$0xff]   ;;  %v14293_v14 = vld [vmem:[%s21433_s1 + $0x7e8] ss:$100 sps:$4 sm:$0xff]  }
  0x3c   :  { %2494 = vmatprep.subr.bf16.mxu0 %v14206_v16  ;;  %2535 = vmatprep.subr.bf16.mxu1 %v14208_v18  ;;  %v14301_v16 = vld [vmem:[%s21433_s1 + $0x724] ss:$100 sps:$4 sm:$0xff]   ;;  %v14296_v18 = vld [vmem:[%s21433_s1 + $0x718] ss:$100 sps:$4 sm:$0xff]  }
  0x3f   :  { %2495 = vmatpush2.bf16.msra.mxu0 %v14210_v19  ;;  %2536 = vmatpush2.bf16.msra.mxu1 %v14211_v20  ;;  %v14299_v19 = vld [vmem:[%s21433_s1 + $0x720] ss:$100 sps:$4 sm:$0xff]   ;;  %v14304_v20 = vld [vmem:[%s21433_s1 + $0x654] ss:$100 sps:$4 sm:$0xff]  }
  0x40   :  { %2546 = vmatprep.subr.bf16.mxu0 %v14214_v22  ;;  %2587 = vmatprep.subr.bf16.mxu1 %v14217_v23  ;;  %v14302_v22 = vld [vmem:[%s21433_s1 + $0x650] ss:$100 sps:$4 sm:$0xff]   ;;  %v14305_v23 = vld [vmem:[%s21433_s1 + $0x658] ss:$100 sps:$4 sm:$0xff]  }
  0x42   :  { %2497 = vmatmul.mubr.bf16.vlgmr.msra.gmra.mxu0 %v16467_v24  ;;  %2538 = vmatmul.mubr.bf16.vlgmr.msra.gmra.mxu1 %v16467_v24 }
  0x43   :  { %2547 = vmatpush1.bf16.msra.mxu0 %v14212_v25  ;;  %2588 = vmatpush1.bf16.msra.mxu1 %v14215_v26  ;;  %v14310_v25 = vld [vmem:[%s21433_s1 + $0x59c] ss:$100 sps:$4 sm:$0xff]   ;;  %v14313_v26 = vld [vmem:[%s21433_s1 + $0x5a4] ss:$100 sps:$4 sm:$0xff]  }
  0x44   :  { %2548 = vmatprep.subr.bf16.mxu0 %v14220_v27  ;;  %2589 = vmatprep.subr.bf16.mxu1 %v14223_v28  ;;  %v14308_v27 = vld [vmem:[%s21433_s1 + $0x598] ss:$100 sps:$4 sm:$0xff]   ;;  %v14311_v28 = vld [vmem:[%s21433_s1 + $0x5a0] ss:$100 sps:$4 sm:$0xff]  }
  0x45   :  { %2578 = vmatprep.mubr.bf16.mxu0 %v16448_v17  ;;  %2619 = vmatprep.mubr.bf16.mxu1 %v16448_v17 }
  0x47   :  { %2549 = vmatpush1.bf16.msra.mxu0 %v14218_v29  ;;  %2590 = vmatpush1.bf16.msra.mxu1 %v14221_v30  ;;  %v14316_v29 = vld [vmem:[%s21433_s1 + $0x4d4] ss:$100 sps:$4 sm:$0xff]   ;;  %v14319_v30 = vld [vmem:[%s21433_s1 + $0x4dc] ss:$100 sps:$4 sm:$0xff]  }
  0x48   :  { %2550 = vmatprep.subr.bf16.mxu0 %v14226_v31  ;;  %2591 = vmatprep.subr.bf16.mxu1 %v14229_v32  ;;  %v14314_v31 = vld [vmem:[%s21433_s1 + $0x4d0] ss:$100 sps:$4 sm:$0xff]   ;;  %v14317_v32 = vld [vmem:[%s21433_s1 + $0x4d8] ss:$100 sps:$4 sm:$0xff]  }
  0x4b   :  { %2551 = vmatpush1.bf16.msra.mxu0 %v14224_v33  ;;  %2592 = vmatpush1.bf16.msra.mxu1 %v14227_v34  ;;  %v14322_v33 = vld [vmem:[%s21433_s1 + $0x40c] ss:$100 sps:$4 sm:$0xff]   ;;  %v14325_v34 = vld [vmem:[%s21433_s1 + $0x414] ss:$100 sps:$4 sm:$0xff]  }
  0x4c   :  { %2552 = vmatprep.subr.bf16.mxu0 %v14232_v35  ;;  %2593 = vmatprep.subr.bf16.mxu1 %v14235_v36  ;;  %v14320_v35 = vld [vmem:[%s21433_s1 + $0x408] ss:$100 sps:$4 sm:$0xff]   ;;  %v14323_v36 = vld [vmem:[%s21433_s1 + $0x410] ss:$100 sps:$4 sm:$0xff]  }
  0x4f   :  { %2553 = vmatpush1.bf16.msra.mxu0 %v14230_v37  ;;  %2594 = vmatpush1.bf16.msra.mxu1 %v14233_v38  ;;  %v14328_v37 = vld [vmem:[%s21433_s1 + $0x344] ss:$100 sps:$4 sm:$0xff]   ;;  %v14331_v38 = vld [vmem:[%s21433_s1 + $0x34c] ss:$100 sps:$4 sm:$0xff]  }
  0x50   :  { %2554 = vmatprep.subr.bf16.mxu0 %v14238_v39  ;;  %2595 = vmatprep.subr.bf16.mxu1 %v14241_v40  ;;  %v14326_v39 = vld [vmem:[%s21433_s1 + $0x340] ss:$100 sps:$4 sm:$0xff]   ;;  %v14329_v40 = vld [vmem:[%s21433_s1 + $0x348] ss:$100 sps:$4 sm:$0xff]  }
  0x53   :  { %2555 = vmatpush1.bf16.msra.mxu0 %v14236_v41  ;;  %2596 = vmatpush1.bf16.msra.mxu1 %v14239_v42  ;;  %v14334_v41 = vld [vmem:[%s21433_s1 + $0x27c] ss:$100 sps:$4 sm:$0xff]   ;;  %v14337_v42 = vld [vmem:[%s21433_s1 + $0x284] ss:$100 sps:$4 sm:$0xff]  }
  0x54   :  { %2556 = vmatprep.subr.bf16.mxu0 %v14244_v43  ;;  %2597 = vmatprep.subr.bf16.mxu1 %v14247_v44  ;;  %v14332_v43 = vld [vmem:[%s21433_s1 + $0x278] ss:$100 sps:$4 sm:$0xff]   ;;  %v14335_v44 = vld [vmem:[%s21433_s1 + $0x280] ss:$100 sps:$4 sm:$0xff]  }
  0x57   :  { %2557 = vmatpush1.bf16.msra.mxu0 %v14242_v45  ;;  %2598 = vmatpush1.bf16.msra.mxu1 %v14245_v46  ;;  %v14340_v45 = vld [vmem:[%s21433_s1 + $0x1b4] ss:$100 sps:$4 sm:$0xff]   ;;  %v14343_v46 = vld [vmem:[%s21433_s1 + $0x1bc] ss:$100 sps:$4 sm:$0xff]  }
  0x58   :  { %2558 = vmatprep.subr.bf16.mxu0 %v14250_v47  ;;  %2599 = vmatprep.subr.bf16.mxu1 %v14253_v48  ;;  %v14338_v47 = vld [vmem:[%s21433_s1 + $0x1b0] ss:$100 sps:$4 sm:$0xff]   ;;  %v14341_v48 = vld [vmem:[%s21433_s1 + $0x1b8] ss:$100 sps:$4 sm:$0xff]  }
  0x5b   :  { %2559 = vmatpush1.bf16.msra.mxu0 %v14248_v49  ;;  %2600 = vmatpush1.bf16.msra.mxu1 %v14251_v50  ;;  %v14346_v49 = vld [vmem:[%s21433_s1 + $0xec] ss:$100 sps:$4 sm:$0xff]   ;;  %v14349_v50 = vld [vmem:[%s21433_s1 + $0xf4] ss:$100 sps:$4 sm:$0xff]  }
  0x5c   :  { %2560 = vmatprep.subr.bf16.mxu0 %v14256_v51  ;;  %2601 = vmatprep.subr.bf16.mxu1 %v14259_v52  ;;  %v14344_v51 = vld [vmem:[%s21433_s1 + $0xe8] ss:$100 sps:$4 sm:$0xff]   ;;  %v14347_v52 = vld [vmem:[%s21433_s1 + $0xf0] ss:$100 sps:$4 sm:$0xff]  }
  0x5f   :  { %2561 = vmatpush1.bf16.msra.mxu0 %v14254_v53  ;;  %2602 = vmatpush1.bf16.msra.mxu1 %v14257_v54  ;;  %v14352_v53 = vld [vmem:[%s21433_s1 + $0x24] ss:$100 sps:$4 sm:$0xff]   ;;  %v14355_v54 = vld [vmem:[%s21433_s1 + $0x2c] ss:$100 sps:$4 sm:$0xff]  }
  0x60   :  { %2562 = vmatprep.subr.bf16.mxu0 %v14262_v55  ;;  %2603 = vmatprep.subr.bf16.mxu1 %v14265_v56  ;;  %v14350_v55 = vld [vmem:[%s21433_s1 + $0x20] ss:$100 sps:$4 sm:$0xff]   ;;  %v14353_v56 = vld [vmem:[%s21433_s1 + $0x28] ss:$100 sps:$4 sm:$0xff]  }
  0x63   :  { %2563 = vmatpush2.bf16.msra.mxu0 %v14260_v57  ;;  %2604 = vmatpush2.bf16.msra.mxu1 %v14263_v58  ;;  %v14358_v57 = vld [vmem:[%s21433_s1 + $0xbdc] ss:$100 sps:$4 sm:$0xff]   ;;  %v14361_v58 = vld [vmem:[%s21433_s1 + $0xbe4] ss:$100 sps:$4 sm:$0xff]  }
  0x64   :  { %2564 = vmatprep.subr.bf16.mxu0 %v14268_v59  ;;  %2605 = vmatprep.subr.bf16.mxu1 %v14271_v60  ;;  %v14356_v59 = vld [vmem:[%s21433_s1 + $0xbd8] ss:$100 sps:$4 sm:$0xff]   ;;  %v14359_v60 = vld [vmem:[%s21433_s1 + $0xbe0] ss:$100 sps:$4 sm:$0xff]  }
  0x67   :  { %2565 = vmatpush2.bf16.msra.mxu0 %v14266_v61  ;;  %2606 = vmatpush2.bf16.msra.mxu1 %v14269_v62  ;;  %v14364_v61 = vld [vmem:[%s21433_s1 + $0xb14] ss:$100 sps:$4 sm:$0xff]   ;;  %v14367_v62 = vld [vmem:[%s21433_s1 + $0xb1c] ss:$100 sps:$4 sm:$0xff]  }
  0x68   :  { %2566 = vmatprep.subr.bf16.mxu0 %v14274_v63  ;;  %2607 = vmatprep.subr.bf16.mxu1 %v14277_v0  ;;  %v14362_v63 = vld [vmem:[%s21433_s1 + $0xb10] ss:$100 sps:$4 sm:$0xff]   ;;  %v14365_v0 = vld [vmem:[%s21433_s1 + $0xb18] ss:$100 sps:$4 sm:$0xff]  }
  0x6b   :  { %2567 = vmatpush2.bf16.msra.mxu0 %v14272_v1  ;;  %2608 = vmatpush2.bf16.msra.mxu1 %v14275_v2  ;;  %v14370_v1 = vld [vmem:[%s21433_s1 + $0xa4c] ss:$100 sps:$4 sm:$0xff]   ;;  %v14373_v2 = vld [vmem:[%s21433_s1 + $0xa54] ss:$100 sps:$4 sm:$0xff]  }
  0x6c   :  { %2568 = vmatprep.subr.bf16.mxu0 %v14280_v3  ;;  %2609 = vmatprep.subr.bf16.mxu1 %v14283_v4  ;;  %v14368_v3 = vld [vmem:[%s21433_s1 + $0xa48] ss:$100 sps:$4 sm:$0xff]   ;;  %v14371_v4 = vld [vmem:[%s21433_s1 + $0xa50] ss:$100 sps:$4 sm:$0xff]  }
  0x6f   :  { %2569 = vmatpush2.bf16.msra.mxu0 %v14278_v5  ;;  %2610 = vmatpush2.bf16.msra.mxu1 %v14281_v6  ;;  %v14376_v5 = vld [vmem:[%s21433_s1 + $0x984] ss:$100 sps:$4 sm:$0xff]   ;;  %v14379_v6 = vld [vmem:[%s21433_s1 + $0x98c] ss:$100 sps:$4 sm:$0xff]  }
  0x70   :  { %2570 = vmatprep.subr.bf16.mxu0 %v14286_v7  ;;  %2611 = vmatprep.subr.bf16.mxu1 %v14289_v8  ;;  %v14374_v7 = vld [vmem:[%s21433_s1 + $0x980] ss:$100 sps:$4 sm:$0xff]   ;;  %v14377_v8 = vld [vmem:[%s21433_s1 + $0x988] ss:$100 sps:$4 sm:$0xff]  }
  0x73   :  { %2571 = vmatpush2.bf16.msra.mxu0 %v14284_v9  ;;  %2612 = vmatpush2.bf16.msra.mxu1 %v14287_v10  ;;  %v14382_v9 = vld [vmem:[%s21433_s1 + $0x8bc] ss:$100 sps:$4 sm:$0xff]   ;;  %v14385_v10 = vld [vmem:[%s21433_s1 + $0x8c4] ss:$100 sps:$4 sm:$0xff]  }
  0x74   :  { %2572 = vmatprep.subr.bf16.mxu0 %v14292_v11  ;;  %2613 = vmatprep.subr.bf16.mxu1 %v14295_v12  ;;  %v14380_v11 = vld [vmem:[%s21433_s1 + $0x8b8] ss:$100 sps:$4 sm:$0xff]   ;;  %v14383_v12 = vld [vmem:[%s21433_s1 + $0x8c0] ss:$100 sps:$4 sm:$0xff]  }
  0x77   :  { %2573 = vmatpush2.bf16.msra.mxu0 %v14290_v13  ;;  %2614 = vmatpush2.bf16.msra.mxu1 %v14293_v14  ;;  %v14388_v13 = vld [vmem:[%s21433_s1 + $0x7f4] ss:$100 sps:$4 sm:$0xff]   ;;  %v14391_v14 = vld [vmem:[%s21433_s1 + $0x7fc] ss:$100 sps:$4 sm:$0xff]  }
  0x78   :  { %2574 = vmatprep.subr.bf16.mxu0 %v14298_v15  ;;  %2615 = vmatprep.subr.bf16.mxu1 %v14301_v16  ;;  %v14386_v15 = vld [vmem:[%s21433_s1 + $0x7f0] ss:$100 sps:$4 sm:$0xff]   ;;  %v14389_v16 = vld [vmem:[%s21433_s1 + $0x7f8] ss:$100 sps:$4 sm:$0xff]  }
  0x7b   :  { %2575 = vmatpush2.bf16.msra.mxu0 %v14296_v18  ;;  %2616 = vmatpush2.bf16.msra.mxu1 %v14299_v19  ;;  %v14394_v18 = vld [vmem:[%s21433_s1 + $0x72c] ss:$100 sps:$4 sm:$0xff]   ;;  %v14397_v19 = vld [vmem:[%s21433_s1 + $0x734] ss:$100 sps:$4 sm:$0xff]  }
  0x7c   :  { %2576 = vmatprep.subr.bf16.mxu0 %v14304_v20  ;;  %2617 = vmatprep.subr.bf16.mxu1 %v14307_v21  ;;  %v14392_v20 = vld [vmem:[%s21433_s1 + $0x728] ss:$100 sps:$4 sm:$0xff]   ;;  %v14395_v21 = vld [vmem:[%s21433_s1 + $0x730] ss:$100 sps:$4 sm:$0xff]  }
  0x7f   :  { %2577 = vmatpush2.bf16.msra.mxu0 %v14302_v22  ;;  %2618 = vmatpush2.bf16.msra.mxu1 %v14305_v23  ;;  %v14400_v22 = vld [vmem:[%s21433_s1 + $0x664] ss:$100 sps:$4 sm:$0xff]   ;;  %v14403_v23 = vld [vmem:[%s21433_s1 + $0x66c] ss:$100 sps:$4 sm:$0xff]  }
  0x80   :  { %2628 = vmatprep.subr.bf16.mxu0 %v14310_v25  ;;  %2669 = vmatprep.subr.bf16.mxu1 %v14313_v26  ;;  %v14398_v25 = vld [vmem:[%s21433_s1 + $0x660] ss:$100 sps:$4 sm:$0xff]   ;;  %v14401_v26 = vld [vmem:[%s21433_s1 + $0x668] ss:$100 sps:$4 sm:$0xff]  }
  0x82   :  { %2579 = vmatmul.mubr.bf16.vlgmr.msra.gmra.mxu0 %v16467_v24  ;;  %2620 = vmatmul.mubr.bf16.vlgmr.msra.gmra.mxu1 %v16467_v24 }
  0x83   :  { %2629 = vmatpush1.bf16.msra.mxu0 %v14308_v27  ;;  %2670 = vmatpush1.bf16.msra.mxu1 %v14311_v28  ;;  %v14406_v27 = vld [vmem:[%s21433_s1 + $0x5ac] ss:$100 sps:$4 sm:$0xff]   ;;  %v14409_v28 = vld [vmem:[%s21433_s1 + $0x5b4] ss:$100 sps:$4 sm:$0xff]  }
  0x84   :  { %2630 = vmatprep.subr.bf16.mxu0 %v14316_v29  ;;  %2671 = vmatprep.subr.bf16.mxu1 %v14319_v30  ;;  %v14404_v29 = vld [vmem:[%s21433_s1 + $0x5a8] ss:$100 sps:$4 sm:$0xff]   ;;  %v14407_v30 = vld [vmem:[%s21433_s1 + $0x5b0] ss:$100 sps:$4 sm:$0xff]  }
  0x85   :  { %2660 = vmatprep.mubr.bf16.mxu0 %v16448_v17  ;;  %2701 = vmatprep.mubr.bf16.mxu1 %v16448_v17 }
  0x87   :  { %2631 = vmatpush1.bf16.msra.mxu0 %v14314_v31  ;;  %2672 = vmatpush1.bf16.msra.mxu1 %v14317_v32  ;;  %v14412_v31 = vld [vmem:[%s21433_s1 + $0x4e4] ss:$100 sps:$4 sm:$0xff]   ;;  %v14415_v32 = vld [vmem:[%s21433_s1 + $0x4ec] ss:$100 sps:$4 sm:$0xff]  }
  0x88   :  { %2632 = vmatprep.subr.bf16.mxu0 %v14322_v33  ;;  %2673 = vmatprep.subr.bf16.mxu1 %v14325_v34  ;;  %v14410_v33 = vld [vmem:[%s21433_s1 + $0x4e0] ss:$100 sps:$4 sm:$0xff]   ;;  %v14413_v34 = vld [vmem:[%s21433_s1 + $0x4e8] ss:$100 sps:$4 sm:$0xff]  }
  0x8b   :  { %2633 = vmatpush1.bf16.msra.mxu0 %v14320_v35  ;;  %2674 = vmatpush1.bf16.msra.mxu1 %v14323_v36  ;;  %v14418_v35 = vld [vmem:[%s21433_s1 + $0x41c] ss:$100 sps:$4 sm:$0xff]   ;;  %v14421_v36 = vld [vmem:[%s21433_s1 + $0x424] ss:$100 sps:$4 sm:$0xff]  }
  0x8c   :  { %2634 = vmatprep.subr.bf16.mxu0 %v14328_v37  ;;  %2675 = vmatprep.subr.bf16.mxu1 %v14331_v38  ;;  %v14416_v37 = vld [vmem:[%s21433_s1 + $0x418] ss:$100 sps:$4 sm:$0xff]   ;;  %v14419_v38 = vld [vmem:[%s21433_s1 + $0x420] ss:$100 sps:$4 sm:$0xff]  }
  0x8f   :  { %2635 = vmatpush1.bf16.msra.mxu0 %v14326_v39  ;;  %2676 = vmatpush1.bf16.msra.mxu1 %v14329_v40  ;;  %v14424_v39 = vld [vmem:[%s21433_s1 + $0x354] ss:$100 sps:$4 sm:$0xff]   ;;  %v14427_v40 = vld [vmem:[%s21433_s1 + $0x35c] ss:$100 sps:$4 sm:$0xff]  }
  0x90   :  { %2636 = vmatprep.subr.bf16.mxu0 %v14334_v41  ;;  %2677 = vmatprep.subr.bf16.mxu1 %v14337_v42  ;;  %v14422_v41 = vld [vmem:[%s21433_s1 + $0x350] ss:$100 sps:$4 sm:$0xff]   ;;  %v14425_v42 = vld [vmem:[%s21433_s1 + $0x358] ss:$100 sps:$4 sm:$0xff]  }
  0x93   :  { %2637 = vmatpush1.bf16.msra.mxu0 %v14332_v43  ;;  %2678 = vmatpush1.bf16.msra.mxu1 %v14335_v44  ;;  %v14430_v43 = vld [vmem:[%s21433_s1 + $0x28c] ss:$100 sps:$4 sm:$0xff]   ;;  %v14433_v44 = vld [vmem:[%s21433_s1 + $0x294] ss:$100 sps:$4 sm:$0xff]  }
  0x94   :  { %2638 = vmatprep.subr.bf16.mxu0 %v14340_v45  ;;  %2679 = vmatprep.subr.bf16.mxu1 %v14343_v46  ;;  %v14428_v45 = vld [vmem:[%s21433_s1 + $0x288] ss:$100 sps:$4 sm:$0xff]   ;;  %v14431_v46 = vld [vmem:[%s21433_s1 + $0x290] ss:$100 sps:$4 sm:$0xff]  }
  0x97   :  { %2639 = vmatpush1.bf16.msra.mxu0 %v14338_v47  ;;  %2680 = vmatpush1.bf16.msra.mxu1 %v14341_v48  ;;  %v14436_v47 = vld [vmem:[%s21433_s1 + $0x1c4] ss:$100 sps:$4 sm:$0xff]   ;;  %v14439_v48 = vld [vmem:[%s21433_s1 + $0x1cc] ss:$100 sps:$4 sm:$0xff]  }
  0x98   :  { %2640 = vmatprep.subr.bf16.mxu0 %v14346_v49  ;;  %2681 = vmatprep.subr.bf16.mxu1 %v14349_v50  ;;  %v14434_v49 = vld [vmem:[%s21433_s1 + $0x1c0] ss:$100 sps:$4 sm:$0xff]   ;;  %v14437_v50 = vld [vmem:[%s21433_s1 + $0x1c8] ss:$100 sps:$4 sm:$0xff]  }
  0x9b   :  { %2641 = vmatpush1.bf16.msra.mxu0 %v14344_v51  ;;  %2682 = vmatpush1.bf16.msra.mxu1 %v14347_v52  ;;  %v14442_v51 = vld [vmem:[%s21433_s1 + $0xfc] ss:$100 sps:$4 sm:$0xff]   ;;  %v14445_v52 = vld [vmem:[%s21433_s1 + $0x104] ss:$100 sps:$4 sm:$0xff]  }
  0x9c   :  { %2642 = vmatprep.subr.bf16.mxu0 %v14352_v53  ;;  %2683 = vmatprep.subr.bf16.mxu1 %v14355_v54  ;;  %v14440_v53 = vld [vmem:[%s21433_s1 + $0xf8] ss:$100 sps:$4 sm:$0xff]   ;;  %v14443_v54 = vld [vmem:[%s21433_s1 + $0x100] ss:$100 sps:$4 sm:$0xff]  }
  0x9f   :  { %2643 = vmatpush1.bf16.msra.mxu0 %v14350_v55  ;;  %2684 = vmatpush1.bf16.msra.mxu1 %v14353_v56  ;;  %v14448_v55 = vld [vmem:[%s21433_s1 + $0x34] ss:$100 sps:$4 sm:$0xff]   ;;  %v14451_v56 = vld [vmem:[%s21433_s1 + $0x3c] ss:$100 sps:$4 sm:$0xff]  }
  0xa0   :  { %2644 = vmatprep.subr.bf16.mxu0 %v14358_v57  ;;  %2685 = vmatprep.subr.bf16.mxu1 %v14361_v58  ;;  %v14446_v57 = vld [vmem:[%s21433_s1 + $0x30] ss:$100 sps:$4 sm:$0xff]   ;;  %v14449_v58 = vld [vmem:[%s21433_s1 + $0x38] ss:$100 sps:$4 sm:$0xff]  }
  0xa3   :  { %2645 = vmatpush2.bf16.msra.mxu0 %v14356_v59  ;;  %2686 = vmatpush2.bf16.msra.mxu1 %v14359_v60  ;;  %v14454_v59 = vld [vmem:[%s21433_s1 + $0xbec] ss:$100 sps:$4 sm:$0xff]   ;;  %v14457_v60 = vld [vmem:[%s21433_s1 + $0xbf4] ss:$100 sps:$4 sm:$0xff]  }
  0xa4   :  { %2646 = vmatprep.subr.bf16.mxu0 %v14364_v61  ;;  %2687 = vmatprep.subr.bf16.mxu1 %v14367_v62  ;;  %v14452_v61 = vld [vmem:[%s21433_s1 + $0xbe8] ss:$100 sps:$4 sm:$0xff]   ;;  %v14455_v62 = vld [vmem:[%s21433_s1 + $0xbf0] ss:$100 sps:$4 sm:$0xff]  }
  0xa7   :  { %2647 = vmatpush2.bf16.msra.mxu0 %v14362_v63  ;;  %2688 = vmatpush2.bf16.msra.mxu1 %v14365_v0  ;;  %v14460_v63 = vld [vmem:[%s21433_s1 + $0xb24] ss:$100 sps:$4 sm:$0xff]   ;;  %v14463_v0 = vld [vmem:[%s21433_s1 + $0xb2c] ss:$100 sps:$4 sm:$0xff]  }
  0xa8   :  { %2648 = vmatprep.subr.bf16.mxu0 %v14370_v1  ;;  %2689 = vmatprep.subr.bf16.mxu1 %v14373_v2  ;;  %v14458_v1 = vld [vmem:[%s21433_s1 + $0xb20] ss:$100 sps:$4 sm:$0xff]   ;;  %v14461_v2 = vld [vmem:[%s21433_s1 + $0xb28] ss:$100 sps:$4 sm:$0xff]  }
  0xab   :  { %2649 = vmatpush2.bf16.msra.mxu0 %v14368_v3  ;;  %2690 = vmatpush2.bf16.msra.mxu1 %v14371_v4  ;;  %v14466_v3 = vld [vmem:[%s21433_s1 + $0xa5c] ss:$100 sps:$4 sm:$0xff]   ;;  %v14469_v4 = vld [vmem:[%s21433_s1 + $0xa64] ss:$100 sps:$4 sm:$0xff]  }
  0xac   :  { %2650 = vmatprep.subr.bf16.mxu0 %v14376_v5  ;;  %2691 = vmatprep.subr.bf16.mxu1 %v14379_v6  ;;  %v14464_v5 = vld [vmem:[%s21433_s1 + $0xa58] ss:$100 sps:$4 sm:$0xff]   ;;  %v14467_v6 = vld [vmem:[%s21433_s1 + $0xa60] ss:$100 sps:$4 sm:$0xff]  }
  0xaf   :  { %2651 = vmatpush2.bf16.msra.mxu0 %v14374_v7  ;;  %2692 = vmatpush2.bf16.msra.mxu1 %v14377_v8  ;;  %v14472_v7 = vld [vmem:[%s21433_s1 + $0x994] ss:$100 sps:$4 sm:$0xff]   ;;  %v14475_v8 = vld [vmem:[%s21433_s1 + $0x99c] ss:$100 sps:$4 sm:$0xff]  }
  0xb0   :  { %2652 = vmatprep.subr.bf16.mxu0 %v14382_v9  ;;  %2693 = vmatprep.subr.bf16.mxu1 %v14385_v10  ;;  %v14470_v9 = vld [vmem:[%s21433_s1 + $0x990] ss:$100 sps:$4 sm:$0xff]   ;;  %v14473_v10 = vld [vmem:[%s21433_s1 + $0x998] ss:$100 sps:$4 sm:$0xff]  }
  0xb3   :  { %2653 = vmatpush2.bf16.msra.mxu0 %v14380_v11  ;;  %2694 = vmatpush2.bf16.msra.mxu1 %v14383_v12  ;;  %v14478_v11 = vld [vmem:[%s21433_s1 + $0x8cc] ss:$100 sps:$4 sm:$0xff]   ;;  %v14481_v12 = vld [vmem:[%s21433_s1 + $0x8d4] ss:$100 sps:$4 sm:$0xff]  }
  0xb4   :  { %2654 = vmatprep.subr.bf16.mxu0 %v14388_v13  ;;  %2695 = vmatprep.subr.bf16.mxu1 %v14391_v14  ;;  %v14476_v13 = vld [vmem:[%s21433_s1 + $0x8c8] ss:$100 sps:$4 sm:$0xff]   ;;  %v14479_v14 = vld [vmem:[%s21433_s1 + $0x8d0] ss:$100 sps:$4 sm:$0xff]  }
  0xb7   :  { %2655 = vmatpush2.bf16.msra.mxu0 %v14386_v15  ;;  %2696 = vmatpush2.bf16.msra.mxu1 %v14389_v16  ;;  %v14484_v15 = vld [vmem:[%s21433_s1 + $0x804] ss:$100 sps:$4 sm:$0xff]   ;;  %v14487_v16 = vld [vmem:[%s21433_s1 + $0x80c] ss:$100 sps:$4 sm:$0xff]  }
  0xb8   :  { %2656 = vmatprep.subr.bf16.mxu0 %v14394_v18  ;;  %2697 = vmatprep.subr.bf16.mxu1 %v14397_v19  ;;  %v14482_v18 = vld [vmem:[%s21433_s1 + $0x800] ss:$100 sps:$4 sm:$0xff]   ;;  %v14485_v19 = vld [vmem:[%s21433_s1 + $0x808] ss:$100 sps:$4 sm:$0xff]  }
  0xbb   :  { %2657 = vmatpush2.bf16.msra.mxu0 %v14392_v20  ;;  %2698 = vmatpush2.bf16.msra.mxu1 %v14395_v21  ;;  %v14490_v20 = vld [vmem:[%s21433_s1 + $0x73c] ss:$100 sps:$4 sm:$0xff]   ;;  %v14493_v21 = vld [vmem:[%s21433_s1 + $0x744] ss:$100 sps:$4 sm:$0xff]  }
  0xbc   :  { %2658 = vmatprep.subr.bf16.mxu0 %v14400_v22  ;;  %2699 = vmatprep.subr.bf16.mxu1 %v14403_v23  ;;  %v14488_v22 = vld [vmem:[%s21433_s1 + $0x738] ss:$100 sps:$4 sm:$0xff]   ;;  %v14491_v23 = vld [vmem:[%s21433_s1 + $0x740] ss:$100 sps:$4 sm:$0xff]  }
  0xbf   :  { %2659 = vmatpush2.bf16.msra.mxu0 %v14398_v25  ;;  %2700 = vmatpush2.bf16.msra.mxu1 %v14401_v26  ;;  %v14496_v25 = vld [vmem:[%s21433_s1 + $0x674] ss:$100 sps:$4 sm:$0xff]   ;;  %v14499_v26 = vld [vmem:[%s21433_s1 + $0x67c] ss:$100 sps:$4 sm:$0xff]  }
  0xc0   :  { %2710 = vmatprep.subr.bf16.mxu0 %v14406_v27  ;;  %2751 = vmatprep.subr.bf16.mxu1 %v14409_v28  ;;  %v14494_v27 = vld [vmem:[%s21433_s1 + $0x670] ss:$100 sps:$4 sm:$0xff]   ;;  %v14497_v28 = vld [vmem:[%s21433_s1 + $0x678] ss:$100 sps:$4 sm:$0xff]  }
  0xc2   :  { %2661 = vmatmul.mubr.bf16.vlgmr.msra.gmra.mxu0 %v16467_v24  ;;  %2702 = vmatmul.mubr.bf16.vlgmr.msra.gmra.mxu1 %v16467_v24 }
  0xc3   :  { %2711 = vmatpush1.bf16.msra.mxu0 %v14404_v29  ;;  %2752 = vmatpush1.bf16.msra.mxu1 %v14407_v30  ;;  %v14502_v29 = vld [vmem:[%s21433_s1 + $0x5bc] ss:$100 sps:$4 sm:$0xff]   ;;  %v14505_v30 = vld [vmem:[%s21433_s1 + $0x5c4] ss:$100 sps:$4 sm:$0xff]  }
  0xc4   :  { %2712 = vmatprep.subr.bf16.mxu0 %v14412_v31  ;;  %2753 = vmatprep.subr.bf16.mxu1 %v14415_v32  ;;  %v14500_v31 = vld [vmem:[%s21433_s1 + $0x5b8] ss:$100 sps:$4 sm:$0xff]   ;;  %v14503_v32 = vld [vmem:[%s21433_s1 + $0x5c0] ss:$100 sps:$4 sm:$0xff]  }
  0xc5   :  { %2742 = vmatprep.mubr.bf16.mxu0 %v16448_v17  ;;  %2783 = vmatprep.mubr.bf16.mxu1 %v16448_v17 }
  0xc7   :  { %2713 = vmatpush1.bf16.msra.mxu0 %v14410_v33  ;;  %2754 = vmatpush1.bf16.msra.mxu1 %v14413_v34  ;;  %v14508_v33 = vld [vmem:[%s21433_s1 + $0x4f4] ss:$100 sps:$4 sm:$0xff]   ;;  %v14511_v34 = vld [vmem:[%s21433_s1 + $0x4fc] ss:$100 sps:$4 sm:$0xff]  }
  0xc8   :  { %2714 = vmatprep.subr.bf16.mxu0 %v14418_v35  ;;  %2755 = vmatprep.subr.bf16.mxu1 %v14421_v36 }
  0xcb   :  { %2715 = vmatpush1.bf16.msra.mxu0 %v14416_v37  ;;  %2756 = vmatpush1.bf16.msra.mxu1 %v14419_v38  ;;  %v14506_v37 = vld [vmem:[%s21433_s1 + $0x4f0] ss:$100 sps:$4 sm:$0xff]   ;;  %v14509_v38 = vld [vmem:[%s21433_s1 + $0x4f8] ss:$100 sps:$4 sm:$0xff]  }
  0xcc   :  { %2716 = vmatprep.subr.bf16.mxu0 %v14424_v39  ;;  %2757 = vmatprep.subr.bf16.mxu1 %v14427_v40 }
  0xcf   :  { %2717 = vmatpush1.bf16.msra.mxu0 %v14422_v41  ;;  %2758 = vmatpush1.bf16.msra.mxu1 %v14425_v42  ;;  %v14514_v41 = vld [vmem:[%s21433_s1 + $0x42c] ss:$100 sps:$4 sm:$0xff]   ;;  %v14517_v42 = vld [vmem:[%s21433_s1 + $0x434] ss:$100 sps:$4 sm:$0xff]  }
  0xd0   :  { %2718 = vmatprep.subr.bf16.mxu0 %v14430_v43  ;;  %2759 = vmatprep.subr.bf16.mxu1 %v14433_v44 }
  0xd3   :  { %2719 = vmatpush1.bf16.msra.mxu0 %v14428_v45  ;;  %2760 = vmatpush1.bf16.msra.mxu1 %v14431_v46  ;;  %v14512_v45 = vld [vmem:[%s21433_s1 + $0x428] ss:$100 sps:$4 sm:$0xff]   ;;  %v14515_v46 = vld [vmem:[%s21433_s1 + $0x430] ss:$100 sps:$4 sm:$0xff]  }
  0xd4   :  { %2720 = vmatprep.subr.bf16.mxu0 %v14436_v47  ;;  %2761 = vmatprep.subr.bf16.mxu1 %v14439_v48 }
  0xd7   :  { %2721 = vmatpush1.bf16.msra.mxu0 %v14434_v49  ;;  %2762 = vmatpush1.bf16.msra.mxu1 %v14437_v50  ;;  %v14520_v49 = vld [vmem:[%s21433_s1 + $0x364] ss:$100 sps:$4 sm:$0xff]   ;;  %v14523_v50 = vld [vmem:[%s21433_s1 + $0x36c] ss:$100 sps:$4 sm:$0xff]  }
  0xd8   :  { %2722 = vmatprep.subr.bf16.mxu0 %v14442_v51  ;;  %2763 = vmatprep.subr.bf16.mxu1 %v14445_v52  ;;  %v14518_v51 = vld [vmem:[%s21433_s1 + $0x360] ss:$100 sps:$4 sm:$0xff]   ;;  %v14521_v52 = vld [vmem:[%s21433_s1 + $0x368] ss:$100 sps:$4 sm:$0xff]  }
  0xdb   :  { %2723 = vmatpush1.bf16.msra.mxu0 %v14440_v53  ;;  %2764 = vmatpush1.bf16.msra.mxu1 %v14443_v54  ;;  %v14526_v53 = vld [vmem:[%s21433_s1 + $0x29c] ss:$100 sps:$4 sm:$0xff]   ;;  %v14529_v54 = vld [vmem:[%s21433_s1 + $0x2a4] ss:$100 sps:$4 sm:$0xff]  }
  0xdc   :  { %2724 = vmatprep.subr.bf16.mxu0 %v14448_v55  ;;  %2765 = vmatprep.subr.bf16.mxu1 %v14451_v56  ;;  %v14524_v55 = vld [vmem:[%s21433_s1 + $0x298] ss:$100 sps:$4 sm:$0xff]   ;;  %v14527_v56 = vld [vmem:[%s21433_s1 + $0x2a0] ss:$100 sps:$4 sm:$0xff]  }
  0xdf   :  { %2725 = vmatpush1.bf16.msra.mxu0 %v14446_v57  ;;  %2766 = vmatpush1.bf16.msra.mxu1 %v14449_v58  ;;  %v14532_v57 = vld [vmem:[%s21433_s1 + $0x1d4] ss:$100 sps:$4 sm:$0xff]   ;;  %v14535_v58 = vld [vmem:[%s21433_s1 + $0x1dc] ss:$100 sps:$4 sm:$0xff]  }
  0xe0   :  { %2726 = vmatprep.subr.bf16.mxu0 %v14454_v59  ;;  %2767 = vmatprep.subr.bf16.mxu1 %v14457_v60  ;;  %v14530_v59 = vld [vmem:[%s21433_s1 + $0x1d0] ss:$100 sps:$4 sm:$0xff]   ;;  %v14533_v60 = vld [vmem:[%s21433_s1 + $0x1d8] ss:$100 sps:$4 sm:$0xff]  }
  0xe3   :  { %2727 = vmatpush2.bf16.msra.mxu0 %v14452_v61  ;;  %2768 = vmatpush2.bf16.msra.mxu1 %v14455_v62  ;;  %v14538_v61 = vld [vmem:[%s21433_s1 + $0x10c] ss:$100 sps:$4 sm:$0xff]   ;;  %v14541_v62 = vld [vmem:[%s21433_s1 + $0x114] ss:$100 sps:$4 sm:$0xff]  }
  0xe4   :  { %2728 = vmatprep.subr.bf16.mxu0 %v14460_v63  ;;  %2769 = vmatprep.subr.bf16.mxu1 %v14463_v0  ;;  %v14536_v63 = vld [vmem:[%s21433_s1 + $0x108] ss:$100 sps:$4 sm:$0xff]   ;;  %v14539_v0 = vld [vmem:[%s21433_s1 + $0x110] ss:$100 sps:$4 sm:$0xff]  }
  0xe7   :  { %2729 = vmatpush2.bf16.msra.mxu0 %v14458_v1  ;;  %2770 = vmatpush2.bf16.msra.mxu1 %v14461_v2  ;;  %v14544_v1 = vld [vmem:[%s21433_s1 + $0x44] ss:$100 sps:$4 sm:$0xff]   ;;  %v14547_v2 = vld [vmem:[%s21433_s1 + $0x4c] ss:$100 sps:$4 sm:$0xff]  }
  0xe8   :  { %2730 = vmatprep.subr.bf16.mxu0 %v14466_v3  ;;  %2771 = vmatprep.subr.bf16.mxu1 %v14469_v4  ;;  %v14542_v3 = vld [vmem:[%s21433_s1 + $0x40] ss:$100 sps:$4 sm:$0xff]   ;;  %v14545_v4 = vld [vmem:[%s21433_s1 + $0x48] ss:$100 sps:$4 sm:$0xff]  }
  0xeb   :  { %2731 = vmatpush2.bf16.msra.mxu0 %v14464_v5  ;;  %2772 = vmatpush2.bf16.msra.mxu1 %v14467_v6  ;;  %v14550_v5 = vld [vmem:[%s21433_s1 + $0xbfc] ss:$100 sps:$4 sm:$0xff]   ;;  %v14553_v6 = vld [vmem:[%s21433_s1 + $0xc04] ss:$100 sps:$4 sm:$0xff]  }
  0xec   :  { %2732 = vmatprep.subr.bf16.mxu0 %v14472_v7  ;;  %2773 = vmatprep.subr.bf16.mxu1 %v14475_v8  ;;  %v14548_v7 = vld [vmem:[%s21433_s1 + $0xbf8] ss:$100 sps:$4 sm:$0xff]   ;;  %v14551_v8 = vld [vmem:[%s21433_s1 + $0xc00] ss:$100 sps:$4 sm:$0xff]  }
  0xef   :  { %2733 = vmatpush2.bf16.msra.mxu0 %v14470_v9  ;;  %2774 = vmatpush2.bf16.msra.mxu1 %v14473_v10  ;;  %v14556_v9 = vld [vmem:[%s21433_s1 + $0xb34] ss:$100 sps:$4 sm:$0xff]   ;;  %v14559_v10 = vld [vmem:[%s21433_s1 + $0xb3c] ss:$100 sps:$4 sm:$0xff]  }
  0xf0   :  { %2734 = vmatprep.subr.bf16.mxu0 %v14478_v11  ;;  %2775 = vmatprep.subr.bf16.mxu1 %v14481_v12  ;;  %v14554_v11 = vld [vmem:[%s21433_s1 + $0xb30] ss:$100 sps:$4 sm:$0xff]   ;;  %v14557_v12 = vld [vmem:[%s21433_s1 + $0xb38] ss:$100 sps:$4 sm:$0xff]  }
  0xf3   :  { %2735 = vmatpush2.bf16.msra.mxu0 %v14476_v13  ;;  %2776 = vmatpush2.bf16.msra.mxu1 %v14479_v14  ;;  %v14562_v13 = vld [vmem:[%s21433_s1 + $0xa6c] ss:$100 sps:$4 sm:$0xff]   ;;  %v14565_v14 = vld [vmem:[%s21433_s1 + $0xa74] ss:$100 sps:$4 sm:$0xff]  }
  0xf4   :  { %2736 = vmatprep.subr.bf16.mxu0 %v14484_v15  ;;  %2777 = vmatprep.subr.bf16.mxu1 %v14487_v16  ;;  %v14560_v15 = vld [vmem:[%s21433_s1 + $0xa68] ss:$100 sps:$4 sm:$0xff]   ;;  %v14563_v16 = vld [vmem:[%s21433_s1 + $0xa70] ss:$100 sps:$4 sm:$0xff]  }
  0xf7   :  { %2737 = vmatpush2.bf16.msra.mxu0 %v14482_v18  ;;  %2778 = vmatpush2.bf16.msra.mxu1 %v14485_v19  ;;  %v14568_v18 = vld [vmem:[%s21433_s1 + $0x9a4] ss:$100 sps:$4 sm:$0xff]   ;;  %v14571_v19 = vld [vmem:[%s21433_s1 + $0x9ac] ss:$100 sps:$4 sm:$0xff]  }
  0xf8   :  { %2738 = vmatprep.subr.bf16.mxu0 %v14490_v20  ;;  %2779 = vmatprep.subr.bf16.mxu1 %v14493_v21  ;;  %v14566_v20 = vld [vmem:[%s21433_s1 + $0x9a0] ss:$100 sps:$4 sm:$0xff]   ;;  %v14569_v21 = vld [vmem:[%s21433_s1 + $0x9a8] ss:$100 sps:$4 sm:$0xff]  }
  0xfb   :  { %2739 = vmatpush2.bf16.msra.mxu0 %v14488_v22  ;;  %2780 = vmatpush2.bf16.msra.mxu1 %v14491_v23  ;;  %v14574_v22 = vld [vmem:[%s21433_s1 + $0x8dc] ss:$100 sps:$4 sm:$0xff]   ;;  %v14577_v23 = vld [vmem:[%s21433_s1 + $0x8e4] ss:$100 sps:$4 sm:$0xff]  }
  0xfc   :  { %2740 = vmatprep.subr.bf16.mxu0 %v14496_v25  ;;  %2781 = vmatprep.subr.bf16.mxu1 %v14499_v26  ;;  %v14572_v25 = vld [vmem:[%s21433_s1 + $0x8d8] ss:$100 sps:$4 sm:$0xff]   ;;  %v14575_v26 = vld [vmem:[%s21433_s1 + $0x8e0] ss:$100 sps:$4 sm:$0xff]  }
  0xff   :  { %2741 = vmatpush2.bf16.msra.mxu0 %v14494_v27  ;;  %2782 = vmatpush2.bf16.msra.mxu1 %v14497_v28  ;;  %v14580_v27 = vld [vmem:[%s21433_s1 + $0x814] ss:$100 sps:$4 sm:$0xff]   ;;  %v14583_v28 = vld [vmem:[%s21433_s1 + $0x81c] ss:$100 sps:$4 sm:$0xff]  }
 0x100   :  { %2792 = vmatprep.subr.bf16.mxu0 %v14502_v29  ;;  %2833 = vmatprep.subr.bf16.mxu1 %v14505_v30  ;;  %v14578_v29 = vld [vmem:[%s21433_s1 + $0x810] ss:$100 sps:$4 sm:$0xff]   ;;  %v14581_v30 = vld [vmem:[%s21433_s1 + $0x818] ss:$100 sps:$4 sm:$0xff]  }
 0x102   :  { %v17069_v35 = vpop.f32.mrf.mxu0  ;;  %v17071_v36 = vpop.f32.mrf.mxu1  ;;  %2743 = vmatmul.mubr.bf16.vlgmr.msra.gmra.mxu0 %v16467_v24  ;;  %2784 = vmatmul.mubr.bf16.vlgmr.msra.gmra.mxu1 %v16467_v24 }
 0x103   :  { %2793 = vmatpush1.bf16.msra.mxu0 %v14500_v31  ;;  %2834 = vmatpush1.bf16.msra.mxu1 %v14503_v32  ;;  %v14586_v31 = vld [vmem:[%s21433_s1 + $0x74c] ss:$100 sps:$4 sm:$0xff]   ;;  %v14589_v32 = vld [vmem:[%s21433_s1 + $0x754] ss:$100 sps:$4 sm:$0xff]  }
 0x104   :  { %v17081_v39 = vpop.f32.mrf.mxu0  ;;  %v17083_v40 = vpop.f32.mrf.mxu1  ;;  %2794 = vmatprep.subr.bf16.mxu0 %v14508_v33  ;;  %2835 = vmatprep.subr.bf16.mxu1 %v14511_v34  ;;  %v14584_v33 = vld [vmem:[%s21433_s1 + $0x748] ss:$100 sps:$4 sm:$0xff]   ;;  %v14587_v34 = vld [vmem:[%s21433_s1 + $0x750] ss:$100 sps:$4 sm:$0xff]  }
 0x105   :  { %2824 = vmatprep.mubr.bf16.mxu0 %v16448_v17  ;;  %2865 = vmatprep.mubr.bf16.mxu1 %v16448_v17 }
 0x106   :  { %v2543_v43 = vpop.f32.mrf.mxu1  ;;  %v2502_v44 = vpop.f32.mrf.mxu0 }
 0x107   :  { %2795 = vmatpush1.bf16.msra.mxu0 %v14506_v37  ;;  %2836 = vmatpush1.bf16.msra.mxu1 %v14509_v38  ;;  %v14592_v37 = vld [vmem:[%s21433_s1 + $0x684] ss:$100 sps:$4 sm:$0xff]   ;;  %v14595_v38 = vld [vmem:[%s21433_s1 + $0x68c] ss:$100 sps:$4 sm:$0xff]   ;;  %v14601_v44 = vld [vmem:[%s21433_s1 + $0x5d4] ss:$100 sps:$4 sm:$0xff]  }
 0x108   :  { %v2544_v47 = vpop.f32.mrf.mxu1  ;;  %2796 = vmatprep.subr.bf16.mxu0 %v14514_v41  ;;  %2837 = vmatprep.subr.bf16.mxu1 %v14517_v42  ;;  %v2503_v48 = vpop.f32.mrf.mxu0  ;;  %v14590_v41 = vld [vmem:[%s21433_s1 + $0x680] ss:$100 sps:$4 sm:$0xff]   ;;  %v14593_v42 = vld [vmem:[%s21433_s1 + $0x688] ss:$100 sps:$4 sm:$0xff]  }
 0x109   :  { %v14598_v43 = vld [vmem:[%s21433_s1 + $0x5cc] ss:$100 sps:$4 sm:$0xff]   ;;  %v14604_v47 = vld [vmem:[%s21433_s1 + $0x504] ss:$100 sps:$4 sm:$0xff]  }
 0x10a   :  { %v14607_v48 = vld [vmem:[%s21433_s1 + $0x50c] ss:$100 sps:$4 sm:$0xff]  }
 0x10b   :  { %2797 = vmatpush1.bf16.msra.mxu0 %v14512_v45  ;;  %2838 = vmatpush1.bf16.msra.mxu1 %v14515_v46  ;;  %v14596_v45 = vld [vmem:[%s21433_s1 + $0x5c8] ss:$100 sps:$4 sm:$0xff]   ;;  %v14599_v46 = vld [vmem:[%s21433_s1 + $0x5d0] ss:$100 sps:$4 sm:$0xff]  }
 0x10c   :  { %2798 = vmatprep.subr.bf16.mxu0 %v14520_v49  ;;  %2839 = vmatprep.subr.bf16.mxu1 %v14523_v50  ;;  %v14602_v49 = vld [vmem:[%s21433_s1 + $0x500] ss:$100 sps:$4 sm:$0xff]   ;;  %v14605_v50 = vld [vmem:[%s21433_s1 + $0x508] ss:$100 sps:$4 sm:$0xff]  }
 0x10f   :  { %2799 = vmatpush1.bf16.msra.mxu0 %v14518_v51  ;;  %2840 = vmatpush1.bf16.msra.mxu1 %v14521_v52 }
 0x110   :  { %2800 = vmatprep.subr.bf16.mxu0 %v14526_v53  ;;  %2841 = vmatprep.subr.bf16.mxu1 %v14529_v54  ;;  %v14610_v53 = vld [vmem:[%s21433_s1 + $0x43c] ss:$100 sps:$4 sm:$0xff]   ;;  %v14613_v54 = vld [vmem:[%s21433_s1 + $0x444] ss:$100 sps:$4 sm:$0xff]  }
 0x113   :  { %2801 = vmatpush1.bf16.msra.mxu0 %v14524_v55  ;;  %2842 = vmatpush1.bf16.msra.mxu1 %v14527_v56 }
 0x114   :  { %2802 = vmatprep.subr.bf16.mxu0 %v14532_v57  ;;  %2843 = vmatprep.subr.bf16.mxu1 %v14535_v58  ;;  %v14608_v57 = vld [vmem:[%s21433_s1 + $0x438] ss:$100 sps:$4 sm:$0xff]   ;;  %v14611_v58 = vld [vmem:[%s21433_s1 + $0x440] ss:$100 sps:$4 sm:$0xff]  }
 0x117   :  { %2803 = vmatpush1.bf16.msra.mxu0 %v14530_v59  ;;  %2844 = vmatpush1.bf16.msra.mxu1 %v14533_v60 }
 0x118   :  { %2804 = vmatprep.subr.bf16.mxu0 %v14538_v61  ;;  %2845 = vmatprep.subr.bf16.mxu1 %v14541_v62  ;;  %v14616_v61 = vld [vmem:[%s21433_s1 + $0x374] ss:$100 sps:$4 sm:$0xff]   ;;  %v14619_v62 = vld [vmem:[%s21433_s1 + $0x37c] ss:$100 sps:$4 sm:$0xff]  }
 0x11b   :  { %2805 = vmatpush1.bf16.msra.mxu0 %v14536_v63  ;;  %2846 = vmatpush1.bf16.msra.mxu1 %v14539_v0  ;;  %v13602_v63 = vcvt.f32.s32 %v17081_v39 }
 0x11c   :  { %2806 = vmatprep.subr.bf16.mxu0 %v14544_v1  ;;  %2847 = vmatprep.subr.bf16.mxu1 %v14547_v2  ;;  %v14614_v2 = vld [vmem:[%s21433_s1 + $0x370] ss:$100 sps:$4 sm:$0xff]  }
 0x11f   :  { %2807 = vmatpush1.bf16.msra.mxu0 %v14542_v3  ;;  %2848 = vmatpush1.bf16.msra.mxu1 %v14545_v4  ;;  %v14617_v3 = vld [vmem:[%s21433_s1 + $0x378] ss:$100 sps:$4 sm:$0xff]   ;;  %v14622_v4 = vld [vmem:[%s21433_s1 + $0x2ac] ss:$100 sps:$4 sm:$0xff]  }
 0x120   :  { %2808 = vmatprep.subr.bf16.mxu0 %v14550_v5  ;;  %2849 = vmatprep.subr.bf16.mxu1 %v14553_v6  ;;  %v14625_v5 = vld [vmem:[%s21433_s1 + $0x2b4] ss:$100 sps:$4 sm:$0xff]   ;;  %v13603_v6 = vcvt.s32.f32 %v13602_v63 }
 0x123   :  { %2809 = vmatpush2.bf16.msra.mxu0 %v14548_v7  ;;  %2850 = vmatpush2.bf16.msra.mxu1 %v14551_v8  ;;  %v14620_v7 = vld [vmem:[%s21433_s1 + $0x2a8] ss:$100 sps:$4 sm:$0xff]   ;;  %v14623_v8 = vld [vmem:[%s21433_s1 + $0x2b0] ss:$100 sps:$4 sm:$0xff]  }
 0x124   :  { %2810 = vmatprep.subr.bf16.mxu0 %v14556_v9  ;;  %2851 = vmatprep.subr.bf16.mxu1 %v14559_v10  ;;  %v14628_v9 = vld [vmem:[%s21433_s1 + $0x1e4] ss:$100 sps:$4 sm:$0xff]   ;;  %v13604_v10 = vand.u32 2147483647, %v13603_v6  ;;  %v13616_v6 = vand.u32 2147483647, %v17083_v40 }
 0x126   :  { %vm13617_vm4 = vcmp.lt.f32.partialorder %v13616_v6, 8388608.0  ;;  %v14717_v6 = vld [vmem:[%s21433_s1 + $0x830] ss:$100 sps:$4 sm:$0xff]  }
 0x127   :  { %2811 = vmatpush2.bf16.msra.mxu0 %v14554_v11  ;;  %2852 = vmatpush2.bf16.msra.mxu1 %v14557_v12  ;;  %v13605_v11 = vand.u32 2147483648, %v17081_v39  ;;  %v14631_v12 = vld [vmem:[%s21433_s1 + $0x1ec] ss:$100 sps:$4 sm:$0xff]  }
 0x128   :  { %2812 = vmatprep.subr.bf16.mxu0 %v14562_v13  ;;  %2853 = vmatprep.subr.bf16.mxu1 %v14565_v14  ;;  %v13600_v13 = vand.u32 2147483647, %v17081_v39  ;;  %v14626_v14 = vld [vmem:[%s21433_s1 + $0x1e0] ss:$100 sps:$4 sm:$0xff]  }
 0x12a   :  { %vm13601_vm2 = vcmp.lt.f32.partialorder %v13600_v13, 8388608.0  ;;  %v14683_v13 = vld [vmem:[%s21433_s1 + $0x760] ss:$100 sps:$4 sm:$0xff]  }
 0x12b   :  { %2813 = vmatpush2.bf16.msra.mxu0 %v14560_v15  ;;  %2854 = vmatpush2.bf16.msra.mxu1 %v14563_v16  ;;  %v14629_v15 = vld [vmem:[%s21433_s1 + $0x1e8] ss:$100 sps:$4 sm:$0xff]   ;;  %v13606_v16 = vor.u32 %v13605_v11, %v13604_v10  ;;  %v14682_v10 = vld [vmem:[%s21433_s1 + $0x75c] ss:$100 sps:$4 sm:$0xff]  }
 0x12c   :  { %2814 = vmatprep.subr.bf16.mxu0 %v14568_v18  ;;  %2855 = vmatprep.subr.bf16.mxu1 %v14571_v19  ;;  %v14634_v18 = vld [vmem:[%s21433_s1 + $0x11c] ss:$100 sps:$4 sm:$0xff]   ;;  %v14637_v19 = vld [vmem:[%s21433_s1 + $0x124] ss:$100 sps:$4 sm:$0xff]  }
 0x12d   :  { %v14685_v11 = vld [vmem:[%s21433_s1 + $0x764] ss:$100 sps:$4 sm:$0xff]  }
 0x12f   :  { %2815 = vmatpush2.bf16.msra.mxu0 %v14566_v20  ;;  %2856 = vmatpush2.bf16.msra.mxu1 %v14569_v21  ;;  %v14632_v20 = vld [vmem:[%s21433_s1 + $0x118] ss:$100 sps:$4 sm:$0xff]   ;;  %v14635_v21 = vld [vmem:[%s21433_s1 + $0x120] ss:$100 sps:$4 sm:$0xff]  }
 0x130   :  { %2816 = vmatprep.subr.bf16.mxu0 %v14574_v22  ;;  %2857 = vmatprep.subr.bf16.mxu1 %v14577_v23  ;;  %v13607_v22 = vsel %vm13601_vm2, %v13606_v16, %v17081_v39  ;;  %v14640_v23 = vld [vmem:[%s21433_s1 + $0x54] ss:$100 sps:$4 sm:$0xff]  }
 0x131   :  { %v14641_v39 = vld [vmem:[%s21433_s1 + $0x58] ss:$100 sps:$4 sm:$0xff]  }
 0x132   :  { %v14688_v16 = vld [vmem:[%s21433_s1 + $0x694] ss:$100 sps:$4 sm:$0xff]  }
 0x133   :  { %2817 = vmatpush2.bf16.msra.mxu0 %v14572_v25  ;;  %2858 = vmatpush2.bf16.msra.mxu1 %v14575_v26  ;;  %v14643_v25 = vld [vmem:[%s21433_s1 + $0x5c] ss:$100 sps:$4 sm:$0xff]   ;;  %v3022_v26 = vmax.f32 %v13607_v22, 0.0 }
 0x134   :  { %2818 = vmatprep.subr.bf16.mxu0 %v14580_v27  ;;  %2859 = vmatprep.subr.bf16.mxu1 %v14583_v28  ;;  %v14638_v27 = vld [vmem:[%s21433_s1 + $0x50] ss:$100 sps:$4 sm:$0xff]   ;;  %v14692_v22 = vld [vmem:[%s21433_s1 + $0xc18] ss:$100 sps:$4 sm:$0xff]  }
 0x135   :  { %v14646_v28 = vld [vmem:[%s21433_s1 + $0xc0c] ss:$100 sps:$4 sm:$0xff]  }
 0x137   :  { %2819 = vmatpush2.bf16.msra.mxu0 %v14578_v29  ;;  %2860 = vmatpush2.bf16.msra.mxu1 %v14581_v30  ;;  %v14649_v29 = vld [vmem:[%s21433_s1 + $0xc14] ss:$100 sps:$4 sm:$0xff]   ;;  %v14644_v30 = vld [vmem:[%s21433_s1 + $0xc08] ss:$100 sps:$4 sm:$0xff]  }
 0x138   :  { %2820 = vmatprep.subr.bf16.mxu0 %v14586_v31  ;;  %2861 = vmatprep.subr.bf16.mxu1 %v14589_v32  ;;  %v14647_v31 = vld [vmem:[%s21433_s1 + $0xc10] ss:$100 sps:$4 sm:$0xff]   ;;  %v3047_v32 = vmin.f32 %v3022_v26, 31.0  ;;  %v14696_v26 = vld [vmem:[%s21433_s1 + $0x5d8] ss:$100 sps:$4 sm:$0xff]  }
 0x13b   :  { %2821 = vmatpush2.bf16.msra.mxu0 %v14584_v33  ;;  %2862 = vmatpush2.bf16.msra.mxu1 %v14587_v34  ;;  %v14652_v33 = vld [vmem:[%s21433_s1 + $0xb44] ss:$100 sps:$4 sm:$0xff]   ;;  %v14655_v34 = vld [vmem:[%s21433_s1 + $0xb4c] ss:$100 sps:$4 sm:$0xff]  }
 0x13c   :  { %2822 = vmatprep.subr.bf16.mxu0 %v14592_v37  ;;  %2863 = vmatprep.subr.bf16.mxu1 %v14595_v38  ;;  %v14650_v37 = vld [vmem:[%s21433_s1 + $0xb40] ss:$100 sps:$4 sm:$0xff]   ;;  %v17388_v38 = vmul.f32 0.5, %v3047_v32 }
 0x13f   :  { %2823 = vmatpush2.bf16.msra.mxu0 %v14590_v41  ;;  %2864 = vmatpush2.bf16.msra.mxu1 %v14593_v42  ;;  %v14653_v41 = vld [vmem:[%s21433_s1 + $0xb48] ss:$100 sps:$4 sm:$0xff]   ;;  %v14658_v42 = vld [vmem:[%s21433_s1 + $0xa7c] ss:$100 sps:$4 sm:$0xff]  }
 0x140   :  { %2874 = vmatprep.subr.bf16.mxu0 %v14598_v43  ;;  %2915 = vmatprep.subr.bf16.mxu1 %v14601_v44  ;;  %v14661_v43 = vld [vmem:[%s21433_s1 + $0xa84] ss:$100 sps:$4 sm:$0xff]   ;;  %v14656_v44 = vld [vmem:[%s21433_s1 + $0xa78] ss:$100 sps:$4 sm:$0xff]  }
 0x142   :  { %v17279_v51 = vpop.f32.mrf.mxu0  ;;  %v17281_v52 = vpop.f32.mrf.mxu1  ;;  %2825 = vmatmul.mubr.bf16.vlgmr.msra.gmra.mxu0 %v16467_v24  ;;  %2866 = vmatmul.mubr.bf16.vlgmr.msra.gmra.mxu1 %v16467_v24 }
 0x143   :  { %2875 = vmatpush1.bf16.msra.mxu0 %v14596_v45  ;;  %2916 = vmatpush1.bf16.msra.mxu1 %v14599_v46  ;;  %v14659_v45 = vld [vmem:[%s21433_s1 + $0xa80] ss:$100 sps:$4 sm:$0xff]   ;;  %v13802_v46 = vcvt.f32.s32 %v17388_v38 }
 0x144   :  { %v17291_v55 = vpop.f32.mrf.mxu0  ;;  %v17293_v56 = vpop.f32.mrf.mxu1  ;;  %2876 = vmatprep.subr.bf16.mxu0 %v14604_v47  ;;  %2917 = vmatprep.subr.bf16.mxu1 %v14607_v48  ;;  %v13618_v47 = vcvt.f32.s32 %v17083_v40  ;;  %v14664_v48 = vld [vmem:[%s21433_s1 + $0x9b4] ss:$100 sps:$4 sm:$0xff]  }
 0x145   :  { %2906 = vmatprep.mubr.bf16.mxu0 %v16448_v17  ;;  %2947 = vmatprep.mubr.bf16.mxu1 %v16448_v17 }
 0x146   :  { %v2625_v59 = vpop.f32.mrf.mxu1  ;;  %v2584_v60 = vpop.f32.mrf.mxu0 }
 0x147   :  { %2877 = vmatpush1.bf16.msra.mxu0 %v14602_v49  ;;  %2918 = vmatpush1.bf16.msra.mxu1 %v14605_v50  ;;  %v14667_v49 = vld [vmem:[%s21433_s1 + $0x9bc] ss:$100 sps:$4 sm:$0xff]   ;;  %v14662_v50 = vld [vmem:[%s21433_s1 + $0x9b0] ss:$100 sps:$4 sm:$0xff]   ;;  %v14668_v60 = vld [vmem:[%s21433_s1 + $0x8e8] ss:$100 sps:$4 sm:$0xff]  }
 0x148   :  { %v2626_v0 = vpop.f32.mrf.mxu1  ;;  %2878 = vmatprep.subr.bf16.mxu0 %v14610_v53  ;;  %2919 = vmatprep.subr.bf16.mxu1 %v14613_v54  ;;  %v2585_v1 = vpop.f32.mrf.mxu0  ;;  %v14665_v53 = vld [vmem:[%s21433_s1 + $0x9b8] ss:$100 sps:$4 sm:$0xff]   ;;  %v13803_v54 = vcvt.s32.f32 %v13802_v46  ;;  %v13594_v46 = vcvt.f32.s32 %v17069_v35 }
 0x149   :  { %v14673_v59 = vld [vmem:[%s21433_s1 + $0x8f4] ss:$100 sps:$4 sm:$0xff]   ;;  %v14679_v1 = vld [vmem:[%s21433_s1 + $0x82c] ss:$100 sps:$4 sm:$0xff]  }
 0x14a   :  { %v13804_v63 = vand.u32 2147483647, %v13803_v54  ;;  %v13634_v54 = vcvt.f32.s32 %v17291_v55 }
 0x14b   :  { %2879 = vmatpush1.bf16.msra.mxu0 %v14608_v57  ;;  %2920 = vmatpush1.bf16.msra.mxu1 %v14611_v58  ;;  %v13619_v57 = vcvt.s32.f32 %v13618_v47  ;;  %v14670_v58 = vld [vmem:[%s21433_s1 + $0x8ec] ss:$100 sps:$4 sm:$0xff]  }
 0x14c   :  { %2880 = vmatprep.subr.bf16.mxu0 %v14616_v61  ;;  %2921 = vmatprep.subr.bf16.mxu1 %v14619_v62  ;;  %v14671_v61 = vld [vmem:[%s21433_s1 + $0x8f0] ss:$100 sps:$4 sm:$0xff]   ;;  %v14676_v62 = vld [vmem:[%s21433_s1 + $0x824] ss:$100 sps:$4 sm:$0xff]  }
 0x14d   :  { %v13620_v0 = vand.u32 2147483647, %v13619_v57 }
 0x14f   :  { %2881 = vmatpush1.bf16.msra.mxu0 %v14614_v2  ;;  %2922 = vmatpush1.bf16.msra.mxu1 %v14617_v3  ;;  %v14674_v2 = vld [vmem:[%s21433_s1 + $0x820] ss:$100 sps:$4 sm:$0xff]   ;;  %v13805_v3 = vand.u32 2147483648, %v17388_v38 }
 0x150   :  { %2882 = vmatprep.subr.bf16.mxu0 %v14622_v4  ;;  %2923 = vmatprep.subr.bf16.mxu1 %v14625_v5  ;;  %v13621_v4 = vand.u32 2147483648, %v17083_v40  ;;  %v13800_v5 = vand.u32 2147483647, %v17388_v38 }
 0x152   :  { %vm13801_vm3 = vcmp.lt.f32.partialorder %v13800_v5, 8388608.0  ;;  %v13597_v5 = vand.u32 2147483648, %v17069_v35 }
 0x153   :  { %2883 = vmatpush1.bf16.msra.mxu0 %v14620_v7  ;;  %2924 = vmatpush1.bf16.msra.mxu1 %v14623_v8  ;;  %v14677_v7 = vld [vmem:[%s21433_s1 + $0x828] ss:$100 sps:$4 sm:$0xff]   ;;  %v13806_v8 = vor.u32 %v13805_v3, %v13804_v63  ;;  %v14716_v3 = vld [vmem:[%s21433_s1 + $0x2b8] ss:$100 sps:$4 sm:$0xff]  }
 0x154   :  { %2884 = vmatprep.subr.bf16.mxu0 %v14628_v9  ;;  %2925 = vmatprep.subr.bf16.mxu1 %v14631_v12  ;;  %v13622_v9 = vor.u32 %v13621_v4, %v13620_v0  ;;  %v14680_v12 = vld [vmem:[%s21433_s1 + $0x758] ss:$100 sps:$4 sm:$0xff]   ;;  %v13635_v0 = vcvt.s32.f32 %v13634_v54 }
 0x157   :  { %2885 = vmatpush1.bf16.msra.mxu0 %v14626_v14  ;;  %2926 = vmatpush1.bf16.msra.mxu1 %v14629_v15  ;;  %v13807_v14 = vsel %vm13801_vm3, %v13806_v8, %v17388_v38  ;;  %v13623_v15 = vsel %vm13617_vm4, %v13622_v9, %v17083_v40  ;;  %v14689_v40 = vld [vmem:[%s21433_s1 + $0x698] ss:$100 sps:$4 sm:$0xff]   ;;  %v14702_v38 = vld [vmem:[%s21433_s1 + $0xa88] ss:$100 sps:$4 sm:$0xff]   ;;  %v13636_v9 = vand.u32 2147483647, %v13635_v0 }
 0x158   :  { %2886 = vmatprep.subr.bf16.mxu0 %v14634_v18  ;;  %2927 = vmatprep.subr.bf16.mxu1 %v14637_v19  ;;  %v14691_v18 = vld [vmem:[%s21433_s1 + $0x69c] ss:$100 sps:$4 sm:$0xff]   ;;  %v3122_v19 = vmax.f32 %v13807_v14, 0.0 }
 0x15b   :  { %2887 = vmatpush1.bf16.msra.mxu0 %v14632_v20  ;;  %2928 = vmatpush1.bf16.msra.mxu1 %v14635_v21  ;;  %v3024_v20 = vmax.f32 %v13623_v15, 0.0  ;;  %v14686_v21 = vld [vmem:[%s21433_s1 + $0x690] ss:$100 sps:$4 sm:$0xff]  }
 0x15c   :  { %2888 = vmatprep.subr.bf16.mxu0 %v14640_v23  ;;  %2929 = vmatprep.subr.bf16.mxu1 %v14643_v25  ;;  %v14695_v23 = vld [vmem:[%s21434_s2 + $0x11c] ss:$20 sps:$4 sm:$0xff]   ;;  %v14693_v25 = vld [vmem:[%s21434_s2 + $0x118] ss:$20 sps:$4 sm:$0xff]  }
 0x15f   :  { %2889 = vmatpush1.bf16.msra.mxu0 %v14638_v27  ;;  %2930 = vmatpush1.bf16.msra.mxu1 %v14641_v39  ;;  %v3147_v27 = vmin.f32 %v3122_v19, 31.0  ;;  %v14697_v39 = vld [vmem:[%s21433_s1 + $0xb50] ss:$100 sps:$4 sm:$0xff]  }
 0x160   :  { %2890 = vmatprep.subr.bf16.mxu0 %v14646_v28  ;;  %2931 = vmatprep.subr.bf16.mxu1 %v14649_v29  ;;  %v3049_v28 = vmin.f32 %v3024_v20, 31.0  ;;  %v14700_v29 = vld [vmem:[%s21434_s2 + $0xf4] ss:$20 sps:$4 sm:$0xff]   ;;  %v14725_v20 = vld [vmem:[%s21434_s2 + $0x2c] ss:$20 sps:$4 sm:$0xff]  }
 0x163   :  { %2891 = vmatpush2.bf16.msra.mxu0 %v14644_v30  ;;  %2932 = vmatpush2.bf16.msra.mxu1 %v14647_v31  ;;  %v14698_v30 = vld [vmem:[%s21434_s2 + $0xf0] ss:$20 sps:$4 sm:$0xff]  }
 0x164   :  { %2892 = vmatprep.subr.bf16.mxu0 %v14652_v33  ;;  %2933 = vmatprep.subr.bf16.mxu1 %v14655_v34  ;;  %v14701_v31 = vld [vmem:[%s21433_s1 + $0x510] ss:$100 sps:$4 sm:$0xff]   ;;  %v17503_v34 = vpack.c.bf16 %v3147_v27, %v3147_v27 }
 0x167   :  { %2893 = vmatpush2.bf16.msra.mxu0 %v14650_v37  ;;  %2934 = vmatpush2.bf16.msra.mxu1 %v14653_v41  ;;  %v17505_v37 = vmul.f32 0.5, %v3049_v28  ;;  %v14705_v41 = vld [vmem:[%s21434_s2 + $0xcc] ss:$20 sps:$4 sm:$0xff]  }
 0x168   :  { %2894 = vmatprep.subr.bf16.mxu0 %v14658_v42  ;;  %2935 = vmatprep.subr.bf16.mxu1 %v14661_v43 }
 0x169   :  { %v13821_v14 = vand.u32 2147483648, %v17505_v37 }
 0x16b   :  { %2895 = vmatpush2.bf16.msra.mxu0 %v14656_v44  ;;  %2936 = vmatpush2.bf16.msra.mxu1 %v14659_v45  ;;  %v14703_v44 = vld [vmem:[%s21434_s2 + $0xc8] ss:$20 sps:$4 sm:$0xff]  }
 0x16c   :  { %2896 = vmatprep.subr.bf16.mxu0 %v14664_v48  ;;  %2937 = vmatprep.subr.bf16.mxu1 %v14667_v49  ;;  %v14706_v45 = vld [vmem:[%s21433_s1 + $0x448] ss:$100 sps:$4 sm:$0xff]   ;;  %v14707_v49 = vld [vmem:[%s21433_s1 + $0x9c0] ss:$100 sps:$4 sm:$0xff]  }
 0x16f   :  { %2897 = vmatpush2.bf16.msra.mxu0 %v14662_v50  ;;  %2938 = vmatpush2.bf16.msra.mxu1 %v14665_v53  ;;  %v14710_v50 = vld [vmem:[%s21434_s2 + $0xa4] ss:$20 sps:$4 sm:$0xff]   ;;  %v13818_v53 = vcvt.f32.s32 %v17505_v37 }
 0x170   :  { %2898 = vmatprep.subr.bf16.mxu0 %v14670_v58  ;;  %2939 = vmatprep.subr.bf16.mxu1 %v14673_v59  ;;  %v14708_v58 = vld [vmem:[%s21434_s2 + $0xa0] ss:$20 sps:$4 sm:$0xff]  }
 0x171   :  { %v14711_v59 = vld [vmem:[%s21433_s1 + $0x380] ss:$100 sps:$4 sm:$0xff]   ;;  %v13819_v63 = vcvt.s32.f32 %v13818_v53  ;;  %v13610_v53 = vcvt.f32.s32 %v17071_v36 }
 0x173   :  { %2899 = vmatpush2.bf16.msra.mxu0 %v14668_v60  ;;  %2940 = vmatpush2.bf16.msra.mxu1 %v14671_v61  ;;  %v13595_v60 = vcvt.s32.f32 %v13594_v46  ;;  %v14712_v61 = vld [vmem:[%s21433_s1 + $0x8f8] ss:$100 sps:$4 sm:$0xff]   ;;  %v13820_v8 = vand.u32 2147483647, %v13819_v63 }
 0x174   :  { %2900 = vmatprep.subr.bf16.mxu0 %v14676_v62  ;;  %2941 = vmatprep.subr.bf16.mxu1 %v14679_v1  ;;  %v14715_v62 = vld [vmem:[%s21434_s2 + $0x7c] ss:$20 sps:$4 sm:$0xff]   ;;  %v13592_v1 = vand.u32 2147483647, %v17069_v35  ;;  %v14732_v46 = vld [vmem:[%s21434_s2 + $0x258] ss:$20 sps:$4 sm:$0xff]  }
 0x175   :  { %v13596_v4 = vand.u32 2147483647, %v13595_v60  ;;  %v14747_v63 = vld [vmem:[%s21434_s2 + $0x348] ss:$20 sps:$4 sm:$0xff]  }
 0x176   :  { %vm17573_vm5 = vcmp.lt.f32.partialorder %v13592_v1, 8388608.0  ;;  %v13650_v1 = vcvt.f32.s32 %v17293_v56 }
 0x177   :  { %2901 = vmatpush2.bf16.msra.mxu0 %v14674_v2  ;;  %2942 = vmatpush2.bf16.msra.mxu1 %v14677_v7  ;;  %v14713_v2 = vld [vmem:[%s21434_s2 + $0x78] ss:$20 sps:$4 sm:$0xff]   ;;  %v14720_v7 = vld [vmem:[%s21434_s2 + $0x54] ss:$20 sps:$4 sm:$0xff]   ;;  %v13598_v15 = vor.u32 %v13597_v5, %v13596_v4 }
 0x178   :  { %2902 = vmatprep.subr.bf16.mxu0 %v14682_v10  ;;  %2943 = vmatprep.subr.bf16.mxu1 %v14685_v11  ;;  %v13637_v10 = vand.u32 2147483648, %v17291_v55  ;;  %v13632_v11 = vand.u32 2147483647, %v17291_v55 }
 0x17a   :  { %vm13633_vm6 = vcmp.lt.f32.partialorder %v13632_v11, 8388608.0  ;;  %v14758_v11 = vld [vmem:[%s21434_s2 + $0x1bc] ss:$20 sps:$4 sm:$0xff]  }
 0x17b   :  { %2903 = vmatpush2.bf16.msra.mxu0 %v14680_v12  ;;  %2944 = vmatpush2.bf16.msra.mxu1 %v14683_v13  ;;  %v14718_v12 = vld [vmem:[%s21434_s2 + $0x50] ss:$20 sps:$4 sm:$0xff]  }
 0x17c   :  { %2904 = vmatprep.subr.bf16.mxu0 %v14688_v16  ;;  %2945 = vmatprep.subr.bf16.mxu1 %v14691_v18  ;;  %v14721_v13 = vld [vmem:[%s21433_s1 + $0x1f0] ss:$100 sps:$4 sm:$0xff]   ;;  %v14722_v16 = vld [vmem:[%s21433_s1 + $0x768] ss:$100 sps:$4 sm:$0xff]   ;;  %v13816_v18 = vand.u32 2147483647, %v17505_v37 }
 0x17e   :  { %vm13817_vm7 = vcmp.lt.f32.partialorder %v13816_v18, 8388608.0 }
 0x17f   :  { %2905 = vmatpush2.bf16.msra.mxu0 %v14686_v21  ;;  %2946 = vmatpush2.bf16.msra.mxu1 %v14689_v40  ;;  %v13822_v21 = vor.u32 %v13821_v14, %v13820_v8  ;;  %v13638_v40 = vor.u32 %v13637_v10, %v13636_v9  ;;  %v13608_v9 = vand.u32 2147483647, %v17071_v36  ;;  %v13651_v10 = vcvt.s32.f32 %v13650_v1  ;;  %v14756_v14 = vld [vmem:[%s21434_s2 + $0x1b8] ss:$20 sps:$4 sm:$0xff]   ;;  %v14788_v1 = vld [vmem:[%s21434_s2 + $0x4b4] ss:$20 sps:$4 sm:$0xff]  }
 0x180   :  { %13273 = vmatprep.subr.bf16.mxu0 %v14692_v22  ;;  %9472 = vmatprep.subr.bf16.mxu1 %v14695_v23  ;;  %v13599_v22 = vsel %vm17573_vm5, %v13598_v15, %v17069_v35  ;;  %v14723_v23 = vld [vmem:[%s21434_s2 + $0x28] ss:$20 sps:$4 sm:$0xff]   ;;  %v14727_v35 = vld [vmem:[%s21433_s1 + $0x6a0] ss:$100 sps:$4 sm:$0xff]   ;;  %v14759_v15 = vld [vmem:[%s21434_s2 + $0x2f8] ss:$20 sps:$4 sm:$0xff]  }
 0x181   :  { %v13639_v27 = vsel %vm13633_vm6, %v13638_v40, %v17291_v55  ;;  %v3021_v28 = vmax.f32 %v13599_v22, 0.0  ;;  %v14731_v55 = vld [vmem:[%s21433_s1 + $0x60] ss:$100 sps:$4 sm:$0xff]   ;;  %v13652_v22 = vand.u32 2147483647, %v13651_v10  ;;  %vm17685_vm8 = vcmp.lt.f32.partialorder %v13608_v9, 8388608.0 }
 0x182   :  { %v17497_v32 = vpop.f32.mrf.mxu0  ;;  %v17499_v33 = vpop.f32.mrf.mxu1  ;;  %2907 = vmatmul.mubr.bf16.vlgmr.msra.gmra.mxu0 %v16467_v24  ;;  %2948 = vmatmul.mubr.bf16.vlgmr.msra.gmra.mxu1 %v16467_v24 }
 0x183   :  { %13274 = vmatpush3.bf16.msra.mxu0 %v14696_v26  ;;  %9473 = vmatpush1.bf16.msra.mxu1 %v14693_v25  ;;  %v14726_v25 = vld [vmem:[%s21433_s1 + $0x128] ss:$100 sps:$4 sm:$0xff]   ;;  %v13823_v26 = vsel %vm13817_vm7, %v13822_v21, %v17505_v37  ;;  %v14734_v37 = vld [vmem:[%s21434_s2 + $0x25c] ss:$20 sps:$4 sm:$0xff]  }
 0x184   :  { %9504 = vmatprep.mubr.bf16.mxu1 %v17503_v34  ;;  %v17514_v42 = vpop.f32.mrf.mxu0  ;;  %v17516_v43 = vpop.f32.mrf.mxu1  ;;  %13275 = vmatprep.subr.bf16.mxu0 %v14697_v39  ;;  %v14730_v39 = vld [vmem:[%s21434_s2 + $0x4] ss:$20 sps:$4 sm:$0xff]   ;;  %v14764_v21 = vld [vmem:[%s21434_s2 + $0x194] ss:$20 sps:$4 sm:$0xff]  }
 0x185   :  { %9474 = vmatprep.subr.bf16.mxu1 %v14700_v29  ;;  %2988 = vmatprep.mubr.bf16.mxu0 %v16448_v17  ;;  %v3124_v29 = vmax.f32 %v13823_v26, 0.0  ;;  %v14762_v26 = vld [vmem:[%s21434_s2 + $0x190] ss:$20 sps:$4 sm:$0xff]  }
 0x186   :  { %v2707_v47 = vpop.f32.mrf.mxu1  ;;  %v2666_v48 = vpop.f32.mrf.mxu0 }
 0x187   :  { %13276 = vmatpush3.bf16.msra.mxu0 %v14701_v31  ;;  %9475 = vmatpush1.bf16.msra.mxu1 %v14698_v30  ;;  %v3026_v30 = vmax.f32 %v13639_v27, 0.0  ;;  %v14728_v31 = vld [vmem:[%s21434_s2] ss:$20 sps:$4 sm:$0xff]   ;;  %v14735_v47 = vld [vmem:[%s21434_s2 + $0x398] ss:$20 sps:$4 sm:$0xff]  }
 0x188   :  { %v2708_v57 = vpop.f32.mrf.mxu1  ;;  %13277 = vmatprep.subr.bf16.mxu0 %v14702_v38  ;;  %9476 = vmatprep.subr.bf16.mxu1 %v14705_v41  ;;  %v2667_v17 = vpop.f32.mrf.mxu0  ;;  %v14737_v38 = vld [vmem:[%s21434_s2 + $0x39c] ss:$20 sps:$4 sm:$0xff]   ;;  %v3046_v41 = vmin.f32 %v3021_v28, 31.0  ;;  %v14740_v48 = vld [vmem:[%s21434_s2 + $0x234] ss:$20 sps:$4 sm:$0xff]  }
 0x189   :  { %v14738_v17 = vld [vmem:[%s21434_s2 + $0x230] ss:$20 sps:$4 sm:$0xff]  }
 0x18b   :  { %13278 = vmatpush3.bf16.msra.mxu0 %v14706_v45  ;;  %9477 = vmatpush1.bf16.msra.mxu1 %v14703_v44  ;;  %v3149_v44 = vmin.f32 %v3124_v29, 31.0  ;;  %v3051_v45 = vmin.f32 %v3026_v30, 31.0  ;;  %v13648_v30 = vand.u32 2147483647, %v17293_v56 }
 0x18c   :  { %13279 = vmatprep.subr.bf16.mxu0 %v14707_v49  ;;  %9478 = vmatprep.subr.bf16.mxu1 %v14710_v50  ;;  %v17618_v49 = vmul.f32 0.5, %v3046_v41  ;;  %v14743_v50 = vld [vmem:[%s21434_s2 + $0x374] ss:$20 sps:$4 sm:$0xff]  }
 0x18d   :  { %v17625_v54 = vpack.c.bf16 %v3149_v44, %v3149_v44  ;;  %v17627_v57 = vmul.f32 0.5, %v3051_v45  ;;  %vm13649_vm11 = vcmp.lt.f32.partialorder %v13648_v30, 8388608.0  ;;  %v14768_v45 = vld [vmem:[%s21434_s2 + $0x168] ss:$20 sps:$4 sm:$0xff]  }
 0x18e   :  { %v13794_v60 = vcvt.f32.s32 %v17618_v49  ;;  %v13792_v18 = vand.u32 2147483647, %v17618_v49  ;;  %v13797_v19 = vand.u32 2147483648, %v17618_v49 }
 0x18f   :  { %13280 = vmatpush3.bf16.msra.mxu0 %v14711_v59  ;;  %9479 = vmatpush1.bf16.msra.mxu1 %v14708_v58  ;;  %v14741_v58 = vld [vmem:[%s21434_s2 + $0x370] ss:$20 sps:$4 sm:$0xff]   ;;  %v14749_v59 = vld [vmem:[%s21434_s2 + $0x34c] ss:$20 sps:$4 sm:$0xff]   ;;  %v13834_v0 = vcvt.f32.s32 %v17627_v57  ;;  %v13832_v28 = vand.u32 2147483647, %v17627_v57 }
 0x190   :  { %13281 = vmatprep.subr.bf16.mxu0 %v14712_v61  ;;  %9480 = vmatprep.subr.bf16.mxu1 %v14715_v62  ;;  %v13611_v61 = vcvt.s32.f32 %v13610_v53  ;;  %v14744_v62 = vld [vmem:[%s21434_s2 + $0x208] ss:$20 sps:$4 sm:$0xff]   ;;  %v13795_v4 = vcvt.s32.f32 %v13794_v60  ;;  %vm13793_vm9 = vcmp.lt.f32.partialorder %v13792_v18, 8388608.0 }
 0x191   :  { %v13835_v8 = vcvt.s32.f32 %v13834_v0  ;;  %vm13833_vm10 = vcmp.lt.f32.partialorder %v13832_v28, 8388608.0  ;;  %v14782_v60 = vld [vmem:[%s21434_s2 + $0x4dc] ss:$20 sps:$4 sm:$0xff]   ;;  %v14798_v28 = vld [vmem:[%s21434_s2 + $0x460] ss:$20 sps:$4 sm:$0xff]  }
 0x192   :  { %v13612_v5 = vand.u32 2147483647, %v13611_v61  ;;  %v14785_v61 = vld [vmem:[%s21434_s2 + $0x61c] ss:$20 sps:$4 sm:$0xff]  }
 0x193   :  { %13282 = vmatpush3.bf16.msra.mxu0 %v14716_v3  ;;  %9481 = vmatpush1.bf16.msra.mxu1 %v14713_v2  ;;  %v14752_v2 = vld [vmem:[%s21434_s2 + $0x1e4] ss:$20 sps:$4 sm:$0xff]   ;;  %v13836_v40 = vand.u32 2147483647, %v13835_v8  ;;  %v14792_v18 = vld [vmem:[%s21434_s2 + $0x488] ss:$20 sps:$4 sm:$0xff]  }
 0x194   :  { %13283 = vmatprep.subr.bf16.mxu0 %v14717_v6  ;;  %9482 = vmatprep.subr.bf16.mxu1 %v14720_v7  ;;  %v14755_v3 = vld [vmem:[%s21434_s2 + $0x324] ss:$20 sps:$4 sm:$0xff]   ;;  %v14750_v6 = vld [vmem:[%s21434_s2 + $0x1e0] ss:$20 sps:$4 sm:$0xff]  }
 0x195   :  { %v14753_v7 = vld [vmem:[%s21434_s2 + $0x320] ss:$20 sps:$4 sm:$0xff]  }
 0x197   :  { %13284 = vmatpush3.bf16.msra.mxu0 %v14721_v13  ;;  %9483 = vmatpush1.bf16.msra.mxu1 %v14718_v12  ;;  %v14761_v12 = vld [vmem:[%s21434_s2 + $0x2fc] ss:$20 sps:$4 sm:$0xff]   ;;  %v13613_v13 = vand.u32 2147483648, %v17071_v36 }
 0x198   :  { %13285 = vmatprep.subr.bf16.mxu0 %v14722_v16  ;;  %9484 = vmatprep.subr.bf16.mxu1 %v14725_v20  ;;  %v13796_v16 = vand.u32 2147483647, %v13795_v4 }
 0x199   :  { %v13614_v20 = vor.u32 %v13613_v13, %v13612_v5  ;;  %v14797_v13 = vld [vmem:[%s21434_s2 + $0x5cc] ss:$20 sps:$4 sm:$0xff]  }
 0x19a   :  { %v13798_v27 = vor.u32 %v13797_v19, %v13796_v16  ;;  %v14795_v19 = vld [vmem:[%s21434_s2 + $0x5c8] ss:$20 sps:$4 sm:$0xff]  }
 0x19b   :  { %13286 = vmatpush3.bf16.msra.mxu0 %v14726_v25  ;;  %9485 = vmatpush1.bf16.msra.mxu1 %v14723_v23  ;;  %v14767_v23 = vld [vmem:[%s21434_s2 + $0x2d4] ss:$20 sps:$4 sm:$0xff]   ;;  %v13615_v29 = vsel %vm17685_vm8, %v13614_v20, %v17071_v36  ;;  %v14773_v36 = vld [vmem:[%s21434_s2 + $0x2ac] ss:$20 sps:$4 sm:$0xff]   ;;  %v13626_v20 = vcvt.f32.s32 %v17279_v51 }
 0x19c   :  { %13287 = vmatprep.subr.bf16.mxu0 %v14727_v35  ;;  %9486 = vmatprep.subr.bf16.mxu1 %v14730_v39  ;;  %v13837_v35 = vand.u32 2147483648, %v17627_v57  ;;  %v13653_v39 = vand.u32 2147483648, %v17293_v56  ;;  %v13799_v41 = vsel %vm13793_vm9, %v13798_v27, %v17618_v49  ;;  %v3023_v44 = vmax.f32 %v13615_v29, 0.0  ;;  %v14776_v49 = vld [vmem:[%s21434_s2 + $0x144] ss:$20 sps:$4 sm:$0xff]  }
 0x19d   :  { %v3121_v53 = vmax.f32 %v13799_v41, 0.0  ;;  %v13666_v27 = vcvt.f32.s32 %v17514_v42  ;;  %v14801_v29 = vld [vmem:[%s21434_s2 + $0x5a0] ss:$20 sps:$4 sm:$0xff]   ;;  %v13627_v30 = vcvt.s32.f32 %v13626_v20  ;;  %v14827_v20 = vld [vmem:[%s21434_s2 + $0x504] ss:$20 sps:$4 sm:$0xff]  }
 0x19f   :  { %13288 = vmatpush3.bf16.msra.mxu0 %v14731_v55  ;;  %9487 = vmatpush1.bf16.msra.mxu1 %v14728_v31  ;;  %v14765_v31 = vld [vmem:[%s21434_s2 + $0x2d0] ss:$20 sps:$4 sm:$0xff]   ;;  %v13838_v55 = vor.u32 %v13837_v35, %v13836_v40 }
 0x1a0   :  { %9488 = vmatprep.subr.bf16.mxu1 %v14734_v37  ;;  %9513 = vmatprep.subr.bf16.mxu0 %v14737_v38  ;;  %v13654_v37 = vor.u32 %v13653_v39, %v13652_v22  ;;  %v14770_v38 = vld [vmem:[%s21434_s2 + $0x16c] ss:$20 sps:$4 sm:$0xff]   ;;  %v14800_v22 = vld [vmem:[%s21434_s2 + $0x464] ss:$20 sps:$4 sm:$0xff]  }
 0x1a2   :  { %2989 = vmatmul.mubr.bf16.vlgmr.msra.gmra.mxu0 %v16467_v24  ;;  %v14746_v24 = vld [vmem:[%s21434_s2 + $0x20c] ss:$20 sps:$4 sm:$0xff]  }
 0x1a3   :  { %9489 = vmatpush2.bf16.msra.mxu1 %v14732_v46  ;;  %9514 = vmatpush1.bf16.msra.mxu0 %v14735_v47  ;;  %v14771_v46 = vld [vmem:[%s21434_s2 + $0x2a8] ss:$20 sps:$4 sm:$0xff]   ;;  %v13839_v47 = vsel %vm13833_vm10, %v13838_v55, %v17627_v57  ;;  %v14777_v57 = vld [vmem:[%s21434_s2 + $0x280] ss:$20 sps:$4 sm:$0xff]  }
 0x1a4   :  { %9545 = vmatprep.mubr.bf16.mxu0 %v17625_v54  ;;  %9490 = vmatprep.subr.bf16.mxu1 %v14740_v48  ;;  %v13655_v48 = vsel %vm13649_vm11, %v13654_v37, %v17293_v56  ;;  %v14774_v56 = vld [vmem:[%s21434_s2 + $0x140] ss:$20 sps:$4 sm:$0xff]   ;;  %v14809_v55 = vld [vmem:[%s21434_s2 + $0x57c] ss:$20 sps:$4 sm:$0xff]  }
 0x1a5   :  { %9515 = vmatprep.subr.bf16.mxu0 %v14743_v50  ;;  %v14779_v50 = vld [vmem:[%s21434_s2 + $0x284] ss:$20 sps:$4 sm:$0xff]  }
 0x1a7   :  { %9491 = vmatpush2.bf16.msra.mxu1 %v14738_v17  ;;  %9516 = vmatpush1.bf16.msra.mxu0 %v14741_v58  ;;  %v3048_v17 = vmin.f32 %v3023_v44, 31.0  ;;  %v3126_v58 = vmax.f32 %v13839_v47, 0.0  ;;  %v13624_v44 = vand.u32 2147483647, %v17279_v51  ;;  %v13628_v47 = vand.u32 2147483647, %v13627_v30 }
 0x1a8   :  { %9492 = vmatprep.subr.bf16.mxu1 %v14746_v24  ;;  %9517 = vmatprep.subr.bf16.mxu0 %v14749_v59  ;;  %v3028_v24 = vmax.f32 %v13655_v48, 0.0  ;;  %v3146_v59 = vmin.f32 %v3121_v53, 31.0  ;;  %v13629_v48 = vand.u32 2147483648, %v17279_v51  ;;  %v14831_v30 = vld [vmem:[%s21434_s2 + $0x898] ss:$20 sps:$4 sm:$0xff]  }
 0x1a9   :  { %v3151_v0 = vmin.f32 %v3126_v58, 31.0  ;;  %v17747_v4 = vmul.f32 0.5, %v3048_v17  ;;  %vm17834_vm12 = vcmp.lt.f32.partialorder %v13624_v44, 8388608.0 }
 0x1aa   :  { %v17749_v5 = vpack.c.bf16 %v3146_v59, %v3146_v59  ;;  %v14813_v59 = vld [vmem:[%s21434_s2 + $0x550] ss:$20 sps:$4 sm:$0xff]  }
 0x1ab   :  { %9493 = vmatpush2.bf16.msra.mxu1 %v14744_v62  ;;  %9518 = vmatpush1.bf16.msra.mxu0 %v14747_v63  ;;  %v14780_v62 = vld [vmem:[%s21434_s2 + $0x4d8] ss:$20 sps:$4 sm:$0xff]   ;;  %v17762_v10 = vpack.c.bf16 %v3151_v0, %v3151_v0  ;;  %v13808_v37 = vand.u32 2147483647, %v17747_v4  ;;  %v13813_v53 = vand.u32 2147483648, %v17747_v4 }
 0x1ac   :  { %9494 = vmatprep.subr.bf16.mxu1 %v14752_v2  ;;  %9519 = vmatprep.subr.bf16.mxu0 %v14755_v3  ;;  %v14783_v63 = vld [vmem:[%s21434_s2 + $0x618] ss:$20 sps:$4 sm:$0xff]   ;;  %v3053_v2 = vmin.f32 %v3028_v24, 31.0  ;;  %v14791_v3 = vld [vmem:[%s21434_s2 + $0x5f4] ss:$20 sps:$4 sm:$0xff]   ;;  %v13669_v24 = vand.u32 2147483648, %v17514_v42 }
 0x1ad   :  { %vm13809_vm13 = vcmp.lt.f32.partialorder %v13808_v37, 8388608.0 }
 0x1af   :  { %9495 = vmatpush2.bf16.msra.mxu1 %v14750_v6  ;;  %9520 = vmatpush1.bf16.msra.mxu0 %v14753_v7  ;;  %v14786_v6 = vld [vmem:[%s21434_s2 + $0x4b0] ss:$20 sps:$4 sm:$0xff]  }
 0x1b0   :  { %9496 = vmatprep.subr.bf16.mxu1 %v14758_v11  ;;  %9521 = vmatprep.subr.bf16.mxu0 %v14761_v12  ;;  %v14789_v7 = vld [vmem:[%s21434_s2 + $0x5f0] ss:$20 sps:$4 sm:$0xff]   ;;  %v17764_v11 = vmul.f32 0.5, %v3053_v2  ;;  %v14794_v12 = vld [vmem:[%s21434_s2 + $0x48c] ss:$20 sps:$4 sm:$0xff]  }
 0x1b1   :  { %v14821_v2 = vld [vmem:[%s21434_s2 + $0x52c] ss:$20 sps:$4 sm:$0xff]  }
 0x1b2   :  { %v13850_v25 = vcvt.f32.s32 %v17764_v11  ;;  %v13848_v0 = vand.u32 2147483647, %v17764_v11 }
 0x1b3   :  { %9497 = vmatpush2.bf16.msra.mxu1 %v14756_v14  ;;  %9522 = vmatpush1.bf16.msra.mxu0 %v14759_v15  ;;  %v13810_v14 = vcvt.f32.s32 %v17747_v4 }
 0x1b4   :  { %9498 = vmatprep.subr.bf16.mxu1 %v14764_v21  ;;  %9523 = vmatprep.subr.bf16.mxu0 %v14767_v23  ;;  %v14803_v23 = vld [vmem:[%s21434_s2 + $0x5a4] ss:$20 sps:$4 sm:$0xff]   ;;  %vm13849_vm15 = vcmp.lt.f32.partialorder %v13848_v0, 8388608.0  ;;  %v13640_v0 = vand.u32 2147483647, %v17281_v52 }
 0x1b6   :  { %vm17970_vm0 = vcmp.lt.f32.partialorder %v13640_v0, 8388608.0  ;;  %v14887_v0 = vld [vmem:[%s21434_s2 + $0xaf4] ss:$20 sps:$4 sm:$0xff]  }
 0x1b7   :  { %9499 = vmatpush2.bf16.msra.mxu1 %v14762_v26  ;;  %9524 = vmatpush1.bf16.msra.mxu0 %v14765_v31  ;;  %v13811_v26 = vcvt.s32.f32 %v13810_v14  ;;  %v14806_v31 = vld [vmem:[%s21434_s2 + $0x43c] ss:$20 sps:$4 sm:$0xff]  }
 0x1b8   :  { %9500 = vmatprep.subr.bf16.mxu1 %v14770_v38  ;;  %9525 = vmatprep.subr.bf16.mxu0 %v14773_v36  ;;  %v13851_v38 = vcvt.s32.f32 %v13850_v25  ;;  %v13667_v36 = vcvt.s32.f32 %v13666_v27  ;;  %v14816_v14 = vld [vmem:[%s21434_s2 + $0x3e8] ss:$20 sps:$4 sm:$0xff]  }
 0x1b9   :  { %v13812_v41 = vand.u32 2147483647, %v13811_v26  ;;  %v14830_v26 = vld [vmem:[%s21434_s2 + $0x75c] ss:$20 sps:$4 sm:$0xff]  }
 0x1ba   :  { %v13852_v17 = vand.u32 2147483647, %v13851_v38  ;;  %v13668_v58 = vand.u32 2147483647, %v13667_v36  ;;  %v14833_v27 = vld [vmem:[%s21434_s2 + $0x89c] ss:$20 sps:$4 sm:$0xff]  }
 0x1bb   :  { %9501 = vmatpush2.bf16.msra.mxu1 %v14768_v45  ;;  %9526 = vmatpush1.bf16.msra.mxu0 %v14771_v46  ;;  %v14804_v45 = vld [vmem:[%s21434_s2 + $0x438] ss:$20 sps:$4 sm:$0xff]   ;;  %v14839_v38 = vld [vmem:[%s21434_s2 + $0x874] ss:$20 sps:$4 sm:$0xff]  }
 0x1bc   :  { %9502 = vmatprep.subr.bf16.mxu1 %v14776_v49  ;;  %9527 = vmatprep.subr.bf16.mxu0 %v14779_v50  ;;  %v14807_v46 = vld [vmem:[%s21434_s2 + $0x578] ss:$20 sps:$4 sm:$0xff]   ;;  %v14812_v49 = vld [vmem:[%s21434_s2 + $0x414] ss:$20 sps:$4 sm:$0xff]  }
 0x1bd   :  { %v14815_v50 = vld [vmem:[%s21434_s2 + $0x554] ss:$20 sps:$4 sm:$0xff]  }
 0x1bf   :  { %9503 = vmatpush2.bf16.msra.mxu1 %v14774_v56  ;;  %9528 = vmatpush1.bf16.msra.mxu0 %v14777_v57  ;;  %v13664_v56 = vand.u32 2147483647, %v17514_v42  ;;  %v14810_v57 = vld [vmem:[%s21434_s2 + $0x410] ss:$20 sps:$4 sm:$0xff]  }
 0x1c0   :  { %9529 = vmatprep.subr.bf16.mxu0 %v14782_v60  ;;  %9554 = vmatprep.subr.bf16.mxu1 %v14785_v61  ;;  %v13814_v60 = vor.u32 %v13813_v53, %v13812_v41  ;;  %v13853_v61 = vand.u32 2147483648, %v17764_v11  ;;  %v14834_v41 = vld [vmem:[%s21434_s2 + $0x730] ss:$20 sps:$4 sm:$0xff]   ;;  %v14843_v53 = vld [vmem:[%s21434_s2 + $0x848] ss:$20 sps:$4 sm:$0xff]  }
 0x1c1   :  { %vm17841_vm14 = vcmp.lt.f32.partialorder %v13664_v56, 8388608.0 }
 0x1c2   :  { %v17757_v8 = vpop.f32.mrf.mxu0  ;;  %v17759_v9 = vpop.f32.mrf.mxu1  ;;  %9505 = vmatmul.mubr.bf16.vlgmr.msra.gmra.mxu1 %v17749_v5 }
 0x1c3   :  { %9530 = vmatpush2.bf16.msra.mxu0 %v14780_v62  ;;  %9555 = vmatpush1.bf16.msra.mxu1 %v14783_v63  ;;  %v13630_v62 = vor.u32 %v13629_v48, %v13628_v47  ;;  %v14818_v63 = vld [vmem:[%s21434_s2 + $0x3ec] ss:$20 sps:$4 sm:$0xff]   ;;  %v13642_v47 = vcvt.f32.s32 %v17281_v52 }
 0x1c4   :  { %9586 = vmatprep.mubr.bf16.mxu1 %v17762_v10  ;;  %v17774_v15 = vpop.f32.mrf.mxu0  ;;  %v17776_v16 = vpop.f32.mrf.mxu1  ;;  %9531 = vmatprep.subr.bf16.mxu0 %v14788_v1  ;;  %v14845_v48 = vld [vmem:[%s21434_s2 + $0x84c] ss:$20 sps:$4 sm:$0xff]  }
 0x1c5   :  { %9556 = vmatprep.subr.bf16.mxu1 %v14791_v3  ;;  %v13854_v3 = vor.u32 %v13853_v61, %v13852_v17  ;;  %v14848_v17 = vld [vmem:[%s21434_s2 + $0x6e4] ss:$20 sps:$4 sm:$0xff]   ;;  %v13643_v56 = vcvt.s32.f32 %v13642_v47  ;;  %v14849_v61 = vld [vmem:[%s21434_s2 + $0x820] ss:$20 sps:$4 sm:$0xff]  }
 0x1c6   :  { %v2789_v21 = vpop.f32.mrf.mxu1  ;;  %v2748_v40 = vpop.f32.mrf.mxu0 }
 0x1c7   :  { %9532 = vmatpush2.bf16.msra.mxu0 %v14786_v6  ;;  %9557 = vmatpush1.bf16.msra.mxu1 %v14789_v7  ;;  %v13670_v6 = vor.u32 %v13669_v24, %v13668_v58  ;;  %v14851_v58 = vld [vmem:[%s21434_s2 + $0x824] ss:$20 sps:$4 sm:$0xff]  }
 0x1c8   :  { %v2790_v35 = vpop.f32.mrf.mxu1  ;;  %9533 = vmatprep.subr.bf16.mxu0 %v14794_v12  ;;  %9558 = vmatprep.subr.bf16.mxu1 %v14797_v13  ;;  %v2749_v39 = vpop.f32.mrf.mxu0  ;;  %v13815_v12 = vsel %vm13809_vm13, %v13814_v60, %v17747_v4  ;;  %v13631_v13 = vsel %vm17834_vm12, %v13630_v62, %v17279_v51  ;;  %v14824_v51 = vld [vmem:[%s21434_s2 + $0x3c4] ss:$20 sps:$4 sm:$0xff]   ;;  %v14846_v60 = vld [vmem:[%s21434_s2 + $0x6e0] ss:$20 sps:$4 sm:$0xff]   ;;  %v14854_v62 = vld [vmem:[%s21434_s2 + $0x6bc] ss:$20 sps:$4 sm:$0xff]  }
 0x1c9   :  { %v13671_v4 = vsel %vm17841_vm14, %v13670_v6, %v17514_v42  ;;  %v3123_v21 = vmax.f32 %v13815_v12, 0.0  ;;  %v3025_v40 = vmax.f32 %v13631_v13, 0.0  ;;  %v14822_v42 = vld [vmem:[%s21434_s2 + $0x3c0] ss:$20 sps:$4 sm:$0xff]   ;;  %v14852_v6 = vld [vmem:[%s21434_s2 + $0x6b8] ss:$20 sps:$4 sm:$0xff]  }
 0x1ca   :  { %v14855_v7 = vld [vmem:[%s21434_s2 + $0x7f8] ss:$20 sps:$4 sm:$0xff]   ;;  %v13645_v13 = vand.u32 2147483648, %v17281_v52 }
 0x1cb   :  { %9534 = vmatpush2.bf16.msra.mxu0 %v14792_v18  ;;  %9559 = vmatpush1.bf16.msra.mxu1 %v14795_v19  ;;  %v14819_v18 = vld [vmem:[%s21434_s2 + $0x528] ss:$20 sps:$4 sm:$0xff]   ;;  %v13855_v19 = vsel %vm13849_vm15, %v13854_v3, %v17764_v11  ;;  %v14825_v11 = vld [vmem:[%s21434_s2 + $0x500] ss:$20 sps:$4 sm:$0xff]   ;;  %v3148_v25 = vmin.f32 %v3123_v21, 31.0  ;;  %v3050_v35 = vmin.f32 %v3025_v40, 31.0 }
 0x1cc   :  { %9535 = vmatprep.subr.bf16.mxu0 %v14800_v22  ;;  %9560 = vmatprep.subr.bf16.mxu1 %v14803_v23  ;;  %v3128_v22 = vmax.f32 %v13855_v19, 0.0  ;;  %v3030_v23 = vmax.f32 %v13671_v4, 0.0  ;;  %v14858_v40 = vld [vmem:[%s21434_s2 + $0x690] ss:$20 sps:$4 sm:$0xff]  }
 0x1cd   :  { %v17888_v37 = vmul.f32 0.5, %v3050_v35  ;;  %v14899_v35 = vld [vmem:[%s21434_s2 + $0xaa4] ss:$20 sps:$4 sm:$0xff]  }
 0x1ce   :  { %v3153_v39 = vmin.f32 %v3128_v22, 31.0  ;;  %v14861_v22 = vld [vmem:[%s21434_s2 + $0x7d0] ss:$20 sps:$4 sm:$0xff]  }
 0x1cf   :  { %9536 = vmatpush2.bf16.msra.mxu0 %v14798_v28  ;;  %9561 = vmatpush1.bf16.msra.mxu1 %v14801_v29  ;;  %v3055_v28 = vmin.f32 %v3030_v23, 31.0  ;;  %v14828_v29 = vld [vmem:[%s21434_s2 + $0x758] ss:$20 sps:$4 sm:$0xff]   ;;  %v13824_v19 = vand.u32 2147483647, %v17888_v37  ;;  %v13829_v4 = vand.u32 2147483648, %v17888_v37 }
 0x1d0   :  { %9537 = vmatprep.subr.bf16.mxu0 %v14806_v31  ;;  %9562 = vmatprep.subr.bf16.mxu1 %v14809_v55  ;;  %v17883_v31 = vpack.c.bf16 %v3148_v25, %v3148_v25  ;;  %v14836_v55 = vld [vmem:[%s21434_s2 + $0x734] ss:$20 sps:$4 sm:$0xff]   ;;  %v17894_v36 = vpack.c.bf16 %v3153_v39, %v3153_v39  ;;  %v14866_v25 = vld [vmem:[%s21434_s2 + $0x66c] ss:$20 sps:$4 sm:$0xff]   ;;  %v13680_v39 = vand.u32 2147483647, %v17516_v43 }
 0x1d1   :  { %v17899_v44 = vmul.f32 0.5, %v3055_v28  ;;  %vm13825_vm1 = vcmp.lt.f32.partialorder %v13824_v19, 8388608.0  ;;  %v14890_v19 = vld [vmem:[%s21434_s2 + $0x98c] ss:$20 sps:$4 sm:$0xff]  }
 0x1d2   :  { %vm13681_vm3 = vcmp.lt.f32.partialorder %v13680_v39, 8388608.0 }
 0x1d3   :  { %9538 = vmatpush2.bf16.msra.mxu0 %v14804_v45  ;;  %9563 = vmatpush1.bf16.msra.mxu1 %v14807_v46  ;;  %v14837_v45 = vld [vmem:[%s21434_s2 + $0x870] ss:$20 sps:$4 sm:$0xff]   ;;  %v14842_v46 = vld [vmem:[%s21434_s2 + $0x70c] ss:$20 sps:$4 sm:$0xff]   ;;  %v13866_v24 = vcvt.f32.s32 %v17899_v44 }
 0x1d4   :  { %9539 = vmatprep.subr.bf16.mxu0 %v14812_v49  ;;  %9564 = vmatprep.subr.bf16.mxu1 %v14815_v50  ;;  %v13826_v49 = vcvt.f32.s32 %v17888_v37  ;;  %v14840_v50 = vld [vmem:[%s21434_s2 + $0x708] ss:$20 sps:$4 sm:$0xff]  }
 0x1d5   :  { %v13867_v1 = vcvt.s32.f32 %v13866_v24  ;;  %v14881_v24 = vld [vmem:[%s21434_s2 + $0xb1c] ss:$20 sps:$4 sm:$0xff]  }
 0x1d7   :  { %9540 = vmatpush2.bf16.msra.mxu0 %v14810_v57  ;;  %9565 = vmatpush1.bf16.msra.mxu1 %v14813_v59  ;;  %v13682_v57 = vcvt.f32.s32 %v17516_v43  ;;  %v13827_v59 = vcvt.s32.f32 %v13826_v49 }
 0x1d8   :  { %9541 = vmatprep.subr.bf16.mxu0 %v14818_v63  ;;  %9566 = vmatprep.subr.bf16.mxu1 %v14821_v2  ;;  %v14857_v63 = vld [vmem:[%s21434_s2 + $0x7fc] ss:$20 sps:$4 sm:$0xff]   ;;  %v13644_v2 = vand.u32 2147483647, %v13643_v56 }
 0x1d9   :  { %v13683_v3 = vcvt.s32.f32 %v13682_v57  ;;  %v13828_v12 = vand.u32 2147483647, %v13827_v59 }
 0x1db   :  { %9542 = vmatpush2.bf16.msra.mxu0 %v14816_v14  ;;  %9567 = vmatpush1.bf16.msra.mxu1 %v14819_v18  ;;  %v14860_v14 = vld [vmem:[%s21434_s2 + $0x694] ss:$20 sps:$4 sm:$0xff]   ;;  %v13684_v21 = vand.u32 2147483647, %v13683_v3  ;;  %v13830_v23 = vor.u32 %v13829_v4, %v13828_v12  ;;  %v14882_v12 = vld [vmem:[%s21434_s2 + $0x9b0] ss:$20 sps:$4 sm:$0xff]  }
 0x1dc   :  { %9543 = vmatprep.subr.bf16.mxu0 %v14824_v51  ;;  %9568 = vmatprep.subr.bf16.mxu1 %v14827_v20  ;;  %v14863_v18 = vld [vmem:[%s21434_s2 + $0x7d4] ss:$20 sps:$4 sm:$0xff]   ;;  %v13868_v51 = vand.u32 2147483647, %v13867_v1  ;;  %v13646_v20 = vor.u32 %v13645_v13, %v13644_v2  ;;  %v14885_v13 = vld [vmem:[%s21434_s2 + $0xaf0] ss:$20 sps:$4 sm:$0xff]  }
 0x1dd   :  { %v14893_v4 = vld [vmem:[%s21434_s2 + $0xacc] ss:$20 sps:$4 sm:$0xff]  }
 0x1df   :  { %9544 = vmatpush2.bf16.msra.mxu0 %v14822_v42  ;;  %9569 = vmatpush1.bf16.msra.mxu1 %v14825_v11  ;;  %v13869_v42 = vand.u32 2147483648, %v17899_v44  ;;  %v13685_v11 = vand.u32 2147483648, %v17516_v43 }
 0x1e0   :  { %9570 = vmatprep.subr.bf16.mxu1 %v14830_v26  ;;  %9595 = vmatprep.subr.bf16.mxu0 %v14833_v27  ;;  %v14869_v26 = vld [vmem:[%s21434_s2 + $0x7ac] ss:$20 sps:$4 sm:$0xff]   ;;  %v13864_v27 = vand.u32 2147483647, %v17899_v44 }
 0x1e1   :  { %v13870_v28 = vor.u32 %v13869_v42, %v13868_v51  ;;  %v13658_v51 = vcvt.f32.s32 %v17497_v32 }
 0x1e2   :  { %9546 = vmatmul.mubr.bf16.vlgmr.msra.gmra.mxu0 %v17883_v31  ;;  %vm13865_vm2 = vcmp.lt.f32.partialorder %v13864_v27, 8388608.0  ;;  %v14896_v27 = vld [vmem:[%s21434_s2 + $0x964] ss:$20 sps:$4 sm:$0xff]  }
 0x1e3   :  { %9571 = vmatpush2.bf16.msra.mxu1 %v14828_v29  ;;  %9596 = vmatpush1.bf16.msra.mxu0 %v14831_v30  ;;  %v13647_v29 = vsel %vm17970_vm0, %v13646_v20, %v17281_v52  ;;  %v13686_v30 = vor.u32 %v13685_v11, %v13684_v21  ;;  %v14875_v52 = vld [vmem:[%s21434_s2 + $0x784] ss:$20 sps:$4 sm:$0xff]   ;;  %v13871_v47 = vsel %vm13865_vm2, %v13870_v28, %v17899_v44  ;;  %v13698_v11 = vcvt.f32.s32 %v17774_v15 }
 0x1e4   :  { %9627 = vmatprep.mubr.bf16.mxu0 %v17894_v36  ;;  %9572 = vmatprep.subr.bf16.mxu1 %v14836_v55  ;;  %v14864_v55 = vld [vmem:[%s21434_s2 + $0x668] ss:$20 sps:$4 sm:$0xff]   ;;  %v3130_v49 = vmax.f32 %v13871_v47, 0.0  ;;  %v13659_v39 = vcvt.s32.f32 %v13658_v51  ;;  %v13656_v47 = vand.u32 2147483647, %v17497_v32 }
 0x1e5   :  { %9597 = vmatprep.subr.bf16.mxu0 %v14839_v38  ;;  %v14867_v38 = vld [vmem:[%s21434_s2 + $0x7a8] ss:$20 sps:$4 sm:$0xff]  }
 0x1e6   :  { %v3155_v56 = vmin.f32 %v3130_v49, 31.0  ;;  %v13661_v49 = vand.u32 2147483648, %v17497_v32  ;;  %vm18095_vm4 = vcmp.lt.f32.partialorder %v13656_v47, 8388608.0 }
 0x1e7   :  { %9573 = vmatpush2.bf16.msra.mxu1 %v14834_v41  ;;  %9598 = vmatpush1.bf16.msra.mxu0 %v14837_v45  ;;  %v13831_v41 = vsel %vm13825_vm1, %v13830_v23, %v17888_v37  ;;  %v14872_v45 = vld [vmem:[%s21434_s2 + $0x644] ss:$20 sps:$4 sm:$0xff]   ;;  %v14891_v23 = vld [vmem:[%s21434_s2 + $0xac8] ss:$20 sps:$4 sm:$0xff]  }
 0x1e8   :  { %9574 = vmatprep.subr.bf16.mxu1 %v14842_v46  ;;  %9599 = vmatprep.subr.bf16.mxu0 %v14845_v48  ;;  %v3027_v46 = vmax.f32 %v13647_v29, 0.0  ;;  %v13687_v48 = vsel %vm13681_vm3, %v13686_v30, %v17516_v43  ;;  %v3125_v37 = vmax.f32 %v13831_v41, 0.0  ;;  %v14878_v43 = vld [vmem:[%s21434_s2 + $0x9dc] ss:$20 sps:$4 sm:$0xff]   ;;  %v18026_v3 = vpack.c.bf16 %v3155_v56, %v3155_v56  ;;  %v14894_v29 = vld [vmem:[%s21434_s2 + $0x960] ss:$20 sps:$4 sm:$0xff]  }
 0x1e9   :  { %v14897_v30 = vld [vmem:[%s21434_s2 + $0xaa0] ss:$20 sps:$4 sm:$0xff]   ;;  %v13699_v41 = vcvt.s32.f32 %v13698_v11 }
 0x1ea   :  { %v3150_v44 = vmin.f32 %v3125_v37, 31.0  ;;  %v13660_v37 = vand.u32 2147483647, %v13659_v39  ;;  %v14926_v39 = vld [vmem:[%s21434_s2 + $0xc5c] ss:$20 sps:$4 sm:$0xff]  }
 0x1eb   :  { %9575 = vmatpush2.bf16.msra.mxu1 %v14840_v50  ;;  %9600 = vmatpush1.bf16.msra.mxu0 %v14843_v53  ;;  %v3052_v50 = vmin.f32 %v3027_v46, 31.0  ;;  %v3032_v53 = vmax.f32 %v13687_v48, 0.0  ;;  %v14900_v48 = vld [vmem:[%s21434_s2 + $0x938] ss:$20 sps:$4 sm:$0xff]  }
 0x1ec   :  { %9576 = vmatprep.subr.bf16.mxu1 %v14848_v17  ;;  %9601 = vmatprep.subr.bf16.mxu0 %v14851_v58  ;;  %v14870_v17 = vld [vmem:[%s21434_s2 + $0x640] ss:$20 sps:$4 sm:$0xff]  }
 0x1ed   :  { %v14873_v58 = vld [vmem:[%s21434_s2 + $0x780] ss:$20 sps:$4 sm:$0xff]   ;;  %v18005_v57 = vmul.f32 0.5, %v3052_v50  ;;  %v3057_v59 = vmin.f32 %v3032_v53, 31.0  ;;  %v14903_v50 = vld [vmem:[%s21434_s2 + $0xa78] ss:$20 sps:$4 sm:$0xff]  }
 0x1ee   :  { %v14908_v53 = vld [vmem:[%s21434_s2 + $0x914] ss:$20 sps:$4 sm:$0xff]  }
 0x1ef   :  { %9577 = vmatpush2.bf16.msra.mxu1 %v14846_v60  ;;  %9602 = vmatpush1.bf16.msra.mxu0 %v14849_v61  ;;  %v14876_v60 = vld [vmem:[%s21434_s2 + $0x9d8] ss:$20 sps:$4 sm:$0xff]   ;;  %v13840_v28 = vand.u32 2147483647, %v18005_v57  ;;  %v13845_v46 = vand.u32 2147483648, %v18005_v57 }
 0x1f0   :  { %9578 = vmatprep.subr.bf16.mxu1 %v14854_v62  ;;  %9603 = vmatprep.subr.bf16.mxu0 %v14857_v63  ;;  %v14879_v61 = vld [vmem:[%s21434_s2 + $0xb18] ss:$20 sps:$4 sm:$0xff]   ;;  %v18013_v62 = vpack.c.bf16 %v3150_v44, %v3150_v44  ;;  %v14884_v63 = vld [vmem:[%s21434_s2 + $0x9b4] ss:$20 sps:$4 sm:$0xff]   ;;  %v13701_v44 = vand.u32 2147483648, %v17774_v15 }
 0x1f1   :  { %vm13841_vm5 = vcmp.lt.f32.partialorder %v13840_v28, 8388608.0  ;;  %v14929_v28 = vld [vmem:[%s21434_s2 + $0xd9c] ss:$20 sps:$4 sm:$0xff]  }
 0x1f3   :  { %9579 = vmatpush2.bf16.msra.mxu1 %v14852_v6  ;;  %9604 = vmatpush1.bf16.msra.mxu0 %v14855_v7  ;;  %v13842_v6 = vcvt.f32.s32 %v18005_v57  ;;  %v18029_v7 = vmul.f32 0.5, %v3057_v59 }
 0x1f4   :  { %9580 = vmatprep.subr.bf16.mxu1 %v14860_v14  ;;  %9605 = vmatprep.subr.bf16.mxu0 %v14863_v18 }
 0x1f5   :  { %v13882_v42 = vcvt.f32.s32 %v18029_v7  ;;  %v13885_v59 = vand.u32 2147483648, %v18029_v7 }
 0x1f7   :  { %9581 = vmatpush2.bf16.msra.mxu1 %v14858_v40  ;;  %9606 = vmatpush1.bf16.msra.mxu0 %v14861_v22  ;;  %v13843_v40 = vcvt.s32.f32 %v13842_v6  ;;  %v14888_v22 = vld [vmem:[%s21434_s2 + $0x988] ss:$20 sps:$4 sm:$0xff]   ;;  %v14909_v6 = vld [vmem:[%s21434_s2 + $0xa50] ss:$20 sps:$4 sm:$0xff]  }
 0x1f8   :  { %9582 = vmatprep.subr.bf16.mxu1 %v14866_v25  ;;  %9607 = vmatprep.subr.bf16.mxu0 %v14869_v26 }
 0x1fb   :  { %9583 = vmatpush2.bf16.msra.mxu1 %v14864_v55  ;;  %9608 = vmatpush1.bf16.msra.mxu0 %v14867_v38  ;;  %v13844_v55 = vand.u32 2147483647, %v13843_v40  ;;  %v13883_v38 = vcvt.s32.f32 %v13882_v42  ;;  %v14912_v40 = vld [vmem:[%s21434_s2 + $0x8e8] ss:$20 sps:$4 sm:$0xff]   ;;  %v14923_v42 = vld [vmem:[%s21434_s2 + $0xa04] ss:$20 sps:$4 sm:$0xff]  }
 0x1fc   :  { %9584 = vmatprep.subr.bf16.mxu1 %v14872_v45  ;;  %9609 = vmatprep.subr.bf16.mxu0 %v14875_v52  ;;  %v14902_v45 = vld [vmem:[%s21434_s2 + $0x93c] ss:$20 sps:$4 sm:$0xff]  }
 0x1fd   :  { %v14905_v52 = vld [vmem:[%s21434_s2 + $0xa7c] ss:$20 sps:$4 sm:$0xff]   ;;  %v13846_v56 = vor.u32 %v13845_v46, %v13844_v55  ;;  %v14927_v55 = vld [vmem:[%s21434_s2 + $0xd98] ss:$20 sps:$4 sm:$0xff]  }
 0x1ff   :  { %9585 = vmatpush2.bf16.msra.mxu1 %v14870_v17  ;;  %9610 = vmatpush1.bf16.msra.mxu0 %v14873_v58  ;;  %v13884_v17 = vand.u32 2147483647, %v13883_v38  ;;  %v13700_v58 = vand.u32 2147483647, %v13699_v41  ;;  %v14932_v41 = vld [vmem:[%s21434_s2 + $0xc34] ss:$20 sps:$4 sm:$0xff]  }
 0x200   :  { %9611 = vmatprep.subr.bf16.mxu0 %v14878_v43  ;;  %9636 = vmatprep.subr.bf16.mxu1 %v14881_v24  ;;  %v14911_v43 = vld [vmem:[%s21434_s2 + $0xa54] ss:$20 sps:$4 sm:$0xff]   ;;  %v13696_v24 = vand.u32 2147483647, %v17774_v15 }
 0x202   :  { %v18021_v1 = vpop.f32.mrf.mxu0  ;;  %v18023_v2 = vpop.f32.mrf.mxu1  ;;  %9587 = vmatmul.mubr.bf16.vlgmr.msra.gmra.mxu1 %v18013_v62  ;;  %vm18111_vm6 = vcmp.lt.f32.partialorder %v13696_v24, 8388608.0  ;;  %v14936_v24 = vld [vmem:[%s21434_s2 + $0xc08] ss:$20 sps:$4 sm:$0xff]  }
 0x203   :  { %9612 = vmatpush2.bf16.msra.mxu0 %v14876_v60  ;;  %9637 = vmatpush1.bf16.msra.mxu1 %v14879_v61  ;;  %v13662_v60 = vor.u32 %v13661_v49, %v13660_v37  ;;  %v13880_v61 = vand.u32 2147483647, %v18029_v7  ;;  %v13674_v37 = vcvt.f32.s32 %v17499_v33 }
 0x204   :  { %9668 = vmatprep.mubr.bf16.mxu1 %v18026_v3  ;;  %v18038_v14 = vpop.f32.mrf.mxu0  ;;  %v18040_v18 = vpop.f32.mrf.mxu1  ;;  %9613 = vmatprep.subr.bf16.mxu0 %v14884_v63  ;;  %v14947_v63 = vld [vmem:[%s21434_s2 + $0xd24] ss:$20 sps:$4 sm:$0xff]  }
 0x205   :  { %9638 = vmatprep.subr.bf16.mxu1 %v14887_v0  ;;  %v14906_v0 = vld [vmem:[%s21434_s2 + $0x910] ss:$20 sps:$4 sm:$0xff]   ;;  %vm13881_vm7 = vcmp.lt.f32.partialorder %v13880_v61, 8388608.0 }
 0x206   :  { %v2871_v20 = vpop.f32.mrf.mxu1  ;;  %v2830_v21 = vpop.f32.mrf.mxu0  ;;  %v14944_v61 = vld [vmem:[%s21434_s2 + $0xbe4] ss:$20 sps:$4 sm:$0xff]  }
 0x207   :  { %9614 = vmatpush2.bf16.msra.mxu0 %v14882_v12  ;;  %9639 = vmatpush1.bf16.msra.mxu1 %v14885_v13  ;;  %v13886_v12 = vor.u32 %v13885_v59, %v13884_v17  ;;  %v13702_v13 = vor.u32 %v13701_v44, %v13700_v58  ;;  %v13847_v20 = vsel %vm13841_vm5, %v13846_v56, %v18005_v57  ;;  %v14938_v17 = vld [vmem:[%s21434_s2 + $0xc0c] ss:$20 sps:$4 sm:$0xff]   ;;  %v14939_v56 = vld [vmem:[%s21434_s2 + $0xd48] ss:$20 sps:$4 sm:$0xff]  }
 0x208   :  { %v2872_v25 = vpop.f32.mrf.mxu1  ;;  %9615 = vmatprep.subr.bf16.mxu0 %v14890_v19  ;;  %9640 = vmatprep.subr.bf16.mxu1 %v14893_v4  ;;  %v2831_v26 = vpop.f32.mrf.mxu0  ;;  %v14914_v19 = vld [vmem:[%s21434_s2 + $0x8ec] ss:$20 sps:$4 sm:$0xff]   ;;  %v13663_v21 = vsel %vm18095_vm4, %v13662_v60, %v17497_v32  ;;  %v14920_v32 = vld [vmem:[%s21434_s2 + $0x8c4] ss:$20 sps:$4 sm:$0xff]   ;;  %v3127_v11 = vmax.f32 %v13847_v20, 0.0  ;;  %v13714_v60 = vcvt.f32.s32 %v17776_v16 }
 0x209   :  { %v14917_v4 = vld [vmem:[%s21434_s2 + $0xa2c] ss:$20 sps:$4 sm:$0xff]   ;;  %v13703_v57 = vsel %vm18111_vm6, %v13702_v13, %v17774_v15  ;;  %v3029_v25 = vmax.f32 %v13663_v21, 0.0  ;;  %v14950_v20 = vld [vmem:[%s21434_s2 + $0xbbc] ss:$20 sps:$4 sm:$0xff]  }
 0x20a   :  { %v14918_v15 = vld [vmem:[%s21434_s2 + $0x8c0] ss:$20 sps:$4 sm:$0xff]   ;;  %v13715_v51 = vcvt.s32.f32 %v13714_v60  ;;  %v14953_v21 = vld [vmem:[%s21434_s2 + $0xcfc] ss:$20 sps:$4 sm:$0xff]  }
 0x20b   :  { %9616 = vmatpush2.bf16.msra.mxu0 %v14888_v22  ;;  %9641 = vmatpush1.bf16.msra.mxu1 %v14891_v23  ;;  %v14915_v22 = vld [vmem:[%s21434_s2 + $0xa28] ss:$20 sps:$4 sm:$0xff]   ;;  %v13887_v23 = vsel %vm13881_vm7, %v13886_v12, %v18029_v7  ;;  %v14921_v7 = vld [vmem:[%s21434_s2 + $0xa00] ss:$20 sps:$4 sm:$0xff]  }
 0x20c   :  { %9617 = vmatprep.subr.bf16.mxu0 %v14896_v27  ;;  %9642 = vmatprep.subr.bf16.mxu1 %v14899_v35  ;;  %v3132_v26 = vmax.f32 %v13887_v23, 0.0  ;;  %v3034_v27 = vmax.f32 %v13703_v57, 0.0  ;;  %v3152_v35 = vmin.f32 %v3127_v11, 31.0  ;;  %v14941_v58 = vld [vmem:[%s21434_s2 + $0xd4c] ss:$20 sps:$4 sm:$0xff]  }
 0x20d   :  { %v14942_v13 = vld [vmem:[%s21434_s2 + $0xbe0] ss:$20 sps:$4 sm:$0xff]   ;;  %v14951_v23 = vld [vmem:[%s21434_s2 + $0xcf8] ss:$20 sps:$4 sm:$0xff]  }
 0x20e   :  { %v3157_v38 = vmin.f32 %v3132_v26, 31.0  ;;  %v18159_v46 = vpack.c.bf16 %v3152_v35, %v3152_v35  ;;  %v14954_v35 = vld [vmem:[%s21434_s2 + $0xb90] ss:$20 sps:$4 sm:$0xff]  }
 0x20f   :  { %9618 = vmatpush2.bf16.msra.mxu0 %v14894_v29  ;;  %9643 = vmatpush1.bf16.msra.mxu1 %v14897_v30  ;;  %v3054_v29 = vmin.f32 %v3029_v25, 31.0  ;;  %v14924_v30 = vld [vmem:[%s21434_s2 + $0xc58] ss:$20 sps:$4 sm:$0xff]   ;;  %v14956_v25 = vld [vmem:[%s21434_s2 + $0xb94] ss:$20 sps:$4 sm:$0xff]  }
 0x210   :  { %9619 = vmatprep.subr.bf16.mxu0 %v14902_v45  ;;  %9644 = vmatprep.subr.bf16.mxu1 %v14905_v52  ;;  %v3059_v45 = vmin.f32 %v3034_v27, 31.0  ;;  %v14935_v52 = vld [vmem:[%s21434_s2 + $0xd74] ss:$20 sps:$4 sm:$0xff]   ;;  %v18168_v49 = vpack.c.bf16 %v3157_v38, %v3157_v38  ;;  %v13716_v27 = vand.u32 2147483647, %v13715_v51 }
 0x211   :  { %v18161_v47 = vmul.f32 0.5, %v3054_v29  ;;  %v13717_v29 = vand.u32 2147483648, %v17776_v16  ;;  %v13712_v38 = vand.u32 2147483647, %v17776_v16 }
 0x213   :  { %9620 = vmatpush2.bf16.msra.mxu0 %v14900_v48  ;;  %9645 = vmatpush1.bf16.msra.mxu1 %v14903_v50  ;;  %v14930_v48 = vld [vmem:[%s21434_s2 + $0xc30] ss:$20 sps:$4 sm:$0xff]   ;;  %v18170_v50 = vmul.f32 0.5, %v3059_v45  ;;  %v13858_v44 = vcvt.f32.s32 %v18161_v47  ;;  %vm13713_vm11 = vcmp.lt.f32.partialorder %v13712_v38, 8388608.0 }
 0x214   :  { %9621 = vmatprep.subr.bf16.mxu0 %v14908_v53  ;;  %9646 = vmatprep.subr.bf16.mxu1 %v14911_v43  ;;  %v14933_v53 = vld [vmem:[%s21434_s2 + $0xd70] ss:$20 sps:$4 sm:$0xff]   ;;  %v13675_v43 = vcvt.s32.f32 %v13674_v37 }
 0x215   :  { %v13898_v59 = vcvt.f32.s32 %v18170_v50 }
 0x216   :  { %v13676_v12 = vand.u32 2147483647, %v13675_v43 }
 0x217   :  { %9622 = vmatpush2.bf16.msra.mxu0 %v14906_v0  ;;  %9647 = vmatpush1.bf16.msra.mxu1 %v14909_v6  ;;  %v13859_v0 = vcvt.s32.f32 %v13858_v44  ;;  %v13672_v6 = vand.u32 2147483647, %v17499_v33 }
 0x218   :  { %9623 = vmatprep.subr.bf16.mxu0 %v14914_v19  ;;  %9648 = vmatprep.subr.bf16.mxu1 %v14917_v4  ;;  %v14945_v19 = vld [vmem:[%s21434_s2 + $0xd20] ss:$20 sps:$4 sm:$0xff]   ;;  %v13899_v4 = vcvt.s32.f32 %v13898_v59 }
 0x219   :  { %v13860_v57 = vand.u32 2147483647, %v13859_v0  ;;  %vm18225_vm8 = vcmp.lt.f32.partialorder %v13672_v6, 8388608.0  ;;  %v14974_v0 = vld [vmem:[%s21434_s2 + $0xedc] ss:$20 sps:$4 sm:$0xff]  }
 0x21a   :  { %v13900_v26 = vand.u32 2147483647, %v13899_v4  ;;  %v14977_v6 = vld [vmem:[%s21434_s2 + $0x101c] ss:$20 sps:$4 sm:$0xff]   ;;  %v14980_v4 = vld [vmem:[%s21434_s2 + $0xeb4] ss:$20 sps:$4 sm:$0xff]  }
 0x21b   :  { %9624 = vmatpush2.bf16.msra.mxu0 %v14912_v40  ;;  %9649 = vmatpush1.bf16.msra.mxu1 %v14915_v22  ;;  %v13677_v40 = vand.u32 2147483648, %v17499_v33  ;;  %v14948_v22 = vld [vmem:[%s21434_s2 + $0xbb8] ss:$20 sps:$4 sm:$0xff]  }
 0x21c   :  { %9625 = vmatprep.subr.bf16.mxu0 %v14920_v32  ;;  %9650 = vmatprep.subr.bf16.mxu1 %v14923_v42  ;;  %v13856_v32 = vand.u32 2147483647, %v18161_v47  ;;  %v13861_v42 = vand.u32 2147483648, %v18161_v47 }
 0x21d   :  { %v13678_v11 = vor.u32 %v13677_v40, %v13676_v12  ;;  %v14972_v12 = vld [vmem:[%s21434_s2 + $0xed8] ss:$20 sps:$4 sm:$0xff]  }
 0x21e   :  { %vm13857_vm9 = vcmp.lt.f32.partialorder %v13856_v32, 8388608.0 }
 0x21f   :  { %9626 = vmatpush2.bf16.msra.mxu0 %v14918_v15  ;;  %9651 = vmatpush1.bf16.msra.mxu1 %v14921_v7  ;;  %v14959_v15 = vld [vmem:[%s21434_s2 + $0xcd4] ss:$20 sps:$4 sm:$0xff]   ;;  %v14989_v7 = vld [vmem:[%s21434_s2 + $0xfcc] ss:$20 sps:$4 sm:$0xff]  }
 0x220   :  { %9652 = vmatprep.subr.bf16.mxu1 %v14926_v39  ;;  %9677 = vmatprep.subr.bf16.mxu0 %v14929_v28  ;;  %v13862_v39 = vor.u32 %v13861_v42, %v13860_v57  ;;  %v13901_v28 = vand.u32 2147483648, %v18170_v50 }
 0x222   :  { %9628 = vmatmul.mubr.bf16.vlgmr.msra.gmra.mxu0 %v18159_v46  ;;  %v13902_v45 = vor.u32 %v13901_v28, %v13900_v26  ;;  %v13863_v37 = vsel %vm13857_vm9, %v13862_v39, %v18161_v47  ;;  %v14968_v47 = vld [vmem:[%s21434_s2 + $0xb44] ss:$20 sps:$4 sm:$0xff]  }
 0x223   :  { %9653 = vmatpush2.bf16.msra.mxu1 %v14924_v30  ;;  %9678 = vmatpush1.bf16.msra.mxu0 %v14927_v55  ;;  %v13896_v30 = vand.u32 2147483647, %v18170_v50  ;;  %v13679_v55 = vsel %vm18225_vm8, %v13678_v11, %v17499_v33  ;;  %v14965_v33 = vld [vmem:[%s21434_s2 + $0xcac] ss:$20 sps:$4 sm:$0xff]   ;;  %v14978_v11 = vld [vmem:[%s21434_s2 + $0xeb0] ss:$20 sps:$4 sm:$0xff]  }
 0x224   :  { %9709 = vmatprep.mubr.bf16.mxu0 %v18168_v49  ;;  %9654 = vmatprep.subr.bf16.mxu1 %v14932_v41  ;;  %v14957_v41 = vld [vmem:[%s21434_s2 + $0xcd0] ss:$20 sps:$4 sm:$0xff]  }
 0x225   :  { %9679 = vmatprep.subr.bf16.mxu0 %v14935_v52  ;;  %v13718_v52 = vor.u32 %v13717_v29, %v13716_v27  ;;  %vm13897_vm10 = vcmp.lt.f32.partialorder %v13896_v30, 8388608.0  ;;  %v14984_v30 = vld [vmem:[%s21434_s2 + $0xe88] ss:$20 sps:$4 sm:$0xff]  }
 0x226   :  { %v13903_v44 = vsel %vm13897_vm10, %v13902_v45, %v18170_v50  ;;  %v14969_v50 = vld [vmem:[%s21434_s2 + $0xc80] ss:$20 sps:$4 sm:$0xff]  }
 0x227   :  { %9655 = vmatpush2.bf16.msra.mxu1 %v14930_v48  ;;  %9680 = vmatpush1.bf16.msra.mxu0 %v14933_v53  ;;  %v14962_v48 = vld [vmem:[%s21434_s2 + $0xb6c] ss:$20 sps:$4 sm:$0xff]   ;;  %v3031_v53 = vmax.f32 %v13679_v55, 0.0  ;;  %v13719_v43 = vsel %vm13713_vm11, %v13718_v52, %v17776_v16  ;;  %v3134_v60 = vmax.f32 %v13903_v44, 0.0  ;;  %v14987_v55 = vld [vmem:[%s21434_s2 + $0xfc8] ss:$20 sps:$4 sm:$0xff]  }
 0x228   :  { %9656 = vmatprep.subr.bf16.mxu1 %v14938_v17  ;;  %9681 = vmatprep.subr.bf16.mxu0 %v14941_v58  ;;  %v14960_v17 = vld [vmem:[%s21434_s2 + $0xb68] ss:$20 sps:$4 sm:$0xff]   ;;  %v14966_v16 = vld [vmem:[%s21434_s2 + $0xb40] ss:$20 sps:$4 sm:$0xff]  }
 0x229   :  { %v14963_v58 = vld [vmem:[%s21434_s2 + $0xca8] ss:$20 sps:$4 sm:$0xff]   ;;  %v3056_v59 = vmin.f32 %v3031_v53, 31.0 }
 0x22b   :  { %9657 = vmatpush2.bf16.msra.mxu1 %v14936_v24  ;;  %9682 = vmatpush1.bf16.msra.mxu0 %v14939_v56  ;;  %v14971_v24 = vld [vmem:[%s21434_s2 + $0xc84] ss:$20 sps:$4 sm:$0xff]   ;;  %v3129_v56 = vmax.f32 %v13863_v37, 0.0  ;;  %v18284_v51 = vmul.f32 0.5, %v3056_v59  ;;  %v15001_v59 = vld [vmem:[%s21434_s2 + $0xf7c] ss:$20 sps:$4 sm:$0xff]  }
 0x22c   :  { %9658 = vmatprep.subr.bf16.mxu1 %v14944_v61  ;;  %9683 = vmatprep.subr.bf16.mxu0 %v14947_v63  ;;  %v3036_v61 = vmax.f32 %v13719_v43, 0.0 }
 0x22d   :  { %v3154_v63 = vmin.f32 %v3129_v56, 31.0  ;;  %v13874_v32 = vcvt.f32.s32 %v18284_v51  ;;  %v13872_v53 = vand.u32 2147483647, %v18284_v51  ;;  %v14998_v56 = vld [vmem:[%s21434_s2 + $0xe3c] ss:$20 sps:$4 sm:$0xff]  }
 0x22f   :  { %9659 = vmatpush2.bf16.msra.mxu1 %v14942_v13  ;;  %9684 = vmatpush1.bf16.msra.mxu0 %v14945_v19  ;;  %v14975_v13 = vld [vmem:[%s21434_s2 + $0x1018] ss:$20 sps:$4 sm:$0xff]   ;;  %v3159_v19 = vmin.f32 %v3134_v60, 31.0  ;;  %v18289_v40 = vpack.c.bf16 %v3154_v63, %v3154_v63  ;;  %v13875_v29 = vcvt.s32.f32 %v13874_v32  ;;  %v13688_v60 = vand.u32 2147483647, %v17757_v8 }
 0x230   :  { %9660 = vmatprep.subr.bf16.mxu1 %v14950_v20  ;;  %9685 = vmatprep.subr.bf16.mxu0 %v14953_v21  ;;  %v3061_v20 = vmin.f32 %v3036_v61, 31.0  ;;  %v14983_v21 = vld [vmem:[%s21434_s2 + $0xff4] ss:$20 sps:$4 sm:$0xff]   ;;  %v14996_v61 = vld [vmem:[%s21434_s2 + $0xe38] ss:$20 sps:$4 sm:$0xff]   ;;  %vm13873_vm13 = vcmp.lt.f32.partialorder %v13872_v53, 8388608.0 }
 0x231   :  { %v18296_v57 = vpack.c.bf16 %v3159_v19, %v3159_v19  ;;  %v13876_v44 = vand.u32 2147483647, %v13875_v29  ;;  %v14999_v63 = vld [vmem:[%s21434_s2 + $0xf78] ss:$20 sps:$4 sm:$0xff]   ;;  %v15007_v19 = vld [vmem:[%s21434_s2 + $0xf54] ss:$20 sps:$4 sm:$0xff]  }
 0x232   :  { %v18299_v42 = vmul.f32 0.5, %v3061_v20  ;;  %vm18365_vm12 = vcmp.lt.f32.partialorder %v13688_v60, 8388608.0  ;;  %v15013_v29 = vld [vmem:[%s21434_s2 + $0xf2c] ss:$20 sps:$4 sm:$0xff]   ;;  %v15028_v60 = vld [vmem:[%s21434_s2 + $0x1134] ss:$20 sps:$4 sm:$0xff]  }
 0x233   :  { %9661 = vmatpush2.bf16.msra.mxu1 %v14948_v22  ;;  %9686 = vmatpush1.bf16.msra.mxu0 %v14951_v23 }
 0x234   :  { %9662 = vmatprep.subr.bf16.mxu1 %v14956_v25  ;;  %9687 = vmatprep.subr.bf16.mxu0 %v14959_v15  ;;  %v14981_v25 = vld [vmem:[%s21434_s2 + $0xff0] ss:$20 sps:$4 sm:$0xff]   ;;  %v14986_v15 = vld [vmem:[%s21434_s2 + $0xe8c] ss:$20 sps:$4 sm:$0xff]   ;;  %v13914_v38 = vcvt.f32.s32 %v18299_v42 }
 0x236   :  { %v13915_v43 = vcvt.s32.f32 %v13914_v38 }
 0x237   :  { %9663 = vmatpush2.bf16.msra.mxu1 %v14954_v35  ;;  %9688 = vmatpush1.bf16.msra.mxu0 %v14957_v41  ;;  %v13690_v35 = vcvt.f32.s32 %v17757_v8  ;;  %v13730_v41 = vcvt.f32.s32 %v18038_v14 }
 0x238   :  { %9664 = vmatprep.subr.bf16.mxu1 %v14962_v48  ;;  %9689 = vmatprep.subr.bf16.mxu0 %v14965_v33  ;;  %v14992_v48 = vld [vmem:[%s21434_s2 + $0xe64] ss:$20 sps:$4 sm:$0xff]  }
 0x239   :  { %v14995_v33 = vld [vmem:[%s21434_s2 + $0xfa4] ss:$20 sps:$4 sm:$0xff]   ;;  %v13691_v37 = vcvt.s32.f32 %v13690_v35 }
 0x23b   :  { %9665 = vmatpush2.bf16.msra.mxu1 %v14960_v17  ;;  %9690 = vmatpush1.bf16.msra.mxu0 %v14963_v58  ;;  %v14990_v17 = vld [vmem:[%s21434_s2 + $0xe60] ss:$20 sps:$4 sm:$0xff]  }
 0x23c   :  { %9666 = vmatprep.subr.bf16.mxu1 %v14968_v47  ;;  %9691 = vmatprep.subr.bf16.mxu0 %v14971_v24  ;;  %v14993_v58 = vld [vmem:[%s21434_s2 + $0xfa0] ss:$20 sps:$4 sm:$0xff]   ;;  %v13877_v47 = vand.u32 2147483648, %v18284_v51  ;;  %v13731_v24 = vcvt.s32.f32 %v13730_v41  ;;  %v15008_v41 = vld [vmem:[%s21434_s2 + $0xde8] ss:$20 sps:$4 sm:$0xff]  }
 0x23e   :  { %v13878_v20 = vor.u32 %v13877_v47, %v13876_v44  ;;  %v15022_v44 = vld [vmem:[%s21434_s2 + $0x115c] ss:$20 sps:$4 sm:$0xff]  }
 0x23f   :  { %9667 = vmatpush2.bf16.msra.mxu1 %v14966_v16  ;;  %9692 = vmatpush1.bf16.msra.mxu0 %v14969_v50  ;;  %v13692_v16 = vand.u32 2147483647, %v13691_v37  ;;  %v13693_v50 = vand.u32 2147483648, %v17757_v8 }
 0x240   :  { %9693 = vmatprep.subr.bf16.mxu0 %v14974_v0  ;;  %9718 = vmatprep.subr.bf16.mxu1 %v14977_v6  ;;  %v15004_v0 = vld [vmem:[%s21434_s2 + $0xe14] ss:$20 sps:$4 sm:$0xff]   ;;  %v13916_v6 = vand.u32 2147483647, %v13915_v43  ;;  %v15025_v43 = vld [vmem:[%s21434_s2 + $0x129c] ss:$20 sps:$4 sm:$0xff]  }
 0x241   :  { %v13694_v32 = vor.u32 %v13693_v50, %v13692_v16  ;;  %v15031_v16 = vld [vmem:[%s21434_s2 + $0x1274] ss:$20 sps:$4 sm:$0xff]  }
 0x242   :  { %v18291_v22 = vpop.f32.mrf.mxu0  ;;  %v18293_v23 = vpop.f32.mrf.mxu1  ;;  %9669 = vmatmul.mubr.bf16.vlgmr.msra.gmra.mxu1 %v18289_v40 }
 0x243   :  { %9694 = vmatpush2.bf16.msra.mxu0 %v14972_v12  ;;  %9719 = vmatpush1.bf16.msra.mxu1 %v14975_v13  ;;  %v13732_v12 = vand.u32 2147483647, %v13731_v24  ;;  %v13733_v13 = vand.u32 2147483648, %v18038_v14  ;;  %v13695_v38 = vsel %vm18365_vm12, %v13694_v32, %v17757_v8  ;;  %v15016_v8 = vld [vmem:[%s21434_s2 + $0xdc4] ss:$20 sps:$4 sm:$0xff]  }
 0x244   :  { %9750 = vmatprep.mubr.bf16.mxu1 %v18296_v57  ;;  %v18308_v26 = vpop.f32.mrf.mxu0  ;;  %v18310_v27 = vpop.f32.mrf.mxu1  ;;  %9695 = vmatprep.subr.bf16.mxu0 %v14980_v4  ;;  %v13728_v4 = vand.u32 2147483647, %v18038_v14  ;;  %v3033_v37 = vmax.f32 %v13695_v38, 0.0  ;;  %v15020_v24 = vld [vmem:[%s21434_s2 + $0x1158] ss:$20 sps:$4 sm:$0xff]  }
 0x245   :  { %9720 = vmatprep.subr.bf16.mxu1 %v14983_v21  ;;  %v13917_v21 = vand.u32 2147483648, %v18299_v42  ;;  %v15037_v32 = vld [vmem:[%s21434_s2 + $0x124c] ss:$20 sps:$4 sm:$0xff]   ;;  %v15043_v38 = vld [vmem:[%s21434_s2 + $0x1224] ss:$20 sps:$4 sm:$0xff]  }
 0x246   :  { %v2953_v39 = vpop.f32.mrf.mxu1  ;;  %v2912_v28 = vpop.f32.mrf.mxu0  ;;  %vm18381_vm14 = vcmp.lt.f32.partialorder %v13728_v4, 8388608.0  ;;  %v3058_v47 = vmin.f32 %v3033_v37, 31.0  ;;  %v15029_v4 = vld [vmem:[%s21434_s2 + $0x1270] ss:$20 sps:$4 sm:$0xff]  }
 0x247   :  { %9696 = vmatpush2.bf16.msra.mxu0 %v14978_v11  ;;  %9721 = vmatpush1.bf16.msra.mxu1 %v14981_v25  ;;  %v13912_v11 = vand.u32 2147483647, %v18299_v42  ;;  %v13918_v35 = vor.u32 %v13917_v21, %v13916_v6  ;;  %v13734_v39 = vor.u32 %v13733_v13, %v13732_v12  ;;  %v15010_v28 = vld [vmem:[%s21434_s2 + $0xdec] ss:$20 sps:$4 sm:$0xff]   ;;  %v13706_v13 = vcvt.f32.s32 %v17759_v9  ;;  %v15049_v37 = vld [vmem:[%s21434_s2 + $0x11fc] ss:$20 sps:$4 sm:$0xff]  }
 0x248   :  { %v2954_v45 = vpop.f32.mrf.mxu1  ;;  %9697 = vmatprep.subr.bf16.mxu0 %v14986_v15  ;;  %9722 = vmatprep.subr.bf16.mxu1 %v14989_v7  ;;  %v2913_v52 = vpop.f32.mrf.mxu0  ;;  %v15002_v15 = vld [vmem:[%s21434_s2 + $0xe10] ss:$20 sps:$4 sm:$0xff]  }
 0x249   :  { %v15005_v7 = vld [vmem:[%s21434_s2 + $0xf50] ss:$20 sps:$4 sm:$0xff]   ;;  %vm13913_vm15 = vcmp.lt.f32.partialorder %v13912_v11, 8388608.0  ;;  %v15011_v45 = vld [vmem:[%s21434_s2 + $0xf28] ss:$20 sps:$4 sm:$0xff]  }
 0x24a   :  { %v13919_v52 = vsel %vm13913_vm15, %v13918_v35, %v18299_v42  ;;  %v15017_v42 = vld [vmem:[%s21434_s2 + $0xf00] ss:$20 sps:$4 sm:$0xff]   ;;  %v15032_v35 = vld [vmem:[%s21434_s2 + $0x1108] ss:$20 sps:$4 sm:$0xff]  }
 0x24b   :  { %9698 = vmatpush2.bf16.msra.mxu0 %v14984_v30  ;;  %9723 = vmatpush1.bf16.msra.mxu1 %v14987_v55  ;;  %v13879_v55 = vsel %vm13873_vm13, %v13878_v20, %v18284_v51  ;;  %v13735_v51 = vsel %vm18381_vm14, %v13734_v39, %v18038_v14  ;;  %v3136_v53 = vmax.f32 %v13919_v52, 0.0  ;;  %v15014_v14 = vld [vmem:[%s21434_s2 + $0xdc0] ss:$20 sps:$4 sm:$0xff]   ;;  %v15035_v39 = vld [vmem:[%s21434_s2 + $0x1248] ss:$20 sps:$4 sm:$0xff]  }
 0x24c   :  { %9699 = vmatprep.subr.bf16.mxu0 %v14992_v48  ;;  %9724 = vmatprep.subr.bf16.mxu1 %v14995_v33  ;;  %v15019_v48 = vld [vmem:[%s21434_s2 + $0xf04] ss:$20 sps:$4 sm:$0xff]   ;;  %v3131_v33 = vmax.f32 %v13879_v55, 0.0  ;;  %v15034_v20 = vld [vmem:[%s21434_s2 + $0x110c] ss:$20 sps:$4 sm:$0xff]  }
 0x24d   :  { %v15040_v55 = vld [vmem:[%s21434_s2 + $0x10e4] ss:$20 sps:$4 sm:$0xff]   ;;  %v15038_v52 = vld [vmem:[%s21434_s2 + $0x10e0] ss:$20 sps:$4 sm:$0xff]  }
 0x24f   :  { %9700 = vmatpush2.bf16.msra.mxu0 %v14990_v17  ;;  %9725 = vmatpush1.bf16.msra.mxu1 %v14993_v58  ;;  %v3038_v17 = vmax.f32 %v13735_v51, 0.0  ;;  %v3156_v58 = vmin.f32 %v3131_v33, 31.0  ;;  %v15041_v51 = vld [vmem:[%s21434_s2 + $0x1220] ss:$20 sps:$4 sm:$0xff]   ;;  %v15046_v33 = vld [vmem:[%s21434_s2 + $0x10bc] ss:$20 sps:$4 sm:$0xff]  }
 0x250   :  { %9701 = vmatprep.subr.bf16.mxu0 %v14998_v56  ;;  %9726 = vmatprep.subr.bf16.mxu1 %v15001_v59  ;;  %v15023_v56 = vld [vmem:[%s21434_s2 + $0x1298] ss:$20 sps:$4 sm:$0xff]   ;;  %v3161_v59 = vmin.f32 %v3136_v53, 31.0 }
 0x251   :  { %v18429_v50 = vpack.c.bf16 %v3156_v58, %v3156_v58  ;;  %v15044_v53 = vld [vmem:[%s21434_s2 + $0x10b8] ss:$20 sps:$4 sm:$0xff]  }
 0x252   :  { %v18437_v12 = vpack.c.bf16 %v3161_v59, %v3161_v59  ;;  %v13704_v59 = vand.u32 2147483647, %v17759_v9 }
 0x253   :  { %9702 = vmatpush2.bf16.msra.mxu0 %v14996_v61  ;;  %9727 = vmatpush1.bf16.msra.mxu1 %v14999_v63  ;;  %v3063_v61 = vmin.f32 %v3038_v17, 31.0  ;;  %v18431_v63 = vmul.f32 0.5, %v3058_v47  ;;  %v15047_v17 = vld [vmem:[%s21434_s2 + $0x11f8] ss:$20 sps:$4 sm:$0xff]   ;;  %v13709_v47 = vand.u32 2147483648, %v17759_v9 }
 0x254   :  { %9703 = vmatprep.subr.bf16.mxu0 %v15004_v0  ;;  %9728 = vmatprep.subr.bf16.mxu1 %v15007_v19  ;;  %v15026_v0 = vld [vmem:[%s21434_s2 + $0x1130] ss:$20 sps:$4 sm:$0xff]   ;;  %vm18517_vm1 = vcmp.lt.f32.partialorder %v13704_v59, 8388608.0 }
 0x255   :  { %v18440_v19 = vmul.f32 0.5, %v3063_v61  ;;  %v13890_v11 = vcvt.f32.s32 %v18431_v63  ;;  %v13893_v58 = vand.u32 2147483648, %v18431_v63 }
 0x257   :  { %9704 = vmatpush2.bf16.msra.mxu0 %v15002_v15  ;;  %9729 = vmatpush1.bf16.msra.mxu1 %v15005_v7  ;;  %v13707_v7 = vcvt.s32.f32 %v13706_v13  ;;  %v13928_v13 = vand.u32 2147483647, %v18440_v19 }
 0x258   :  { %9705 = vmatprep.subr.bf16.mxu0 %v15010_v28  ;;  %9730 = vmatprep.subr.bf16.mxu1 %v15013_v29  ;;  %v13930_v28 = vcvt.f32.s32 %v18440_v19  ;;  %v13746_v29 = vcvt.f32.s32 %v18040_v18 }
 0x259   :  { %vm13929_vm2 = vcmp.lt.f32.partialorder %v13928_v13, 8388608.0  ;;  %v15085_v13 = vld [vmem:[%s21434_s2 + $0x14cc] ss:$20 sps:$4 sm:$0xff]  }
 0x25b   :  { %9706 = vmatpush2.bf16.msra.mxu0 %v15008_v41  ;;  %9731 = vmatpush1.bf16.msra.mxu1 %v15011_v45  ;;  %v13891_v41 = vcvt.s32.f32 %v13890_v11  ;;  %v13708_v45 = vand.u32 2147483647, %v13707_v7  ;;  %v15058_v11 = vld [vmem:[%s21434_s2 + $0x106c] ss:$20 sps:$4 sm:$0xff]   ;;  %v13762_v7 = vcvt.f32.s32 %v18308_v26 }
 0x25c   :  { %9707 = vmatprep.subr.bf16.mxu0 %v15016_v8  ;;  %9732 = vmatprep.subr.bf16.mxu1 %v15019_v48  ;;  %v13931_v8 = vcvt.s32.f32 %v13930_v28  ;;  %v13747_v48 = vcvt.s32.f32 %v13746_v29  ;;  %v15056_v29 = vld [vmem:[%s21434_s2 + $0x1068] ss:$20 sps:$4 sm:$0xff]  }
 0x25f   :  { %9708 = vmatpush2.bf16.msra.mxu0 %v15014_v14  ;;  %9733 = vmatpush1.bf16.msra.mxu1 %v15017_v42  ;;  %v13892_v14 = vand.u32 2147483647, %v13891_v41  ;;  %v13888_v42 = vand.u32 2147483647, %v18431_v63 }
 0x260   :  { %9734 = vmatprep.subr.bf16.mxu1 %v15022_v44  ;;  %9759 = vmatprep.subr.bf16.mxu0 %v15025_v43  ;;  %v15052_v44 = vld [vmem:[%s21434_s2 + $0x1094] ss:$20 sps:$4 sm:$0xff]   ;;  %v13932_v43 = vand.u32 2147483647, %v13931_v8 }
 0x261   :  { %v13894_v61 = vor.u32 %v13893_v58, %v13892_v14  ;;  %vm18513_vm0 = vcmp.lt.f32.partialorder %v13888_v42, 8388608.0  ;;  %v15076_v42 = vld [vmem:[%s21434_s2 + $0x13b4] ss:$20 sps:$4 sm:$0xff]  }
 0x262   :  { %v13289_v6 = vpop.f32.mrf.mxu0  ;;  %9710 = vmatmul.mubr.bf16.vlgmr.msra.gmra.mxu0 %v18429_v50 }
 0x263   :  { %9735 = vmatpush2.bf16.msra.mxu1 %v15020_v24  ;;  %9760 = vmatpush1.bf16.msra.mxu0 %v15023_v56  ;;  %v13748_v24 = vand.u32 2147483647, %v13747_v48  ;;  %v15055_v56 = vld [vmem:[%s21434_s2 + $0x11d4] ss:$20 sps:$4 sm:$0xff]   ;;  %v15070_v48 = vld [vmem:[%s21434_s2 + $0x13dc] ss:$20 sps:$4 sm:$0xff]  }
 0x264   :  { %9791 = vmatprep.mubr.bf16.mxu0 %v18437_v12  ;;  %v13290_v21 = vpop.f32.mrf.mxu0  ;;  %9736 = vmatprep.subr.bf16.mxu1 %v15028_v60  ;;  %v15050_v60 = vld [vmem:[%s21434_s2 + $0x1090] ss:$20 sps:$4 sm:$0xff]  }
 0x265   :  { %v18453_v25 = vadd.f32 %v13290_v21, %v13289_v6  ;;  %9761 = vmatprep.subr.bf16.mxu0 %v15031_v16  ;;  %v13933_v16 = vand.u32 2147483648, %v18440_v19  ;;  %v13749_v6 = vand.u32 2147483648, %v18040_v18 }
 0x266   :  { %v13292_v15 = vpop.f32.mrf.mxu0 }
 0x267   :  { %9737 = vmatpush2.bf16.msra.mxu1 %v15026_v0  ;;  %9762 = vmatpush1.bf16.msra.mxu0 %v15029_v4  ;;  %v13710_v0 = vor.u32 %v13709_v47, %v13708_v45  ;;  %v13744_v4 = vand.u32 2147483647, %v18040_v18  ;;  %v13934_v21 = vor.u32 %v13933_v16, %v13932_v43  ;;  %v15061_v15 = vld [vmem:[%s21434_s2 + $0x11ac] ss:$20 sps:$4 sm:$0xff]   ;;  %v15077_v16 = vld [vmem:[%s21434_s2 + $0x14f0] ss:$20 sps:$4 sm:$0xff]  }
 0x268   :  { %9738 = vmatprep.subr.bf16.mxu1 %v15034_v20  ;;  %9763 = vmatprep.subr.bf16.mxu0 %v15037_v32  ;;  %v13293_v30 = vpop.f32.mrf.mxu0  ;;  %v15053_v20 = vld [vmem:[%s21434_s2 + $0x11d0] ss:$20 sps:$4 sm:$0xff]   ;;  %v13750_v32 = vor.u32 %v13749_v6, %v13748_v24 }
 0x269   :  { %v13711_v28 = vsel %vm18517_vm1, %v13710_v0, %v17759_v9  ;;  %vm13745_vm3 = vcmp.lt.f32.partialorder %v13744_v4, 8388608.0  ;;  %v15059_v30 = vld [vmem:[%s21434_s2 + $0x11a8] ss:$20 sps:$4 sm:$0xff]   ;;  %v15064_v9 = vld [vmem:[%s21434_s2 + $0x1044] ss:$20 sps:$4 sm:$0xff]  }
 0x26a   :  { %v3035_v45 = vmax.f32 %v13711_v28, 0.0  ;;  %v15074_v24 = vld [vmem:[%s21434_s2 + $0x13b0] ss:$20 sps:$4 sm:$0xff]   ;;  %v15082_v0 = vld [vmem:[%s21434_s2 + $0x138c] ss:$20 sps:$4 sm:$0xff]  }
 0x26b   :  { %9739 = vmatpush2.bf16.msra.mxu1 %v15032_v35  ;;  %9764 = vmatpush1.bf16.msra.mxu0 %v15035_v39  ;;  %v13895_v39 = vsel %vm18513_vm0, %v13894_v61, %v18431_v63  ;;  %v13751_v63 = vsel %vm13745_vm3, %v13750_v32, %v18040_v18  ;;  %v15062_v18 = vld [vmem:[%s21434_s2 + $0x1040] ss:$20 sps:$4 sm:$0xff]   ;;  %v15080_v32 = vld [vmem:[%s21434_s2 + $0x1388] ss:$20 sps:$4 sm:$0xff]   ;;  %v15091_v28 = vld [vmem:[%s21434_s2 + $0x14a4] ss:$20 sps:$4 sm:$0xff]  }
 0x26c   :  { %9740 = vmatprep.subr.bf16.mxu1 %v15040_v55  ;;  %9765 = vmatprep.subr.bf16.mxu0 %v15043_v38  ;;  %v13935_v55 = vsel %vm13929_vm2, %v13934_v21, %v18440_v19  ;;  %v15067_v38 = vld [vmem:[%s21434_s2 + $0x1184] ss:$20 sps:$4 sm:$0xff]   ;;  %v3133_v41 = vmax.f32 %v13895_v39, 0.0  ;;  %v15065_v19 = vld [vmem:[%s21434_s2 + $0x1180] ss:$20 sps:$4 sm:$0xff]  }
 0x26d   :  { %v15088_v39 = vld [vmem:[%s21434_s2 + $0x1364] ss:$20 sps:$4 sm:$0xff]  }
 0x26e   :  { %v3158_v8 = vmin.f32 %v3133_v41, 31.0 }
 0x26f   :  { %9741 = vmatpush2.bf16.msra.mxu1 %v15038_v52  ;;  %9766 = vmatpush1.bf16.msra.mxu0 %v15041_v51  ;;  %v3138_v52 = vmax.f32 %v13935_v55, 0.0  ;;  %v3040_v51 = vmax.f32 %v13751_v63, 0.0  ;;  %v13725_v63 = vand.u32 2147483648, %v18021_v1 }
 0x270   :  { %9742 = vmatprep.subr.bf16.mxu1 %v15046_v33  ;;  %9767 = vmatprep.subr.bf16.mxu0 %v15049_v37  ;;  %v15073_v33 = vld [vmem:[%s21434_s2 + $0x151c] ss:$20 sps:$4 sm:$0xff]   ;;  %v3060_v37 = vmin.f32 %v3035_v45, 31.0  ;;  %v18565_v43 = vpack.c.bf16 %v3158_v8, %v3158_v8  ;;  %v13763_v45 = vcvt.s32.f32 %v13762_v7  ;;  %v15109_v7 = vld [vmem:[%s21434_s2 + $0x142c] ss:$20 sps:$4 sm:$0xff]  }
 0x271   :  { %v3163_v14 = vmin.f32 %v3138_v52, 31.0  ;;  %v3065_v58 = vmin.f32 %v3040_v51, 31.0  ;;  %v15094_v52 = vld [vmem:[%s21434_s2 + $0x133c] ss:$20 sps:$4 sm:$0xff]  }
 0x272   :  { %v18567_v47 = vmul.f32 0.5, %v3060_v37  ;;  %v15097_v51 = vld [vmem:[%s21434_s2 + $0x147c] ss:$20 sps:$4 sm:$0xff]  }
 0x273   :  { %9743 = vmatpush2.bf16.msra.mxu1 %v15044_v53  ;;  %9768 = vmatpush1.bf16.msra.mxu0 %v15047_v17  ;;  %v15068_v53 = vld [vmem:[%s21434_s2 + $0x13d8] ss:$20 sps:$4 sm:$0xff]   ;;  %v18578_v61 = vmul.f32 0.5, %v3065_v58  ;;  %v13764_v58 = vand.u32 2147483647, %v13763_v45 }
 0x274   :  { %9744 = vmatprep.subr.bf16.mxu1 %v15052_v44  ;;  %9769 = vmatprep.subr.bf16.mxu0 %v15055_v56  ;;  %v15071_v17 = vld [vmem:[%s21434_s2 + $0x1518] ss:$20 sps:$4 sm:$0xff]   ;;  %v15079_v44 = vld [vmem:[%s21434_s2 + $0x14f4] ss:$20 sps:$4 sm:$0xff]   ;;  %v13722_v56 = vcvt.f32.s32 %v18021_v1  ;;  %v13906_v4 = vcvt.f32.s32 %v18567_v47  ;;  %v13904_v37 = vand.u32 2147483647, %v18567_v47 }
 0x276   :  { %vm18659_vm5 = vcmp.lt.f32.partialorder %v13904_v37, 8388608.0  ;;  %v15121_v37 = vld [vmem:[%s21434_s2 + $0x179c] ss:$20 sps:$4 sm:$0xff]  }
 0x277   :  { %9745 = vmatpush2.bf16.msra.mxu1 %v15050_v60  ;;  %9770 = vmatpush1.bf16.msra.mxu0 %v15053_v20  ;;  %v18576_v60 = vpack.c.bf16 %v3163_v14, %v3163_v14  ;;  %v13723_v20 = vcvt.s32.f32 %v13722_v56  ;;  %v15103_v14 = vld [vmem:[%s21434_s2 + $0x1454] ss:$20 sps:$4 sm:$0xff]   ;;  %v13760_v56 = vand.u32 2147483647, %v18308_v26 }
 0x278   :  { %9746 = vmatprep.subr.bf16.mxu1 %v15058_v11  ;;  %9771 = vmatprep.subr.bf16.mxu0 %v15061_v15  ;;  %v15083_v11 = vld [vmem:[%s21434_s2 + $0x14c8] ss:$20 sps:$4 sm:$0xff]   ;;  %v13946_v15 = vcvt.f32.s32 %v18578_v61 }
 0x279   :  { %v13724_v55 = vand.u32 2147483647, %v13723_v20  ;;  %v13944_v20 = vand.u32 2147483647, %v18578_v61  ;;  %vm18664_vm6 = vcmp.lt.f32.partialorder %v13760_v56, 8388608.0 }
 0x27a   :  { %v13947_v41 = vcvt.s32.f32 %v13946_v15  ;;  %v15106_v15 = vld [vmem:[%s21434_s2 + $0x12ec] ss:$20 sps:$4 sm:$0xff]   ;;  %v15127_v56 = vld [vmem:[%s21434_s2 + $0x1774] ss:$20 sps:$4 sm:$0xff]  }
 0x27b   :  { %9747 = vmatpush2.bf16.msra.mxu1 %v15056_v29  ;;  %9772 = vmatpush1.bf16.msra.mxu0 %v15059_v30  ;;  %v13907_v29 = vcvt.s32.f32 %v13906_v4  ;;  %v13720_v30 = vand.u32 2147483647, %v18021_v1  ;;  %v15101_v4 = vld [vmem:[%s21434_s2 + $0x1450] ss:$20 sps:$4 sm:$0xff]   ;;  %vm13945_vm7 = vcmp.lt.f32.partialorder %v13944_v20, 8388608.0 }
 0x27c   :  { %9748 = vmatprep.subr.bf16.mxu1 %v15064_v9  ;;  %9773 = vmatprep.subr.bf16.mxu0 %v15067_v38  ;;  %v15086_v9 = vld [vmem:[%s21434_s2 + $0x1360] ss:$20 sps:$4 sm:$0xff]  }
 0x27d   :  { %v15089_v38 = vld [vmem:[%s21434_s2 + $0x14a0] ss:$20 sps:$4 sm:$0xff]   ;;  %v13908_v8 = vand.u32 2147483647, %v13907_v29  ;;  %vm18632_vm4 = vcmp.lt.f32.partialorder %v13720_v30, 8388608.0 }
 0x27f   :  { %9749 = vmatpush2.bf16.msra.mxu1 %v15062_v18  ;;  %9774 = vmatpush1.bf16.msra.mxu0 %v15065_v19  ;;  %v15092_v18 = vld [vmem:[%s21434_s2 + $0x1338] ss:$20 sps:$4 sm:$0xff]  }
 0x280   :  { %9775 = vmatprep.subr.bf16.mxu0 %v15070_v48  ;;  %9800 = vmatprep.subr.bf16.mxu1 %v15073_v33  ;;  %v15095_v19 = vld [vmem:[%s21434_s2 + $0x1478] ss:$20 sps:$4 sm:$0xff]   ;;  %v13909_v48 = vand.u32 2147483648, %v18567_v47  ;;  %v15100_v33 = vld [vmem:[%s21434_s2 + $0x1314] ss:$20 sps:$4 sm:$0xff]  }
 0x282   :  { %v18573_v59 = vpop.f32.mrf.mxu1  ;;  %9751 = vmatmul.mubr.bf16.vlgmr.msra.gmra.mxu1 %v18565_v43 }
 0x283   :  { %9776 = vmatpush2.bf16.msra.mxu0 %v15068_v53  ;;  %9801 = vmatpush1.bf16.msra.mxu1 %v15071_v17  ;;  %v13726_v17 = vor.u32 %v13725_v63, %v13724_v55  ;;  %v15104_v55 = vld [vmem:[%s21434_s2 + $0x12e8] ss:$20 sps:$4 sm:$0xff]  }
 0x284   :  { %9832 = vmatprep.mubr.bf16.mxu1 %v18576_v60  ;;  %v18587_v6 = vpop.f32.mrf.mxu1  ;;  %9777 = vmatprep.subr.bf16.mxu0 %v15076_v42  ;;  %v13948_v42 = vand.u32 2147483647, %v13947_v41  ;;  %v15107_v63 = vld [vmem:[%s21434_s2 + $0x1428] ss:$20 sps:$4 sm:$0xff]   ;;  %v15115_v41 = vld [vmem:[%s21434_s2 + $0x1404] ss:$20 sps:$4 sm:$0xff]  }
 0x285   :  { %9802 = vmatprep.subr.bf16.mxu1 %v15079_v44  ;;  %v13765_v44 = vand.u32 2147483648, %v18308_v26 }
 0x286   :  { %v9510_v21 = vpop.f32.mrf.mxu1 }
 0x287   :  { %9778 = vmatpush2.bf16.msra.mxu0 %v15074_v24  ;;  %9803 = vmatpush1.bf16.msra.mxu1 %v15077_v16  ;;  %v13738_v24 = vcvt.f32.s32 %v18023_v2  ;;  %v15098_v16 = vld [vmem:[%s21434_s2 + $0x1310] ss:$20 sps:$4 sm:$0xff]   ;;  %v13727_v21 = vsel %vm18632_vm4, %v13726_v17, %v18021_v1  ;;  %v13736_v1 = vand.u32 2147483647, %v18023_v2  ;;  %v15116_v17 = vld [vmem:[%s21434_s2 + $0x1658] ss:$20 sps:$4 sm:$0xff]  }
 0x288   :  { %v9511_v35 = vpop.f32.mrf.mxu1  ;;  %9779 = vmatprep.subr.bf16.mxu0 %v15082_v0  ;;  %9804 = vmatprep.subr.bf16.mxu1 %v15085_v13  ;;  %v13910_v0 = vor.u32 %v13909_v48, %v13908_v8  ;;  %v13949_v13 = vand.u32 2147483648, %v18578_v61  ;;  %v3037_v30 = vmax.f32 %v13727_v21, 0.0  ;;  %v15113_v8 = vld [vmem:[%s21434_s2 + $0x1400] ss:$20 sps:$4 sm:$0xff]   ;;  %vm9468_vm4 = vcmask 523264  }
 0x289   :  { %vm18714_vm8 = vcmp.lt.f32.partialorder %v13736_v1, 8388608.0 }
 0x28a   :  { %v13911_v29 = vsel %vm18659_vm5, %v13910_v0, %v18567_v47  ;;  %v15112_v47 = vld [vmem:[%s21434_s2 + $0x12c4] ss:$20 sps:$4 sm:$0xff]  }
 0x28b   :  { %9780 = vmatpush2.bf16.msra.mxu0 %v15080_v32  ;;  %9805 = vmatpush1.bf16.msra.mxu1 %v15083_v11  ;;  %v13950_v32 = vor.u32 %v13949_v13, %v13948_v42  ;;  %v13766_v11 = vor.u32 %v13765_v44, %v13764_v58  ;;  %v3135_v45 = vmax.f32 %v13911_v29, 0.0  ;;  %v15124_v44 = vld [vmem:[%s21434_s2 + $0x1634] ss:$20 sps:$4 sm:$0xff]  }
 0x28c   :  { %9781 = vmatprep.subr.bf16.mxu0 %v15088_v39  ;;  %9806 = vmatprep.subr.bf16.mxu1 %v15091_v28  ;;  %v13739_v39 = vcvt.s32.f32 %v13738_v24 }
 0x28d   :  { %v3160_v48 = vmin.f32 %v3135_v45, 31.0 }
 0x28f   :  { %9782 = vmatpush2.bf16.msra.mxu0 %v15086_v9  ;;  %9807 = vmatpush1.bf16.msra.mxu1 %v15089_v38  ;;  %v13951_v9 = vsel %vm13945_vm7, %v13950_v32, %v18578_v61  ;;  %v13767_v38 = vsel %vm18664_vm6, %v13766_v11, %v18308_v26  ;;  %v15110_v26 = vld [vmem:[%s21434_s2 + $0x12c0] ss:$20 sps:$4 sm:$0xff]   ;;  %v18718_v0 = vpack.c.bf16 %v3160_v48, %v3160_v48  ;;  %v15145_v48 = vld [vmem:[%s21434_s2 + $0x16fc] ss:$20 sps:$4 sm:$0xff]  }
 0x290   :  { %9783 = vmatprep.subr.bf16.mxu0 %v15094_v52  ;;  %9808 = vmatprep.subr.bf16.mxu1 %v15097_v51  ;;  %v13740_v52 = vand.u32 2147483647, %v13739_v39  ;;  %v3062_v51 = vmin.f32 %v3037_v30, 31.0  ;;  %v3140_v61 = vmax.f32 %v13951_v9, 0.0  ;;  %v13778_v39 = vcvt.f32.s32 %v18310_v27 }
 0x292   :  { %v18706_v42 = vmul.f32 0.5, %v3062_v51  ;;  %v3165_v58 = vmin.f32 %v3140_v61, 31.0  ;;  %v13779_v45 = vcvt.s32.f32 %v13778_v39  ;;  %v15134_v51 = vld [vmem:[%s21434_s2 + $0x15e0] ss:$20 sps:$4 sm:$0xff]  }
 0x293   :  { %9784 = vmatpush2.bf16.msra.mxu0 %v15092_v18  ;;  %9809 = vmatpush1.bf16.msra.mxu1 %v15095_v19  ;;  %v13741_v18 = vand.u32 2147483648, %v18023_v2  ;;  %v3042_v19 = vmax.f32 %v13767_v38, 0.0 }
 0x294   :  { %9785 = vmatprep.subr.bf16.mxu0 %v15100_v33  ;;  %9810 = vmatprep.subr.bf16.mxu1 %v15103_v14  ;;  %v15118_v33 = vld [vmem:[%s21434_s2 + $0x165c] ss:$20 sps:$4 sm:$0xff]   ;;  %v15119_v14 = vld [vmem:[%s21434_s2 + $0x1798] ss:$20 sps:$4 sm:$0xff]   ;;  %v13922_v20 = vcvt.f32.s32 %v18706_v42  ;;  %v18728_v32 = vpack.c.bf16 %v3165_v58, %v3165_v58  ;;  %v13781_v58 = vand.u32 2147483648, %v18310_v27 }
 0x295   :  { %v13742_v53 = vor.u32 %v13741_v18, %v13740_v52  ;;  %v3067_v24 = vmin.f32 %v3042_v19, 31.0  ;;  %v15137_v18 = vld [vmem:[%s21434_s2 + $0x1720] ss:$20 sps:$4 sm:$0xff]  }
 0x296   :  { %v13923_v29 = vcvt.s32.f32 %v13922_v20  ;;  %v15151_v20 = vld [vmem:[%s21434_s2 + $0x16d4] ss:$20 sps:$4 sm:$0xff]  }
 0x297   :  { %9786 = vmatpush2.bf16.msra.mxu0 %v15098_v16  ;;  %9811 = vmatpush1.bf16.msra.mxu1 %v15101_v4  ;;  %v13743_v13 = vsel %vm18714_vm8, %v13742_v53, %v18023_v2  ;;  %v15122_v4 = vld [vmem:[%s21434_s2 + $0x1630] ss:$20 sps:$4 sm:$0xff]   ;;  %v18730_v11 = vmul.f32 0.5, %v3067_v24  ;;  %v15140_v53 = vld [vmem:[%s21434_s2 + $0x15b8] ss:$20 sps:$4 sm:$0xff]  }
 0x298   :  { %9787 = vmatprep.subr.bf16.mxu0 %v15106_v15  ;;  %9812 = vmatprep.subr.bf16.mxu1 %v15109_v7  ;;  %v15125_v2 = vld [vmem:[%s21434_s2 + $0x1770] ss:$20 sps:$4 sm:$0xff]   ;;  %v15130_v7 = vld [vmem:[%s21434_s2 + $0x160c] ss:$20 sps:$4 sm:$0xff]   ;;  %v3039_v35 = vmax.f32 %v13743_v13, 0.0  ;;  %v13770_v13 = vcvt.f32.s32 %v18293_v23 }
 0x299   :  { %v13962_v9 = vcvt.f32.s32 %v18730_v11  ;;  %v13924_v52 = vand.u32 2147483647, %v13923_v29  ;;  %v13960_v39 = vand.u32 2147483647, %v18730_v11  ;;  %v15154_v29 = vld [vmem:[%s21434_s2 + $0x156c] ss:$20 sps:$4 sm:$0xff]  }
 0x29a   :  { %v3064_v38 = vmin.f32 %v3039_v35, 31.0  ;;  %v15149_v35 = vld [vmem:[%s21434_s2 + $0x16d0] ss:$20 sps:$4 sm:$0xff]  }
 0x29b   :  { %9788 = vmatpush2.bf16.msra.mxu0 %v15104_v55  ;;  %9813 = vmatpush1.bf16.msra.mxu1 %v15107_v63  ;;  %v15128_v55 = vld [vmem:[%s21434_s2 + $0x1608] ss:$20 sps:$4 sm:$0xff]   ;;  %v13963_v61 = vcvt.s32.f32 %v13962_v9  ;;  %vm18828_vm11 = vcmp.lt.f32.partialorder %v13960_v39, 8388608.0 }
 0x29c   :  { %9789 = vmatprep.subr.bf16.mxu0 %v15112_v47  ;;  %9814 = vmatprep.subr.bf16.mxu1 %v15115_v41  ;;  %v15131_v63 = vld [vmem:[%s21434_s2 + $0x1748] ss:$20 sps:$4 sm:$0xff]   ;;  %v15139_v41 = vld [vmem:[%s21434_s2 + $0x1724] ss:$20 sps:$4 sm:$0xff]   ;;  %v18768_v19 = vmul.f32 0.5, %v3064_v38  ;;  %v13757_v38 = vand.u32 2147483648, %v18291_v22 }
 0x29f   :  { %9790 = vmatpush2.bf16.msra.mxu0 %v15110_v26  ;;  %9815 = vmatpush1.bf16.msra.mxu1 %v15113_v8  ;;  %v13754_v26 = vcvt.f32.s32 %v18291_v22  ;;  %v15142_v8 = vld [vmem:[%s21434_s2 + $0x15bc] ss:$20 sps:$4 sm:$0xff]  }
 0x2a0   :  { %9816 = vmatprep.subr.bf16.mxu1 %v15118_v33  ;;  %9841 = vmatprep.subr.bf16.mxu0 %v15121_v37  ;;  %v13925_v33 = vand.u32 2147483648, %v18706_v42  ;;  %v13780_v37 = vand.u32 2147483647, %v13779_v45  ;;  %v13752_v45 = vand.u32 2147483647, %v18291_v22 }
 0x2a1   :  { %v13755_v16 = vcvt.s32.f32 %v13754_v26 }
 0x2a2   :  { %v9547_v21 = vpop.f32.mrf.mxu0  ;;  %9792 = vmatmul.mubr.bf16.vlgmr.msra.gmra.mxu0 %v18718_v0  ;;  %v13926_v24 = vor.u32 %v13925_v33, %v13924_v52  ;;  %vm18844_vm12 = vcmp.lt.f32.partialorder %v13752_v45, 8388608.0 }
 0x2a3   :  { %v18733_v15 = vadd.f32 %v9547_v21, %v18573_v59  ;;  %9817 = vmatpush2.bf16.msra.mxu1 %v15116_v17  ;;  %9842 = vmatpush1.bf16.msra.mxu0 %v15119_v14  ;;  %v15133_v59 = vld [vmem:[%s21434_s2 + $0x174c] ss:$20 sps:$4 sm:$0xff]   ;;  %v13920_v14 = vand.u32 2147483647, %v18706_v42  ;;  %v13938_v21 = vcvt.f32.s32 %v18768_v19  ;;  %v13756_v9 = vand.u32 2147483647, %v13755_v16 }
 0x2a4   :  { %9873 = vmatprep.mubr.bf16.mxu0 %v18728_v32  ;;  %v9549_v1 = vpop.f32.mrf.mxu0  ;;  %9818 = vmatprep.subr.bf16.mxu1 %v15124_v44  ;;  %v15143_v17 = vld [vmem:[%s21434_s2 + $0x16f8] ss:$20 sps:$4 sm:$0xff]   ;;  %v15148_v44 = vld [vmem:[%s21434_s2 + $0x1594] ss:$20 sps:$4 sm:$0xff]  }
 0x2a5   :  { %v18747_v28 = vadd.f32 %v9549_v1, %v18587_v6  ;;  %9843 = vmatprep.subr.bf16.mxu0 %v15127_v56  ;;  %v15136_v6 = vld [vmem:[%s21434_s2 + $0x15e4] ss:$20 sps:$4 sm:$0xff]   ;;  %v13964_v56 = vand.u32 2147483647, %v13963_v61  ;;  %v13965_v1 = vand.u32 2147483648, %v18730_v11  ;;  %vm18802_vm9 = vcmp.lt.f32.partialorder %v13920_v14, 8388608.0 }
 0x2a6   :  { %v9551_v30 = vpop.f32.mrf.mxu0  ;;  %v15160_v61 = vld [vmem:[%s21434_s2 + $0x1544] ss:$20 sps:$4 sm:$0xff]  }
 0x2a7   :  { %9819 = vmatpush2.bf16.msra.mxu1 %v15122_v4  ;;  %9844 = vmatpush1.bf16.msra.mxu0 %v15125_v2  ;;  %v13776_v4 = vand.u32 2147483647, %v18310_v27  ;;  %v13782_v2 = vor.u32 %v13781_v58, %v13780_v37  ;;  %v15157_v30 = vld [vmem:[%s21434_s2 + $0x16ac] ss:$20 sps:$4 sm:$0xff]   ;;  %v15163_v37 = vld [vmem:[%s21434_s2 + $0x1684] ss:$20 sps:$4 sm:$0xff]  }
 0x2a8   :  { %v9552_v47 = vpop.f32.mrf.mxu0  ;;  %9820 = vmatprep.subr.bf16.mxu1 %v15130_v7  ;;  %9845 = vmatprep.subr.bf16.mxu0 %v15133_v59  ;;  %v15146_v7 = vld [vmem:[%s21434_s2 + $0x1590] ss:$20 sps:$4 sm:$0xff]   ;;  %v13936_v59 = vand.u32 2147483647, %v18768_v19 }
 0x2a9   :  { %v13771_v47 = vcvt.s32.f32 %v13770_v13  ;;  %vm18817_vm10 = vcmp.lt.f32.partialorder %v13776_v4, 8388608.0 }
 0x2aa   :  { %v13783_v52 = vsel %vm18817_vm10, %v13782_v2, %v18310_v27  ;;  %v13941_v2 = vand.u32 2147483648, %v18768_v19  ;;  %vm18896_vm14 = vcmp.lt.f32.partialorder %v13936_v59, 8388608.0  ;;  %v15199_v59 = vld [vmem:[%s21434_s2 + $0x1954] ss:$20 sps:$4 sm:$0xff]  }
 0x2ab   :  { %9821 = vmatpush2.bf16.msra.mxu1 %v15128_v55  ;;  %9846 = vmatpush1.bf16.msra.mxu0 %v15131_v63  ;;  %v13927_v55 = vsel %vm18802_vm9, %v13926_v24, %v18706_v42  ;;  %v13966_v63 = vor.u32 %v13965_v1, %v13964_v56  ;;  %v15152_v42 = vld [vmem:[%s21434_s2 + $0x1568] ss:$20 sps:$4 sm:$0xff]   ;;  %v3044_v33 = vmax.f32 %v13783_v52, 0.0  ;;  %v15161_v24 = vld [vmem:[%s21434_s2 + $0x1680] ss:$20 sps:$4 sm:$0xff]  }
 0x2ac   :  { %9822 = vmatprep.subr.bf16.mxu1 %v15136_v6  ;;  %9847 = vmatprep.subr.bf16.mxu0 %v15139_v41  ;;  %v13939_v41 = vcvt.s32.f32 %v13938_v21  ;;  %v3137_v26 = vmax.f32 %v13927_v55, 0.0  ;;  %v15169_v21 = vld [vmem:[%s21434_s2 + $0x1a1c] ss:$20 sps:$4 sm:$0xff]   ;;  %v15172_v1 = vld [vmem:[%s21434_s2 + $0x18b4] ss:$20 sps:$4 sm:$0xff]  }
 0x2ad   :  { %v13967_v27 = vsel %vm18828_vm11, %v13966_v63, %v18730_v11  ;;  %v13773_v11 = vand.u32 2147483648, %v18293_v23  ;;  %v3069_v4 = vmin.f32 %v3044_v33, 31.0  ;;  %v15176_v33 = vld [vmem:[%s21434_s2 + $0x1888] ss:$20 sps:$4 sm:$0xff]  }
 0x2ae   :  { %v13940_v14 = vand.u32 2147483647, %v13939_v41  ;;  %v3142_v58 = vmax.f32 %v13967_v27, 0.0  ;;  %v3162_v56 = vmin.f32 %v3137_v26, 31.0 }
 0x2af   :  { %9823 = vmatpush2.bf16.msra.mxu1 %v15134_v51  ;;  %9848 = vmatpush1.bf16.msra.mxu0 %v15137_v18  ;;  %v15155_v18 = vld [vmem:[%s21434_s2 + $0x16a8] ss:$20 sps:$4 sm:$0xff]   ;;  %v15173_v51 = vld [vmem:[%s21434_s2 + $0x19f0] ss:$20 sps:$4 sm:$0xff]  }
 0x2b0   :  { %9824 = vmatprep.subr.bf16.mxu1 %v15142_v8  ;;  %9849 = vmatprep.subr.bf16.mxu0 %v15145_v48  ;;  %v13758_v8 = vor.u32 %v13757_v38, %v13756_v9  ;;  %v13772_v48 = vand.u32 2147483647, %v13771_v47  ;;  %v13942_v55 = vor.u32 %v13941_v2, %v13940_v14  ;;  %v18886_v9 = vmul.f32 0.5, %v3069_v4  ;;  %v15170_v47 = vld [vmem:[%s21434_s2 + $0x18b0] ss:$20 sps:$4 sm:$0xff]  }
 0x2b1   :  { %v18888_v38 = vpack.c.bf16 %v3162_v56, %v3162_v56  ;;  %v15190_v4 = vld [vmem:[%s21434_s2 + $0x183c] ss:$20 sps:$4 sm:$0xff]  }
 0x2b2   :  { %v13759_v16 = vsel %vm18844_vm12, %v13758_v8, %v18291_v22  ;;  %v13774_v13 = vor.u32 %v13773_v11, %v13772_v48  ;;  %v15167_v22 = vld [vmem:[%s21434_s2 + $0x1a18] ss:$20 sps:$4 sm:$0xff]   ;;  %v13978_v27 = vcvt.f32.s32 %v18886_v9 }
 0x2b3   :  { %9825 = vmatpush2.bf16.msra.mxu1 %v15140_v53  ;;  %9850 = vmatpush1.bf16.msra.mxu0 %v15143_v17  ;;  %v15158_v17 = vld [vmem:[%s21434_s2 + $0x1540] ss:$20 sps:$4 sm:$0xff]   ;;  %v3041_v39 = vmax.f32 %v13759_v16, 0.0  ;;  %v15187_v11 = vld [vmem:[%s21434_s2 + $0x19a4] ss:$20 sps:$4 sm:$0xff]  }
 0x2b4   :  { %9826 = vmatprep.subr.bf16.mxu1 %v15148_v44  ;;  %9851 = vmatprep.subr.bf16.mxu0 %v15151_v20  ;;  %v13768_v44 = vand.u32 2147483647, %v18293_v23  ;;  %v15166_v20 = vld [vmem:[%s21434_s2 + $0x18dc] ss:$20 sps:$4 sm:$0xff]  }
 0x2b6   :  { %vm18876_vm13 = vcmp.lt.f32.partialorder %v13768_v44, 8388608.0  ;;  %v15182_v44 = vld [vmem:[%s21434_s2 + $0x1860] ss:$20 sps:$4 sm:$0xff]  }
 0x2b7   :  { %9827 = vmatpush2.bf16.msra.mxu1 %v15146_v7  ;;  %9852 = vmatpush1.bf16.msra.mxu0 %v15149_v35  ;;  %v15164_v7 = vld [vmem:[%s21434_s2 + $0x18d8] ss:$20 sps:$4 sm:$0xff]   ;;  %v3167_v35 = vmin.f32 %v3142_v58, 31.0  ;;  %v13775_v63 = vsel %vm18876_vm13, %v13774_v13, %v18293_v23  ;;  %v3066_v23 = vmin.f32 %v3041_v39, 31.0  ;;  %v13979_v58 = vcvt.s32.f32 %v13978_v27 }
 0x2b8   :  { %9828 = vmatprep.subr.bf16.mxu1 %v15154_v29  ;;  %9853 = vmatprep.subr.bf16.mxu0 %v15157_v30  ;;  %v15175_v30 = vld [vmem:[%s21434_s2 + $0x19f4] ss:$20 sps:$4 sm:$0xff]   ;;  %v3043_v52 = vmax.f32 %v13775_v63, 0.0  ;;  %v13786_v29 = vcvt.f32.s32 %v18453_v25  ;;  %v15197_v63 = vld [vmem:[%s21434_s2 + $0x1950] ss:$20 sps:$4 sm:$0xff]  }
 0x2b9   :  { %v18894_v41 = vpack.c.bf16 %v3167_v35, %v3167_v35  ;;  %v13980_v2 = vand.u32 2147483647, %v13979_v58  ;;  %v15191_v35 = vld [vmem:[%s21434_s2 + $0x1978] ss:$20 sps:$4 sm:$0xff]   ;;  %v13784_v27 = vand.u32 2147483647, %v18453_v25 }
 0x2ba   :  { %v3068_v53 = vmin.f32 %v3043_v52, 31.0  ;;  %v15202_v52 = vld [vmem:[%s21434_s2 + $0x17ec] ss:$20 sps:$4 sm:$0xff]  }
 0x2bb   :  { %9829 = vmatpush2.bf16.msra.mxu1 %v15152_v42  ;;  %9854 = vmatpush1.bf16.msra.mxu0 %v15155_v18  ;;  %v15178_v18 = vld [vmem:[%s21434_s2 + $0x188c] ss:$20 sps:$4 sm:$0xff]   ;;  %vm19008_vm0 = vcmp.lt.f32.partialorder %v13784_v27, 8388608.0 }
 0x2bc   :  { %9830 = vmatprep.subr.bf16.mxu1 %v15160_v61  ;;  %9855 = vmatprep.subr.bf16.mxu0 %v15163_v37  ;;  %v13943_v61 = vsel %vm18896_vm14, %v13942_v55, %v18768_v19  ;;  %v18925_v37 = vmul.f32 0.5, %v3066_v23  ;;  %v18944_v13 = vmul.f32 0.5, %v3068_v53  ;;  %v15194_v55 = vld [vmem:[%s21434_s2 + $0x1810] ss:$20 sps:$4 sm:$0xff]   ;;  %v13787_v23 = vcvt.s32.f32 %v13786_v29 }
 0x2bd   :  { %v18923_v19 = vmax.f32 %v13943_v61, 0.0  ;;  %v15203_v61 = vld [vmem:[%s21434_s2 + $0x1928] ss:$20 sps:$4 sm:$0xff]   ;;  %v13789_v53 = vand.u32 2147483648, %v18453_v25 }
 0x2be   :  { %v13954_v16 = vcvt.f32.s32 %v18925_v37  ;;  %v13957_v45 = vand.u32 2147483648, %v18925_v37 }
 0x2bf   :  { %9831 = vmatpush2.bf16.msra.mxu1 %v15158_v17  ;;  %9856 = vmatpush1.bf16.msra.mxu0 %v15161_v24  ;;  %v15179_v17 = vld [vmem:[%s21434_s2 + $0x19c8] ss:$20 sps:$4 sm:$0xff]   ;;  %v15185_v24 = vld [vmem:[%s21434_s2 + $0x19a0] ss:$20 sps:$4 sm:$0xff]   ;;  %v3164_v56 = vmin.f32 %v18923_v19, 31.0 }
 0x2c0   :  { %9857 = vmatprep.subr.bf16.mxu0 %v15166_v20  ;;  %9882 = vmatprep.subr.bf16.mxu1 %v15169_v21  ;;  %v15193_v20 = vld [vmem:[%s21434_s2 + $0x197c] ss:$20 sps:$4 sm:$0xff]   ;;  %v13976_v21 = vand.u32 2147483647, %v18886_v9  ;;  %v18966_v39 = vcvt.s32.f32 %v13954_v16  ;;  %v15212_v16 = vld [vmem:[%s21434_s2 + $0x1b58] ss:$20 sps:$4 sm:$0xff]  }
 0x2c1   :  { %v15221_v19 = vld [vmem:[%s21434_s2 + $0x1c70] ss:$20 sps:$4 sm:$0xff]  }
 0x2c2   :  { %v9588_v6 = vpop.f32.mrf.mxu1  ;;  %9833 = vmatmul.mubr.bf16.vlgmr.msra.gmra.mxu1 %v18888_v38  ;;  %vm13977_vm15 = vcmp.lt.f32.partialorder %v13976_v21, 8388608.0  ;;  %v15223_v21 = vld [vmem:[%s21434_s2 + $0x1c74] ss:$20 sps:$4 sm:$0xff]  }
 0x2c3   :  { %v18901_v42 = vadd.f32 %v9588_v6, %v18733_v15  ;;  %9858 = vmatpush2.bf16.msra.mxu0 %v15164_v7  ;;  %9883 = vmatpush1.bf16.msra.mxu1 %v15167_v22  ;;  %v15181_v15 = vld [vmem:[%s21434_s2 + $0x19cc] ss:$20 sps:$4 sm:$0xff]   ;;  %v13981_v7 = vand.u32 2147483648, %v18886_v9  ;;  %v13956_v6 = vand.u32 2147483647, %v18966_v39  ;;  %v13973_v39 = vand.u32 2147483648, %v18944_v13 }
 0x2c4   :  { %9914 = vmatprep.mubr.bf16.mxu1 %v18894_v41  ;;  %v9590_v26 = vpop.f32.mrf.mxu1  ;;  %9859 = vmatprep.subr.bf16.mxu0 %v15172_v1  ;;  %v15188_v22 = vld [vmem:[%s21434_s2 + $0x1838] ss:$20 sps:$4 sm:$0xff]   ;;  %v15196_v1 = vld [vmem:[%s21434_s2 + $0x1814] ss:$20 sps:$4 sm:$0xff]  }
 0x2c5   :  { %v18918_v8 = vadd.f32 %v9590_v26, %v18747_v28  ;;  %9884 = vmatprep.subr.bf16.mxu1 %v15175_v30  ;;  %v15184_v28 = vld [vmem:[%s21434_s2 + $0x1864] ss:$20 sps:$4 sm:$0xff]   ;;  %v13982_v30 = vor.u32 %v13981_v7, %v13980_v2  ;;  %v13970_v2 = vcvt.f32.s32 %v18944_v13 }
 0x2c6   :  { %v9592_v48 = vpop.f32.mrf.mxu1 }
 0x2c7   :  { %9860 = vmatpush2.bf16.msra.mxu0 %v15170_v47  ;;  %9885 = vmatpush1.bf16.msra.mxu1 %v15173_v51  ;;  %v13952_v47 = vand.u32 2147483647, %v18925_v37  ;;  %v15205_v51 = vld [vmem:[%s21434_s2 + $0x192c] ss:$20 sps:$4 sm:$0xff]   ;;  %v13983_v26 = vsel %vm13977_vm15, %v13982_v30, %v18886_v9  ;;  %v15211_v48 = vld [vmem:[%s21434_s2 + $0x1904] ss:$20 sps:$4 sm:$0xff]   ;;  %v19052_v30 = vcvt.s32.f32 %v13970_v2 }
 0x2c8   :  { %v9593_v14 = vpop.f32.mrf.mxu1  ;;  %9861 = vmatprep.subr.bf16.mxu0 %v15178_v18  ;;  %9886 = vmatprep.subr.bf16.mxu1 %v15181_v15  ;;  %v15200_v18 = vld [vmem:[%s21434_s2 + $0x17e8] ss:$20 sps:$4 sm:$0xff]   ;;  %v15208_v15 = vld [vmem:[%s21434_s2 + $0x17c4] ss:$20 sps:$4 sm:$0xff]   ;;  %v15206_v9 = vld [vmem:[%s21434_s2 + $0x17c0] ss:$20 sps:$4 sm:$0xff]  }
 0x2c9   :  { %v15209_v14 = vld [vmem:[%s21434_s2 + $0x1900] ss:$20 sps:$4 sm:$0xff]   ;;  %vm13953_vm1 = vcmp.lt.f32.partialorder %v13952_v47, 8388608.0  ;;  %v13972_v27 = vand.u32 2147483647, %v19052_v30 }
 0x2ca   :  { %v15250_v2 = vld [vmem:[%s21434_s2 + $0x1a6c] ss:$20 sps:$4 sm:$0xff]  }
 0x2cb   :  { %9862 = vmatpush2.bf16.msra.mxu0 %v15176_v33  ;;  %9887 = vmatpush1.bf16.msra.mxu1 %v15179_v17  ;;  %v13788_v33 = vand.u32 2147483647, %v13787_v23  ;;  %v3144_v17 = vmax.f32 %v13983_v26, 0.0  ;;  %v15254_v30 = vld [vmem:[%s21434_s2 + $0x1a40] ss:$20 sps:$4 sm:$0xff]  }
 0x2cc   :  { %9863 = vmatprep.subr.bf16.mxu0 %v15184_v28  ;;  %9888 = vmatprep.subr.bf16.mxu1 %v15187_v11  ;;  %v15214_v28 = vld [vmem:[%s21434_s2 + $0x1b5c] ss:$20 sps:$4 sm:$0xff]   ;;  %v15244_v11 = vld [vmem:[%s21434_s2 + $0x1a94] ss:$20 sps:$4 sm:$0xff]  }
 0x2cd   :  { %v13790_v58 = vor.u32 %v13789_v53, %v13788_v33  ;;  %v15233_v33 = vld [vmem:[%s21434_s2 + $0x1c20] ss:$20 sps:$4 sm:$0xff]  }
 0x2cf   :  { %9864 = vmatpush2.bf16.msra.mxu0 %v15182_v44  ;;  %9889 = vmatpush1.bf16.msra.mxu1 %v15185_v24  ;;  %v15217_v44 = vld [vmem:[%s21434_s2 + $0x1c9c] ss:$20 sps:$4 sm:$0xff]   ;;  %v3169_v24 = vmin.f32 %v3144_v17, 31.0  ;;  %v13791_v7 = vsel %vm19008_vm0, %v13790_v58, %v18453_v25  ;;  %v15247_v58 = vld [vmem:[%s21434_s2 + $0x1bd4] ss:$20 sps:$4 sm:$0xff]  }
 0x2d0   :  { %9865 = vmatprep.subr.bf16.mxu0 %v15190_v4  ;;  %9890 = vmatprep.subr.bf16.mxu1 %v15193_v20  ;;  %v15215_v4 = vld [vmem:[%s21434_s2 + $0x1c98] ss:$20 sps:$4 sm:$0xff]   ;;  %v15220_v20 = vld [vmem:[%s21434_s2 + $0x1b34] ss:$20 sps:$4 sm:$0xff]   ;;  %v3045_v29 = vmax.f32 %v13791_v7, 0.0 }
 0x2d1   :  { %v15241_v17 = vld [vmem:[%s21434_s2 + $0x1bfc] ss:$20 sps:$4 sm:$0xff]   ;;  %v15253_v7 = vld [vmem:[%s21434_s2 + $0x1bac] ss:$20 sps:$4 sm:$0xff]  }
 0x2d2   :  { %v3070_v26 = vmin.f32 %v3045_v29, 31.0  ;;  %v15251_v29 = vld [vmem:[%s21434_s2 + $0x1ba8] ss:$20 sps:$4 sm:$0xff]  }
 0x2d3   :  { %9866 = vmatpush2.bf16.msra.mxu0 %v15188_v22  ;;  %9891 = vmatpush1.bf16.msra.mxu1 %v15191_v35  ;;  %v19034_v22 = vpack.c.bf16 %v3164_v56, %v3164_v56  ;;  %v15218_v35 = vld [vmem:[%s21434_s2 + $0x1b30] ss:$20 sps:$4 sm:$0xff]   ;;  %v15226_v56 = vld [vmem:[%s21434_s2 + $0x1b0c] ss:$20 sps:$4 sm:$0xff]  }
 0x2d4   :  { %9867 = vmatprep.subr.bf16.mxu0 %v15196_v1  ;;  %9892 = vmatprep.subr.bf16.mxu1 %v15199_v59  ;;  %v19040_v59 = vpack.c.bf16 %v3169_v24, %v3169_v24  ;;  %v19081_v47 = vmul.f32 0.5, %v3070_v26  ;;  %v15245_v24 = vld [vmem:[%s21434_s2 + $0x1bd0] ss:$20 sps:$4 sm:$0xff]   ;;  %v15263_v26 = vld [vmem:[%s21434_s2 + $0x1e78] ss:$20 sps:$4 sm:$0xff]  }
 0x2d7   :  { %9868 = vmatpush2.bf16.msra.mxu0 %v15194_v55  ;;  %9893 = vmatpush1.bf16.msra.mxu1 %v15197_v63  ;;  %v13958_v63 = vor.u32 %v13957_v45, %v13956_v6  ;;  %v15232_v6 = vld [vmem:[%s21434_s2 + $0x1ae4] ss:$20 sps:$4 sm:$0xff]  }
 0x2d8   :  { %9869 = vmatprep.subr.bf16.mxu0 %v15202_v52  ;;  %9894 = vmatprep.subr.bf16.mxu1 %v15205_v51  ;;  %v15224_v51 = vld [vmem:[%s21434_s2 + $0x1b08] ss:$20 sps:$4 sm:$0xff]   ;;  %v15235_v45 = vld [vmem:[%s21434_s2 + $0x1c24] ss:$20 sps:$4 sm:$0xff]  }
 0x2db   :  { %9870 = vmatpush2.bf16.msra.mxu0 %v15200_v18  ;;  %9895 = vmatpush1.bf16.msra.mxu1 %v15203_v61  ;;  %v15227_v18 = vld [vmem:[%s21434_s2 + $0x1c48] ss:$20 sps:$4 sm:$0xff]   ;;  %v13968_v61 = vand.u32 2147483647, %v18944_v13 }
 0x2dc   :  { %9871 = vmatprep.subr.bf16.mxu0 %v15208_v15  ;;  %9896 = vmatprep.subr.bf16.mxu1 %v15211_v48  ;;  %v13959_v15 = vsel %vm13953_vm1, %v13958_v63, %v18925_v37  ;;  %v15230_v48 = vld [vmem:[%s21434_s2 + $0x1ae0] ss:$20 sps:$4 sm:$0xff]   ;;  %v15238_v37 = vld [vmem:[%s21434_s2 + $0x1abc] ss:$20 sps:$4 sm:$0xff]  }
 0x2dd   :  { %v3141_v53 = vmax.f32 %v13959_v15, 0.0  ;;  %v15265_v63 = vld [vmem:[%s21434_s2 + $0x1e7c] ss:$20 sps:$4 sm:$0xff]   ;;  %vm19147_vm3 = vcmp.lt.f32.partialorder %v13968_v61, 8388608.0  ;;  %v13974_v15 = vor.u32 %v13973_v39, %v13972_v27  ;;  %v15274_v39 = vld [vmem:[%s21434_s2 + $0x1d8c] ss:$20 sps:$4 sm:$0xff]  }
 0x2df   :  { %9872 = vmatpush2.bf16.msra.mxu0 %v15206_v9  ;;  %9897 = vmatpush1.bf16.msra.mxu1 %v15209_v14  ;;  %v13986_v9 = vcvt.f32.s32 %v19081_v47  ;;  %v15236_v14 = vld [vmem:[%s21434_s2 + $0x1ab8] ss:$20 sps:$4 sm:$0xff]  }
 0x2e0   :  { %9898 = vmatprep.subr.bf16.mxu1 %v15214_v28  ;;  %9923 = vmatprep.subr.bf16.mxu0 %v15217_v44  ;;  %v15239_v28 = vld [vmem:[%s21434_s2 + $0x1bf8] ss:$20 sps:$4 sm:$0xff]   ;;  %v15242_v44 = vld [vmem:[%s21434_s2 + $0x1a90] ss:$20 sps:$4 sm:$0xff]  }
 0x2e2   :  { %v9629_v1 = vpop.f32.mrf.mxu0  ;;  %9874 = vmatmul.mubr.bf16.vlgmr.msra.gmra.mxu0 %v19034_v22 }
 0x2e3   :  { %v19044_v25 = vadd.f32 %v9629_v1, %v18901_v42  ;;  %9899 = vmatpush2.bf16.msra.mxu1 %v15212_v16  ;;  %9924 = vmatpush1.bf16.msra.mxu0 %v15215_v4  ;;  %v15229_v42 = vld [vmem:[%s21434_s2 + $0x1c4c] ss:$20 sps:$4 sm:$0xff]   ;;  %v13987_v16 = vcvt.s32.f32 %v13986_v9  ;;  %v13989_v4 = vand.u32 2147483648, %v19081_v47  ;;  %v16219_v9 = vmov 0  }
 0x2e4   :  { %9955 = vmatprep.mubr.bf16.mxu0 %v19040_v59  ;;  %v9631_v55 = vpop.f32.mrf.mxu0  ;;  %9900 = vmatprep.subr.bf16.mxu1 %v15220_v20  ;;  %v3166_v20 = vmin.f32 %v3141_v53, 31.0  ;;  %v15266_v53 = vld [vmem:[%s21434_s2 + $0x1db0] ss:$20 sps:$4 sm:$0xff]  }
 0x2e5   :  { %v19059_v23 = vadd.f32 %v9631_v55, %v18918_v8  ;;  %9925 = vmatprep.subr.bf16.mxu0 %v15223_v21  ;;  %v13984_v21 = vand.u32 2147483647, %v19081_v47  ;;  %v13988_v1 = vand.u32 2147483647, %v13987_v16  ;;  %v15257_v55 = vld [vmem:[%s21434_s2 + $0x1b80] ss:$20 sps:$4 sm:$0xff]  }
 0x2e6   :  { %v9633_v52 = vpop.f32.mrf.mxu0  ;;  %v19163_v61 = vpack.c.bf16 %v3166_v20, %v3166_v20  ;;  %v15281_v20 = vld [vmem:[%s21434_s2 + $0x1e00] ss:$20 sps:$4 sm:$0xff]  }
 0x2e7   :  { %9901 = vmatpush2.bf16.msra.mxu1 %v15218_v35  ;;  %9926 = vmatpush1.bf16.msra.mxu0 %v15221_v19  ;;  %v15248_v35 = vld [vmem:[%s21434_s2 + $0x1a68] ss:$20 sps:$4 sm:$0xff]   ;;  %v15256_v19 = vld [vmem:[%s21434_s2 + $0x1a44] ss:$20 sps:$4 sm:$0xff]   ;;  %vm19143_vm2 = vcmp.lt.f32.partialorder %v13984_v21, 8388608.0 }
 0x2e8   :  { %v9634_v8 = vpop.f32.mrf.mxu0  ;;  %9902 = vmatprep.subr.bf16.mxu1 %v15226_v56  ;;  %9927 = vmatprep.subr.bf16.mxu0 %v15229_v42  ;;  %v15259_v56 = vld [vmem:[%s21434_s2 + $0x1b84] ss:$20 sps:$4 sm:$0xff]   ;;  %v15262_v42 = vld [vmem:[%s21434_s2 + $0x1ddc] ss:$20 sps:$4 sm:$0xff]  }
 0x2e9   :  { %v15268_v8 = vld [vmem:[%s21434_s2 + $0x1db4] ss:$20 sps:$4 sm:$0xff]   ;;  %v15286_v21 = vld [vmem:[%s21434_s2 + $0x1d3c] ss:$20 sps:$4 sm:$0xff]  }
 0x2eb   :  { %9903 = vmatpush2.bf16.msra.mxu1 %v15224_v51  ;;  %9928 = vmatpush1.bf16.msra.mxu0 %v15227_v18  ;;  %v15260_v18 = vld [vmem:[%s21434_s2 + $0x1dd8] ss:$20 sps:$4 sm:$0xff]   ;;  %v15296_v51 = vld [vmem:[%s21434_s2 + $0x1ce8] ss:$20 sps:$4 sm:$0xff]  }
 0x2ec   :  { %9904 = vmatprep.subr.bf16.mxu1 %v15232_v6  ;;  %9929 = vmatprep.subr.bf16.mxu0 %v15235_v45  ;;  %v15271_v6 = vld [vmem:[%s21434_s2 + $0x1e54] ss:$20 sps:$4 sm:$0xff]   ;;  %v13990_v45 = vor.u32 %v13989_v4, %v13988_v1 }
 0x2ed   :  { %v15278_v4 = vld [vmem:[%s21434_s2 + $0x1d60] ss:$20 sps:$4 sm:$0xff]  }
 0x2ee   :  { %v15287_v1 = vld [vmem:[%s21434_s2 + $0x120] ss:$20 sps:$4 sm:$0xff]  }
 0x2ef   :  { %9905 = vmatpush2.bf16.msra.mxu1 %v15230_v48  ;;  %9930 = vmatpush1.bf16.msra.mxu0 %v15233_v33 }
 0x2f0   :  { %9906 = vmatprep.subr.bf16.mxu1 %v15238_v37  ;;  %9931 = vmatprep.subr.bf16.mxu0 %v15241_v17  ;;  %v15269_v37 = vld [vmem:[%s21434_s2 + $0x1e50] ss:$20 sps:$4 sm:$0xff]  }
 0x2f3   :  { %9907 = vmatpush2.bf16.msra.mxu1 %v15236_v14  ;;  %9932 = vmatpush1.bf16.msra.mxu0 %v15239_v28  ;;  %v13991_v14 = vsel %vm19143_vm2, %v13990_v45, %v19081_v47  ;;  %v13975_v28 = vsel %vm19147_vm3, %v13974_v15, %v18944_v13  ;;  %v15280_v47 = vld [vmem:[%s21434_s2 + $0x1d64] ss:$20 sps:$4 sm:$0xff]   ;;  %v15305_v45 = vld [vmem:[%s21434_s2 + $0xa8] ss:$20 sps:$4 sm:$0xff]  }
 0x2f4   :  { %9908 = vmatprep.subr.bf16.mxu1 %v15244_v11  ;;  %9933 = vmatprep.subr.bf16.mxu0 %v15247_v58  ;;  %v15272_v58 = vld [vmem:[%s21434_s2 + $0x1d88] ss:$20 sps:$4 sm:$0xff]   ;;  %v15283_v13 = vld [vmem:[%s21434_s2 + $0x1e04] ss:$20 sps:$4 sm:$0xff]   ;;  %v3143_v16 = vmax.f32 %v13975_v28, 0.0 }
 0x2f5   :  { %v15310_v15 = vld [vmem:[%s21434_s2 + $0x84] ss:$20 sps:$4 sm:$0xff]  }
 0x2f6   :  { %v3168_v52 = vmin.f32 %v3143_v16, 31.0  ;;  %v15323_v16 = vld [vmem:[%s21434_s2 + $0x350] ss:$20 sps:$4 sm:$0xff]  }
 0x2f7   :  { %9909 = vmatpush2.bf16.msra.mxu1 %v15242_v44  ;;  %9934 = vmatpush1.bf16.msra.mxu0 %v15245_v24  ;;  %v3145_v24 = vmax.f32 %v13991_v14, 0.0 }
 0x2f8   :  { %9910 = vmatprep.subr.bf16.mxu1 %v15250_v2  ;;  %9935 = vmatprep.subr.bf16.mxu0 %v15253_v7  ;;  %v15289_v7 = vld [vmem:[%s21434_s2 + $0x124] ss:$20 sps:$4 sm:$0xff]  }
 0x2f9   :  { %v3170_v2 = vmin.f32 %v3145_v24, 31.0  ;;  %v15320_v24 = vld [vmem:[%s21434_s2 + $0x30] ss:$20 sps:$4 sm:$0xff]  }
 0x2fb   :  { %9911 = vmatpush2.bf16.msra.mxu1 %v15248_v35  ;;  %9936 = vmatpush1.bf16.msra.mxu0 %v15251_v29  ;;  %v15284_v35 = vld [vmem:[%s21434_s2 + $0x1d38] ss:$20 sps:$4 sm:$0xff]   ;;  %v15292_v29 = vld [vmem:[%s21434_s2 + $0x1d14] ss:$20 sps:$4 sm:$0xff]  }
 0x2fc   :  { %9912 = vmatprep.subr.bf16.mxu1 %v15256_v19  ;;  %9937 = vmatprep.subr.bf16.mxu0 %v15259_v56  ;;  %v15295_v19 = vld [vmem:[%s21434_s2 + $0xfc] ss:$20 sps:$4 sm:$0xff]   ;;  %v19229_v56 = vpack.c.bf16 %v3170_v2, %v3170_v2 }
 0x2fd   :  { %v15329_v2 = vld [vmem:[%s21434_s2 + $0x328] ss:$20 sps:$4 sm:$0xff]  }
 0x2ff   :  { %9913 = vmatpush2.bf16.msra.mxu1 %v15254_v30  ;;  %9938 = vmatpush1.bf16.msra.mxu0 %v15257_v55  ;;  %v15290_v30 = vld [vmem:[%s21434_s2 + $0x1d10] ss:$20 sps:$4 sm:$0xff]   ;;  %v15293_v55 = vld [vmem:[%s21434_s2 + $0xf8] ss:$20 sps:$4 sm:$0xff]  }
 0x300   :  { %9939 = vmatprep.subr.bf16.mxu0 %v15262_v42  ;;  %9972 = vmatprep.subr.bf16.mxu1 %v15265_v63  ;;  %v15298_v42 = vld [vmem:[%s21434_s2 + $0x1cec] ss:$20 sps:$4 sm:$0xff]   ;;  %v15301_v63 = vld [vmem:[%s21434_s2 + $0xd4] ss:$20 sps:$4 sm:$0xff]  }
 0x302   :  { %v9670_v48 = vpop.f32.mrf.mxu1  ;;  %9915 = vmatmul.mubr.bf16.vlgmr.msra.gmra.mxu1 %v19163_v61 }
 0x303   :  { %v19169_v33 = vadd.f32 %v9670_v48, %v19044_v25  ;;  %9940 = vmatpush2.bf16.msra.mxu0 %v15260_v18  ;;  %9973 = vmatpush1.bf16.msra.mxu1 %v15263_v26  ;;  %v15277_v25 = vld [vmem:[%s21434_s2 + $0x1e2c] ss:$20 sps:$4 sm:$0xff]   ;;  %v15299_v18 = vld [vmem:[%s21434_s2 + $0xd0] ss:$20 sps:$4 sm:$0xff]  }
 0x304   :  { %v9672_v27 = vpop.f32.mrf.mxu1  ;;  %9941 = vmatprep.subr.bf16.mxu0 %v15268_v8  ;;  %9974 = vmatprep.subr.bf16.mxu1 %v15271_v6  ;;  %v15304_v26 = vld [vmem:[%s21434_s2 + $0x1cc4] ss:$20 sps:$4 sm:$0xff]   ;;  %v15307_v8 = vld [vmem:[%s21434_s2 + $0xac] ss:$20 sps:$4 sm:$0xff]  }
 0x305   :  { %v19184_v17 = vadd.f32 %v9672_v27, %v19059_v23  ;;  %9996 = vmatprep.mubr.bf16.mxu1 %v16219_v9  ;;  %v15275_v23 = vld [vmem:[%s21434_s2 + $0x1e28] ss:$20 sps:$4 sm:$0xff]   ;;  %v15302_v6 = vld [vmem:[%s21434_s2 + $0x1cc0] ss:$20 sps:$4 sm:$0xff]   ;;  %v15313_v48 = vld [vmem:[%s21434_s2 + $0x3a4] ss:$20 sps:$4 sm:$0xff]  }
 0x306   :  { %v9674_v11 = vpop.f32.mrf.mxu1  ;;  %v15319_v27 = vld [vmem:[%s21434_s2 + $0x37c] ss:$20 sps:$4 sm:$0xff]  }
 0x307   :  { %9942 = vmatpush2.bf16.msra.mxu0 %v15266_v53  ;;  %9975 = vmatpush1.bf16.msra.mxu1 %v15269_v37  ;;  %v15308_v53 = vld [vmem:[%s21434_s2 + $0x80] ss:$20 sps:$4 sm:$0xff]   ;;  %v15314_v11 = vld [vmem:[%s21434_s2 + $0x58] ss:$20 sps:$4 sm:$0xff]  }
 0x308   :  { %v9675_v44 = vpop.f32.mrf.mxu1  ;;  %9943 = vmatprep.subr.bf16.mxu0 %v15274_v39  ;;  %9976 = vmatprep.subr.bf16.mxu1 %v15277_v25  ;;  %v15311_v37 = vld [vmem:[%s21434_s2 + $0x3a0] ss:$20 sps:$4 sm:$0xff]   ;;  %v15316_v39 = vld [vmem:[%s21434_s2 + $0x5c] ss:$20 sps:$4 sm:$0xff]   ;;  %v19282_v25 = vpack.c.bf16 %v3168_v52, %v3168_v52 }
 0x309   :  { %v15349_v52 = vld [vmem:[%s21434_s2 + $0x2b4] ss:$20 sps:$4 sm:$0xff]  }
 0x30b   :  { %9944 = vmatpush2.bf16.msra.mxu0 %v15272_v58  ;;  %9977 = vmatpush1.bf16.msra.mxu1 %v15275_v23  ;;  %v15317_v58 = vld [vmem:[%s21434_s2 + $0x378] ss:$20 sps:$4 sm:$0xff]   ;;  %v15322_v23 = vld [vmem:[%s21434_s2 + $0x34] ss:$20 sps:$4 sm:$0xff]  }
 0x30c   :  { %9945 = vmatprep.subr.bf16.mxu0 %v15280_v47  ;;  %9978 = vmatprep.subr.bf16.mxu1 %v15283_v13 }
 0x30f   :  { %9946 = vmatpush2.bf16.msra.mxu0 %v15278_v4  ;;  %9979 = vmatpush1.bf16.msra.mxu1 %v15281_v20  ;;  %v15331_v20 = vld [vmem:[%s21434_s2 + $0x32c] ss:$20 sps:$4 sm:$0xff]  }
 0x310   :  { %9947 = vmatprep.subr.bf16.mxu0 %v15286_v21  ;;  %10005 = vmatprep.subr.bf16.mxu1 %v15289_v7  ;;  %v15326_v21 = vld [vmem:[%s21434_s2 + $0x8] ss:$20 sps:$4 sm:$0xff]   ;;  %v15334_v7 = vld [vmem:[%s21434_s2 + $0x264] ss:$20 sps:$4 sm:$0xff]  }
 0x312   :  { %13187 = vmatmul.mubr.msk.bf16.vlgmr.msra.gmra.mxu1 %vm9468_vm4, %v19229_v56 }
 0x313   :  { %9948 = vmatpush2.bf16.msra.mxu0 %v15284_v35  ;;  %10006 = vmatpush1.bf16.msra.mxu1 %v15287_v1  ;;  %v15337_v35 = vld [vmem:[%s21434_s2 + $0x304] ss:$20 sps:$4 sm:$0xff]   ;;  %v15332_v1 = vld [vmem:[%s21434_s2 + $0x260] ss:$20 sps:$4 sm:$0xff]  }
 0x314   :  { %10037 = vmatprep.mubr.bf16.mxu1 %v17503_v34  ;;  %9949 = vmatprep.subr.bf16.mxu0 %v15292_v29  ;;  %v15335_v29 = vld [vmem:[%s21434_s2 + $0x300] ss:$20 sps:$4 sm:$0xff]  }
 0x315   :  { %10007 = vmatprep.subr.bf16.mxu1 %v15295_v19  ;;  %v15340_v19 = vld [vmem:[%s21434_s2 + $0x23c] ss:$20 sps:$4 sm:$0xff]  }
 0x317   :  { %9950 = vmatpush2.bf16.msra.mxu0 %v15290_v30  ;;  %10008 = vmatpush1.bf16.msra.mxu1 %v15293_v55  ;;  %v15343_v30 = vld [vmem:[%s21434_s2 + $0x2dc] ss:$20 sps:$4 sm:$0xff]   ;;  %v15338_v55 = vld [vmem:[%s21434_s2 + $0x238] ss:$20 sps:$4 sm:$0xff]  }
 0x318   :  { %9951 = vmatprep.subr.bf16.mxu0 %v15298_v42  ;;  %10009 = vmatprep.subr.bf16.mxu1 %v15301_v63  ;;  %v15341_v42 = vld [vmem:[%s21434_s2 + $0x2d8] ss:$20 sps:$4 sm:$0xff]   ;;  %v15346_v63 = vld [vmem:[%s21434_s2 + $0x214] ss:$20 sps:$4 sm:$0xff]  }
 0x31b   :  { %9952 = vmatpush2.bf16.msra.mxu0 %v15296_v51  ;;  %10010 = vmatpush1.bf16.msra.mxu1 %v15299_v18  ;;  %v15344_v51 = vld [vmem:[%s21434_s2 + $0x210] ss:$20 sps:$4 sm:$0xff]  }
 0x31c   :  { %9953 = vmatprep.subr.bf16.mxu0 %v15304_v26  ;;  %10011 = vmatprep.subr.bf16.mxu1 %v15307_v8  ;;  %v15347_v18 = vld [vmem:[%s21434_s2 + $0x2b0] ss:$20 sps:$4 sm:$0xff]   ;;  %v15352_v26 = vld [vmem:[%s21434_s2 + $0x1ec] ss:$20 sps:$4 sm:$0xff]  }
 0x31d   :  { %v15355_v8 = vld [vmem:[%s21434_s2 + $0x28c] ss:$20 sps:$4 sm:$0xff]  }
 0x31f   :  { %9954 = vmatpush2.bf16.msra.mxu0 %v15302_v6  ;;  %10012 = vmatpush1.bf16.msra.mxu1 %v15305_v45  ;;  %v15350_v6 = vld [vmem:[%s21434_s2 + $0x1e8] ss:$20 sps:$4 sm:$0xff]  }
 0x320   :  { %10013 = vmatprep.subr.bf16.mxu1 %v15310_v15  ;;  %10046 = vmatprep.subr.bf16.mxu0 %v15313_v48  ;;  %v15353_v45 = vld [vmem:[%s21434_s2 + $0x288] ss:$20 sps:$4 sm:$0xff]   ;;  %v15358_v15 = vld [vmem:[%s21434_s2 + $0x1c4] ss:$20 sps:$4 sm:$0xff]  }
 0x321   :  { %v15361_v48 = vld [vmem:[%s21434_s2 + $0x4e4] ss:$20 sps:$4 sm:$0xff]  }
 0x322   :  { %v9711_v14 = vpop.f32.mrf.mxu0  ;;  %9956 = vmatmul.mubr.bf16.vlgmr.msra.gmra.mxu0 %v19282_v25 }
 0x323   :  { %v19286_v28 = vadd.f32 %v9711_v14, %v19169_v33  ;;  %10014 = vmatpush1.bf16.msra.mxu1 %v15308_v53  ;;  %10047 = vmatpush1.bf16.msra.mxu0 %v15311_v37  ;;  %v15325_v33 = vld [vmem:[%s21434_s2 + $0x354] ss:$20 sps:$4 sm:$0xff]  }
 0x324   :  { %10078 = vmatprep.mubr.bf16.mxu0 %v17625_v54  ;;  %v9713_v44 = vpop.f32.mrf.mxu0  ;;  %10015 = vmatprep.subr.bf16.mxu1 %v15316_v39  ;;  %v15356_v53 = vld [vmem:[%s21434_s2 + $0x1c0] ss:$20 sps:$4 sm:$0xff]   ;;  %v15364_v39 = vld [vmem:[%s21434_s2 + $0x19c] ss:$20 sps:$4 sm:$0xff]  }
 0x325   :  { %v19302_v47 = vadd.f32 %v9713_v44, %v19184_v17  ;;  %10048 = vmatprep.subr.bf16.mxu0 %v15319_v27  ;;  %v15328_v17 = vld [vmem:[%s21434_s2 + $0xc] ss:$20 sps:$4 sm:$0xff]   ;;  %v15367_v27 = vld [vmem:[%s21434_s2 + $0x4bc] ss:$20 sps:$4 sm:$0xff]   ;;  %v15370_v44 = vld [vmem:[%s21434_s2 + $0x174] ss:$20 sps:$4 sm:$0xff]  }
 0x326   :  { %v9715_v13 = vpop.f32.mrf.mxu0  ;;  %v15359_v37 = vld [vmem:[%s21434_s2 + $0x4e0] ss:$20 sps:$4 sm:$0xff]  }
 0x327   :  { %10016 = vmatpush1.bf16.msra.mxu1 %v15314_v11  ;;  %10049 = vmatpush1.bf16.msra.mxu0 %v15317_v58  ;;  %v15362_v58 = vld [vmem:[%s21434_s2 + $0x198] ss:$20 sps:$4 sm:$0xff]  }
 0x328   :  { %v9716_v4 = vpop.f32.mrf.mxu0  ;;  %10017 = vmatprep.subr.bf16.mxu1 %v15322_v23  ;;  %10050 = vmatprep.subr.bf16.mxu0 %v15325_v33  ;;  %v15365_v23 = vld [vmem:[%s21434_s2 + $0x4b8] ss:$20 sps:$4 sm:$0xff]  }
 0x329   :  { %v15371_v4 = vld [vmem:[%s21434_s2 + $0x490] ss:$20 sps:$4 sm:$0xff]  }
 0x32b   :  { %10018 = vmatpush1.bf16.msra.mxu1 %v15320_v24  ;;  %10051 = vmatpush1.bf16.msra.mxu0 %v15323_v16  ;;  %v15368_v16 = vld [vmem:[%s21434_s2 + $0x170] ss:$20 sps:$4 sm:$0xff]  }
 0x32c   :  { %10019 = vmatprep.subr.bf16.mxu1 %v15328_v17  ;;  %10052 = vmatprep.subr.bf16.mxu0 %v15331_v20  ;;  %v15376_v20 = vld [vmem:[%s21434_s2 + $0x14c] ss:$20 sps:$4 sm:$0xff]  }
 0x32f   :  { %10020 = vmatpush1.bf16.msra.mxu1 %v15326_v21  ;;  %10053 = vmatpush1.bf16.msra.mxu0 %v15329_v2  ;;  %v15374_v21 = vld [vmem:[%s21434_s2 + $0x148] ss:$20 sps:$4 sm:$0xff]  }
 0x330   :  { %10021 = vmatprep.subr.bf16.mxu1 %v15334_v7  ;;  %10054 = vmatprep.subr.bf16.mxu0 %v15337_v35  ;;  %v15377_v2 = vld [vmem:[%s21434_s2 + $0x468] ss:$20 sps:$4 sm:$0xff]   ;;  %v15382_v7 = vld [vmem:[%s21434_s2 + $0x444] ss:$20 sps:$4 sm:$0xff]  }
 0x331   :  { %v15385_v35 = vld [vmem:[%s21434_s2 + $0x624] ss:$20 sps:$4 sm:$0xff]  }
 0x333   :  { %10022 = vmatpush2.bf16.msra.mxu1 %v15332_v1  ;;  %10055 = vmatpush1.bf16.msra.mxu0 %v15335_v29  ;;  %v15380_v1 = vld [vmem:[%s21434_s2 + $0x440] ss:$20 sps:$4 sm:$0xff]  }
 0x334   :  { %10023 = vmatprep.subr.bf16.mxu1 %v15340_v19  ;;  %10056 = vmatprep.subr.bf16.mxu0 %v15343_v30  ;;  %v15383_v29 = vld [vmem:[%s21434_s2 + $0x620] ss:$20 sps:$4 sm:$0xff]   ;;  %v15388_v19 = vld [vmem:[%s21434_s2 + $0x41c] ss:$20 sps:$4 sm:$0xff]  }
 0x335   :  { %v15391_v30 = vld [vmem:[%s21434_s2 + $0x5fc] ss:$20 sps:$4 sm:$0xff]  }
 0x337   :  { %10024 = vmatpush2.bf16.msra.mxu1 %v15338_v55  ;;  %10057 = vmatpush1.bf16.msra.mxu0 %v15341_v42  ;;  %v15386_v55 = vld [vmem:[%s21434_s2 + $0x418] ss:$20 sps:$4 sm:$0xff]  }
 0x338   :  { %10025 = vmatprep.subr.bf16.mxu1 %v15346_v63  ;;  %10058 = vmatprep.subr.bf16.mxu0 %v15349_v52  ;;  %v15389_v42 = vld [vmem:[%s21434_s2 + $0x5f8] ss:$20 sps:$4 sm:$0xff]   ;;  %v15394_v63 = vld [vmem:[%s21434_s2 + $0x3f4] ss:$20 sps:$4 sm:$0xff]  }
 0x339   :  { %v15397_v52 = vld [vmem:[%s21434_s2 + $0x5d4] ss:$20 sps:$4 sm:$0xff]  }
 0x33b   :  { %10026 = vmatpush2.bf16.msra.mxu1 %v15344_v51  ;;  %10059 = vmatpush1.bf16.msra.mxu0 %v15347_v18  ;;  %v15392_v51 = vld [vmem:[%s21434_s2 + $0x3f0] ss:$20 sps:$4 sm:$0xff]  }
 0x33c   :  { %10027 = vmatprep.subr.bf16.mxu1 %v15352_v26  ;;  %10060 = vmatprep.subr.bf16.mxu0 %v15355_v8  ;;  %v15395_v18 = vld [vmem:[%s21434_s2 + $0x5d0] ss:$20 sps:$4 sm:$0xff]   ;;  %v15400_v26 = vld [vmem:[%s21434_s2 + $0x3cc] ss:$20 sps:$4 sm:$0xff]  }
 0x33d   :  { %v15403_v8 = vld [vmem:[%s21434_s2 + $0x5ac] ss:$20 sps:$4 sm:$0xff]  }
 0x33f   :  { %10028 = vmatpush2.bf16.msra.mxu1 %v15350_v6  ;;  %10061 = vmatpush1.bf16.msra.mxu0 %v15353_v45  ;;  %v15398_v6 = vld [vmem:[%s21434_s2 + $0x3c8] ss:$20 sps:$4 sm:$0xff]  }
 0x340   :  { %10029 = vmatprep.subr.bf16.mxu1 %v15358_v15  ;;  %10062 = vmatprep.subr.bf16.mxu0 %v15361_v48  ;;  %v15401_v45 = vld [vmem:[%s21434_s2 + $0x5a8] ss:$20 sps:$4 sm:$0xff]   ;;  %v15406_v15 = vld [vmem:[%s21434_s2 + $0x584] ss:$20 sps:$4 sm:$0xff]  }
 0x341   :  { %v15409_v48 = vld [vmem:[%s21434_s2 + $0x8a4] ss:$20 sps:$4 sm:$0xff]  }
 0x342   :  { %v9752_v14 = vpop.f32.mrf.mxu1 }
 0x343   :  { %v19389_v11 = vadd.f32 %v9752_v14, %v19286_v28  ;;  %10030 = vmatpush2.bf16.msra.mxu1 %v15356_v53  ;;  %10063 = vmatpush2.bf16.msra.mxu0 %v15359_v37  ;;  %v15373_v28 = vld [vmem:[%s21434_s2 + $0x494] ss:$20 sps:$4 sm:$0xff]   ;;  %v15410_v14 = vld [vmem:[%s21434_s2 + $0x558] ss:$20 sps:$4 sm:$0xff]  }
 0x344   :  { %v9754_v33 = vpop.f32.mrf.mxu1  ;;  %10031 = vmatprep.subr.bf16.mxu1 %v15364_v39  ;;  %10064 = vmatprep.subr.bf16.mxu0 %v15367_v27  ;;  %v15404_v53 = vld [vmem:[%s21434_s2 + $0x580] ss:$20 sps:$4 sm:$0xff]   ;;  %v15412_v39 = vld [vmem:[%s21434_s2 + $0x55c] ss:$20 sps:$4 sm:$0xff]  }
 0x345   :  { %v19404_v13 = vadd.f32 %v9754_v33, %v19302_v47  ;;  %v15379_v47 = vld [vmem:[%s21434_s2 + $0x46c] ss:$20 sps:$4 sm:$0xff]   ;;  %v15415_v27 = vld [vmem:[%s21434_s2 + $0x87c] ss:$20 sps:$4 sm:$0xff]   ;;  %v15421_v33 = vld [vmem:[%s21434_s2 + $0x854] ss:$20 sps:$4 sm:$0xff]  }
 0x346   :  { %v9756_v24 = vpop.f32.mrf.mxu1  ;;  %v15407_v37 = vld [vmem:[%s21434_s2 + $0x8a0] ss:$20 sps:$4 sm:$0xff]  }
 0x347   :  { %10032 = vmatpush2.bf16.msra.mxu1 %v15362_v58  ;;  %10065 = vmatpush2.bf16.msra.mxu0 %v15365_v23  ;;  %v15413_v58 = vld [vmem:[%s21434_s2 + $0x878] ss:$20 sps:$4 sm:$0xff]  }
 0x348   :  { %v9757_v17 = vpop.f32.mrf.mxu1  ;;  %10033 = vmatprep.subr.bf16.mxu1 %v15370_v44  ;;  %10066 = vmatprep.subr.bf16.mxu0 %v15373_v28  ;;  %v15418_v44 = vld [vmem:[%s21434_s2 + $0x534] ss:$20 sps:$4 sm:$0xff]  }
 0x349   :  { %v15419_v17 = vld [vmem:[%s21434_s2 + $0x850] ss:$20 sps:$4 sm:$0xff]  }
 0x34b   :  { %10034 = vmatpush2.bf16.msra.mxu1 %v15368_v16  ;;  %10067 = vmatpush2.bf16.msra.mxu0 %v15371_v4  ;;  %v15416_v4 = vld [vmem:[%s21434_s2 + $0x530] ss:$20 sps:$4 sm:$0xff]  }
 0x34c   :  { %10035 = vmatprep.subr.bf16.mxu1 %v15376_v20  ;;  %10068 = vmatprep.subr.bf16.mxu0 %v15379_v47  ;;  %v15424_v20 = vld [vmem:[%s21434_s2 + $0x50c] ss:$20 sps:$4 sm:$0xff]  }
 0x34d   :  { %v15427_v47 = vld [vmem:[%s21434_s2 + $0x82c] ss:$20 sps:$4 sm:$0xff]  }
 0x34f   :  { %10036 = vmatpush2.bf16.msra.mxu1 %v15374_v21  ;;  %10069 = vmatpush2.bf16.msra.mxu0 %v15377_v2  ;;  %v15422_v21 = vld [vmem:[%s21434_s2 + $0x508] ss:$20 sps:$4 sm:$0xff]  }
 0x350   :  { %10070 = vmatprep.subr.bf16.mxu0 %v15382_v7  ;;  %10087 = vmatprep.subr.bf16.mxu1 %v15385_v35  ;;  %v15425_v2 = vld [vmem:[%s21434_s2 + $0x828] ss:$20 sps:$4 sm:$0xff]   ;;  %v15430_v7 = vld [vmem:[%s21434_s2 + $0x764] ss:$20 sps:$4 sm:$0xff]  }
 0x351   :  { %v15433_v35 = vld [vmem:[%s21434_s2 + $0x804] ss:$20 sps:$4 sm:$0xff]  }
 0x352   :  { %10038 = vmatmul.mubr.bf16.vlgmr.msra.gmra.mxu1 %v17749_v5 }
 0x353   :  { %10071 = vmatpush2.bf16.msra.mxu0 %v15380_v1  ;;  %10088 = vmatpush1.bf16.msra.mxu1 %v15383_v29  ;;  %v15428_v1 = vld [vmem:[%s21434_s2 + $0x760] ss:$20 sps:$4 sm:$0xff]  }
 0x354   :  { %10119 = vmatprep.mubr.bf16.mxu1 %v17762_v10  ;;  %10072 = vmatprep.subr.bf16.mxu0 %v15388_v19  ;;  %v15431_v29 = vld [vmem:[%s21434_s2 + $0x800] ss:$20 sps:$4 sm:$0xff]   ;;  %v15436_v19 = vld [vmem:[%s21434_s2 + $0x73c] ss:$20 sps:$4 sm:$0xff]  }
 0x355   :  { %10089 = vmatprep.subr.bf16.mxu1 %v15391_v30  ;;  %v15439_v30 = vld [vmem:[%s21434_s2 + $0x7dc] ss:$20 sps:$4 sm:$0xff]  }
 0x357   :  { %10073 = vmatpush2.bf16.msra.mxu0 %v15386_v55  ;;  %10090 = vmatpush1.bf16.msra.mxu1 %v15389_v42  ;;  %v15434_v55 = vld [vmem:[%s21434_s2 + $0x738] ss:$20 sps:$4 sm:$0xff]  }
 0x358   :  { %10074 = vmatprep.subr.bf16.mxu0 %v15394_v63  ;;  %10091 = vmatprep.subr.bf16.mxu1 %v15397_v52  ;;  %v15437_v42 = vld [vmem:[%s21434_s2 + $0x7d8] ss:$20 sps:$4 sm:$0xff]   ;;  %v15442_v63 = vld [vmem:[%s21434_s2 + $0x714] ss:$20 sps:$4 sm:$0xff]  }
 0x359   :  { %v15445_v52 = vld [vmem:[%s21434_s2 + $0x7b4] ss:$20 sps:$4 sm:$0xff]  }
 0x35b   :  { %10075 = vmatpush2.bf16.msra.mxu0 %v15392_v51  ;;  %10092 = vmatpush1.bf16.msra.mxu1 %v15395_v18  ;;  %v15440_v51 = vld [vmem:[%s21434_s2 + $0x710] ss:$20 sps:$4 sm:$0xff]  }
 0x35c   :  { %10076 = vmatprep.subr.bf16.mxu0 %v15400_v26  ;;  %10093 = vmatprep.subr.bf16.mxu1 %v15403_v8  ;;  %v15443_v18 = vld [vmem:[%s21434_s2 + $0x7b0] ss:$20 sps:$4 sm:$0xff]   ;;  %v15448_v26 = vld [vmem:[%s21434_s2 + $0x6ec] ss:$20 sps:$4 sm:$0xff]  }
 0x35d   :  { %v15451_v8 = vld [vmem:[%s21434_s2 + $0x78c] ss:$20 sps:$4 sm:$0xff]  }
 0x35f   :  { %10077 = vmatpush2.bf16.msra.mxu0 %v15398_v6  ;;  %10094 = vmatpush1.bf16.msra.mxu1 %v15401_v45  ;;  %v15446_v6 = vld [vmem:[%s21434_s2 + $0x6e8] ss:$20 sps:$4 sm:$0xff]  }
 0x360   :  { %10095 = vmatprep.subr.bf16.mxu1 %v15406_v15  ;;  %10128 = vmatprep.subr.bf16.mxu0 %v15409_v48  ;;  %v15449_v45 = vld [vmem:[%s21434_s2 + $0x788] ss:$20 sps:$4 sm:$0xff]   ;;  %v15454_v15 = vld [vmem:[%s21434_s2 + $0x6c4] ss:$20 sps:$4 sm:$0xff]  }
 0x361   :  { %v15457_v48 = vld [vmem:[%s21434_s2 + $0x9e4] ss:$20 sps:$4 sm:$0xff]  }
 0x362   :  { %v9793_v23 = vpop.f32.mrf.mxu0  ;;  %10079 = vmatmul.mubr.bf16.vlgmr.msra.gmra.mxu0 %v17883_v31 }
 0x363   :  { %v19506_v28 = vadd.f32 %v9793_v23, %v19389_v11  ;;  %10096 = vmatpush1.bf16.msra.mxu1 %v15404_v53  ;;  %10129 = vmatpush1.bf16.msra.mxu0 %v15407_v37  ;;  %v15452_v53 = vld [vmem:[%s21434_s2 + $0x6c0] ss:$20 sps:$4 sm:$0xff]   ;;  %v15458_v23 = vld [vmem:[%s21434_s2 + $0x698] ss:$20 sps:$4 sm:$0xff]  }
 0x364   :  { %10160 = vmatprep.mubr.bf16.mxu0 %v17894_v36  ;;  %v9795_v24 = vpop.f32.mrf.mxu0  ;;  %10097 = vmatprep.subr.bf16.mxu1 %v15412_v39  ;;  %v15455_v37 = vld [vmem:[%s21434_s2 + $0x9e0] ss:$20 sps:$4 sm:$0xff]   ;;  %v15460_v39 = vld [vmem:[%s21434_s2 + $0x69c] ss:$20 sps:$4 sm:$0xff]  }
 0x365   :  { %v19510_v16 = vadd.f32 %v9795_v24, %v19404_v13  ;;  %10130 = vmatprep.subr.bf16.mxu0 %v15415_v27  ;;  %v15463_v27 = vld [vmem:[%s21434_s2 + $0x9bc] ss:$20 sps:$4 sm:$0xff]   ;;  %v15466_v24 = vld [vmem:[%s21434_s2 + $0x674] ss:$20 sps:$4 sm:$0xff]  }
 0x366   :  { %v9797_v11 = vpop.f32.mrf.mxu0 }
 0x367   :  { %10098 = vmatpush1.bf16.msra.mxu1 %v15410_v14  ;;  %10131 = vmatpush1.bf16.msra.mxu0 %v15413_v58  ;;  %v15464_v11 = vld [vmem:[%s21434_s2 + $0x670] ss:$20 sps:$4 sm:$0xff]  }
 0x368   :  { %v9798_v13 = vpop.f32.mrf.mxu0  ;;  %10099 = vmatprep.subr.bf16.mxu1 %v15418_v44  ;;  %10132 = vmatprep.subr.bf16.mxu0 %v15421_v33  ;;  %v15461_v44 = vld [vmem:[%s21434_s2 + $0x9b8] ss:$20 sps:$4 sm:$0xff]  }
 0x369   :  { %v15472_v13 = vld [vmem:[%s21434_s2 + $0x64c] ss:$20 sps:$4 sm:$0xff]  }
 0x36b   :  { %10100 = vmatpush1.bf16.msra.mxu1 %v15416_v4  ;;  %10133 = vmatpush1.bf16.msra.mxu0 %v15419_v17 }
 0x36c   :  { %10101 = vmatprep.subr.bf16.mxu1 %v15424_v20  ;;  %10134 = vmatprep.subr.bf16.mxu0 %v15427_v47  ;;  %v15467_v20 = vld [vmem:[%s21434_s2 + $0x990] ss:$20 sps:$4 sm:$0xff]  }
 0x36f   :  { %10102 = vmatpush1.bf16.msra.mxu1 %v15422_v21  ;;  %10135 = vmatpush1.bf16.msra.mxu0 %v15425_v2  ;;  %v15470_v21 = vld [vmem:[%s21434_s2 + $0x648] ss:$20 sps:$4 sm:$0xff]  }
 0x370   :  { %10103 = vmatprep.subr.bf16.mxu1 %v15430_v7  ;;  %10136 = vmatprep.subr.bf16.mxu0 %v15433_v35  ;;  %v15473_v2 = vld [vmem:[%s21434_s2 + $0x968] ss:$20 sps:$4 sm:$0xff]   ;;  %v15478_v7 = vld [vmem:[%s21434_s2 + $0x944] ss:$20 sps:$4 sm:$0xff]  }
 0x371   :  { %v15481_v35 = vld [vmem:[%s21434_s2 + $0xb24] ss:$20 sps:$4 sm:$0xff]  }
 0x373   :  { %10104 = vmatpush2.bf16.msra.mxu1 %v15428_v1  ;;  %10137 = vmatpush1.bf16.msra.mxu0 %v15431_v29  ;;  %v15476_v1 = vld [vmem:[%s21434_s2 + $0x940] ss:$20 sps:$4 sm:$0xff]  }
 0x374   :  { %10105 = vmatprep.subr.bf16.mxu1 %v15436_v19  ;;  %10138 = vmatprep.subr.bf16.mxu0 %v15439_v30  ;;  %v15479_v29 = vld [vmem:[%s21434_s2 + $0xb20] ss:$20 sps:$4 sm:$0xff]   ;;  %v15484_v19 = vld [vmem:[%s21434_s2 + $0x91c] ss:$20 sps:$4 sm:$0xff]  }
 0x375   :  { %v15487_v30 = vld [vmem:[%s21434_s2 + $0xafc] ss:$20 sps:$4 sm:$0xff]  }
 0x377   :  { %10106 = vmatpush2.bf16.msra.mxu1 %v15434_v55  ;;  %10139 = vmatpush1.bf16.msra.mxu0 %v15437_v42  ;;  %v15482_v55 = vld [vmem:[%s21434_s2 + $0x918] ss:$20 sps:$4 sm:$0xff]  }
 0x378   :  { %10107 = vmatprep.subr.bf16.mxu1 %v15442_v63  ;;  %10140 = vmatprep.subr.bf16.mxu0 %v15445_v52  ;;  %v15485_v42 = vld [vmem:[%s21434_s2 + $0xaf8] ss:$20 sps:$4 sm:$0xff]   ;;  %v15490_v63 = vld [vmem:[%s21434_s2 + $0x8f4] ss:$20 sps:$4 sm:$0xff]  }
 0x379   :  { %v15493_v52 = vld [vmem:[%s21434_s2 + $0xad4] ss:$20 sps:$4 sm:$0xff]  }
 0x37b   :  { %10108 = vmatpush2.bf16.msra.mxu1 %v15440_v51  ;;  %10141 = vmatpush1.bf16.msra.mxu0 %v15443_v18  ;;  %v15488_v51 = vld [vmem:[%s21434_s2 + $0x8f0] ss:$20 sps:$4 sm:$0xff]  }
 0x37c   :  { %10109 = vmatprep.subr.bf16.mxu1 %v15448_v26  ;;  %10142 = vmatprep.subr.bf16.mxu0 %v15451_v8  ;;  %v15491_v18 = vld [vmem:[%s21434_s2 + $0xad0] ss:$20 sps:$4 sm:$0xff]   ;;  %v15496_v26 = vld [vmem:[%s21434_s2 + $0x8cc] ss:$20 sps:$4 sm:$0xff]  }
 0x37d   :  { %v15499_v8 = vld [vmem:[%s21434_s2 + $0xaac] ss:$20 sps:$4 sm:$0xff]  }
 0x37f   :  { %10110 = vmatpush2.bf16.msra.mxu1 %v15446_v6  ;;  %10143 = vmatpush1.bf16.msra.mxu0 %v15449_v45  ;;  %v15494_v6 = vld [vmem:[%s21434_s2 + $0x8c8] ss:$20 sps:$4 sm:$0xff]  }
 0x380   :  { %10111 = vmatprep.subr.bf16.mxu1 %v15454_v15  ;;  %10144 = vmatprep.subr.bf16.mxu0 %v15457_v48  ;;  %v15497_v45 = vld [vmem:[%s21434_s2 + $0xaa8] ss:$20 sps:$4 sm:$0xff]   ;;  %v15502_v15 = vld [vmem:[%s21434_s2 + $0xa84] ss:$20 sps:$4 sm:$0xff]  }
 0x381   :  { %v15505_v48 = vld [vmem:[%s21434_s2 + $0xda4] ss:$20 sps:$4 sm:$0xff]  }
 0x382   :  { %v9834_v14 = vpop.f32.mrf.mxu1 }
 0x383   :  { %v19597_v58 = vadd.f32 %v9834_v14, %v19506_v28  ;;  %10112 = vmatpush2.bf16.msra.mxu1 %v15452_v53  ;;  %10145 = vmatpush2.bf16.msra.mxu0 %v15455_v37  ;;  %v15469_v28 = vld [vmem:[%s21434_s2 + $0x994] ss:$20 sps:$4 sm:$0xff]  }
 0x384   :  { %v9836_v33 = vpop.f32.mrf.mxu1  ;;  %10113 = vmatprep.subr.bf16.mxu1 %v15460_v39  ;;  %10146 = vmatprep.subr.bf16.mxu0 %v15463_v27  ;;  %v15500_v53 = vld [vmem:[%s21434_s2 + $0xa80] ss:$20 sps:$4 sm:$0xff]   ;;  %v15508_v39 = vld [vmem:[%s21434_s2 + $0xa5c] ss:$20 sps:$4 sm:$0xff]  }
 0x385   :  { %v19612_v4 = vadd.f32 %v9836_v33, %v19510_v16  ;;  %v15475_v16 = vld [vmem:[%s21434_s2 + $0x96c] ss:$20 sps:$4 sm:$0xff]   ;;  %v15511_v27 = vld [vmem:[%s21434_s2 + $0xd7c] ss:$20 sps:$4 sm:$0xff]  }
 0x386   :  { %v9838_v17 = vpop.f32.mrf.mxu1  ;;  %v15503_v37 = vld [vmem:[%s21434_s2 + $0xda0] ss:$20 sps:$4 sm:$0xff]   ;;  %v15509_v33 = vld [vmem:[%s21434_s2 + $0xd78] ss:$20 sps:$4 sm:$0xff]  }
 0x387   :  { %10114 = vmatpush2.bf16.msra.mxu1 %v15458_v23  ;;  %10147 = vmatpush2.bf16.msra.mxu0 %v15461_v44  ;;  %v15506_v44 = vld [vmem:[%s21434_s2 + $0xa58] ss:$20 sps:$4 sm:$0xff]  }
 0x388   :  { %v9839_v47 = vpop.f32.mrf.mxu1  ;;  %10115 = vmatprep.subr.bf16.mxu1 %v15466_v24  ;;  %10148 = vmatprep.subr.bf16.mxu0 %v15469_v28  ;;  %v15514_v24 = vld [vmem:[%s21434_s2 + $0xa34] ss:$20 sps:$4 sm:$0xff]  }
 0x389   :  { %v15515_v47 = vld [vmem:[%s21434_s2 + $0xd50] ss:$20 sps:$4 sm:$0xff]  }
 0x38b   :  { %10116 = vmatpush2.bf16.msra.mxu1 %v15464_v11  ;;  %10149 = vmatpush2.bf16.msra.mxu0 %v15467_v20  ;;  %v15512_v20 = vld [vmem:[%s21434_s2 + $0xa30] ss:$20 sps:$4 sm:$0xff]  }
 0x38c   :  { %10117 = vmatprep.subr.bf16.mxu1 %v15472_v13  ;;  %10150 = vmatprep.subr.bf16.mxu0 %v15475_v16  ;;  %v15523_v16 = vld [vmem:[%s21434_s2 + $0xd2c] ss:$20 sps:$4 sm:$0xff]  }
 0x38f   :  { %10118 = vmatpush2.bf16.msra.mxu1 %v15470_v21  ;;  %10151 = vmatpush2.bf16.msra.mxu0 %v15473_v2  ;;  %v15518_v21 = vld [vmem:[%s21434_s2 + $0xa08] ss:$20 sps:$4 sm:$0xff]  }
 0x390   :  { %10152 = vmatprep.subr.bf16.mxu0 %v15478_v7  ;;  %10169 = vmatprep.subr.bf16.mxu1 %v15481_v35  ;;  %v15521_v2 = vld [vmem:[%s21434_s2 + $0xd28] ss:$20 sps:$4 sm:$0xff]   ;;  %v15526_v7 = vld [vmem:[%s21434_s2 + $0xc64] ss:$20 sps:$4 sm:$0xff]  }
 0x391   :  { %v15529_v35 = vld [vmem:[%s21434_s2 + $0xd04] ss:$20 sps:$4 sm:$0xff]  }
 0x392   :  { %10120 = vmatmul.mubr.bf16.vlgmr.msra.gmra.mxu1 %v18013_v62 }
 0x393   :  { %10153 = vmatpush2.bf16.msra.mxu0 %v15476_v1  ;;  %10170 = vmatpush1.bf16.msra.mxu1 %v15479_v29  ;;  %v15524_v1 = vld [vmem:[%s21434_s2 + $0xc60] ss:$20 sps:$4 sm:$0xff]  }
 0x394   :  { %10201 = vmatprep.mubr.bf16.mxu1 %v18026_v3  ;;  %10154 = vmatprep.subr.bf16.mxu0 %v15484_v19  ;;  %v15527_v29 = vld [vmem:[%s21434_s2 + $0xd00] ss:$20 sps:$4 sm:$0xff]   ;;  %v15532_v19 = vld [vmem:[%s21434_s2 + $0xc3c] ss:$20 sps:$4 sm:$0xff]  }
 0x395   :  { %10171 = vmatprep.subr.bf16.mxu1 %v15487_v30  ;;  %v15535_v30 = vld [vmem:[%s21434_s2 + $0xcdc] ss:$20 sps:$4 sm:$0xff]  }
 0x397   :  { %10155 = vmatpush2.bf16.msra.mxu0 %v15482_v55  ;;  %10172 = vmatpush1.bf16.msra.mxu1 %v15485_v42  ;;  %v15530_v55 = vld [vmem:[%s21434_s2 + $0xc38] ss:$20 sps:$4 sm:$0xff]  }
 0x398   :  { %10156 = vmatprep.subr.bf16.mxu0 %v15490_v63  ;;  %10173 = vmatprep.subr.bf16.mxu1 %v15493_v52  ;;  %v15533_v42 = vld [vmem:[%s21434_s2 + $0xcd8] ss:$20 sps:$4 sm:$0xff]   ;;  %v15538_v63 = vld [vmem:[%s21434_s2 + $0xc14] ss:$20 sps:$4 sm:$0xff]  }
 0x399   :  { %v15541_v52 = vld [vmem:[%s21434_s2 + $0xcb4] ss:$20 sps:$4 sm:$0xff]  }
 0x39b   :  { %10157 = vmatpush2.bf16.msra.mxu0 %v15488_v51  ;;  %10174 = vmatpush1.bf16.msra.mxu1 %v15491_v18  ;;  %v15536_v51 = vld [vmem:[%s21434_s2 + $0xc10] ss:$20 sps:$4 sm:$0xff]  }
 0x39c   :  { %10158 = vmatprep.subr.bf16.mxu0 %v15496_v26  ;;  %10175 = vmatprep.subr.bf16.mxu1 %v15499_v8  ;;  %v15539_v18 = vld [vmem:[%s21434_s2 + $0xcb0] ss:$20 sps:$4 sm:$0xff]   ;;  %v15544_v26 = vld [vmem:[%s21434_s2 + $0xbec] ss:$20 sps:$4 sm:$0xff]  }
 0x39d   :  { %v15547_v8 = vld [vmem:[%s21434_s2 + $0xc8c] ss:$20 sps:$4 sm:$0xff]  }
 0x39f   :  { %10159 = vmatpush2.bf16.msra.mxu0 %v15494_v6  ;;  %10176 = vmatpush1.bf16.msra.mxu1 %v15497_v45  ;;  %v15542_v6 = vld [vmem:[%s21434_s2 + $0xbe8] ss:$20 sps:$4 sm:$0xff]  }
 0x3a0   :  { %10177 = vmatprep.subr.bf16.mxu1 %v15502_v15  ;;  %10210 = vmatprep.subr.bf16.mxu0 %v15505_v48  ;;  %v15545_v45 = vld [vmem:[%s21434_s2 + $0xc88] ss:$20 sps:$4 sm:$0xff]   ;;  %v15550_v15 = vld [vmem:[%s21434_s2 + $0xbc4] ss:$20 sps:$4 sm:$0xff]  }
 0x3a1   :  { %v15553_v48 = vld [vmem:[%s21434_s2 + $0xee4] ss:$20 sps:$4 sm:$0xff]  }
 0x3a2   :  { %v9875_v14 = vpop.f32.mrf.mxu0  ;;  %10161 = vmatmul.mubr.bf16.vlgmr.msra.gmra.mxu0 %v18159_v46 }
 0x3a3   :  { %v19702_v23 = vadd.f32 %v9875_v14, %v19597_v58  ;;  %10178 = vmatpush1.bf16.msra.mxu1 %v15500_v53  ;;  %10211 = vmatpush1.bf16.msra.mxu0 %v15503_v37  ;;  %v15517_v58 = vld [vmem:[%s21434_s2 + $0xd54] ss:$20 sps:$4 sm:$0xff]  }
 0x3a4   :  { %10242 = vmatprep.mubr.bf16.mxu0 %v18168_v49  ;;  %v9877_v28 = vpop.f32.mrf.mxu0  ;;  %10179 = vmatprep.subr.bf16.mxu1 %v15508_v39 }
 0x3a5   :  { %v19718_v17 = vadd.f32 %v9877_v28, %v19612_v4  ;;  %10212 = vmatprep.subr.bf16.mxu0 %v15511_v27  ;;  %v15520_v4 = vld [vmem:[%s21434_s2 + $0xa0c] ss:$20 sps:$4 sm:$0xff]  }
 0x3a6   :  { %v9879_v11 = vpop.f32.mrf.mxu0 }
 0x3a7   :  { %10180 = vmatpush1.bf16.msra.mxu1 %v15506_v44  ;;  %10213 = vmatpush1.bf16.msra.mxu0 %v15509_v33 }
 0x3a8   :  { %v9880_v13 = vpop.f32.mrf.mxu0  ;;  %10181 = vmatprep.subr.bf16.mxu1 %v15514_v24  ;;  %10214 = vmatprep.subr.bf16.mxu0 %v15517_v58 }
 0x3ab   :  { %10182 = vmatpush1.bf16.msra.mxu1 %v15512_v20  ;;  %10215 = vmatpush1.bf16.msra.mxu0 %v15515_v47 }
 0x3ac   :  { %10183 = vmatprep.subr.bf16.mxu1 %v15520_v4  ;;  %10216 = vmatprep.subr.bf16.mxu0 %v15523_v16 }
 0x3af   :  { %10184 = vmatpush1.bf16.msra.mxu1 %v15518_v21  ;;  %10217 = vmatpush1.bf16.msra.mxu0 %v15521_v2 }
 0x3b0   :  { %10185 = vmatprep.subr.bf16.mxu1 %v15526_v7  ;;  %10218 = vmatprep.subr.bf16.mxu0 %v15529_v35 }
 0x3b3   :  { %10186 = vmatpush2.bf16.msra.mxu1 %v15524_v1  ;;  %10219 = vmatpush1.bf16.msra.mxu0 %v15527_v29 }
 0x3b4   :  { %10187 = vmatprep.subr.bf16.mxu1 %v15532_v19  ;;  %10220 = vmatprep.subr.bf16.mxu0 %v15535_v30 }
 0x3b7   :  { %10188 = vmatpush2.bf16.msra.mxu1 %v15530_v55  ;;  %10221 = vmatpush1.bf16.msra.mxu0 %v15533_v42 }
 0x3b8   :  { %10189 = vmatprep.subr.bf16.mxu1 %v15538_v63  ;;  %10222 = vmatprep.subr.bf16.mxu0 %v15541_v52 }
 0x3bb   :  { %10190 = vmatpush2.bf16.msra.mxu1 %v15536_v51  ;;  %10223 = vmatpush1.bf16.msra.mxu0 %v15539_v18 }
 0x3bc   :  { %10191 = vmatprep.subr.bf16.mxu1 %v15544_v26  ;;  %10224 = vmatprep.subr.bf16.mxu0 %v15547_v8 }
 0x3bd   :  { %10 = vsyncpa [#allocation3], 0  ;;  %v15548_v53 = vld [vmem:[%s21434_s2 + $0xbc0] ss:$20 sps:$4 sm:$0xff]   ;;  %v15556_v39 = vld [vmem:[%s21434_s2 + $0xb9c] ss:$20 sps:$4 sm:$0xff]  }
 0x3be   :  { %v15551_v37 = vld [vmem:[%s21434_s2 + $0xee0] ss:$20 sps:$4 sm:$0xff]   ;;  %v15559_v27 = vld [vmem:[%s21434_s2 + $0xebc] ss:$20 sps:$4 sm:$0xff]   ;;  %v15554_v33 = vld [vmem:[%s21434_s2 + $0xb98] ss:$20 sps:$4 sm:$0xff]  }
 0x3bf   :  { %10192 = vmatpush2.bf16.msra.mxu1 %v15542_v6  ;;  %10225 = vmatpush1.bf16.msra.mxu0 %v15545_v45  ;;  %v15557_v24 = vld [vmem:[%s21434_s2 + $0xeb8] ss:$20 sps:$4 sm:$0xff]   ;;  %v15562_v58 = vld [vmem:[%s21434_s2 + $0xb74] ss:$20 sps:$4 sm:$0xff]   ;;  %v15560_v47 = vld [vmem:[%s21434_s2 + $0xb70] ss:$20 sps:$4 sm:$0xff]  }
 0x3c0   :  { %10193 = vmatprep.subr.bf16.mxu1 %v15550_v15  ;;  %10226 = vmatprep.subr.bf16.mxu0 %v15553_v48  ;;  %v15563_v13 = vld [vmem:[%s21434_s2 + $0xe90] ss:$20 sps:$4 sm:$0xff]   ;;  %v15568_v16 = vld [vmem:[%s21434_s2 + $0xb4c] ss:$20 sps:$4 sm:$0xff]   ;;  %v15566_v21 = vld [vmem:[%s21434_s2 + $0xb48] ss:$20 sps:$4 sm:$0xff]  }
 0x3c1   :  { %v15569_v2 = vld [vmem:[%s21434_s2 + $0xe68] ss:$20 sps:$4 sm:$0xff]   ;;  %v15574_v7 = vld [vmem:[%s21434_s2 + $0xe44] ss:$20 sps:$4 sm:$0xff]   ;;  %v15572_v1 = vld [vmem:[%s21434_s2 + $0xe40] ss:$20 sps:$4 sm:$0xff]  }
 0x3c2   :  { %v9916_v14 = vpop.f32.mrf.mxu1  ;;  %v15577_v35 = vld [vmem:[%s21434_s2 + $0x1024] ss:$20 sps:$4 sm:$0xff]   ;;  %v15575_v29 = vld [vmem:[%s21434_s2 + $0x1020] ss:$20 sps:$4 sm:$0xff]   ;;  %v15580_v19 = vld [vmem:[%s21434_s2 + $0xe1c] ss:$20 sps:$4 sm:$0xff]  }
 0x3c3   :  { %v19805_v44 = vadd.f32 %v9916_v14, %v19702_v23  ;;  %10194 = vmatpush2.bf16.msra.mxu1 %v15548_v53  ;;  %10227 = vmatpush2.bf16.msra.mxu0 %v15551_v37  ;;  %v15565_v23 = vld [vmem:[%s21434_s2 + $0xe94] ss:$20 sps:$4 sm:$0xff]   ;;  %v15583_v30 = vld [vmem:[%s21434_s2 + $0xffc] ss:$20 sps:$4 sm:$0xff]   ;;  %v15578_v42 = vld [vmem:[%s21434_s2 + $0xe18] ss:$20 sps:$4 sm:$0xff]  }
 0x3c4   :  { %v9918_v28 = vpop.f32.mrf.mxu1  ;;  %10195 = vmatprep.subr.bf16.mxu1 %v15556_v39  ;;  %10228 = vmatprep.subr.bf16.mxu0 %v15559_v27  ;;  %v15581_v63 = vld [vmem:[%s21434_s2 + $0xff8] ss:$20 sps:$4 sm:$0xff]   ;;  %v15586_v51 = vld [vmem:[%s21434_s2 + $0xdf4] ss:$20 sps:$4 sm:$0xff]   ;;  %v15584_v8 = vld [vmem:[%s21434_s2 + $0xdf0] ss:$20 sps:$4 sm:$0xff]  }
 0x3c5   :  { %v19820_v11 = vadd.f32 %v9918_v28, %v19718_v17  ;;  %v15571_v17 = vld [vmem:[%s21434_s2 + $0xe6c] ss:$20 sps:$4 sm:$0xff]   ;;  %v15589_v18 = vld [vmem:[%s21434_s2 + $0xfd4] ss:$20 sps:$4 sm:$0xff]   ;;  %v15587_v6 = vld [vmem:[%s21434_s2 + $0xfd0] ss:$20 sps:$4 sm:$0xff]  }
 0x3c6   :  { %v9920_v20 = vpop.f32.mrf.mxu1  ;;  %v15592_v15 = vld [vmem:[%s21434_s2 + $0xdcc] ss:$20 sps:$4 sm:$0xff]   ;;  %v15590_v53 = vld [vmem:[%s21434_s2 + $0xdc8] ss:$20 sps:$4 sm:$0xff]   ;;  %v15598_v39 = vld [vmem:[%s21434_s2 + $0xf84] ss:$20 sps:$4 sm:$0xff]  }
 0x3c7   :  { %10196 = vmatpush2.bf16.msra.mxu1 %v15554_v33  ;;  %10229 = vmatpush2.bf16.msra.mxu0 %v15557_v24  ;;  %v15595_v48 = vld [vmem:[%s21434_s2 + $0xfac] ss:$20 sps:$4 sm:$0xff]   ;;  %v15593_v37 = vld [vmem:[%s21434_s2 + $0xfa8] ss:$20 sps:$4 sm:$0xff]   ;;  %v15601_v27 = vld [vmem:[%s21434_s2 + $0x12a4] ss:$20 sps:$4 sm:$0xff]  }
 0x3c8   :  { %v9921_v4 = vpop.f32.mrf.mxu1  ;;  %10197 = vmatprep.subr.bf16.mxu1 %v15562_v58  ;;  %10230 = vmatprep.subr.bf16.mxu0 %v15565_v23  ;;  %v15596_v14 = vld [vmem:[%s21434_s2 + $0xf80] ss:$20 sps:$4 sm:$0xff]   ;;  %v15604_v24 = vld [vmem:[%s21434_s2 + $0xf5c] ss:$20 sps:$4 sm:$0xff]   ;;  %v15602_v20 = vld [vmem:[%s21434_s2 + $0xf58] ss:$20 sps:$4 sm:$0xff]  }
 0x3c9   :  { %v15599_v33 = vld [vmem:[%s21434_s2 + $0x12a0] ss:$20 sps:$4 sm:$0xff]   ;;  %v15607_v28 = vld [vmem:[%s21434_s2 + $0x127c] ss:$20 sps:$4 sm:$0xff]   ;;  %vm16221_vm6 = vmmov 0  }
 0x3ca   :  { %v15610_v4 = vld [vmem:[%s21434_s2 + $0xf34] ss:$20 sps:$4 sm:$0xff]  }
 0x3cb   :  { %10198 = vmatpush2.bf16.msra.mxu1 %v15560_v47  ;;  %10231 = vmatpush2.bf16.msra.mxu0 %v15563_v13  ;;  %v15605_v47 = vld [vmem:[%s21434_s2 + $0x1278] ss:$20 sps:$4 sm:$0xff]  }
 0x3cc   :  { %10199 = vmatprep.subr.bf16.mxu1 %v15568_v16  ;;  %10232 = vmatprep.subr.bf16.mxu0 %v15571_v17 }
 0x3cf   :  { %10200 = vmatpush2.bf16.msra.mxu1 %v15566_v21  ;;  %10233 = vmatpush2.bf16.msra.mxu0 %v15569_v2 }
 0x3d0   :  { %10234 = vmatprep.subr.bf16.mxu0 %v15574_v7  ;;  %10251 = vmatprep.subr.bf16.mxu1 %v15577_v35  ;;  %v15608_v7 = vld [vmem:[%s21434_s2 + $0xf30] ss:$20 sps:$4 sm:$0xff]  }
 0x3d1   :  { %v15611_v35 = vld [vmem:[%s21434_s2 + $0x1250] ss:$20 sps:$4 sm:$0xff]  }
 0x3d2   :  { %v9998_v55 = vpop.f32.mrf.mxu1  ;;  %10202 = vmatmul.mubr.bf16.vlgmr.msra.gmra.mxu1 %v18289_v40 }
 0x3d3   :  { %10235 = vmatpush2.bf16.msra.mxu0 %v15572_v1  ;;  %10252 = vmatpush1.bf16.msra.mxu1 %v15575_v29  ;;  %v15619_v29 = vld [vmem:[%s21434_s2 + $0x122c] ss:$20 sps:$4 sm:$0xff]  }
 0x3d4   :  { %10283 = vmatprep.mubr.bf16.mxu1 %v18296_v57  ;;  %v10000_v52 = vpop.f32.mrf.mxu1  ;;  %10236 = vmatprep.subr.bf16.mxu0 %v15580_v19  ;;  %v15614_v19 = vld [vmem:[%s21434_s2 + $0xf08] ss:$20 sps:$4 sm:$0xff]  }
 0x3d5   :  { %10253 = vmatprep.subr.bf16.mxu1 %v15583_v30  ;;  %v15617_v30 = vld [vmem:[%s21434_s2 + $0x1228] ss:$20 sps:$4 sm:$0xff]  }
 0x3d6   :  { %v10002_v26 = vpop.f32.mrf.mxu1 }
 0x3d7   :  { %10237 = vmatpush2.bf16.msra.mxu0 %v15578_v42  ;;  %10254 = vmatpush1.bf16.msra.mxu1 %v15581_v63  ;;  %v15625_v42 = vld [vmem:[%s21434_s2 + $0x1204] ss:$20 sps:$4 sm:$0xff]   ;;  %v15620_v63 = vld [vmem:[%s21434_s2 + $0x1160] ss:$20 sps:$4 sm:$0xff]  }
 0x3d8   :  { %v10003_v45 = vpop.f32.mrf.mxu1  ;;  %10238 = vmatprep.subr.bf16.mxu0 %v15586_v51  ;;  %10255 = vmatprep.subr.bf16.mxu1 %v15589_v18  ;;  %v15628_v51 = vld [vmem:[%s21434_s2 + $0x113c] ss:$20 sps:$4 sm:$0xff]   ;;  %v15626_v26 = vld [vmem:[%s21434_s2 + $0x1138] ss:$20 sps:$4 sm:$0xff]  }
 0x3d9   :  { %v15631_v18 = vld [vmem:[%s21434_s2 + $0x11dc] ss:$20 sps:$4 sm:$0xff]   ;;  %v15637_v45 = vld [vmem:[%s21434_s2 + $0x11b4] ss:$20 sps:$4 sm:$0xff]  }
 0x3db   :  { %10239 = vmatpush2.bf16.msra.mxu0 %v15584_v8  ;;  %10256 = vmatpush1.bf16.msra.mxu1 %v15587_v6  ;;  %v15629_v8 = vld [vmem:[%s21434_s2 + $0x11d8] ss:$20 sps:$4 sm:$0xff]   ;;  %v15634_v6 = vld [vmem:[%s21434_s2 + $0x1114] ss:$20 sps:$4 sm:$0xff]  }
 0x3dc   :  { %10240 = vmatprep.subr.bf16.mxu0 %v15592_v15  ;;  %10257 = vmatprep.subr.bf16.mxu1 %v15595_v48  ;;  %v15632_v15 = vld [vmem:[%s21434_s2 + $0x1110] ss:$20 sps:$4 sm:$0xff]  }
 0x3dd   :  { %v15635_v48 = vld [vmem:[%s21434_s2 + $0x11b0] ss:$20 sps:$4 sm:$0xff]  }
 0x3df   :  { %10241 = vmatpush2.bf16.msra.mxu0 %v15590_v53  ;;  %10258 = vmatpush1.bf16.msra.mxu1 %v15593_v37  ;;  %v15640_v53 = vld [vmem:[%s21434_s2 + $0x10ec] ss:$20 sps:$4 sm:$0xff]  }
 0x3e0   :  { %10259 = vmatprep.subr.bf16.mxu1 %v15598_v39  ;;  %10292 = vmatprep.subr.bf16.mxu0 %v15601_v27  ;;  %v15643_v37 = vld [vmem:[%s21434_s2 + $0x118c] ss:$20 sps:$4 sm:$0xff]   ;;  %v15638_v39 = vld [vmem:[%s21434_s2 + $0x10e8] ss:$20 sps:$4 sm:$0xff]  }
 0x3e1   :  { %v15641_v27 = vld [vmem:[%s21434_s2 + $0x1188] ss:$20 sps:$4 sm:$0xff]  }
 0x3e2   :  { %v9957_v58 = vpop.f32.mrf.mxu0  ;;  %10243 = vmatmul.mubr.bf16.vlgmr.msra.gmra.mxu0 %v18429_v50 }
 0x3e3   :  { %v9958_v23 = vadd.f32 %v9957_v58, %v19805_v44  ;;  %10260 = vmatpush1.bf16.msra.mxu1 %v15596_v14  ;;  %10293 = vmatpush1.bf16.msra.mxu0 %v15599_v33  ;;  %v15613_v44 = vld [vmem:[%s21434_s2 + $0x1254] ss:$20 sps:$4 sm:$0xff]   ;;  %v15646_v14 = vld [vmem:[%s21434_s2 + $0x10c4] ss:$20 sps:$4 sm:$0xff]   ;;  %v15652_v58 = vld [vmem:[%s21434_s2 + $0x109c] ss:$20 sps:$4 sm:$0xff]  }
 0x3e4   :  { %10324 = vmatprep.mubr.bf16.mxu0 %v18437_v12  ;;  %v9959_v13 = vpop.f32.mrf.mxu0  ;;  %10261 = vmatprep.subr.bf16.mxu1 %v15604_v24  ;;  %v15649_v33 = vld [vmem:[%s21434_s2 + $0x13e4] ss:$20 sps:$4 sm:$0xff]   ;;  %v15644_v24 = vld [vmem:[%s21434_s2 + $0x10c0] ss:$20 sps:$4 sm:$0xff]  }
 0x3e5   :  { %v19923_v16 = vadd.f32 %v9998_v55, %v9958_v23  ;;  %v9960_v17 = vadd.f32 %v9959_v13, %v19820_v11  ;;  %10294 = vmatprep.subr.bf16.mxu0 %v15607_v28  ;;  %v15616_v11 = vld [vmem:[%s21434_s2 + $0xf0c] ss:$20 sps:$4 sm:$0xff]   ;;  %v15622_v55 = vld [vmem:[%s21434_s2 + $0x1164] ss:$20 sps:$4 sm:$0xff]   ;;  %v15655_v23 = vld [vmem:[%s21434_s2 + $0x13bc] ss:$20 sps:$4 sm:$0xff]  }
 0x3e6   :  { %v9961_v21 = vpop.f32.mrf.mxu0  ;;  %v15647_v28 = vld [vmem:[%s21434_s2 + $0x13e0] ss:$20 sps:$4 sm:$0xff]  }
 0x3e7   :  { %v19926_v2 = vadd.f32 %v10000_v52, %v9960_v17  ;;  %10262 = vmatpush1.bf16.msra.mxu1 %v15602_v20  ;;  %10295 = vmatpush1.bf16.msra.mxu0 %v15605_v47  ;;  %v15623_v52 = vld [vmem:[%s21434_s2 + $0x1200] ss:$20 sps:$4 sm:$0xff]   ;;  %v15650_v20 = vld [vmem:[%s21434_s2 + $0x1098] ss:$20 sps:$4 sm:$0xff]   ;;  %v15659_v17 = vld [vmem:[%s21434_s2 + $0x1390] ss:$20 sps:$4 sm:$0xff]  }
 0x3e8   :  { %v9962_v1 = vpop.f32.mrf.mxu0  ;;  %10263 = vmatprep.subr.bf16.mxu1 %v15610_v4  ;;  %10296 = vmatprep.subr.bf16.mxu0 %v15613_v44  ;;  %v15653_v47 = vld [vmem:[%s21434_s2 + $0x13b8] ss:$20 sps:$4 sm:$0xff]   ;;  %v15658_v13 = vld [vmem:[%s21434_s2 + $0x1074] ss:$20 sps:$4 sm:$0xff]   ;;  %v15656_v44 = vld [vmem:[%s21434_s2 + $0x1070] ss:$20 sps:$4 sm:$0xff]  }
 0x3e9   :  { %v15661_v4 = vld [vmem:[%s21434_s2 + $0x1394] ss:$20 sps:$4 sm:$0xff]   ;;  %v15664_v21 = vld [vmem:[%s21434_s2 + $0x104c] ss:$20 sps:$4 sm:$0xff]  }
 0x3ea   :  { %v15665_v1 = vld [vmem:[%s21434_s2 + $0x1368] ss:$20 sps:$4 sm:$0xff]  }
 0x3eb   :  { %10264 = vmatpush1.bf16.msra.mxu1 %v15608_v7  ;;  %10297 = vmatpush1.bf16.msra.mxu0 %v15611_v35  ;;  %v15667_v7 = vld [vmem:[%s21434_s2 + $0x136c] ss:$20 sps:$4 sm:$0xff]   ;;  %v15662_v35 = vld [vmem:[%s21434_s2 + $0x1048] ss:$20 sps:$4 sm:$0xff]  }
 0x3ec   :  { %10265 = vmatprep.subr.bf16.mxu1 %v15616_v11  ;;  %10298 = vmatprep.subr.bf16.mxu0 %v15619_v29  ;;  %v15670_v11 = vld [vmem:[%s21434_s2 + $0x1344] ss:$20 sps:$4 sm:$0xff]  }
 0x3ed   :  { %v15673_v29 = vld [vmem:[%s21434_s2 + $0x1524] ss:$20 sps:$4 sm:$0xff]  }
 0x3ef   :  { %10266 = vmatpush1.bf16.msra.mxu1 %v15614_v19  ;;  %10299 = vmatpush1.bf16.msra.mxu0 %v15617_v30  ;;  %v15668_v19 = vld [vmem:[%s21434_s2 + $0x1340] ss:$20 sps:$4 sm:$0xff]  }
 0x3f0   :  { %10267 = vmatprep.subr.bf16.mxu1 %v15622_v55  ;;  %10300 = vmatprep.subr.bf16.mxu0 %v15625_v42  ;;  %v15671_v30 = vld [vmem:[%s21434_s2 + $0x1520] ss:$20 sps:$4 sm:$0xff]   ;;  %v15676_v55 = vld [vmem:[%s21434_s2 + $0x131c] ss:$20 sps:$4 sm:$0xff]  }
 0x3f1   :  { %v15679_v42 = vld [vmem:[%s21434_s2 + $0x14fc] ss:$20 sps:$4 sm:$0xff]  }
 0x3f3   :  { %10268 = vmatpush2.bf16.msra.mxu1 %v15620_v63  ;;  %10301 = vmatpush1.bf16.msra.mxu0 %v15623_v52  ;;  %v15674_v52 = vld [vmem:[%s21434_s2 + $0x1318] ss:$20 sps:$4 sm:$0xff]  }
 0x3f4   :  { %10269 = vmatprep.subr.bf16.mxu1 %v15628_v51  ;;  %10302 = vmatprep.subr.bf16.mxu0 %v15631_v18  ;;  %v15677_v51 = vld [vmem:[%s21434_s2 + $0x14f8] ss:$20 sps:$4 sm:$0xff]  }
 0x3f7   :  { %10270 = vmatpush2.bf16.msra.mxu1 %v15626_v26  ;;  %10303 = vmatpush1.bf16.msra.mxu0 %v15629_v8  ;;  %v15682_v26 = vld [vmem:[%s21434_s2 + $0x12f4] ss:$20 sps:$4 sm:$0xff]  }
 0x3f8   :  { %10271 = vmatprep.subr.bf16.mxu1 %v15634_v6  ;;  %10304 = vmatprep.subr.bf16.mxu0 %v15637_v45  ;;  %v15685_v8 = vld [vmem:[%s21434_s2 + $0x14d4] ss:$20 sps:$4 sm:$0xff]   ;;  %v15680_v45 = vld [vmem:[%s21434_s2 + $0x12f0] ss:$20 sps:$4 sm:$0xff]  }
 0x3fb   :  { %10272 = vmatpush2.bf16.msra.mxu1 %v15632_v15  ;;  %10305 = vmatpush1.bf16.msra.mxu0 %v15635_v48  ;;  %v15683_v15 = vld [vmem:[%s21434_s2 + $0x14d0] ss:$20 sps:$4 sm:$0xff]  }
 0x3fc   :  { %10273 = vmatprep.subr.bf16.mxu1 %v15640_v53  ;;  %10306 = vmatprep.subr.bf16.mxu0 %v15643_v37  ;;  %v15688_v53 = vld [vmem:[%s21434_s2 + $0x12cc] ss:$20 sps:$4 sm:$0xff]  }
 0x3fd   :  { %v15691_v37 = vld [vmem:[%s21434_s2 + $0x14ac] ss:$20 sps:$4 sm:$0xff]  }
 0x3ff   :  { %10274 = vmatpush2.bf16.msra.mxu1 %v15638_v39  ;;  %10307 = vmatpush1.bf16.msra.mxu0 %v15641_v27  ;;  %v15686_v39 = vld [vmem:[%s21434_s2 + $0x12c8] ss:$20 sps:$4 sm:$0xff]  }
 0x400   :  { %10275 = vmatprep.subr.bf16.mxu1 %v15646_v14  ;;  %10308 = vmatprep.subr.bf16.mxu0 %v15649_v33  ;;  %v15689_v27 = vld [vmem:[%s21434_s2 + $0x14a8] ss:$20 sps:$4 sm:$0xff]   ;;  %v15694_v14 = vld [vmem:[%s21434_s2 + $0x1484] ss:$20 sps:$4 sm:$0xff]  }
 0x401   :  { %v15697_v33 = vld [vmem:[%s21434_s2 + $0x17a4] ss:$20 sps:$4 sm:$0xff]  }
 0x403   :  { %10276 = vmatpush2.bf16.msra.mxu1 %v15644_v24  ;;  %10309 = vmatpush2.bf16.msra.mxu0 %v15647_v28  ;;  %v15692_v24 = vld [vmem:[%s21434_s2 + $0x1480] ss:$20 sps:$4 sm:$0xff]  }
 0x404   :  { %10277 = vmatprep.subr.bf16.mxu1 %v15652_v58  ;;  %10310 = vmatprep.subr.bf16.mxu0 %v15655_v23  ;;  %v15695_v28 = vld [vmem:[%s21434_s2 + $0x17a0] ss:$20 sps:$4 sm:$0xff]   ;;  %v15700_v58 = vld [vmem:[%s21434_s2 + $0x145c] ss:$20 sps:$4 sm:$0xff]  }
 0x405   :  { %v15703_v23 = vld [vmem:[%s21434_s2 + $0x177c] ss:$20 sps:$4 sm:$0xff]  }
 0x407   :  { %10278 = vmatpush2.bf16.msra.mxu1 %v15650_v20  ;;  %10311 = vmatpush2.bf16.msra.mxu0 %v15653_v47 }
 0x408   :  { %10279 = vmatprep.subr.bf16.mxu1 %v15658_v13  ;;  %10312 = vmatprep.subr.bf16.mxu0 %v15661_v4  ;;  %v15698_v13 = vld [vmem:[%s21434_s2 + $0x1458] ss:$20 sps:$4 sm:$0xff]  }
 0x409   :  { %v15701_v4 = vld [vmem:[%s21434_s2 + $0x1778] ss:$20 sps:$4 sm:$0xff]  }
 0x40b   :  { %10280 = vmatpush2.bf16.msra.mxu1 %v15656_v44  ;;  %10313 = vmatpush2.bf16.msra.mxu0 %v15659_v17  ;;  %v15706_v17 = vld [vmem:[%s21434_s2 + $0x1434] ss:$20 sps:$4 sm:$0xff]  }
 0x40c   :  { %10281 = vmatprep.subr.bf16.mxu1 %v15664_v21  ;;  %10314 = vmatprep.subr.bf16.mxu0 %v15667_v7  ;;  %v15709_v21 = vld [vmem:[%s21434_s2 + $0x1754] ss:$20 sps:$4 sm:$0xff]  }
 0x40f   :  { %10282 = vmatpush2.bf16.msra.mxu1 %v15662_v35  ;;  %10315 = vmatpush2.bf16.msra.mxu0 %v15665_v1  ;;  %v15704_v1 = vld [vmem:[%s21434_s2 + $0x1430] ss:$20 sps:$4 sm:$0xff]  }
 0x410   :  { %10316 = vmatprep.subr.bf16.mxu0 %v15670_v11  ;;  %10333 = vmatprep.subr.bf16.mxu1 %v15673_v29  ;;  %v15707_v11 = vld [vmem:[%s21434_s2 + $0x1750] ss:$20 sps:$4 sm:$0xff]  }
 0x412   :  { %v10039_v63 = vpop.f32.mrf.mxu1  ;;  %10284 = vmatmul.mubr.bf16.vlgmr.msra.gmra.mxu1 %v18565_v43 }
 0x413   :  { %10317 = vmatpush2.bf16.msra.mxu0 %v15668_v19  ;;  %10334 = vmatpush1.bf16.msra.mxu1 %v15671_v30  ;;  %v15712_v19 = vld [vmem:[%s21434_s2 + $0x140c] ss:$20 sps:$4 sm:$0xff]  }
 0x414   :  { %10365 = vmatprep.mubr.bf16.mxu1 %v18576_v60  ;;  %v10041_v18 = vpop.f32.mrf.mxu1  ;;  %10318 = vmatprep.subr.bf16.mxu0 %v15676_v55  ;;  %v15715_v30 = vld [vmem:[%s21434_s2 + $0x172c] ss:$20 sps:$4 sm:$0xff]   ;;  %v15710_v55 = vld [vmem:[%s21434_s2 + $0x1408] ss:$20 sps:$4 sm:$0xff]  }
 0x415   :  { %10335 = vmatprep.subr.bf16.mxu1 %v15679_v42  ;;  %v15713_v42 = vld [vmem:[%s21434_s2 + $0x1728] ss:$20 sps:$4 sm:$0xff]  }
 0x416   :  { %v10043_v6 = vpop.f32.mrf.mxu1 }
 0x417   :  { %10319 = vmatpush2.bf16.msra.mxu0 %v15674_v52  ;;  %10336 = vmatpush1.bf16.msra.mxu1 %v15677_v51  ;;  %v15721_v52 = vld [vmem:[%s21434_s2 + $0x1704] ss:$20 sps:$4 sm:$0xff]   ;;  %v15716_v51 = vld [vmem:[%s21434_s2 + $0x1660] ss:$20 sps:$4 sm:$0xff]  }
 0x418   :  { %v10044_v48 = vpop.f32.mrf.mxu1  ;;  %10320 = vmatprep.subr.bf16.mxu0 %v15682_v26  ;;  %10337 = vmatprep.subr.bf16.mxu1 %v15685_v8  ;;  %v15724_v26 = vld [vmem:[%s21434_s2 + $0x163c] ss:$20 sps:$4 sm:$0xff]   ;;  %v15722_v6 = vld [vmem:[%s21434_s2 + $0x1638] ss:$20 sps:$4 sm:$0xff]  }
 0x419   :  { %v15727_v8 = vld [vmem:[%s21434_s2 + $0x16dc] ss:$20 sps:$4 sm:$0xff]   ;;  %v15733_v48 = vld [vmem:[%s21434_s2 + $0x16b4] ss:$20 sps:$4 sm:$0xff]  }
 0x41b   :  { %10321 = vmatpush2.bf16.msra.mxu0 %v15680_v45  ;;  %10338 = vmatpush1.bf16.msra.mxu1 %v15683_v15  ;;  %v15725_v45 = vld [vmem:[%s21434_s2 + $0x16d8] ss:$20 sps:$4 sm:$0xff]   ;;  %v15730_v15 = vld [vmem:[%s21434_s2 + $0x1614] ss:$20 sps:$4 sm:$0xff]  }
 0x41c   :  { %10322 = vmatprep.subr.bf16.mxu0 %v15688_v53  ;;  %10339 = vmatprep.subr.bf16.mxu1 %v15691_v37  ;;  %v15728_v53 = vld [vmem:[%s21434_s2 + $0x1610] ss:$20 sps:$4 sm:$0xff]  }
 0x41d   :  { %v15731_v37 = vld [vmem:[%s21434_s2 + $0x16b0] ss:$20 sps:$4 sm:$0xff]  }
 0x41f   :  { %10323 = vmatpush2.bf16.msra.mxu0 %v15686_v39  ;;  %10340 = vmatpush1.bf16.msra.mxu1 %v15689_v27  ;;  %v15736_v39 = vld [vmem:[%s21434_s2 + $0x15ec] ss:$20 sps:$4 sm:$0xff]  }
 0x420   :  { %10341 = vmatprep.subr.bf16.mxu1 %v15694_v14  ;;  %10374 = vmatprep.subr.bf16.mxu0 %v15697_v33  ;;  %v15739_v27 = vld [vmem:[%s21434_s2 + $0x168c] ss:$20 sps:$4 sm:$0xff]   ;;  %v15734_v14 = vld [vmem:[%s21434_s2 + $0x15e8] ss:$20 sps:$4 sm:$0xff]  }
 0x421   :  { %v15737_v33 = vld [vmem:[%s21434_s2 + $0x1688] ss:$20 sps:$4 sm:$0xff]  }
 0x422   :  { %v10080_v20 = vpop.f32.mrf.mxu0  ;;  %10325 = vmatmul.mubr.bf16.vlgmr.msra.gmra.mxu0 %v18718_v0 }
 0x423   :  { %v20111_v47 = vadd.f32 %v10080_v20, %v10039_v63  ;;  %10342 = vmatpush1.bf16.msra.mxu1 %v15692_v24  ;;  %10375 = vmatpush1.bf16.msra.mxu0 %v15695_v28  ;;  %v15718_v63 = vld [vmem:[%s21434_s2 + $0x1664] ss:$20 sps:$4 sm:$0xff]   ;;  %v15748_v20 = vld [vmem:[%s21434_s2 + $0x159c] ss:$20 sps:$4 sm:$0xff]  }
 0x424   :  { %10406 = vmatprep.mubr.bf16.mxu0 %v18728_v32  ;;  %v10082_v44 = vpop.f32.mrf.mxu0  ;;  %10343 = vmatprep.subr.bf16.mxu1 %v15700_v58  ;;  %v15742_v24 = vld [vmem:[%s21434_s2 + $0x15c4] ss:$20 sps:$4 sm:$0xff]   ;;  %v15740_v58 = vld [vmem:[%s21434_s2 + $0x15c0] ss:$20 sps:$4 sm:$0xff]  }
 0x425   :  { %v20126_v7 = vadd.f32 %v10082_v44, %v10041_v18  ;;  %10376 = vmatprep.subr.bf16.mxu0 %v15703_v23  ;;  %v15719_v18 = vld [vmem:[%s21434_s2 + $0x1700] ss:$20 sps:$4 sm:$0xff]   ;;  %v15745_v28 = vld [vmem:[%s21434_s2 + $0x18e4] ss:$20 sps:$4 sm:$0xff]  }
 0x426   :  { %v10084_v35 = vpop.f32.mrf.mxu0  ;;  %v15743_v23 = vld [vmem:[%s21434_s2 + $0x18e0] ss:$20 sps:$4 sm:$0xff]   ;;  %v15749_v44 = vld [vmem:[%s21434_s2 + $0x18b8] ss:$20 sps:$4 sm:$0xff]  }
 0x427   :  { %10344 = vmatpush1.bf16.msra.mxu1 %v15698_v13  ;;  %10377 = vmatpush1.bf16.msra.mxu0 %v15701_v4  ;;  %v15751_v13 = vld [vmem:[%s21434_s2 + $0x18bc] ss:$20 sps:$4 sm:$0xff]   ;;  %v15746_v4 = vld [vmem:[%s21434_s2 + $0x1598] ss:$20 sps:$4 sm:$0xff]  }
 0x428   :  { %v10085_v29 = vpop.f32.mrf.mxu0  ;;  %10345 = vmatprep.subr.bf16.mxu1 %v15706_v17  ;;  %10378 = vmatprep.subr.bf16.mxu0 %v15709_v21  ;;  %v15754_v17 = vld [vmem:[%s21434_s2 + $0x1574] ss:$20 sps:$4 sm:$0xff]   ;;  %v15752_v35 = vld [vmem:[%s21434_s2 + $0x1570] ss:$20 sps:$4 sm:$0xff]  }
 0x429   :  { %v15757_v21 = vld [vmem:[%s21434_s2 + $0x1894] ss:$20 sps:$4 sm:$0xff]   ;;  %v15763_v29 = vld [vmem:[%s21434_s2 + $0x186c] ss:$20 sps:$4 sm:$0xff]  }
 0x42b   :  { %10346 = vmatpush1.bf16.msra.mxu1 %v15704_v1  ;;  %10379 = vmatpush1.bf16.msra.mxu0 %v15707_v11  ;;  %v15755_v1 = vld [vmem:[%s21434_s2 + $0x1890] ss:$20 sps:$4 sm:$0xff]   ;;  %v15760_v11 = vld [vmem:[%s21434_s2 + $0x154c] ss:$20 sps:$4 sm:$0xff]  }
 0x42c   :  { %10347 = vmatprep.subr.bf16.mxu1 %v15712_v19  ;;  %10380 = vmatprep.subr.bf16.mxu0 %v15715_v30  ;;  %v15758_v19 = vld [vmem:[%s21434_s2 + $0x1548] ss:$20 sps:$4 sm:$0xff]  }
 0x42d   :  { %v15761_v30 = vld [vmem:[%s21434_s2 + $0x1868] ss:$20 sps:$4 sm:$0xff]  }
 0x42f   :  { %10348 = vmatpush1.bf16.msra.mxu1 %v15710_v55  ;;  %10381 = vmatpush1.bf16.msra.mxu0 %v15713_v42  ;;  %v15766_v55 = vld [vmem:[%s21434_s2 + $0x1844] ss:$20 sps:$4 sm:$0xff]  }
 0x430   :  { %10349 = vmatprep.subr.bf16.mxu1 %v15718_v63  ;;  %10382 = vmatprep.subr.bf16.mxu0 %v15721_v52  ;;  %v15769_v42 = vld [vmem:[%s21434_s2 + $0x1a24] ss:$20 sps:$4 sm:$0xff]   ;;  %v15764_v63 = vld [vmem:[%s21434_s2 + $0x1840] ss:$20 sps:$4 sm:$0xff]  }
 0x431   :  { %v15767_v52 = vld [vmem:[%s21434_s2 + $0x1a20] ss:$20 sps:$4 sm:$0xff]  }
 0x433   :  { %10350 = vmatpush2.bf16.msra.mxu1 %v15716_v51  ;;  %10383 = vmatpush1.bf16.msra.mxu0 %v15719_v18  ;;  %v15772_v51 = vld [vmem:[%s21434_s2 + $0x181c] ss:$20 sps:$4 sm:$0xff]  }
 0x434   :  { %10351 = vmatprep.subr.bf16.mxu1 %v15724_v26  ;;  %10384 = vmatprep.subr.bf16.mxu0 %v15727_v8  ;;  %v15775_v18 = vld [vmem:[%s21434_s2 + $0x19fc] ss:$20 sps:$4 sm:$0xff]  }
 0x437   :  { %10352 = vmatpush2.bf16.msra.mxu1 %v15722_v6  ;;  %10385 = vmatpush1.bf16.msra.mxu0 %v15725_v45  ;;  %v15770_v6 = vld [vmem:[%s21434_s2 + $0x1818] ss:$20 sps:$4 sm:$0xff]  }
 0x438   :  { %10353 = vmatprep.subr.bf16.mxu1 %v15730_v15  ;;  %10386 = vmatprep.subr.bf16.mxu0 %v15733_v48  ;;  %v15773_v45 = vld [vmem:[%s21434_s2 + $0x19f8] ss:$20 sps:$4 sm:$0xff]   ;;  %v15778_v48 = vld [vmem:[%s21434_s2 + $0x17f4] ss:$20 sps:$4 sm:$0xff]  }
 0x43b   :  { %10354 = vmatpush2.bf16.msra.mxu1 %v15728_v53  ;;  %10387 = vmatpush1.bf16.msra.mxu0 %v15731_v37 }
 0x43c   :  { %10355 = vmatprep.subr.bf16.mxu1 %v15736_v39  ;;  %10388 = vmatprep.subr.bf16.mxu0 %v15739_v27  ;;  %v15776_v39 = vld [vmem:[%s21434_s2 + $0x17f0] ss:$20 sps:$4 sm:$0xff]  }
 0x43d   :  { %v15779_v27 = vld [vmem:[%s21434_s2 + $0x19d0] ss:$20 sps:$4 sm:$0xff]  }
 0x43f   :  { %10356 = vmatpush2.bf16.msra.mxu1 %v15734_v14  ;;  %10389 = vmatpush1.bf16.msra.mxu0 %v15737_v33  ;;  %v15784_v33 = vld [vmem:[%s21434_s2 + $0x17cc] ss:$20 sps:$4 sm:$0xff]  }
 0x440   :  { %10357 = vmatprep.subr.bf16.mxu1 %v15742_v24  ;;  %10390 = vmatprep.subr.bf16.mxu0 %v15745_v28  ;;  %v15782_v24 = vld [vmem:[%s21434_s2 + $0x17c8] ss:$20 sps:$4 sm:$0xff]  }
 0x441   :  { %v15785_v28 = vld [vmem:[%s21434_s2 + $0x19a8] ss:$20 sps:$4 sm:$0xff]  }
 0x443   :  { %10358 = vmatpush2.bf16.msra.mxu1 %v15740_v58  ;;  %10391 = vmatpush2.bf16.msra.mxu0 %v15743_v23  ;;  %v15790_v58 = vld [vmem:[%s21434_s2 + $0x1984] ss:$20 sps:$4 sm:$0xff]  }
 0x444   :  { %10359 = vmatprep.subr.bf16.mxu1 %v15748_v20  ;;  %10392 = vmatprep.subr.bf16.mxu0 %v15751_v13  ;;  %v15793_v23 = vld [vmem:[%s21434_s2 + $0x1ca4] ss:$20 sps:$4 sm:$0xff]   ;;  %v15788_v20 = vld [vmem:[%s21434_s2 + $0x1980] ss:$20 sps:$4 sm:$0xff]  }
 0x445   :  { %v15791_v13 = vld [vmem:[%s21434_s2 + $0x1ca0] ss:$20 sps:$4 sm:$0xff]  }
 0x447   :  { %10360 = vmatpush2.bf16.msra.mxu1 %v15746_v4  ;;  %10393 = vmatpush2.bf16.msra.mxu0 %v15749_v44  ;;  %v15796_v4 = vld [vmem:[%s21434_s2 + $0x195c] ss:$20 sps:$4 sm:$0xff]  }
 0x448   :  { %10361 = vmatprep.subr.bf16.mxu1 %v15754_v17  ;;  %10394 = vmatprep.subr.bf16.mxu0 %v15757_v21  ;;  %v15799_v44 = vld [vmem:[%s21434_s2 + $0x1c7c] ss:$20 sps:$4 sm:$0xff]  }
 0x44b   :  { %10362 = vmatpush2.bf16.msra.mxu1 %v15752_v35  ;;  %10395 = vmatpush2.bf16.msra.mxu0 %v15755_v1  ;;  %v15794_v35 = vld [vmem:[%s21434_s2 + $0x1958] ss:$20 sps:$4 sm:$0xff]  }
 0x44c   :  { %10363 = vmatprep.subr.bf16.mxu1 %v15760_v11  ;;  %10396 = vmatprep.subr.bf16.mxu0 %v15763_v29  ;;  %v15797_v1 = vld [vmem:[%s21434_s2 + $0x1c78] ss:$20 sps:$4 sm:$0xff]   ;;  %v15802_v29 = vld [vmem:[%s21434_s2 + $0x1934] ss:$20 sps:$4 sm:$0xff]  }
 0x44f   :  { %10364 = vmatpush2.bf16.msra.mxu1 %v15758_v19  ;;  %10397 = vmatpush2.bf16.msra.mxu0 %v15761_v30  ;;  %v15805_v19 = vld [vmem:[%s21434_s2 + $0x1c54] ss:$20 sps:$4 sm:$0xff]  }
 0x450   :  { %10398 = vmatprep.subr.bf16.mxu0 %v15766_v55  ;;  %10415 = vmatprep.subr.bf16.mxu1 %v15769_v42  ;;  %v15800_v42 = vld [vmem:[%s21434_s2 + $0x1930] ss:$20 sps:$4 sm:$0xff]  }
 0x452   :  { %v10121_v26 = vpop.f32.mrf.mxu1  ;;  %10366 = vmatmul.mubr.bf16.vlgmr.msra.gmra.mxu1 %v18888_v38 }
 0x453   :  { %v10122_v8 = vadd.f32 %v10121_v26, %v20111_v47  ;;  %10399 = vmatpush2.bf16.msra.mxu0 %v15764_v63  ;;  %10416 = vmatpush1.bf16.msra.mxu1 %v15767_v52  ;;  %v15781_v47 = vld [vmem:[%s21434_s2 + $0x19d4] ss:$20 sps:$4 sm:$0xff]   ;;  %v15803_v63 = vld [vmem:[%s21434_s2 + $0x1c50] ss:$20 sps:$4 sm:$0xff]  }
 0x454   :  { %10447 = vmatprep.mubr.bf16.mxu1 %v18894_v41  ;;  %v10123_v15 = vpop.f32.mrf.mxu1  ;;  %10400 = vmatprep.subr.bf16.mxu0 %v15772_v51  ;;  %v15808_v51 = vld [vmem:[%s21434_s2 + $0x190c] ss:$20 sps:$4 sm:$0xff]   ;;  %v15806_v26 = vld [vmem:[%s21434_s2 + $0x1908] ss:$20 sps:$4 sm:$0xff]  }
 0x455   :  { %v10124_v53 = vadd.f32 %v10123_v15, %v20126_v7  ;;  %10417 = vmatprep.subr.bf16.mxu1 %v15775_v18  ;;  %v15787_v7 = vld [vmem:[%s21434_s2 + $0x19ac] ss:$20 sps:$4 sm:$0xff]  }
 0x456   :  { %v10125_v37 = vpop.f32.mrf.mxu1  ;;  %v15811_v18 = vld [vmem:[%s21434_s2 + $0x1c2c] ss:$20 sps:$4 sm:$0xff]  }
 0x457   :  { %10401 = vmatpush2.bf16.msra.mxu0 %v15770_v6  ;;  %10418 = vmatpush1.bf16.msra.mxu1 %v15773_v45  ;;  %v15814_v6 = vld [vmem:[%s21434_s2 + $0x1b64] ss:$20 sps:$4 sm:$0xff]   ;;  %v15812_v15 = vld [vmem:[%s21434_s2 + $0x1b60] ss:$20 sps:$4 sm:$0xff]  }
 0x458   :  { %v10126_v14 = vpop.f32.mrf.mxu1  ;;  %10402 = vmatprep.subr.bf16.mxu0 %v15778_v48  ;;  %10419 = vmatprep.subr.bf16.mxu1 %v15781_v47  ;;  %v15817_v45 = vld [vmem:[%s21434_s2 + $0x1c04] ss:$20 sps:$4 sm:$0xff]   ;;  %v15815_v48 = vld [vmem:[%s21434_s2 + $0x1c00] ss:$20 sps:$4 sm:$0xff]   ;;  %v15820_v47 = vld [vmem:[%s21434_s2 + $0x1b3c] ss:$20 sps:$4 sm:$0xff]  }
 0x459   :  { %v15818_v37 = vld [vmem:[%s21434_s2 + $0x1b38] ss:$20 sps:$4 sm:$0xff]   ;;  %v15829_v14 = vld [vmem:[%s21434_s2 + $0x1bb4] ss:$20 sps:$4 sm:$0xff]  }
 0x45b   :  { %10403 = vmatpush2.bf16.msra.mxu0 %v15776_v39  ;;  %10420 = vmatpush1.bf16.msra.mxu1 %v15779_v27  ;;  %v15821_v39 = vld [vmem:[%s21434_s2 + $0x1bd8] ss:$20 sps:$4 sm:$0xff]   ;;  %v15826_v27 = vld [vmem:[%s21434_s2 + $0x1b14] ss:$20 sps:$4 sm:$0xff]  }
 0x45c   :  { %10404 = vmatprep.subr.bf16.mxu0 %v15784_v33  ;;  %10421 = vmatprep.subr.bf16.mxu1 %v15787_v7  ;;  %v15824_v33 = vld [vmem:[%s21434_s2 + $0x1b10] ss:$20 sps:$4 sm:$0xff]  }
 0x45d   :  { %v15827_v7 = vld [vmem:[%s21434_s2 + $0x1bb0] ss:$20 sps:$4 sm:$0xff]  }
 0x45f   :  { %10405 = vmatpush2.bf16.msra.mxu0 %v15782_v24  ;;  %10422 = vmatpush1.bf16.msra.mxu1 %v15785_v28  ;;  %v15832_v24 = vld [vmem:[%s21434_s2 + $0x1aec] ss:$20 sps:$4 sm:$0xff]  }
 0x460   :  { %10423 = vmatprep.subr.bf16.mxu1 %v15790_v58  ;;  %10456 = vmatprep.subr.bf16.mxu0 %v15793_v23  ;;  %v15835_v28 = vld [vmem:[%s21434_s2 + $0x1b8c] ss:$20 sps:$4 sm:$0xff]   ;;  %v15830_v58 = vld [vmem:[%s21434_s2 + $0x1ae8] ss:$20 sps:$4 sm:$0xff]  }
 0x461   :  { %v15833_v23 = vld [vmem:[%s21434_s2 + $0x1b88] ss:$20 sps:$4 sm:$0xff]  }
 0x462   :  { %v10162_v17 = vpop.f32.mrf.mxu0  ;;  %10407 = vmatmul.mubr.bf16.vlgmr.msra.gmra.mxu0 %v19034_v22 }
 0x463   :  { %v20313_v21 = vadd.f32 %v10162_v17, %v10122_v8  ;;  %10424 = vmatpush1.bf16.msra.mxu1 %v15788_v20  ;;  %10457 = vmatpush1.bf16.msra.mxu0 %v15791_v13  ;;  %v15809_v8 = vld [vmem:[%s21434_s2 + $0x1c28] ss:$20 sps:$4 sm:$0xff]   ;;  %v15838_v20 = vld [vmem:[%s21434_s2 + $0x1ac4] ss:$20 sps:$4 sm:$0xff]  }
 0x464   :  { %10488 = vmatprep.mubr.bf16.mxu0 %v19040_v59  ;;  %v10164_v11 = vpop.f32.mrf.mxu0  ;;  %10425 = vmatprep.subr.bf16.mxu1 %v15796_v4  ;;  %v15841_v13 = vld [vmem:[%s21434_s2 + $0x1de4] ss:$20 sps:$4 sm:$0xff]   ;;  %v15836_v4 = vld [vmem:[%s21434_s2 + $0x1ac0] ss:$20 sps:$4 sm:$0xff]   ;;  %v15844_v17 = vld [vmem:[%s21434_s2 + $0x1a9c] ss:$20 sps:$4 sm:$0xff]  }
 0x465   :  { %v20328_v30 = vadd.f32 %v10164_v11, %v10124_v53  ;;  %10458 = vmatprep.subr.bf16.mxu0 %v15799_v44  ;;  %v15823_v53 = vld [vmem:[%s21434_s2 + $0x1bdc] ss:$20 sps:$4 sm:$0xff]   ;;  %v15839_v44 = vld [vmem:[%s21434_s2 + $0x1de0] ss:$20 sps:$4 sm:$0xff]   ;;  %v15845_v11 = vld [vmem:[%s21434_s2 + $0x1db8] ss:$20 sps:$4 sm:$0xff]  }
 0x466   :  { %v10166_v55 = vpop.f32.mrf.mxu0 }
 0x467   :  { %10426 = vmatpush1.bf16.msra.mxu1 %v15794_v35  ;;  %10459 = vmatpush1.bf16.msra.mxu0 %v15797_v1  ;;  %v15847_v35 = vld [vmem:[%s21434_s2 + $0x1dbc] ss:$20 sps:$4 sm:$0xff]   ;;  %v15842_v1 = vld [vmem:[%s21434_s2 + $0x1a98] ss:$20 sps:$4 sm:$0xff]  }
 0x468   :  { %v10167_v52 = vpop.f32.mrf.mxu0  ;;  %10427 = vmatprep.subr.bf16.mxu1 %v15802_v29  ;;  %10460 = vmatprep.subr.bf16.mxu0 %v15805_v19  ;;  %v15850_v29 = vld [vmem:[%s21434_s2 + $0x1a74] ss:$20 sps:$4 sm:$0xff]   ;;  %v15848_v55 = vld [vmem:[%s21434_s2 + $0x1a70] ss:$20 sps:$4 sm:$0xff]  }
 0x469   :  { %v15853_v19 = vld [vmem:[%s21434_s2 + $0x1d94] ss:$20 sps:$4 sm:$0xff]   ;;  %v15859_v52 = vld [vmem:[%s21434_s2 + $0x1d6c] ss:$20 sps:$4 sm:$0xff]  }
 0x46b   :  { %10428 = vmatpush1.bf16.msra.mxu1 %v15800_v42  ;;  %10461 = vmatpush1.bf16.msra.mxu0 %v15803_v63  ;;  %v15851_v42 = vld [vmem:[%s21434_s2 + $0x1d90] ss:$20 sps:$4 sm:$0xff]   ;;  %v15856_v63 = vld [vmem:[%s21434_s2 + $0x1a4c] ss:$20 sps:$4 sm:$0xff]  }
 0x46c   :  { %10429 = vmatprep.subr.bf16.mxu1 %v15808_v51  ;;  %10462 = vmatprep.subr.bf16.mxu0 %v15811_v18  ;;  %v15854_v51 = vld [vmem:[%s21434_s2 + $0x1a48] ss:$20 sps:$4 sm:$0xff]  }
 0x46d   :  { %v15857_v18 = vld [vmem:[%s21434_s2 + $0x1d68] ss:$20 sps:$4 sm:$0xff]  }
 0x46f   :  { %10430 = vmatpush1.bf16.msra.mxu1 %v15806_v26  ;;  %10463 = vmatpush1.bf16.msra.mxu0 %v15809_v8  ;;  %v15862_v26 = vld [vmem:[%s21434_s2 + $0x1d44] ss:$20 sps:$4 sm:$0xff]  }
 0x470   :  { %10431 = vmatprep.subr.bf16.mxu1 %v15814_v6  ;;  %10464 = vmatprep.subr.bf16.mxu0 %v15817_v45  ;;  %v15865_v8 = vld [vmem:[%s21434_s2 + $0x1e84] ss:$20 sps:$4 sm:$0xff]   ;;  %v15860_v6 = vld [vmem:[%s21434_s2 + $0x1d40] ss:$20 sps:$4 sm:$0xff]  }
 0x471   :  { %v15863_v45 = vld [vmem:[%s21434_s2 + $0x1e80] ss:$20 sps:$4 sm:$0xff]  }
 0x473   :  { %10432 = vmatpush2.bf16.msra.mxu1 %v15812_v15  ;;  %10465 = vmatpush1.bf16.msra.mxu0 %v15815_v48  ;;  %v15868_v15 = vld [vmem:[%s21434_s2 + $0x1d1c] ss:$20 sps:$4 sm:$0xff]  }
 0x474   :  { %10433 = vmatprep.subr.bf16.mxu1 %v15820_v47  ;;  %10466 = vmatprep.subr.bf16.mxu0 %v15823_v53  ;;  %v15871_v48 = vld [vmem:[%s21434_s2 + $0x1e5c] ss:$20 sps:$4 sm:$0xff]  }
 0x477   :  { %10434 = vmatpush2.bf16.msra.mxu1 %v15818_v37  ;;  %10467 = vmatpush1.bf16.msra.mxu0 %v15821_v39  ;;  %v15866_v37 = vld [vmem:[%s21434_s2 + $0x1d18] ss:$20 sps:$4 sm:$0xff]  }
 0x478   :  { %10435 = vmatprep.subr.bf16.mxu1 %v15826_v27  ;;  %10468 = vmatprep.subr.bf16.mxu0 %v15829_v14  ;;  %v15869_v39 = vld [vmem:[%s21434_s2 + $0x1e58] ss:$20 sps:$4 sm:$0xff]   ;;  %v15874_v14 = vld [vmem:[%s21434_s2 + $0x1cf4] ss:$20 sps:$4 sm:$0xff]  }
 0x47b   :  { %10436 = vmatpush2.bf16.msra.mxu1 %v15824_v33  ;;  %10469 = vmatpush1.bf16.msra.mxu0 %v15827_v7 }
 0x47c   :  { %10437 = vmatprep.subr.bf16.mxu1 %v15832_v24  ;;  %10470 = vmatprep.subr.bf16.mxu0 %v15835_v28  ;;  %v15872_v24 = vld [vmem:[%s21434_s2 + $0x1cf0] ss:$20 sps:$4 sm:$0xff]  }
 0x47d   :  { %v15875_v28 = vld [vmem:[%s21434_s2 + $0x1e30] ss:$20 sps:$4 sm:$0xff]  }
 0x47f   :  { %10438 = vmatpush2.bf16.msra.mxu1 %v15830_v58  ;;  %10471 = vmatpush1.bf16.msra.mxu0 %v15833_v23  ;;  %v15883_v23 = vld [vmem:[%s21434_s2 + $0x1e0c] ss:$20 sps:$4 sm:$0xff]  }
 0x480   :  { %10439 = vmatprep.subr.bf16.mxu1 %v15838_v20  ;;  %10472 = vmatprep.subr.bf16.mxu0 %v15841_v13  ;;  %v15878_v20 = vld [vmem:[%s21434_s2 + $0x1cc8] ss:$20 sps:$4 sm:$0xff]  }
 0x481   :  { %v15881_v13 = vld [vmem:[%s21434_s2 + $0x1e08] ss:$20 sps:$4 sm:$0xff]  }
 0x483   :  { %10440 = vmatpush2.bf16.msra.mxu1 %v15836_v4  ;;  %10473 = vmatpush2.bf16.msra.mxu0 %v15839_v44  ;;  %v15884_v4 = vld [vmem:[%s21434_s2 + $0x268] ss:$20 sps:$4 sm:$0xff]  }
 0x484   :  { %10441 = vmatprep.subr.bf16.mxu1 %v15844_v17  ;;  %10474 = vmatprep.subr.bf16.mxu0 %v15847_v35  ;;  %v15885_v44 = vld [vmem:[%s21434_s2 + $0x4e8] ss:$20 sps:$4 sm:$0xff]  }
 0x485   :  { %v15886_v17 = vld [vmem:[%s21434_s2 + $0x128] ss:$20 sps:$4 sm:$0xff]  }
 0x486   :  { %v15887_v35 = vld [vmem:[%s21434_s2 + $0x3a8] ss:$20 sps:$4 sm:$0xff]  }
 0x487   :  { %10442 = vmatpush2.bf16.msra.mxu1 %v15842_v1  ;;  %10475 = vmatpush2.bf16.msra.mxu0 %v15845_v11  ;;  %v15888_v1 = vld [vmem:[%s21434_s2 + $0x240] ss:$20 sps:$4 sm:$0xff]  }
 0x488   :  { %10443 = vmatprep.subr.bf16.mxu1 %v15850_v29  ;;  %10476 = vmatprep.subr.bf16.mxu0 %v15853_v19  ;;  %v15889_v11 = vld [vmem:[%s21434_s2 + $0x4c0] ss:$20 sps:$4 sm:$0xff]  }
 0x48b   :  { %10444 = vmatpush2.bf16.msra.mxu1 %v15848_v55  ;;  %10477 = vmatpush2.bf16.msra.mxu0 %v15851_v42  ;;  %v15890_v55 = vld [vmem:[%s21434_s2 + $0x100] ss:$20 sps:$4 sm:$0xff]  }
 0x48c   :  { %10445 = vmatprep.subr.bf16.mxu1 %v15856_v63  ;;  %10478 = vmatprep.subr.bf16.mxu0 %v15859_v52  ;;  %v15891_v63 = vld [vmem:[%s21434_s2 + $0x380] ss:$20 sps:$4 sm:$0xff]   ;;  %v15892_v52 = vld [vmem:[%s21434_s2 + $0x218] ss:$20 sps:$4 sm:$0xff]  }
 0x48f   :  { %10446 = vmatpush2.bf16.msra.mxu1 %v15854_v51  ;;  %10479 = vmatpush2.bf16.msra.mxu0 %v15857_v18 }
 0x490   :  { %10480 = vmatprep.subr.bf16.mxu0 %v15862_v26  ;;  %10505 = vmatprep.subr.bf16.mxu1 %v15865_v8  ;;  %v15895_v8 = vld [vmem:[%s21434_s2 + $0x358] ss:$20 sps:$4 sm:$0xff]  }
 0x492   :  { %v10203_v47 = vpop.f32.mrf.mxu1  ;;  %10448 = vmatmul.mubr.bf16.vlgmr.msra.gmra.mxu1 %v19163_v61 }
 0x493   :  { %v10204_v53 = vadd.f32 %v10203_v47, %v20313_v21  ;;  %10481 = vmatpush2.bf16.msra.mxu0 %v15860_v6  ;;  %10506 = vmatpush1.bf16.msra.mxu1 %v15863_v45  ;;  %v15877_v21 = vld [vmem:[%s21434_s2 + $0x1e34] ss:$20 sps:$4 sm:$0xff]   ;;  %v15896_v6 = vld [vmem:[%s21434_s2 + $0x1f0] ss:$20 sps:$4 sm:$0xff]  }
 0x494   :  { %v10205_v27 = vpop.f32.mrf.mxu1  ;;  %10482 = vmatprep.subr.bf16.mxu0 %v15868_v15  ;;  %10507 = vmatprep.subr.bf16.mxu1 %v15871_v48  ;;  %v15897_v45 = vld [vmem:[%s21434_s2 + $0x470] ss:$20 sps:$4 sm:$0xff]   ;;  %v15900_v47 = vld [vmem:[%s21434_s2 + $0x1c8] ss:$20 sps:$4 sm:$0xff]  }
 0x495   :  { %v10206_v33 = vadd.f32 %v10205_v27, %v20328_v30  ;;  %10529 = vmatprep.mubr.bf16.mxu1 %v16219_v9  ;;  %v15880_v30 = vld [vmem:[%s21434_s2 + $0x1ccc] ss:$20 sps:$4 sm:$0xff]   ;;  %v15898_v15 = vld [vmem:[%s21434_s2 + $0xb0] ss:$20 sps:$4 sm:$0xff]  }
 0x496   :  { %v10207_v7 = vpop.f32.mrf.mxu1  ;;  %v15899_v48 = vld [vmem:[%s21434_s2 + $0x330] ss:$20 sps:$4 sm:$0xff]   ;;  %v15904_v27 = vld [vmem:[%s21434_s2 + $0x1a0] ss:$20 sps:$4 sm:$0xff]  }
 0x497   :  { %10483 = vmatpush2.bf16.msra.mxu0 %v15866_v37  ;;  %10508 = vmatpush1.bf16.msra.mxu1 %v15869_v39  ;;  %v15902_v37 = vld [vmem:[%s21434_s2 + $0x88] ss:$20 sps:$4 sm:$0xff]   ;;  %v15908_v7 = vld [vmem:[%s21434_s2 + $0x178] ss:$20 sps:$4 sm:$0xff]  }
 0x498   :  { %v10208_v58 = vpop.f32.mrf.mxu1  ;;  %10484 = vmatprep.subr.bf16.mxu0 %v15874_v14  ;;  %10509 = vmatprep.subr.bf16.mxu1 %v15877_v21  ;;  %v15903_v39 = vld [vmem:[%s21434_s2 + $0x308] ss:$20 sps:$4 sm:$0xff]   ;;  %v15905_v14 = vld [vmem:[%s21434_s2 + $0x420] ss:$20 sps:$4 sm:$0xff]  }
 0x499   :  { %v15906_v21 = vld [vmem:[%s21434_s2 + $0x60] ss:$20 sps:$4 sm:$0xff]   ;;  %v15911_v58 = vld [vmem:[%s21434_s2 + $0x2b8] ss:$20 sps:$4 sm:$0xff]  }
 0x49b   :  { %10485 = vmatpush2.bf16.msra.mxu0 %v15872_v24  ;;  %10510 = vmatpush1.bf16.msra.mxu1 %v15875_v28  ;;  %v15909_v24 = vld [vmem:[%s21434_s2 + $0x3f8] ss:$20 sps:$4 sm:$0xff]  }
 0x49c   :  { %10486 = vmatprep.subr.bf16.mxu0 %v15880_v30  ;;  %10511 = vmatprep.subr.bf16.mxu1 %v15883_v23  ;;  %v15910_v28 = vld [vmem:[%s21434_s2 + $0x38] ss:$20 sps:$4 sm:$0xff]   ;;  %v15912_v30 = vld [vmem:[%s21434_s2 + $0x150] ss:$20 sps:$4 sm:$0xff]  }
 0x49d   :  { %v15913_v23 = vld [vmem:[%s21434_s2 + $0x3d0] ss:$20 sps:$4 sm:$0xff]  }
 0x49f   :  { %10487 = vmatpush2.bf16.msra.mxu0 %v15878_v20  ;;  %10512 = vmatpush1.bf16.msra.mxu1 %v15881_v13  ;;  %v15914_v20 = vld [vmem:[%s21434_s2 + $0x10] ss:$20 sps:$4 sm:$0xff]  }
 0x4a0   :  { %13295 = vmatprep.subr.bf16.mxu0 %v15884_v4  ;;  %13317 = vmatprep.subr.bf16.mxu1 %v15885_v44  ;;  %v15915_v13 = vld [vmem:[%s21434_s2 + $0x290] ss:$20 sps:$4 sm:$0xff]   ;;  %v15916_v4 = vld [vmem:[%s21434_s2 + $0x768] ss:$20 sps:$4 sm:$0xff]  }
 0x4a1   :  { %v15917_v44 = vld [vmem:[%s21434_s2 + $0x9e8] ss:$20 sps:$4 sm:$0xff]  }
 0x4a2   :  { %v10244_v29 = vpop.f32.mrf.mxu0  ;;  %10489 = vmatmul.mubr.bf16.vlgmr.msra.gmra.mxu0 %v19282_v25  ;;  %13188 = vmatmul.mubr.msk.bf16.vlgmr.msra.gmra.mxu1 %vm9468_vm4, %v19229_v56 }
 0x4a3   :  { %v20517_v19 = vadd.f32 %v10244_v29, %v10204_v53  ;;  %13296 = vmatpush3.bf16.msra.mxu0 %v15886_v17  ;;  %10570 = vmatprep.mubr.bf16.mxu0 %v17503_v34  ;;  %v15893_v34 = vld [vmem:[%s21434_s2 + $0x498] ss:$20 sps:$4 sm:$0xff]   ;;  %v15901_v53 = vld [vmem:[%s21434_s2 + $0x448] ss:$20 sps:$4 sm:$0xff]   ;;  %v15922_v29 = vld [vmem:[%s21434_s2 + $0x600] ss:$20 sps:$4 sm:$0xff]  }
 0x4a4   :  { %13318 = vmatpush3.bf16.msra.mxu1 %v15887_v35  ;;  %10610 = vmatprep.mubr.bf16.mxu1 %v17625_v54  ;;  %v10246_v42 = vpop.f32.mrf.mxu0  ;;  %v15894_v54 = vld [vmem:[%s21434_s2 + $0xd8] ss:$20 sps:$4 sm:$0xff]   ;;  %v15918_v17 = vld [vmem:[%s21434_s2 + $0x628] ss:$20 sps:$4 sm:$0xff]  }
 0x4a5   :  { %v20530_v51 = vadd.f32 %v10246_v42, %v10206_v33  ;;  %13297 = vmatprep.subr.bf16.mxu0 %v15888_v1  ;;  %13319 = vmatprep.subr.bf16.mxu1 %v15889_v11  ;;  %v15907_v33 = vld [vmem:[%s21434_s2 + $0x2e0] ss:$20 sps:$4 sm:$0xff]   ;;  %v15919_v35 = vld [vmem:[%s21434_s2 + $0x8a8] ss:$20 sps:$4 sm:$0xff]   ;;  %v15927_v42 = vld [vmem:[%s21434_s2 + $0x858] ss:$20 sps:$4 sm:$0xff]  }
 0x4a6   :  { %v10248_v18 = vpop.f32.mrf.mxu0  ;;  %v15920_v1 = vld [vmem:[%s21434_s2 + $0x740] ss:$20 sps:$4 sm:$0xff]  }
 0x4a7   :  { %13298 = vmatpush3.bf16.msra.mxu0 %v15890_v55  ;;  %v15921_v11 = vld [vmem:[%s21434_s2 + $0x9c0] ss:$20 sps:$4 sm:$0xff]   ;;  %v15932_v18 = vld [vmem:[%s21434_s2 + $0x6c8] ss:$20 sps:$4 sm:$0xff]  }
 0x4a8   :  { %13320 = vmatpush3.bf16.msra.mxu1 %v15891_v63  ;;  %v10249_v26 = vpop.f32.mrf.mxu0  ;;  %13299 = vmatprep.subr.bf16.mxu0 %v15892_v52  ;;  %v15923_v55 = vld [vmem:[%s21434_s2 + $0x880] ss:$20 sps:$4 sm:$0xff]   ;;  %v15929_v63 = vld [vmem:[%s21434_s2 + $0x970] ss:$20 sps:$4 sm:$0xff]  }
 0x4a9   :  { %13321 = vmatprep.subr.bf16.mxu1 %v15893_v34  ;;  %v15930_v52 = vld [vmem:[%s21434_s2 + $0x5b0] ss:$20 sps:$4 sm:$0xff]   ;;  %v15934_v26 = vld [vmem:[%s21434_s2 + $0x588] ss:$20 sps:$4 sm:$0xff]  }
 0x4aa   :  { %v15931_v34 = vld [vmem:[%s21434_s2 + $0x830] ss:$20 sps:$4 sm:$0xff]  }
 0x4ab   :  { %13300 = vmatpush3.bf16.msra.mxu0 %v15894_v54  ;;  %v15933_v54 = vld [vmem:[%s21434_s2 + $0x948] ss:$20 sps:$4 sm:$0xff]  }
 0x4ac   :  { %13322 = vmatpush3.bf16.msra.mxu1 %v15895_v8  ;;  %13301 = vmatprep.subr.bf16.mxu0 %v15896_v6  ;;  %v15935_v8 = vld [vmem:[%s21434_s2 + $0x808] ss:$20 sps:$4 sm:$0xff]   ;;  %v15936_v6 = vld [vmem:[%s21434_s2 + $0x6a0] ss:$20 sps:$4 sm:$0xff]  }
 0x4ad   :  { %13323 = vmatprep.subr.bf16.mxu1 %v15897_v45  ;;  %v15937_v45 = vld [vmem:[%s21434_s2 + $0x920] ss:$20 sps:$4 sm:$0xff]  }
 0x4af   :  { %13302 = vmatpush3.bf16.msra.mxu0 %v15898_v15 }
 0x4b0   :  { %13324 = vmatpush3.bf16.msra.mxu1 %v15899_v48  ;;  %13303 = vmatprep.subr.bf16.mxu0 %v15900_v47  ;;  %v15938_v47 = vld [vmem:[%s21434_s2 + $0x560] ss:$20 sps:$4 sm:$0xff]  }
 0x4b1   :  { %13325 = vmatprep.subr.bf16.mxu1 %v15901_v53 }
 0x4b3   :  { %13304 = vmatpush3.bf16.msra.mxu0 %v15902_v37  ;;  %v15939_v37 = vld [vmem:[%s21434_s2 + $0x7e0] ss:$20 sps:$4 sm:$0xff]  }
 0x4b4   :  { %13326 = vmatpush3.bf16.msra.mxu1 %v15903_v39  ;;  %13305 = vmatprep.subr.bf16.mxu0 %v15904_v27  ;;  %v15940_v39 = vld [vmem:[%s21434_s2 + $0x678] ss:$20 sps:$4 sm:$0xff]  }
 0x4b5   :  { %13327 = vmatprep.subr.bf16.mxu1 %v15905_v14 }
 0x4b7   :  { %13306 = vmatpush3.bf16.msra.mxu0 %v15906_v21  ;;  %v15942_v21 = vld [vmem:[%s21434_s2 + $0x538] ss:$20 sps:$4 sm:$0xff]  }
 0x4b8   :  { %13328 = vmatpush3.bf16.msra.mxu1 %v15907_v33  ;;  %13307 = vmatprep.subr.bf16.mxu0 %v15908_v7  ;;  %v15943_v7 = vld [vmem:[%s21434_s2 + $0x7b8] ss:$20 sps:$4 sm:$0xff]  }
 0x4b9   :  { %13329 = vmatprep.subr.bf16.mxu1 %v15909_v24  ;;  %v15945_v24 = vld [vmem:[%s21434_s2 + $0x8d0] ss:$20 sps:$4 sm:$0xff]  }
 0x4bb   :  { %13308 = vmatpush3.bf16.msra.mxu0 %v15910_v28  ;;  %v15946_v28 = vld [vmem:[%s21434_s2 + $0x510] ss:$20 sps:$4 sm:$0xff]  }
 0x4bc   :  { %13330 = vmatpush3.bf16.msra.mxu1 %v15911_v58  ;;  %13309 = vmatprep.subr.bf16.mxu0 %v15912_v30  ;;  %v15947_v58 = vld [vmem:[%s21434_s2 + $0x790] ss:$20 sps:$4 sm:$0xff]   ;;  %v15948_v30 = vld [vmem:[%s21434_s2 + $0xc68] ss:$20 sps:$4 sm:$0xff]  }
 0x4bd   :  { %13331 = vmatprep.subr.bf16.mxu1 %v15913_v23  ;;  %v15949_v23 = vld [vmem:[%s21434_s2 + $0xee8] ss:$20 sps:$4 sm:$0xff]  }
 0x4bf   :  { %13310 = vmatpush3.bf16.msra.mxu0 %v15914_v20  ;;  %v15950_v20 = vld [vmem:[%s21434_s2 + $0xb28] ss:$20 sps:$4 sm:$0xff]  }
 0x4c0   :  { %13332 = vmatpush3.bf16.msra.mxu1 %v15915_v13  ;;  %13339 = vmatprep.subr.bf16.mxu0 %v15916_v4  ;;  %v15951_v13 = vld [vmem:[%s21434_s2 + $0xda8] ss:$20 sps:$4 sm:$0xff]   ;;  %v15952_v4 = vld [vmem:[%s21434_s2 + $0xc40] ss:$20 sps:$4 sm:$0xff]  }
 0x4c1   :  { %13361 = vmatprep.subr.bf16.mxu1 %v15917_v44 }
 0x4c2   :  { %10571 = vmatmul.mubr.bf16.vlgmr.msra.gmra.mxu0 %v17749_v5  ;;  %v15924_v5 = vld [vmem:[%s21434_s2 + $0x718] ss:$20 sps:$4 sm:$0xff]  }
 0x4c3   :  { %10611 = vmatmul.mubr.bf16.vlgmr.msra.gmra.mxu1 %v17883_v31  ;;  %13340 = vmatpush3.bf16.msra.mxu0 %v15918_v17  ;;  %v15925_v31 = vld [vmem:[%s21434_s2 + $0x998] ss:$20 sps:$4 sm:$0xff]   ;;  %v15953_v17 = vld [vmem:[%s21434_s2 + $0xec0] ss:$20 sps:$4 sm:$0xff]  }
 0x4c4   :  { %10650 = vmatprep.mubr.bf16.mxu0 %v17762_v10  ;;  %13362 = vmatpush3.bf16.msra.mxu1 %v15919_v35  ;;  %v15926_v10 = vld [vmem:[%s21434_s2 + $0x5d8] ss:$20 sps:$4 sm:$0xff]  }
 0x4c5   :  { %10690 = vmatprep.mubr.bf16.mxu1 %v17894_v36  ;;  %13341 = vmatprep.subr.bf16.mxu0 %v15920_v1  ;;  %v15928_v36 = vld [vmem:[%s21434_s2 + $0x6f0] ss:$20 sps:$4 sm:$0xff]   ;;  %v15954_v1 = vld [vmem:[%s21434_s2 + $0xb00] ss:$20 sps:$4 sm:$0xff]  }
 0x4c6   :  { %13363 = vmatprep.subr.bf16.mxu1 %v15921_v11 }
 0x4c7   :  { %13342 = vmatpush3.bf16.msra.mxu0 %v15922_v29  ;;  %v15956_v29 = vld [vmem:[%s21434_s2 + $0xc18] ss:$20 sps:$4 sm:$0xff]  }
 0x4c8   :  { %13364 = vmatpush3.bf16.msra.mxu1 %v15923_v55  ;;  %13343 = vmatprep.subr.bf16.mxu0 %v15924_v5  ;;  %v15957_v55 = vld [vmem:[%s21434_s2 + $0xe98] ss:$20 sps:$4 sm:$0xff]  }
 0x4c9   :  { %13365 = vmatprep.subr.bf16.mxu1 %v15925_v31  ;;  %v15958_v5 = vld [vmem:[%s21434_s2 + $0xad8] ss:$20 sps:$4 sm:$0xff]  }
 0x4cb   :  { %13344 = vmatpush3.bf16.msra.mxu0 %v15926_v10  ;;  %v15960_v10 = vld [vmem:[%s21434_s2 + $0xbf0] ss:$20 sps:$4 sm:$0xff]  }
 0x4cc   :  { %13366 = vmatpush3.bf16.msra.mxu1 %v15927_v42  ;;  %13345 = vmatprep.subr.bf16.mxu0 %v15928_v36  ;;  %v15961_v42 = vld [vmem:[%s21434_s2 + $0xe70] ss:$20 sps:$4 sm:$0xff]  }
 0x4cd   :  { %13367 = vmatprep.subr.bf16.mxu1 %v15929_v63  ;;  %v15962_v36 = vld [vmem:[%s21434_s2 + $0xab0] ss:$20 sps:$4 sm:$0xff]  }
 0x4ce   :  { %v15963_v63 = vld [vmem:[%s21434_s2 + $0xd30] ss:$20 sps:$4 sm:$0xff]  }
 0x4cf   :  { %13346 = vmatpush3.bf16.msra.mxu0 %v15930_v52  ;;  %v15964_v52 = vld [vmem:[%s21434_s2 + $0xbc8] ss:$20 sps:$4 sm:$0xff]  }
 0x4d0   :  { %13368 = vmatpush3.bf16.msra.mxu1 %v15931_v34  ;;  %13347 = vmatprep.subr.bf16.mxu0 %v15932_v18  ;;  %v15965_v34 = vld [vmem:[%s21434_s2 + $0xe48] ss:$20 sps:$4 sm:$0xff]  }
 0x4d1   :  { %13369 = vmatprep.subr.bf16.mxu1 %v15933_v54  ;;  %v15966_v18 = vld [vmem:[%s21434_s2 + $0xa88] ss:$20 sps:$4 sm:$0xff]  }
 0x4d2   :  { %v10285_v15 = vpop.f32.mrf.mxu1  ;;  %v15967_v54 = vld [vmem:[%s21434_s2 + $0xd08] ss:$20 sps:$4 sm:$0xff]  }
 0x4d3   :  { %v10286_v48 = vadd.f32 %v10285_v15, %v20517_v19  ;;  %13348 = vmatpush3.bf16.msra.mxu0 %v15934_v26  ;;  %v15941_v19 = vld [vmem:[%s21434_s2 + $0x8f8] ss:$20 sps:$4 sm:$0xff]   ;;  %v15968_v26 = vld [vmem:[%s21434_s2 + $0xba0] ss:$20 sps:$4 sm:$0xff]  }
 0x4d4   :  { %13370 = vmatpush3.bf16.msra.mxu1 %v15935_v8  ;;  %v10287_v53 = vpop.f32.mrf.mxu1  ;;  %13349 = vmatprep.subr.bf16.mxu0 %v15936_v6  ;;  %v15969_v8 = vld [vmem:[%s21434_s2 + $0xe20] ss:$20 sps:$4 sm:$0xff]   ;;  %v15972_v15 = vld [vmem:[%s21434_s2 + $0xb78] ss:$20 sps:$4 sm:$0xff]  }
 0x4d5   :  { %v10288_v27 = vadd.f32 %v10287_v53, %v20530_v51  ;;  %13371 = vmatprep.subr.bf16.mxu1 %v15937_v45  ;;  %v15944_v51 = vld [vmem:[%s21434_s2 + $0x650] ss:$20 sps:$4 sm:$0xff]   ;;  %v15970_v6 = vld [vmem:[%s21434_s2 + $0xa60] ss:$20 sps:$4 sm:$0xff]   ;;  %v15975_v53 = vld [vmem:[%s21434_s2 + $0xcb8] ss:$20 sps:$4 sm:$0xff]  }
 0x4d6   :  { %v10289_v14 = vpop.f32.mrf.mxu1  ;;  %v15971_v45 = vld [vmem:[%s21434_s2 + $0xce0] ss:$20 sps:$4 sm:$0xff]  }
 0x4d7   :  { %13350 = vmatpush3.bf16.msra.mxu0 %v15938_v47  ;;  %v15974_v47 = vld [vmem:[%s21434_s2 + $0xa38] ss:$20 sps:$4 sm:$0xff]   ;;  %v15980_v14 = vld [vmem:[%s21434_s2 + $0x1168] ss:$20 sps:$4 sm:$0xff]  }
 0x4d8   :  { %13372 = vmatpush3.bf16.msra.mxu1 %v15939_v37  ;;  %v10290_v33 = vpop.f32.mrf.mxu1  ;;  %13351 = vmatprep.subr.bf16.mxu0 %v15940_v39  ;;  %v15976_v37 = vld [vmem:[%s21434_s2 + $0xb50] ss:$20 sps:$4 sm:$0xff]  }
 0x4d9   :  { %13373 = vmatprep.subr.bf16.mxu1 %v15941_v19  ;;  %v15977_v39 = vld [vmem:[%s21434_s2 + $0xdd0] ss:$20 sps:$4 sm:$0xff]   ;;  %v15982_v33 = vld [vmem:[%s21434_s2 + $0x1028] ss:$20 sps:$4 sm:$0xff]  }
 0x4da   :  { %v15979_v19 = vld [vmem:[%s21434_s2 + $0xc90] ss:$20 sps:$4 sm:$0xff]  }
 0x4db   :  { %13352 = vmatpush3.bf16.msra.mxu0 %v15942_v21  ;;  %v15981_v21 = vld [vmem:[%s21434_s2 + $0x13e8] ss:$20 sps:$4 sm:$0xff]  }
 0x4dc   :  { %13374 = vmatpush3.bf16.msra.mxu1 %v15943_v7  ;;  %13353 = vmatprep.subr.bf16.mxu0 %v15944_v51  ;;  %v15983_v7 = vld [vmem:[%s21434_s2 + $0x12a8] ss:$20 sps:$4 sm:$0xff]   ;;  %v15984_v51 = vld [vmem:[%s21434_s2 + $0x1140] ss:$20 sps:$4 sm:$0xff]  }
 0x4dd   :  { %13375 = vmatprep.subr.bf16.mxu1 %v15945_v24  ;;  %v15985_v24 = vld [vmem:[%s21434_s2 + $0x13c0] ss:$20 sps:$4 sm:$0xff]  }
 0x4df   :  { %13354 = vmatpush3.bf16.msra.mxu0 %v15946_v28  ;;  %v15986_v28 = vld [vmem:[%s21434_s2 + $0x1000] ss:$20 sps:$4 sm:$0xff]  }
 0x4e0   :  { %13376 = vmatpush3.bf16.msra.mxu1 %v15947_v58  ;;  %13383 = vmatprep.subr.bf16.mxu0 %v15948_v30  ;;  %v15987_v58 = vld [vmem:[%s21434_s2 + $0x1280] ss:$20 sps:$4 sm:$0xff]   ;;  %v15991_v30 = vld [vmem:[%s21434_s2 + $0x1258] ss:$20 sps:$4 sm:$0xff]  }
 0x4e1   :  { %13405 = vmatprep.subr.bf16.mxu1 %v15949_v23  ;;  %v15993_v23 = vld [vmem:[%s21434_s2 + $0x1370] ss:$20 sps:$4 sm:$0xff]  }
 0x4e2   :  { %v10326_v44 = vpop.f32.mrf.mxu0  ;;  %10651 = vmatmul.mubr.bf16.vlgmr.msra.gmra.mxu0 %v18013_v62  ;;  %v15955_v62 = vld [vmem:[%s21434_s2 + $0xd80] ss:$20 sps:$4 sm:$0xff]  }
 0x4e3   :  { %v20722_v35 = vadd.f32 %v10326_v44, %v10286_v48  ;;  %10691 = vmatmul.mubr.bf16.vlgmr.msra.gmra.mxu1 %v18159_v46  ;;  %13384 = vmatpush3.bf16.msra.mxu0 %v15950_v20  ;;  %v15973_v48 = vld [vmem:[%s21434_s2 + $0xdf8] ss:$20 sps:$4 sm:$0xff]   ;;  %v15994_v20 = vld [vmem:[%s21434_s2 + $0xfb0] ss:$20 sps:$4 sm:$0xff]   ;;  %v15997_v44 = vld [vmem:[%s21434_s2 + $0x1348] ss:$20 sps:$4 sm:$0xff]  }
 0x4e4   :  { %10730 = vmatprep.mubr.bf16.mxu0 %v18026_v3  ;;  %13406 = vmatpush3.bf16.msra.mxu1 %v15951_v13  ;;  %v10328_v11 = vpop.f32.mrf.mxu0  ;;  %v15995_v13 = vld [vmem:[%s21434_s2 + $0x1230] ss:$20 sps:$4 sm:$0xff]  }
 0x4e5   :  { %10770 = vmatprep.mubr.bf16.mxu1 %v18168_v49  ;;  %v20736_v46 = vadd.f32 %v10328_v11, %v10288_v27  ;;  %13385 = vmatprep.subr.bf16.mxu0 %v15952_v4  ;;  %v15959_v49 = vld [vmem:[%s21434_s2 + $0xd58] ss:$20 sps:$4 sm:$0xff]   ;;  %v15978_v27 = vld [vmem:[%s21434_s2 + $0xa10] ss:$20 sps:$4 sm:$0xff]   ;;  %v15996_v4 = vld [vmem:[%s21434_s2 + $0x10c8] ss:$20 sps:$4 sm:$0xff]  }
 0x4e6   :  { %v10330_v3 = vpop.f32.mrf.mxu0  ;;  %13407 = vmatprep.subr.bf16.mxu1 %v15953_v17  ;;  %v15998_v17 = vld [vmem:[%s21434_s2 + $0xf88] ss:$20 sps:$4 sm:$0xff]   ;;  %v16000_v11 = vld [vmem:[%s21434_s2 + $0x10a0] ss:$20 sps:$4 sm:$0xff]  }
 0x4e7   :  { %13386 = vmatpush3.bf16.msra.mxu0 %v15954_v1  ;;  %v15999_v1 = vld [vmem:[%s21434_s2 + $0x1208] ss:$20 sps:$4 sm:$0xff]   ;;  %v16002_v3 = vld [vmem:[%s21434_s2 + $0xf60] ss:$20 sps:$4 sm:$0xff]  }
 0x4e8   :  { %13408 = vmatpush3.bf16.msra.mxu1 %v15955_v62  ;;  %v10331_v31 = vpop.f32.mrf.mxu0  ;;  %13387 = vmatprep.subr.bf16.mxu0 %v15956_v29  ;;  %v16001_v62 = vld [vmem:[%s21434_s2 + $0x1320] ss:$20 sps:$4 sm:$0xff]  }
 0x4e9   :  { %13409 = vmatprep.subr.bf16.mxu1 %v15957_v55  ;;  %v16003_v31 = vld [vmem:[%s21434_s2 + $0x11e0] ss:$20 sps:$4 sm:$0xff]  }
 0x4eb   :  { %13388 = vmatpush3.bf16.msra.mxu0 %v15958_v5 }
 0x4ec   :  { %13410 = vmatpush3.bf16.msra.mxu1 %v15959_v49  ;;  %13389 = vmatprep.subr.bf16.mxu0 %v15960_v10  ;;  %v16004_v49 = vld [vmem:[%s21434_s2 + $0x1078] ss:$20 sps:$4 sm:$0xff]  }
 0x4ed   :  { %13411 = vmatprep.subr.bf16.mxu1 %v15961_v42 }
 0x4ef   :  { %13390 = vmatpush3.bf16.msra.mxu0 %v15962_v36  ;;  %v16006_v36 = vld [vmem:[%s21434_s2 + $0xf38] ss:$20 sps:$4 sm:$0xff]  }
 0x4f0   :  { %13412 = vmatpush3.bf16.msra.mxu1 %v15963_v63  ;;  %13391 = vmatprep.subr.bf16.mxu0 %v15964_v52  ;;  %v16007_v52 = vld [vmem:[%s21434_s2 + $0x11b8] ss:$20 sps:$4 sm:$0xff]  }
 0x4f1   :  { %13413 = vmatprep.subr.bf16.mxu1 %v15965_v34  ;;  %v16009_v34 = vld [vmem:[%s21434_s2 + $0x12d0] ss:$20 sps:$4 sm:$0xff]  }
 0x4f3   :  { %13392 = vmatpush3.bf16.msra.mxu0 %v15966_v18  ;;  %v16010_v18 = vld [vmem:[%s21434_s2 + $0xf10] ss:$20 sps:$4 sm:$0xff]  }
 0x4f4   :  { %13414 = vmatpush3.bf16.msra.mxu1 %v15967_v54  ;;  %13393 = vmatprep.subr.bf16.mxu0 %v15968_v26  ;;  %v16011_v54 = vld [vmem:[%s21434_s2 + $0x1190] ss:$20 sps:$4 sm:$0xff]   ;;  %v16012_v26 = vld [vmem:[%s21434_s2 + $0x1668] ss:$20 sps:$4 sm:$0xff]  }
 0x4f5   :  { %13415 = vmatprep.subr.bf16.mxu1 %v15969_v8  ;;  %v16013_v8 = vld [vmem:[%s21434_s2 + $0x18e8] ss:$20 sps:$4 sm:$0xff]  }
 0x4f7   :  { %13394 = vmatpush3.bf16.msra.mxu0 %v15970_v6  ;;  %v16014_v6 = vld [vmem:[%s21434_s2 + $0x1528] ss:$20 sps:$4 sm:$0xff]  }
 0x4f8   :  { %13416 = vmatpush3.bf16.msra.mxu1 %v15971_v45  ;;  %13395 = vmatprep.subr.bf16.mxu0 %v15972_v15  ;;  %v16015_v45 = vld [vmem:[%s21434_s2 + $0x17a8] ss:$20 sps:$4 sm:$0xff]   ;;  %v16016_v15 = vld [vmem:[%s21434_s2 + $0x1640] ss:$20 sps:$4 sm:$0xff]  }
 0x4f9   :  { %13417 = vmatprep.subr.bf16.mxu1 %v15973_v48 }
 0x4fb   :  { %13396 = vmatpush3.bf16.msra.mxu0 %v15974_v47  ;;  %v16017_v47 = vld [vmem:[%s21434_s2 + $0x18c0] ss:$20 sps:$4 sm:$0xff]  }
 0x4fc   :  { %13418 = vmatpush3.bf16.msra.mxu1 %v15975_v53  ;;  %13397 = vmatprep.subr.bf16.mxu0 %v15976_v37  ;;  %v16018_v37 = vld [vmem:[%s21434_s2 + $0x1500] ss:$20 sps:$4 sm:$0xff]  }
 0x4fd   :  { %13419 = vmatprep.subr.bf16.mxu1 %v15977_v39 }
 0x4ff   :  { %13398 = vmatpush3.bf16.msra.mxu0 %v15978_v27  ;;  %v16020_v27 = vld [vmem:[%s21434_s2 + $0x1618] ss:$20 sps:$4 sm:$0xff]  }
 0x500   :  { %13420 = vmatpush3.bf16.msra.mxu1 %v15979_v19  ;;  %13427 = vmatprep.subr.bf16.mxu0 %v15980_v14 }
 0x501   :  { %13449 = vmatprep.subr.bf16.mxu1 %v15981_v21  ;;  %v16023_v21 = vld [vmem:[%s21434_s2 + $0x1758] ss:$20 sps:$4 sm:$0xff]  }
 0x502   :  { %10731 = vmatmul.mubr.bf16.vlgmr.msra.gmra.mxu0 %v18289_v40  ;;  %v15988_v40 = vld [vmem:[%s21434_s2 + $0x1118] ss:$20 sps:$4 sm:$0xff]  }
 0x503   :  { %10771 = vmatmul.mubr.bf16.vlgmr.msra.gmra.mxu1 %v18429_v50  ;;  %13428 = vmatpush3.bf16.msra.mxu0 %v15982_v33  ;;  %v15989_v50 = vld [vmem:[%s21434_s2 + $0x1398] ss:$20 sps:$4 sm:$0xff]   ;;  %v16025_v33 = vld [vmem:[%s21434_s2 + $0x1870] ss:$20 sps:$4 sm:$0xff]  }
 0x504   :  { %10810 = vmatprep.mubr.bf16.mxu0 %v18296_v57  ;;  %13450 = vmatpush3.bf16.msra.mxu1 %v15983_v7  ;;  %v15990_v57 = vld [vmem:[%s21434_s2 + $0xfd8] ss:$20 sps:$4 sm:$0xff]   ;;  %v16026_v7 = vld [vmem:[%s21434_s2 + $0x14b0] ss:$20 sps:$4 sm:$0xff]  }
 0x505   :  { %10850 = vmatprep.mubr.bf16.mxu1 %v18437_v12  ;;  %13429 = vmatprep.subr.bf16.mxu0 %v15984_v51  ;;  %v15992_v12 = vld [vmem:[%s21434_s2 + $0x10f0] ss:$20 sps:$4 sm:$0xff]  }
 0x506   :  { %13451 = vmatprep.subr.bf16.mxu1 %v15985_v24  ;;  %v16027_v51 = vld [vmem:[%s21434_s2 + $0x1730] ss:$20 sps:$4 sm:$0xff]   ;;  %v16028_v24 = vld [vmem:[%s21434_s2 + $0x15c8] ss:$20 sps:$4 sm:$0xff]  }
 0x507   :  { %13430 = vmatpush3.bf16.msra.mxu0 %v15986_v28  ;;  %v16029_v28 = vld [vmem:[%s21434_s2 + $0x1848] ss:$20 sps:$4 sm:$0xff]  }
 0x508   :  { %13452 = vmatpush3.bf16.msra.mxu1 %v15987_v58  ;;  %13431 = vmatprep.subr.bf16.mxu0 %v15988_v40  ;;  %v16030_v58 = vld [vmem:[%s21434_s2 + $0x1488] ss:$20 sps:$4 sm:$0xff]  }
 0x509   :  { %13453 = vmatprep.subr.bf16.mxu1 %v15989_v50  ;;  %v16031_v40 = vld [vmem:[%s21434_s2 + $0x1708] ss:$20 sps:$4 sm:$0xff]   ;;  %v16032_v50 = vld [vmem:[%s21434_s2 + $0x15a0] ss:$20 sps:$4 sm:$0xff]  }
 0x50b   :  { %13432 = vmatpush3.bf16.msra.mxu0 %v15990_v57  ;;  %v16033_v57 = vld [vmem:[%s21434_s2 + $0x1820] ss:$20 sps:$4 sm:$0xff]  }
 0x50c   :  { %13454 = vmatpush3.bf16.msra.mxu1 %v15991_v30  ;;  %13433 = vmatprep.subr.bf16.mxu0 %v15992_v12  ;;  %v16034_v30 = vld [vmem:[%s21434_s2 + $0x1460] ss:$20 sps:$4 sm:$0xff]  }
 0x50d   :  { %13455 = vmatprep.subr.bf16.mxu1 %v15993_v23  ;;  %v16035_v12 = vld [vmem:[%s21434_s2 + $0x16e0] ss:$20 sps:$4 sm:$0xff]   ;;  %v16036_v23 = vld [vmem:[%s21434_s2 + $0x1578] ss:$20 sps:$4 sm:$0xff]  }
 0x50f   :  { %13434 = vmatpush3.bf16.msra.mxu0 %v15994_v20  ;;  %v16037_v20 = vld [vmem:[%s21434_s2 + $0x17f8] ss:$20 sps:$4 sm:$0xff]  }
 0x510   :  { %13456 = vmatpush3.bf16.msra.mxu1 %v15995_v13  ;;  %13435 = vmatprep.subr.bf16.mxu0 %v15996_v4  ;;  %v16038_v13 = vld [vmem:[%s21434_s2 + $0x1438] ss:$20 sps:$4 sm:$0xff]   ;;  %v14002_v4 = vcvt.f32.s32 %v19926_v2 }
 0x511   :  { %13457 = vmatprep.subr.bf16.mxu1 %v15997_v44  ;;  %v16039_v44 = vld [vmem:[%s21434_s2 + $0x16b8] ss:$20 sps:$4 sm:$0xff]  }
 0x512   :  { %v10367_v29 = vpop.f32.mrf.mxu1 }
 0x513   :  { %v10368_v55 = vadd.f32 %v10367_v29, %v20722_v35  ;;  %13436 = vmatpush3.bf16.msra.mxu0 %v15998_v17  ;;  %v16005_v35 = vld [vmem:[%s21434_s2 + $0x12f8] ss:$20 sps:$4 sm:$0xff]   ;;  %v16040_v17 = vld [vmem:[%s21434_s2 + $0x1550] ss:$20 sps:$4 sm:$0xff]  }
 0x514   :  { %13458 = vmatpush3.bf16.msra.mxu1 %v15999_v1  ;;  %v10369_v5 = vpop.f32.mrf.mxu1  ;;  %13437 = vmatprep.subr.bf16.mxu0 %v16000_v11  ;;  %v16041_v1 = vld [vmem:[%s21434_s2 + $0x17d0] ss:$20 sps:$4 sm:$0xff]  }
 0x515   :  { %v20888_v10 = vadd.f32 %v10369_v5, %v20736_v46  ;;  %13459 = vmatprep.subr.bf16.mxu1 %v16001_v62  ;;  %v16008_v46 = vld [vmem:[%s21434_s2 + $0x1050] ss:$20 sps:$4 sm:$0xff]   ;;  %v14003_v62 = vcvt.s32.f32 %v14002_v4  ;;  %v16046_v5 = vld [vmem:[%s21434_s2 + $0x1a28] ss:$20 sps:$4 sm:$0xff]  }
 0x516   :  { %v10371_v42 = vpop.f32.mrf.mxu1  ;;  %v16042_v11 = vld [vmem:[%s21434_s2 + $0x1410] ss:$20 sps:$4 sm:$0xff]   ;;  %v16079_v4 = vld [vmem:[%s21434_s2 + $0x1e88] ss:$20 sps:$4 sm:$0xff]  }
 0x517   :  { %13438 = vmatpush3.bf16.msra.mxu0 %v16002_v3  ;;  %v16043_v29 = vld [vmem:[%s21434_s2 + $0x1690] ss:$20 sps:$4 sm:$0xff]   ;;  %v16045_v3 = vld [vmem:[%s21434_s2 + $0x1de8] ss:$20 sps:$4 sm:$0xff]   ;;  %v14005_v42 = vand.u32 2147483648, %v19926_v2 }
 0x518   :  { %13460 = vmatpush3.bf16.msra.mxu1 %v16003_v31  ;;  %v10372_v63 = vpop.f32.mrf.mxu1  ;;  %13439 = vmatprep.subr.bf16.mxu0 %v16004_v49  ;;  %v14004_v31 = vand.u32 2147483647, %v14003_v62  ;;  %v16047_v49 = vld [vmem:[%s21434_s2 + $0x1ca8] ss:$20 sps:$4 sm:$0xff]  }
 0x519   :  { %13461 = vmatprep.subr.bf16.mxu1 %v16005_v35  ;;  %v16048_v35 = vld [vmem:[%s21434_s2 + $0x1b40] ss:$20 sps:$4 sm:$0xff]   ;;  %v14000_v63 = vand.u32 2147483647, %v19926_v2 }
 0x51b   :  { %13440 = vmatpush3.bf16.msra.mxu0 %v16006_v36  ;;  %v16049_v36 = vld [vmem:[%s21434_s2 + $0x1dc0] ss:$20 sps:$4 sm:$0xff]   ;;  %vm14001_vm5 = vcmp.lt.f32.partialorder %v14000_v63, 8388608.0 }
 0x51c   :  { %13462 = vmatpush3.bf16.msra.mxu1 %v16007_v52  ;;  %13441 = vmatprep.subr.bf16.mxu0 %v16008_v46  ;;  %v16050_v52 = vld [vmem:[%s21434_s2 + $0x1a00] ss:$20 sps:$4 sm:$0xff]   ;;  %v14006_v46 = vor.u32 %v14005_v42, %v14004_v31 }
 0x51d   :  { %13463 = vmatprep.subr.bf16.mxu1 %v16009_v34  ;;  %v16052_v34 = vld [vmem:[%s21434_s2 + $0x1b18] ss:$20 sps:$4 sm:$0xff]  }
 0x51f   :  { %13442 = vmatpush3.bf16.msra.mxu0 %v16010_v18  ;;  %v14007_v18 = vsel %vm14001_vm5, %v14006_v46, %v19926_v2  ;;  %v16058_v2 = vld [vmem:[%s21434_s2 + $0x19b0] ss:$20 sps:$4 sm:$0xff]  }
 0x520   :  { %13464 = vmatpush3.bf16.msra.mxu1 %v16011_v54  ;;  %13471 = vmatprep.subr.bf16.mxu0 %v16012_v26  ;;  %v16056_v54 = vld [vmem:[%s21434_s2 + $0x1af0] ss:$20 sps:$4 sm:$0xff]  }
 0x521   :  { %13493 = vmatprep.subr.bf16.mxu1 %v16013_v8  ;;  %v16057_v26 = vld [vmem:[%s21434_s2 + $0x1d70] ss:$20 sps:$4 sm:$0xff]   ;;  %v11064_v8 = vmax.f32 %v14007_v18, 0.0  ;;  %v16087_v18 = vld [vmem:[%s21434_s2 + $0x1e38] ss:$20 sps:$4 sm:$0xff]  }
 0x522   :  { %v10408_v48 = vpop.f32.mrf.mxu0  ;;  %10811 = vmatmul.mubr.bf16.vlgmr.msra.gmra.mxu0 %v18565_v43  ;;  %v16019_v43 = vld [vmem:[%s21434_s2 + $0x1780] ss:$20 sps:$4 sm:$0xff]  }
 0x523   :  { %v20930_v53 = vadd.f32 %v10408_v48, %v10368_v55  ;;  %10851 = vmatmul.mubr.bf16.vlgmr.msra.gmra.mxu1 %v18718_v0  ;;  %13472 = vmatpush3.bf16.msra.mxu0 %v16014_v6  ;;  %v16021_v0 = vld [vmem:[%s21434_s2 + $0x1898] ss:$20 sps:$4 sm:$0xff]   ;;  %v16044_v55 = vld [vmem:[%s21434_s2 + $0x1b68] ss:$20 sps:$4 sm:$0xff]   ;;  %v16059_v6 = vld [vmem:[%s21434_s2 + $0x1c30] ss:$20 sps:$4 sm:$0xff]  }
 0x524   :  { %10890 = vmatprep.mubr.bf16.mxu0 %v18576_v60  ;;  %13494 = vmatpush3.bf16.msra.mxu1 %v16015_v45  ;;  %v20937_v39 = vpop.f32.mrf.mxu0  ;;  %v16022_v60 = vld [vmem:[%s21434_s2 + $0x14d8] ss:$20 sps:$4 sm:$0xff]   ;;  %v16060_v45 = vld [vmem:[%s21434_s2 + $0x1ac8] ss:$20 sps:$4 sm:$0xff]   ;;  %v11069_v48 = vmin.f32 %v11064_v8, 31.0 }
 0x525   :  { %10930 = vmatprep.mubr.bf16.mxu1 %v18728_v32  ;;  %13473 = vmatprep.subr.bf16.mxu0 %v16016_v15  ;;  %v16024_v32 = vld [vmem:[%s21434_s2 + $0x15f0] ss:$20 sps:$4 sm:$0xff]   ;;  %v16061_v15 = vld [vmem:[%s21434_s2 + $0x1d48] ss:$20 sps:$4 sm:$0xff]  }
 0x526   :  { %v10412_v19 = vpop.f32.mrf.mxu0  ;;  %13495 = vmatprep.subr.bf16.mxu1 %v16017_v47  ;;  %v16062_v47 = vld [vmem:[%s21434_s2 + $0x1988] ss:$20 sps:$4 sm:$0xff]  }
 0x527   :  { %13474 = vmatpush3.bf16.msra.mxu0 %v16018_v37  ;;  %v16063_v37 = vld [vmem:[%s21434_s2 + $0x1c08] ss:$20 sps:$4 sm:$0xff]   ;;  %v21089_v19 = vmul.f32 0.5, %v11069_v48 }
 0x528   :  { %13496 = vmatpush3.bf16.msra.mxu1 %v16019_v43  ;;  %v10413_v14 = vpop.f32.mrf.mxu0  ;;  %13475 = vmatprep.subr.bf16.mxu0 %v16020_v27  ;;  %v16064_v43 = vld [vmem:[%s21434_s2 + $0x1aa0] ss:$20 sps:$4 sm:$0xff]  }
 0x529   :  { %13497 = vmatprep.subr.bf16.mxu1 %v16021_v0  ;;  %v16065_v27 = vld [vmem:[%s21434_s2 + $0x1d20] ss:$20 sps:$4 sm:$0xff]   ;;  %v14045_v62 = vand.u32 2147483648, %v21089_v19 }
 0x52a   :  { %v16097_v48 = vld [vmem:[%s21435_s3 + $0x134] ss:$8 sps:$4 sm:$0xff]  }
 0x52b   :  { %13476 = vmatpush3.bf16.msra.mxu0 %v16022_v60  ;;  %v16066_v60 = vld [vmem:[%s21434_s2 + $0x1960] ss:$20 sps:$4 sm:$0xff]  }
 0x52c   :  { %13498 = vmatpush3.bf16.msra.mxu1 %v16023_v21  ;;  %13477 = vmatprep.subr.bf16.mxu0 %v16024_v32  ;;  %v16067_v21 = vld [vmem:[%s21434_s2 + $0x1be0] ss:$20 sps:$4 sm:$0xff]   ;;  %v16068_v32 = vld [vmem:[%s21434_s2 + $0x1a78] ss:$20 sps:$4 sm:$0xff]  }
 0x52d   :  { %13499 = vmatprep.subr.bf16.mxu1 %v16025_v33  ;;  %v16069_v33 = vld [vmem:[%s21434_s2 + $0x1cf8] ss:$20 sps:$4 sm:$0xff]  }
 0x52f   :  { %13478 = vmatpush3.bf16.msra.mxu0 %v16026_v7 }
 0x530   :  { %13500 = vmatpush3.bf16.msra.mxu1 %v16027_v51  ;;  %13479 = vmatprep.subr.bf16.mxu0 %v16028_v24  ;;  %v16070_v51 = vld [vmem:[%s21434_s2 + $0x1938] ss:$20 sps:$4 sm:$0xff]   ;;  %v14042_v24 = vcvt.f32.s32 %v21089_v19 }
 0x531   :  { %13501 = vmatprep.subr.bf16.mxu1 %v16029_v28 }
 0x533   :  { %13480 = vmatpush3.bf16.msra.mxu0 %v16030_v58  ;;  %v16071_v58 = vld [vmem:[%s21434_s2 + $0x1bb8] ss:$20 sps:$4 sm:$0xff]  }
 0x534   :  { %13502 = vmatpush3.bf16.msra.mxu1 %v16031_v40  ;;  %13481 = vmatprep.subr.bf16.mxu0 %v16032_v50  ;;  %v16072_v40 = vld [vmem:[%s21434_s2 + $0x1a50] ss:$20 sps:$4 sm:$0xff]  }
 0x535   :  { %13503 = vmatprep.subr.bf16.mxu1 %v16033_v57  ;;  %v16073_v50 = vld [vmem:[%s21434_s2 + $0x1cd0] ss:$20 sps:$4 sm:$0xff]  }
 0x536   :  { %v16074_v57 = vld [vmem:[%s21434_s2 + $0x1910] ss:$20 sps:$4 sm:$0xff]  }
 0x537   :  { %13482 = vmatpush3.bf16.msra.mxu0 %v16034_v30  ;;  %v14043_v30 = vcvt.s32.f32 %v14042_v24 }
 0x538   :  { %13504 = vmatpush3.bf16.msra.mxu1 %v16035_v12  ;;  %13483 = vmatprep.subr.bf16.mxu0 %v16036_v23  ;;  %v16075_v12 = vld [vmem:[%s21434_s2 + $0x1b90] ss:$20 sps:$4 sm:$0xff]   ;;  %v16078_v23 = vld [vmem:[%s21435_s3 + $0x174] ss:$8 sps:$4 sm:$0xff]  }
 0x539   :  { %13505 = vmatprep.subr.bf16.mxu1 %v16037_v20  ;;  %v16076_v20 = vld [vmem:[%s21435_s3 + $0x170] ss:$8 sps:$4 sm:$0xff]  }
 0x53b   :  { %13484 = vmatpush3.bf16.msra.mxu0 %v16038_v13  ;;  %v14044_v13 = vand.u32 2147483647, %v14043_v30  ;;  %v16109_v30 = vld [vmem:[%s21435_s3 + $0x114] ss:$8 sps:$4 sm:$0xff]  }
 0x53c   :  { %13506 = vmatpush3.bf16.msra.mxu1 %v16039_v44  ;;  %13485 = vmatprep.subr.bf16.mxu0 %v16040_v17  ;;  %v16082_v44 = vld [vmem:[%s21435_s3 + $0x164] ss:$8 sps:$4 sm:$0xff]   ;;  %v10411_v17 = vadd.f32 %v20937_v39, %v20888_v10  ;;  %v16080_v10 = vld [vmem:[%s21435_s3 + $0x160] ss:$8 sps:$4 sm:$0xff]  }
 0x53d   :  { %13507 = vmatprep.subr.bf16.mxu1 %v16041_v1 }
 0x53f   :  { %13486 = vmatpush3.bf16.msra.mxu0 %v16042_v11  ;;  %v16220_v11 = vmov 0.0  }
 0x540   :  { %13508 = vmatpush3.bf16.msra.mxu1 %v16043_v29  ;;  %13515 = vmatprep.subr.bf16.mxu0 %v16044_v55 }
 0x541   :  { %13537 = vmatprep.subr.bf16.mxu1 %v16045_v3  ;;  %v14040_v3 = vand.u32 2147483647, %v21089_v19 }
 0x542   :  { %10891 = vmatmul.mubr.bf16.vlgmr.msra.gmra.mxu0 %v18888_v38  ;;  %v16051_v38 = vld [vmem:[%s21434_s2 + $0x1c80] ss:$20 sps:$4 sm:$0xff]  }
 0x543   :  { %10931 = vmatmul.mubr.bf16.vlgmr.msra.gmra.mxu1 %v19034_v22  ;;  %13516 = vmatpush3.bf16.msra.mxu0 %v16046_v5  ;;  %v16053_v22 = vld [vmem:[%s21434_s2 + $0x1d98] ss:$20 sps:$4 sm:$0xff]   ;;  %vm14041_vm7 = vcmp.lt.f32.partialorder %v14040_v3, 8388608.0  ;;  %v16113_v3 = vld [vmem:[%s21435_s3 + $0x100] ss:$8 sps:$4 sm:$0xff]  }
 0x544   :  { %10970 = vmatprep.mubr.bf16.mxu0 %v18894_v41  ;;  %13538 = vmatpush3.bf16.msra.mxu1 %v16047_v49  ;;  %v16054_v41 = vld [vmem:[%s21434_s2 + $0x19d8] ss:$20 sps:$4 sm:$0xff]  }
 0x545   :  { %11010 = vmatprep.mubr.bf16.mxu1 %v19040_v59  ;;  %13517 = vmatprep.subr.bf16.mxu0 %v16048_v35  ;;  %v16055_v59 = vld [vmem:[%s21434_s2 + $0x1c58] ss:$20 sps:$4 sm:$0xff]   ;;  %v16086_v35 = vld [vmem:[%s21435_s3 + $0x154] ss:$8 sps:$4 sm:$0xff]  }
 0x546   :  { %13539 = vmatprep.subr.bf16.mxu1 %v16049_v36 }
 0x547   :  { %13518 = vmatpush3.bf16.msra.mxu0 %v16050_v52 }
 0x548   :  { %13540 = vmatpush3.bf16.msra.mxu1 %v16051_v38  ;;  %13519 = vmatprep.subr.bf16.mxu0 %v16052_v34  ;;  %v16084_v38 = vld [vmem:[%s21435_s3 + $0x150] ss:$8 sps:$4 sm:$0xff]  }
 0x549   :  { %13541 = vmatprep.subr.bf16.mxu1 %v16053_v22 }
 0x54b   :  { %13520 = vmatpush3.bf16.msra.mxu0 %v16054_v41 }
 0x54c   :  { %13542 = vmatpush3.bf16.msra.mxu1 %v16055_v59  ;;  %13521 = vmatprep.subr.bf16.mxu0 %v16056_v54  ;;  %v16090_v59 = vld [vmem:[%s21435_s3 + $0x144] ss:$8 sps:$4 sm:$0xff]  }
 0x54d   :  { %13543 = vmatprep.subr.bf16.mxu1 %v16057_v26 }
 0x54f   :  { %13522 = vmatpush3.bf16.msra.mxu0 %v16058_v2 }
 0x550   :  { %13544 = vmatpush3.bf16.msra.mxu1 %v16059_v6  ;;  %13523 = vmatprep.subr.bf16.mxu0 %v16060_v45  ;;  %v16088_v6 = vld [vmem:[%s21435_s3 + $0x140] ss:$8 sps:$4 sm:$0xff]  }
 0x551   :  { %13545 = vmatprep.subr.bf16.mxu1 %v16061_v15  ;;  %v16091_v15 = vld [vmem:[%s21434_s2 + $0x1e10] ss:$20 sps:$4 sm:$0xff]  }
 0x552   :  { %v10449_v0 = vpop.f32.mrf.mxu1 }
 0x553   :  { %13524 = vmatpush3.bf16.msra.mxu0 %v16062_v47  ;;  %v10450_v1 = vadd.f32 %v10449_v0, %v20930_v53  ;;  %v14046_v53 = vor.u32 %v14045_v62, %v14044_v13  ;;  %v16107_v13 = vld [vmem:[%s21435_s3 + $0x110] ss:$8 sps:$4 sm:$0xff]  }
 0x554   :  { %13546 = vmatpush3.bf16.msra.mxu1 %v16063_v37  ;;  %v10451_v14 = vpop.f32.mrf.mxu1  ;;  %13525 = vmatprep.subr.bf16.mxu0 %v16064_v43  ;;  %v16094_v43 = vld [vmem:[%s21435_s3 + $0x74] ss:$8 sps:$4 sm:$0xff]  }
 0x555   :  { %13547 = vmatprep.subr.bf16.mxu1 %v16065_v27  ;;  %v10452_v5 = vadd.f32 %v10451_v14, %v10411_v17  ;;  %v14047_v34 = vsel %vm14041_vm7, %v14046_v53, %v21089_v19 }
 0x556   :  { %v10453_v7 = vpop.f32.mrf.mxu1  ;;  %v11084_v8 = vmax.f32 %v14047_v34, 0.0 }
 0x557   :  { %13526 = vmatpush3.bf16.msra.mxu0 %v16066_v60  ;;  %v16095_v60 = vld [vmem:[%s21435_s3 + $0x130] ss:$8 sps:$4 sm:$0xff]   ;;  %v16100_v7 = vld [vmem:[%s21435_s3 + $0x64] ss:$8 sps:$4 sm:$0xff]  }
 0x558   :  { %13548 = vmatpush3.bf16.msra.mxu1 %v16067_v21  ;;  %v10454_v28 = vpop.f32.mrf.mxu1  ;;  %13527 = vmatprep.subr.bf16.mxu0 %v16068_v32  ;;  %v11089_v0 = vmin.f32 %v11084_v8, 31.0  ;;  %v16092_v21 = vld [vmem:[%s21435_s3 + $0x70] ss:$8 sps:$4 sm:$0xff]  }
 0x559   :  { %13549 = vmatprep.subr.bf16.mxu1 %v16069_v33 }
 0x55b   :  { %13528 = vmatpush3.bf16.msra.mxu0 %v16070_v51  ;;  %v16103_v51 = vld [vmem:[%s21435_s3 + $0x124] ss:$8 sps:$4 sm:$0xff]  }
 0x55c   :  { %13550 = vmatpush3.bf16.msra.mxu1 %v16071_v58  ;;  %13529 = vmatprep.subr.bf16.mxu0 %v16072_v40  ;;  %v11094_v58 = vpack.c.bf16 %v11089_v0, %v11089_v0  ;;  %v16101_v40 = vld [vmem:[%s21435_s3 + $0x120] ss:$8 sps:$4 sm:$0xff]  }
 0x55d   :  { %13551 = vmatprep.subr.bf16.mxu1 %v16073_v50 }
 0x55f   :  { %13530 = vmatpush3.bf16.msra.mxu0 %v16074_v57  ;;  %v16098_v57 = vld [vmem:[%s21435_s3 + $0x60] ss:$8 sps:$4 sm:$0xff]  }
 0x560   :  { %13552 = vmatpush3.bf16.msra.mxu1 %v16075_v12  ;;  %11574 = vmatprep.subr.bf16.mxu0 %v16078_v23 }
 0x561   :  { %13564 = vmatprep.subr.bf16.mxu1 %v16220_v11 }
 0x562   :  { %v10490_v29 = vpop.f32.mrf.mxu0  ;;  %v10531_v55 = vpop.f32.mrf.mxu1  ;;  %10971 = vmatmul.mubr.bf16.vlgmr.msra.gmra.mxu0 %v19163_v61  ;;  %v16083_v61 = vld [vmem:[%s21434_s2 + $0x1e60] ss:$20 sps:$4 sm:$0xff]  }
 0x563   :  { %v10491_v31 = vadd.f32 %v10490_v29, %v10450_v1  ;;  %11011 = vmatmul.mubr.bf16.vlgmr.msra.gmra.mxu1 %v19282_v25  ;;  %11575 = vmatpush1.bf16.msra.mxu0 %v16076_v20  ;;  %v13994_v20 = vcvt.f32.s32 %v19923_v16 }
 0x564   :  { %13565 = vmatpush3.bf16.msra.mxu1 %v16079_v4  ;;  %v10492_v39 = vpop.f32.mrf.mxu0  ;;  %v10533_v49 = vpop.f32.mrf.mxu1  ;;  %11576 = vmatprep.subr.bf16.mxu0 %v16082_v44  ;;  %v16104_v4 = vld [vmem:[%s21435_s3 + $0x50] ss:$8 sps:$4 sm:$0xff]   ;;  %v16115_v44 = vld [vmem:[%s21435_s3 + $0x104] ss:$8 sps:$4 sm:$0xff]  }
 0x565   :  { %v21150_v42 = vadd.f32 %v10531_v55, %v10491_v31  ;;  %v10493_v25 = vadd.f32 %v10492_v39, %v10452_v5  ;;  %13566 = vmatprep.subr.bf16.mxu1 %v16220_v11  ;;  %13572 = vmatprep.mubr.msk.bf16.mxu1 %vm16221_vm6, %v16220_v11  ;;  %v13995_v29 = vcvt.s32.f32 %v13994_v20  ;;  %v16110_v55 = vld [vmem:[%s21435_s3 + $0x40] ss:$8 sps:$4 sm:$0xff]   ;;  %v16121_v31 = vld [vmem:[%s21435_s3 + $0x1f4] ss:$8 sps:$4 sm:$0xff]   ;;  %v16140_v20 = vld [vmem:[%s21435_s3 + $0xf0] ss:$8 sps:$4 sm:$0xff]  }
 0x566   :  { %v10494_v36 = vpop.f32.mrf.mxu0  ;;  %v10535_v63 = vpop.f32.mrf.mxu1 }
 0x567   :  { %v14010_v52 = vcvt.f32.s32 %v21150_v42  ;;  %v10534_v46 = vadd.f32 %v10533_v49, %v10493_v25  ;;  %11577 = vmatpush1.bf16.msra.mxu0 %v16080_v10  ;;  %v14013_v14 = vand.u32 2147483648, %v21150_v42  ;;  %v14008_v32 = vand.u32 2147483647, %v21150_v42  ;;  %v16118_v49 = vld [vmem:[%s21435_s3 + $0x34] ss:$8 sps:$4 sm:$0xff]  }
 0x568   :  { %13567 = vmatpush3.bf16.msra.mxu1 %v16083_v61  ;;  %v10495_v22 = vpop.f32.mrf.mxu0  ;;  %v10536_v41 = vpop.f32.mrf.mxu1  ;;  %11578 = vmatprep.subr.bf16.mxu0 %v16086_v35  ;;  %v13996_v35 = vand.u32 2147483647, %v13995_v29  ;;  %v16116_v25 = vld [vmem:[%s21435_s3 + $0x30] ss:$8 sps:$4 sm:$0xff]   ;;  %v16127_v36 = vld [vmem:[%s21435_s3 + $0x1e4] ss:$8 sps:$4 sm:$0xff]  }
 0x569   :  { %v14018_v54 = vcvt.f32.s32 %v10534_v46  ;;  %13568 = vmatprep.subr.bf16.mxu1 %v16220_v11  ;;  %v14011_v26 = vcvt.s32.f32 %v14010_v52  ;;  %v14016_v45 = vand.u32 2147483647, %v10534_v46  ;;  %v14021_v37 = vand.u32 2147483648, %v10534_v46  ;;  %v16157_v29 = vld [vmem:[%s21435_s3 + $0x194] ss:$8 sps:$4 sm:$0xff]  }
 0x56a   :  { %vm14009_vm9 = vcmp.lt.f32.partialorder %v14008_v32, 8388608.0  ;;  %v13997_v52 = vand.u32 2147483648, %v19923_v16  ;;  %v13992_v22 = vand.u32 2147483647, %v19923_v16 }
 0x56b   :  { %v14019_v2 = vcvt.s32.f32 %v14018_v54  ;;  %11579 = vmatpush1.bf16.msra.mxu0 %v16084_v38  ;;  %v14012_v27 = vand.u32 2147483647, %v14011_v26  ;;  %vm14017_vm8 = vcmp.lt.f32.partialorder %v14016_v45, 8388608.0  ;;  %v16124_v38 = vld [vmem:[%s21435_s3 + $0x24] ss:$8 sps:$4 sm:$0xff]  }
 0x56c   :  { %13569 = vmatpush3.bf16.msra.mxu1 %v16087_v18  ;;  %11580 = vmatprep.subr.bf16.mxu0 %v16090_v59  ;;  %v13998_v18 = vor.u32 %v13997_v52, %v13996_v35  ;;  %v16125_v54 = vld [vmem:[%s21435_s3 + $0x1e0] ss:$8 sps:$4 sm:$0xff]   ;;  %vm21258_vm11 = vcmp.lt.f32.partialorder %v13992_v22, 8388608.0  ;;  %v16164_v52 = vld [vmem:[%s21435_s3 + $0xb0] ss:$8 sps:$4 sm:$0xff]  }
 0x56d   :  { %v14020_v47 = vand.u32 2147483647, %v14019_v2  ;;  %13570 = vmatprep.subr.bf16.mxu1 %v16220_v11  ;;  %v14014_v24 = vor.u32 %v14013_v14, %v14012_v27  ;;  %v16112_v11 = vld [vmem:[%s21435_s3 + $0x44] ss:$8 sps:$4 sm:$0xff]   ;;  %v16122_v2 = vld [vmem:[%s21435_s3 + $0x20] ss:$8 sps:$4 sm:$0xff]  }
 0x56e   :  { %v16131_v14 = vld [vmem:[%s21435_s3 + $0x1d0] ss:$8 sps:$4 sm:$0xff]   ;;  %v16161_v35 = vld [vmem:[%s21435_s3 + $0x180] ss:$8 sps:$4 sm:$0xff]  }
 0x56f   :  { %v14022_v19 = vor.u32 %v14021_v37, %v14020_v47  ;;  %11581 = vmatpush1.bf16.msra.mxu0 %v16088_v6  ;;  %v14015_v12 = vsel %vm14009_vm9, %v14014_v24, %v21150_v42  ;;  %v16119_v42 = vld [vmem:[%s21435_s3 + $0x1f0] ss:$8 sps:$4 sm:$0xff]   ;;  %v16133_v6 = vld [vmem:[%s21435_s3 + $0x1d4] ss:$8 sps:$4 sm:$0xff]  }
 0x570   :  { %13571 = vmatpush3.bf16.msra.mxu1 %v16091_v15  ;;  %11582 = vmatprep.subr.bf16.mxu0 %v16097_v48  ;;  %v11065_v1 = vmax.f32 %v14015_v12, 0.0  ;;  %v16130_v47 = vld [vmem:[%s21435_s3 + $0x14] ss:$8 sps:$4 sm:$0xff]   ;;  %v16143_v12 = vld [vmem:[%s21435_s3 + $0x1b0] ss:$8 sps:$4 sm:$0xff]  }
 0x571   :  { %v14023_v33 = vsel %vm14017_vm8, %v14022_v19, %v10534_v46  ;;  %11533 = vmatprep.subr.bf16.mxu1 %v16094_v43  ;;  %v13999_v19 = vsel %vm21258_vm11, %v13998_v18, %v19923_v16  ;;  %v16139_v16 = vld [vmem:[%s21435_s3 + $0x1c4] ss:$8 sps:$4 sm:$0xff]  }
 0x572   :  { %v11066_v28 = vmax.f32 %v14023_v33, 0.0  ;;  %v11070_v39 = vmin.f32 %v11065_v1, 31.0  ;;  %v16128_v33 = vld [vmem:[%s21435_s3 + $0x10] ss:$8 sps:$4 sm:$0xff]  }
 0x573   :  { %13573 = vmatmul.mubr.msk.bf16.vlgmr.msra.gmra.mxu1 %vm9468_vm4, %v19229_v56  ;;  %11583 = vmatpush1.bf16.msra.mxu0 %v16095_v60  ;;  %v16106_v56 = vld [vmem:[%s21435_s3 + $0x54] ss:$8 sps:$4 sm:$0xff]  }
 0x574   :  { %v11071_v50 = vmin.f32 %v11066_v28, 31.0  ;;  %11534 = vmatpush1.bf16.msra.mxu1 %v16092_v21  ;;  %11565 = vmatprep.mubr.bf16.mxu1 %v11094_v58  ;;  %v21239_v46 = vmul.f32 0.5, %v11070_v39  ;;  %v11063_v28 = vmax.f32 %v13999_v19, 0.0  ;;  %v16137_v58 = vld [vmem:[%s21435_s3 + $0x1c0] ss:$8 sps:$4 sm:$0xff]  }
 0x575   :  { %11535 = vmatprep.subr.bf16.mxu1 %v16100_v7  ;;  %11584 = vmatprep.subr.bf16.mxu0 %v16103_v51  ;;  %v16136_v51 = vld [vmem:[%s21435_s3 + $0x4] ss:$8 sps:$4 sm:$0xff]  }
 0x576   :  { %v11076_v23 = vmul.f32 0.5, %v11071_v50  ;;  %v14050_v37 = vcvt.f32.s32 %v21239_v46  ;;  %v16145_v50 = vld [vmem:[%s21435_s3 + $0x1b4] ss:$8 sps:$4 sm:$0xff]  }
 0x577   :  { %11585 = vmatpush1.bf16.msra.mxu0 %v16101_v40  ;;  %v16134_v40 = vld [vmem:[%s21435_s3] ss:$8 sps:$4 sm:$0xff]  }
 0x578   :  { %11536 = vmatpush1.bf16.msra.mxu1 %v16098_v57  ;;  %11586 = vmatprep.subr.bf16.mxu0 %v16109_v30  ;;  %v14058_v17 = vcvt.f32.s32 %v11076_v23  ;;  %v14056_v5 = vand.u32 2147483647, %v11076_v23  ;;  %v14061_v53 = vand.u32 2147483648, %v11076_v23  ;;  %v14051_v24 = vcvt.s32.f32 %v14050_v37  ;;  %v16142_v57 = vld [vmem:[%s21435_s3 + $0xf4] ss:$8 sps:$4 sm:$0xff]  }
 0x579   :  { %11537 = vmatprep.subr.bf16.mxu1 %v16106_v56  ;;  %v11068_v56 = vmin.f32 %v11063_v28, 31.0 }
 0x57a   :  { %v14059_v62 = vcvt.s32.f32 %v14058_v17  ;;  %vm14057_vm10 = vcmp.lt.f32.partialorder %v14056_v5, 8388608.0  ;;  %v14052_v30 = vand.u32 2147483647, %v14051_v24 }
 0x57b   :  { %11587 = vmatpush1.bf16.msra.mxu0 %v16107_v13  ;;  %v16151_v13 = vld [vmem:[%s21435_s3 + $0x1a4] ss:$8 sps:$4 sm:$0xff]   ;;  %v21305_v1 = vmul.f32 0.5, %v11068_v56 }
 0x57c   :  { %11538 = vmatpush1.bf16.msra.mxu1 %v16104_v4  ;;  %11588 = vmatprep.subr.bf16.mxu0 %v16115_v44  ;;  %v14060_v10 = vand.u32 2147483647, %v14059_v62  ;;  %v14048_v4 = vand.u32 2147483647, %v21239_v46  ;;  %v16148_v44 = vld [vmem:[%s21435_s3 + $0xe4] ss:$8 sps:$4 sm:$0xff]  }
 0x57d   :  { %11539 = vmatprep.subr.bf16.mxu1 %v16112_v11  ;;  %v16149_v11 = vld [vmem:[%s21435_s3 + $0x1a0] ss:$8 sps:$4 sm:$0xff]   ;;  %v14034_v5 = vcvt.f32.s32 %v21305_v1  ;;  %v14032_v22 = vand.u32 2147483647, %v21305_v1 }
 0x57e   :  { %v14062_v61 = vor.u32 %v14061_v53, %v14060_v10  ;;  %v16146_v62 = vld [vmem:[%s21435_s3 + $0xe0] ss:$8 sps:$4 sm:$0xff]   ;;  %vm14049_vm12 = vcmp.lt.f32.partialorder %v14048_v4, 8388608.0  ;;  %v16152_v10 = vld [vmem:[%s21435_s3 + $0xd0] ss:$8 sps:$4 sm:$0xff]  }
 0x57f   :  { %11589 = vmatpush1.bf16.msra.mxu0 %v16113_v3  ;;  %v16163_v53 = vld [vmem:[%s21435_s3 + $0x184] ss:$8 sps:$4 sm:$0xff]   ;;  %vm14033_vm13 = vcmp.lt.f32.partialorder %v14032_v22, 8388608.0  ;;  %v16179_v4 = vld [vmem:[%s21435_s3 + $0x220] ss:$8 sps:$4 sm:$0xff]  }
 0x580   :  { %11540 = vmatpush1.bf16.msra.mxu1 %v16110_v55  ;;  %11590 = vmatprep.subr.bf16.mxu0 %v16121_v31  ;;  %v14063_v63 = vsel %vm14057_vm10, %v14062_v61, %v11076_v23  ;;  %v14053_v23 = vand.u32 2147483648, %v21239_v46  ;;  %v16154_v55 = vld [vmem:[%s21435_s3 + $0xd4] ss:$8 sps:$4 sm:$0xff]   ;;  %v16155_v31 = vld [vmem:[%s21435_s3 + $0x190] ss:$8 sps:$4 sm:$0xff]   ;;  %v14035_v61 = vcvt.s32.f32 %v14034_v5 }
 0x581   :  { %11541 = vmatprep.subr.bf16.mxu1 %v16118_v49  ;;  %v11086_v34 = vmax.f32 %v14063_v63, 0.0  ;;  %v16160_v49 = vld [vmem:[%s21435_s3 + $0xc4] ss:$8 sps:$4 sm:$0xff]  }
 0x582   :  { %v13311_v41 = vpop.f32.mrf.mxu0  ;;  %v14054_v17 = vor.u32 %v14053_v23, %v14052_v30  ;;  %v14036_v63 = vand.u32 2147483647, %v14035_v61  ;;  %v16176_v23 = vld [vmem:[%s21435_s3 + $0x230] ss:$8 sps:$4 sm:$0xff]  }
 0x583   :  { %v13333_v59 = vpop.f32.mrf.mxu1  ;;  %11591 = vmatpush2.bf16.msra.mxu0 %v16119_v42  ;;  %v11091_v26 = vmin.f32 %v11086_v34, 31.0  ;;  %v16158_v42 = vld [vmem:[%s21435_s3 + $0xc0] ss:$8 sps:$4 sm:$0xff]   ;;  %v16169_v34 = vld [vmem:[%s21435_s3 + $0xa4] ss:$8 sps:$4 sm:$0xff]  }
 0x584   :  { %11542 = vmatpush1.bf16.msra.mxu1 %v16116_v25  ;;  %v13312_v8 = vpop.f32.mrf.mxu0  ;;  %11592 = vmatprep.subr.bf16.mxu0 %v16127_v36  ;;  %v14055_v3 = vsel %vm14049_vm12, %v14054_v17, %v21239_v46  ;;  %v16166_v36 = vld [vmem:[%s21435_s3 + $0xb4] ss:$8 sps:$4 sm:$0xff]   ;;  %v16182_v17 = vld [vmem:[%s21435_s3 + $0x210] ss:$8 sps:$4 sm:$0xff]  }
 0x585   :  { %v13313_v45 = vadd.f32 %v13312_v8, %v13311_v41  ;;  %v13334_v15 = vpop.f32.mrf.mxu1  ;;  %11543 = vmatprep.subr.bf16.mxu1 %v16124_v38  ;;  %v11096_v48 = vpack.c.bf16 %v11091_v26, %v11091_v26  ;;  %v11085_v39 = vmax.f32 %v14055_v3, 0.0  ;;  %v14037_v38 = vand.u32 2147483648, %v21305_v1  ;;  %v16167_v26 = vld [vmem:[%s21435_s3 + $0xa0] ss:$8 sps:$4 sm:$0xff]  }
 0x586   :  { %v13335_v27 = vadd.f32 %v13334_v15, %v13333_v59  ;;  %v13314_v0 = vpop.f32.mrf.mxu0 }
 0x587   :  { %v13336_v60 = vpop.f32.mrf.mxu1  ;;  %11593 = vmatpush2.bf16.msra.mxu0 %v16125_v54  ;;  %11606 = vmatprep.mubr.bf16.mxu0 %v11096_v48  ;;  %v11090_v25 = vmin.f32 %v11085_v39, 31.0  ;;  %v14038_v18 = vor.u32 %v14037_v38, %v14036_v63 }
 0x588   :  { %v21268_v21 = vadd.f32 %v13335_v27, %v13313_v45  ;;  %11544 = vmatpush1.bf16.msra.mxu1 %v16122_v2  ;;  %v13315_v32 = vpop.f32.mrf.mxu0  ;;  %11594 = vmatprep.subr.bf16.mxu0 %v16133_v6  ;;  %v16172_v6 = vld [vmem:[%s21435_s3 + $0x94] ss:$8 sps:$4 sm:$0xff]   ;;  %v16170_v27 = vld [vmem:[%s21435_s3 + $0x90] ss:$8 sps:$4 sm:$0xff]   ;;  %v16175_v60 = vld [vmem:[%s21435_s3 + $0x84] ss:$8 sps:$4 sm:$0xff]  }
 0x589   :  { %v13337_v7 = vpop.f32.mrf.mxu1  ;;  %11545 = vmatprep.subr.bf16.mxu1 %v16130_v47  ;;  %v11095_v46 = vpack.c.bf16 %v11090_v25, %v11090_v25  ;;  %v14039_v48 = vsel %vm14033_vm13, %v14038_v18, %v21305_v1  ;;  %v16187_v1 = vld [vmem:[%s21435_s3 + $0x204] ss:$8 sps:$4 sm:$0xff]  }
 0x58b   :  { %11595 = vmatpush2.bf16.msra.mxu0 %v16131_v14  ;;  %v11083_v14 = vmax.f32 %v14039_v48, 0.0 }
 0x58c   :  { %11546 = vmatpush1.bf16.msra.mxu1 %v16128_v33  ;;  %11596 = vmatprep.subr.bf16.mxu0 %v16139_v16 }
 0x58d   :  { %11547 = vmatprep.subr.bf16.mxu1 %v16136_v51  ;;  %v11088_v32 = vmin.f32 %v11083_v14, 31.0 }
 0x58f   :  { %11597 = vmatpush2.bf16.msra.mxu0 %v16137_v58  ;;  %v11093_v33 = vpack.c.bf16 %v11088_v32, %v11088_v32 }
 0x590   :  { %11548 = vmatpush1.bf16.msra.mxu1 %v16134_v40  ;;  %11598 = vmatprep.subr.bf16.mxu0 %v16145_v50 }
 0x591   :  { %11549 = vmatprep.subr.bf16.mxu1 %v16142_v57 }
 0x593   :  { %11599 = vmatpush2.bf16.msra.mxu0 %v16143_v12 }
 0x594   :  { %11550 = vmatpush2.bf16.msra.mxu1 %v16140_v20  ;;  %11600 = vmatprep.subr.bf16.mxu0 %v16151_v13  ;;  %v16178_v20 = vld [vmem:[%s21435_s3 + $0x234] ss:$8 sps:$4 sm:$0xff]   ;;  %v16181_v13 = vld [vmem:[%s21435_s3 + $0x224] ss:$8 sps:$4 sm:$0xff]  }
 0x595   :  { %11551 = vmatprep.subr.bf16.mxu1 %v16148_v44  ;;  %v16184_v44 = vld [vmem:[%s21435_s3 + $0x214] ss:$8 sps:$4 sm:$0xff]  }
 0x597   :  { %11601 = vmatpush2.bf16.msra.mxu0 %v16149_v11  ;;  %v16185_v11 = vld [vmem:[%s21435_s3 + $0x200] ss:$8 sps:$4 sm:$0xff]  }
 0x598   :  { %11552 = vmatpush2.bf16.msra.mxu1 %v16146_v62  ;;  %11602 = vmatprep.subr.bf16.mxu0 %v16157_v29 }
 0x599   :  { %11553 = vmatprep.subr.bf16.mxu1 %v16154_v55 }
 0x59b   :  { %11603 = vmatpush2.bf16.msra.mxu0 %v16155_v31 }
 0x59c   :  { %11554 = vmatpush2.bf16.msra.mxu1 %v16152_v10  ;;  %11604 = vmatprep.subr.bf16.mxu0 %v16163_v53 }
 0x59d   :  { %11555 = vmatprep.subr.bf16.mxu1 %v16160_v49 }
 0x59f   :  { %11605 = vmatpush2.bf16.msra.mxu0 %v16161_v35 }
 0x5a0   :  { %11556 = vmatpush2.bf16.msra.mxu1 %v16158_v42  ;;  %11748 = vmatprep.subr.bf16.mxu0 %v16219_v9 }
 0x5a1   :  { %11557 = vmatprep.subr.bf16.mxu1 %v16166_v36 }
 0x5a2   :  { %v13355_v41 = vpop.f32.mrf.mxu0  ;;  %11607 = vmatmul.mubr.bf16.vlgmr.msra.gmra.mxu0 %v11095_v46 }
 0x5a3   :  { %v13377_v59 = vpop.f32.mrf.mxu1 }
 0x5a4   :  { %11558 = vmatpush2.bf16.msra.mxu1 %v16164_v52  ;;  %v13356_v54 = vpop.f32.mrf.mxu0 }
 0x5a5   :  { %v13357_v8 = vadd.f32 %v13356_v54, %v13355_v41  ;;  %v13378_v2 = vpop.f32.mrf.mxu1  ;;  %11559 = vmatprep.subr.bf16.mxu1 %v16169_v34 }
 0x5a6   :  { %v13379_v45 = vadd.f32 %v13378_v2, %v13377_v59  ;;  %v13358_v15 = vpop.f32.mrf.mxu0 }
 0x5a7   :  { %v10653_v47 = vadd.f32 %v13357_v8, %v21268_v21  ;;  %v13380_v37 = vpop.f32.mrf.mxu1  ;;  %v16173_v21 = vld [vmem:[%s21435_s3 + $0x80] ss:$8 sps:$4 sm:$0xff]  }
 0x5a8   :  { %11560 = vmatpush2.bf16.msra.mxu1 %v16167_v26  ;;  %v13359_v43 = vpop.f32.mrf.mxu0 }
 0x5a9   :  { %v10693_v0 = vadd.f32 %v13379_v45, %v10653_v47  ;;  %v13381_v19 = vpop.f32.mrf.mxu1  ;;  %11561 = vmatprep.subr.bf16.mxu1 %v16172_v6 }
 0x5ac   :  { %11562 = vmatpush2.bf16.msra.mxu1 %v16170_v27 }
 0x5ad   :  { %11563 = vmatprep.subr.bf16.mxu1 %v16175_v60 }
 0x5b0   :  { %11564 = vmatpush2.bf16.msra.mxu1 %v16173_v21 }
 0x5b1   :  { %11623 = vmatprep.subr.bf16.mxu1 %v16178_v20 }
 0x5b3   :  { %11566 = vmatmul.mubr.bf16.vlgmr.msra.gmra.mxu1 %v11093_v33 }
 0x5b4   :  { %11647 = vmatprep.mubr.bf16.mxu1 %v16219_v9  ;;  %11624 = vmatpush1.bf16.msra.mxu1 %v16176_v23 }
 0x5b5   :  { %11625 = vmatprep.subr.bf16.mxu1 %v16181_v13 }
 0x5b8   :  { %11626 = vmatpush1.bf16.msra.mxu1 %v16179_v4 }
 0x5b9   :  { %11627 = vmatprep.subr.bf16.mxu1 %v16184_v44 }
 0x5bc   :  { %11628 = vmatpush1.bf16.msra.mxu1 %v16182_v17 }
 0x5bd   :  { %11629 = vmatprep.subr.bf16.mxu1 %v16187_v1 }
 0x5c0   :  { %11630 = vmatpush1.bf16.msra.mxu1 %v16185_v11 }
 0x5c2   :  { %v13399_v16 = vpop.f32.mrf.mxu0 }
 0x5c3   :  { %v13421_v7 = vpop.f32.mrf.mxu1 }
 0x5c4   :  { %v13400_v51 = vpop.f32.mrf.mxu0 }
 0x5c5   :  { %v13401_v24 = vadd.f32 %v13400_v51, %v13399_v16  ;;  %v13422_v28 = vpop.f32.mrf.mxu1 }
 0x5c6   :  { %v13423_v58 = vadd.f32 %v13422_v28, %v13421_v7  ;;  %v13402_v40 = vpop.f32.mrf.mxu0 }
 0x5c7   :  { %v10733_v50 = vadd.f32 %v13401_v24, %v10693_v0  ;;  %v13424_v57 = vpop.f32.mrf.mxu1 }
 0x5c8   :  { %v13403_v30 = vpop.f32.mrf.mxu0 }
 0x5c9   :  { %v10773_v56 = vadd.f32 %v13423_v58, %v10733_v50  ;;  %v13425_v12 = vpop.f32.mrf.mxu1 }
 0x5e2   :  { %v13443_v62 = vpop.f32.mrf.mxu0 }
 0x5e3   :  { %v13465_v29 = vpop.f32.mrf.mxu1 }
 0x5e4   :  { %v13444_v55 = vpop.f32.mrf.mxu0 }
 0x5e5   :  { %v13445_v3 = vadd.f32 %v13444_v55, %v13443_v62  ;;  %v13466_v5 = vpop.f32.mrf.mxu1 }
 0x5e6   :  { %v13467_v31 = vadd.f32 %v13466_v5, %v13465_v29  ;;  %v13446_v10 = vpop.f32.mrf.mxu0 }
 0x5e7   :  { %v10813_v53 = vadd.f32 %v13445_v3, %v10773_v56  ;;  %v13468_v39 = vpop.f32.mrf.mxu1 }
 0x5e8   :  { %v13447_v49 = vpop.f32.mrf.mxu0  ;;  %v16188_v39 = vld [vmem:[%s21436_s4 + $0x38] sm:$0xff]  }
 0x5e9   :  { %v10853_v61 = vadd.f32 %v13467_v31, %v10813_v53  ;;  %v13469_v35 = vpop.f32.mrf.mxu1  ;;  %11749 = vmatpush1.bf16.msra.mxu0 %v16188_v39  ;;  %v16189_v49 = vld [vmem:[%s21436_s4 + $0x30] sm:$0xff]  }
 0x5ea   :  { %11750 = vmatprep.subr.bf16.mxu0 %v16219_v9  ;;  %v16191_v35 = vld [vmem:[%s21436_s4 + $0x20] sm:$0xff]  }
 0x5ed   :  { %11751 = vmatpush1.bf16.msra.mxu0 %v16189_v49 }
 0x5ee   :  { %11752 = vmatprep.subr.bf16.mxu0 %v16219_v9 }
 0x602   :  { %v13487_v42 = vpop.f32.mrf.mxu0 }
 0x603   :  { %v13509_v25 = vpop.f32.mrf.mxu1 }
 0x604   :  { %v13488_v36 = vpop.f32.mrf.mxu0 }
 0x605   :  { %v13510_v63 = vpop.f32.mrf.mxu1  ;;  %v13489_v18 = vadd.f32 %v13488_v36, %v13487_v42  ;;  %v16192_v42 = vld [vmem:[%s21436_s4 + $0x18] sm:$0xff]   ;;  %v16194_v36 = vld [vmem:[%s21436_s4 + $0x8] sm:$0xff]  }
 0x606   :  { %v13490_v52 = vpop.f32.mrf.mxu0  ;;  %v13511_v15 = vadd.f32 %v13510_v63, %v13509_v25  ;;  %v16193_v25 = vld [vmem:[%s21436_s4 + $0x10] sm:$0xff]   ;;  %v16195_v63 = vld [vmem:[%s21436_s4] sm:$0xff]  }
 0x607   :  { %v13512_v46 = vpop.f32.mrf.mxu1  ;;  %v10893_v2 = vadd.f32 %v13489_v18, %v10853_v61  ;;  %v16190_v61 = vld [vmem:[%s21436_s4 + $0x28] sm:$0xff]   ;;  %v16196_v52 = vld [vmem:[%s21436_s4 + $0x40] sm:$0xff]   ;;  %s16222_s4 = smov [#allocation2]  }
 0x608   :  { %v13491_v38 = vpop.f32.mrf.mxu0  ;;  %11753 = vmatpush1.bf16.msra.mxu0 %v16190_v61  ;;  %s11799_s30 = sshll.u32 %s16222_s4, 4  ;;  %s11800_s30 = int_to_ptr.vmem [resolvable:$true] %s11799_s30 }
 0x609   :  { %v13513_v34 = vpop.f32.mrf.mxu1  ;;  %v10933_v47 = vadd.f32 %v13511_v15, %v10893_v2  ;;  %11754 = vmatprep.subr.bf16.mxu0 %v16219_v9  ;;  %s16197_s2 = scalar_lea.vmem %s11800_s30, 128  ;;  %p16202_p1 = scmp.lt.s32.totalorder %s11800_s30, %s11800_s30 }
 0x60a   :  { %p16198_p0 = scmp.ne.s32.totalorder %s11800_s30, %s16197_s2  ;;  %p16203_p2 = scmp.lt.s32.totalorder %s16197_s2, %s16197_s2 }
 0x60c   :  { %11755 = vmatpush1.bf16.msra.mxu0 %v16191_v35  ;;  %p16204_p3 = por %p16203_p2, %p16202_p1 }
 0x60d   :  { %11756 = vmatprep.subr.bf16.mxu0 %v16219_v9 }
 0x60e   :  { %p16205_p4 = pnand %p16204_p3, %p16198_p0 }
 0x610   :  { %11757 = vmatpush1.bf16.msra.mxu0 %v16192_v42 }
 0x611   :  { %11758 = vmatprep.subr.bf16.mxu0 %v16219_v9 }
 0x614   :  { %11759 = vmatpush1.bf16.msra.mxu0 %v16193_v25 }
 0x615   :  { %11760 = vmatprep.subr.bf16.mxu0 %v16219_v9 }
 0x618   :  { %11761 = vmatpush1.bf16.msra.mxu0 %v16194_v36 }
 0x619   :  { %11762 = vmatprep.subr.bf16.mxu0 %v16219_v9 }
 0x61c   :  { %11763 = vmatpush1.bf16.msra.mxu0 %v16195_v63 }
 0x61d   :  { %11778 = vmatprep.subr.bf16.mxu0 %v16219_v9 }
 0x620   :  { %11779 = vmatpush2.bf16.msra.mxu0 %v16196_v52 }
 0x622   :  { %v13531_v22 = vpop.f32.mrf.mxu0 }
 0x623   :  { %v13553_v41 = vpop.f32.mrf.mxu1 }
 0x624   :  { %v13532_v59 = vpop.f32.mrf.mxu0 }
 0x625   :  { %v13554_v54 = vpop.f32.mrf.mxu1  ;;  %v13533_v48 = vadd.f32 %v13532_v59, %v13531_v22 }
 0x626   :  { %v13534_v26 = vpop.f32.mrf.mxu0  ;;  %v13555_v43 = vadd.f32 %v13554_v54, %v13553_v41 }
 0x627   :  { %v13556_v8 = vpop.f32.mrf.mxu1  ;;  %v10973_v37 = vadd.f32 %v13533_v48, %v10933_v47 }
 0x628   :  { %v13535_v6 = vpop.f32.mrf.mxu0 }
 0x629   :  { %v13557_v45 = vpop.f32.mrf.mxu1  ;;  %v11013_v27 = vadd.f32 %v13555_v43, %v10973_v37 }
 0x633   :  { %v11052_v0 = vpop.f32.mrf.mxu1 }
 0x634   :  { %v11053_v19 = vadd.f32 %v11052_v0, %v11013_v27 }
 0x635   :  { %v13574_v60 = vpop.f32.mrf.mxu1 }
 0x636   :  { %v14026_v14 = vcvt.f32.s32 %v11053_v19  ;;  %v14024_v33 = vand.u32 2147483647, %v11053_v19  ;;  %v14029_v51 = vand.u32 2147483648, %v11053_v19 }
 0x637   :  { %v11055_v21 = vpop.f32.mrf.mxu1 }
 0x638   :  { %v14027_v32 = vcvt.s32.f32 %v14026_v14  ;;  %vm14025_vm14 = vcmp.lt.f32.partialorder %v14024_v33, 8388608.0 }
 0x639   :  { %v13575_v16 = vpop.f32.mrf.mxu1 }
 0x63a   :  { %v14028_v7 = vand.u32 2147483647, %v14027_v32 }
 0x63c   :  { %v14030_v24 = vor.u32 %v14029_v51, %v14028_v7 }
 0x63e   :  { %v14031_v28 = vsel %vm14025_vm14, %v14030_v24, %v11053_v19 }
 0x63f   :  { %v11067_v58 = vmax.f32 %v14031_v28, 0.0 }
 0x641   :  { %v11072_v40 = vmin.f32 %v11067_v58, 31.0 }
 0x643   :  { %v11077_v50 = vmul.f32 0.5, %v11072_v40 }
 0x645   :  { %v14066_v57 = vcvt.f32.s32 %v11077_v50  ;;  %v14064_v56 = vand.u32 2147483647, %v11077_v50  ;;  %v14069_v23 = vand.u32 2147483648, %v11077_v50 }
 0x647   :  { %v14067_v30 = vcvt.s32.f32 %v14066_v57  ;;  %vm14065_vm15 = vcmp.lt.f32.partialorder %v14064_v56, 8388608.0 }
 0x649   :  { %v14068_v12 = vand.u32 2147483647, %v14067_v30 }
 0x64b   :  { %v14070_v20 = vor.u32 %v14069_v23, %v14068_v12 }
 0x64d   :  { %v14071_v13 = vsel %vm14065_vm15, %v14070_v20, %v11077_v50 }
 0x64e   :  { %v11087_v4 = vmax.f32 %v14071_v13, 0.0 }
 0x650   :  { %v11092_v44 = vmin.f32 %v11087_v4, 31.0 }
 0x652   :  { %v11097_v17 = vpack.c.bf16 %v11092_v44, %v11092_v44 }
 0x654   :  { %13262 = vmatmul.mubr.msk.bf16.vlgmr.msra.gmra.mxu1 %vm9468_vm4, %v11097_v17  ;;  %vm11744_vm4 = vcmask 130048  }
 0x662   :  { %v11608_v1 = vpop.f32.mrf.mxu0 }
 0x664   :  { %v11610_v11 = vpop.f32.mrf.mxu0 }
 0x666   :  { %v11612_v62 = vpop.f32.mrf.mxu0 }
 0x668   :  { %v11613_v29 = vpop.f32.mrf.mxu0 }
 0x673   :  { %v11567_v55 = vpop.f32.mrf.mxu1 }
 0x674   :  { %v11609_v3 = vadd.f32 %v11608_v1, %v11567_v55 }
 0x675   :  { %v11569_v5 = vpop.f32.mrf.mxu1 }
 0x676   :  { %v11611_v31 = vadd.f32 %v11610_v11, %v11569_v5 }
 0x677   :  { %v11571_v10 = vpop.f32.mrf.mxu1 }
 0x679   :  { %v11572_v53 = vpop.f32.mrf.mxu1 }
 0x714   :  { %v11649_v46 = vpop.f32.mrf.mxu1 }
 0x715   :  { %v11650_v38 = vadd.f32 %v11649_v46, %v11609_v3 }
 0x716   :  { %v11651_v34 = vpop.f32.mrf.mxu1 }
 0x717   :  { %v14074_v22 = vcvt.f32.s32 %v11650_v38  ;;  %v11652_v41 = vadd.f32 %v11651_v34, %v11611_v31  ;;  %v14072_v26 = vand.u32 2147483647, %v11650_v38  ;;  %v14077_v6 = vand.u32 2147483648, %v11650_v38 }
 0x718   :  { %v11653_v18 = vpop.f32.mrf.mxu1 }
 0x719   :  { %v14075_v59 = vcvt.s32.f32 %v14074_v22  ;;  %v14082_v54 = vcvt.f32.s32 %v11652_v41  ;;  %v14080_v15 = vand.u32 2147483647, %v11652_v41  ;;  %v14085_v37 = vand.u32 2147483648, %v11652_v41 }
 0x71a   :  { %v11654_v8 = vpop.f32.mrf.mxu1  ;;  %vm14073_vm0 = vcmp.lt.f32.partialorder %v14072_v26, 8388608.0 }
 0x71b   :  { %v14076_v2 = vand.u32 2147483647, %v14075_v59  ;;  %v14083_v45 = vcvt.s32.f32 %v14082_v54  ;;  %vm14081_vm1 = vcmp.lt.f32.partialorder %v14080_v15, 8388608.0 }
 0x71d   :  { %v14078_v48 = vor.u32 %v14077_v6, %v14076_v2  ;;  %v14084_v47 = vand.u32 2147483647, %v14083_v45 }
 0x71f   :  { %v14079_v9 = vsel %vm14073_vm0, %v14078_v48, %v11650_v38  ;;  %v14086_v43 = vor.u32 %v14085_v37, %v14084_v47 }
 0x720   :  { %v11658_v27 = vmax.f32 %v14079_v9, 0.0 }
 0x721   :  { %v14087_v0 = vsel %vm14081_vm1, %v14086_v43, %v11652_v41 }
 0x722   :  { %v11660_v19 = vmin.f32 %v11658_v27, 31.0  ;;  %v11659_v60 = vmax.f32 %v14087_v0, 0.0 }
 0x724   :  { %v11662_v14 = vmul.f32 2.0, %v11660_v19  ;;  %v11661_v21 = vmin.f32 %v11659_v60, 31.0 }
 0x726   :  { %v11663_v32 = vmul.f32 2.0, %v11661_v21  ;;  %v14090_v33 = vcvt.f32.s32 %v11662_v14  ;;  %v14088_v24 = vand.u32 2147483647, %v11662_v14  ;;  %v14093_v40 = vand.u32 2147483648, %v11662_v14 }
 0x728   :  { %v14098_v16 = vcvt.f32.s32 %v11663_v32  ;;  %v14091_v7 = vcvt.s32.f32 %v14090_v33  ;;  %v14096_v28 = vand.u32 2147483647, %v11663_v32  ;;  %v14101_v57 = vand.u32 2147483648, %v11663_v32 }
 0x729   :  { %vm14089_vm2 = vcmp.lt.f32.partialorder %v14088_v24, 8388608.0 }
 0x72a   :  { %v14099_v51 = vcvt.s32.f32 %v14098_v16  ;;  %v14092_v58 = vand.u32 2147483647, %v14091_v7  ;;  %vm14097_vm3 = vcmp.lt.f32.partialorder %v14096_v28, 8388608.0 }
 0x72c   :  { %v14100_v50 = vand.u32 2147483647, %v14099_v51  ;;  %v14094_v30 = vor.u32 %v14093_v40, %v14092_v58 }
 0x72e   :  { %v14102_v56 = vor.u32 %v14101_v57, %v14100_v50  ;;  %v14095_v12 = vsel %vm14089_vm2, %v14094_v30, %v11662_v14 }
 0x72f   :  { %v11666_v20 = vmax.f32 %v14095_v12, 0.0 }
 0x730   :  { %v14103_v23 = vsel %vm14097_vm3, %v14102_v56, %v11663_v32 }
 0x731   :  { %v11667_v13 = vmax.f32 %v14103_v23, 0.0  ;;  %v11668_v4 = vmin.f32 %v11666_v20, 31.0 }
 0x733   :  { %v11669_v44 = vmin.f32 %v11667_v13, 31.0  ;;  %v11670_v1 = vpack.c.bf16 %v11668_v4, %v11668_v4 }
 0x735   :  { %v11671_v17 = vpack.c.bf16 %v11669_v44, %v11669_v44 }
 0x737   :  { %13272 = vmatprep.mubr.msk.bf16.mxu0 %vm11744_vm4, %v11671_v17 }
 0x738   :  { %11781 = vmatmul.mubr.bf16.vlgmr.msra.gmra.mxu0 %v11670_v1 }
 0x7f8   :  { %v11782_v11 = vpop.f32.mrf.mxu0 }
 0x7f9   :  { %v14106_v62 = vcvt.f32.s32 %v11782_v11  ;;  %v14104_v3 = vand.u32 2147483647, %v11782_v11  ;;  %v14109_v10 = vand.u32 2147483648, %v11782_v11 }
 0x7fa   :  { %v11784_v29 = vpop.f32.mrf.mxu0 }
 0x7fb   :  { %v14107_v55 = vcvt.s32.f32 %v14106_v62  ;;  %vm14105_vm5 = vcmp.lt.f32.partialorder %v14104_v3, 8388608.0 }
 0x7fc   :  { %v11785_v5 = vpop.f32.mrf.mxu0 }
 0x7fd   :  { %v14108_v31 = vand.u32 2147483647, %v14107_v55 }
 0x7fe   :  { %v11786_v53 = vpop.f32.mrf.mxu0 }
 0x7ff   :  { %v14110_v39 = vor.u32 %v14109_v10, %v14108_v31 }
 0x801   :  { %v14111_v49 = vsel %vm14105_vm5, %v14110_v39, %v11782_v11 }
 0x802   :  { %v11789_v61 = vmax.f32 %v14111_v49, 0.0 }
 0x804   :  { %v11790_v35 = vmin.f32 %v11789_v61, 31.0 }
 0x806   :  { %v11791_v42 = vmul.f32 8.0, %v11790_v35 }
 0x808   :  { %11792 = vst [vmem:[#allocation2] sm:$0xff] %v11791_v42 }
 0x809   :  { %16208 = shalt.err (!%p16205_p4)
}
 0x80a   :  { %11802 = dma.vmem_to_hbm [thread:$0]  %s11800_s30, 128, %s21437_s5, [#allocation3]  }
 0x80b   :  { %16217 = dma.done.wait [#allocation3], 128  }
 0x80c   :  { %16218 = vsyncadd [#allocation3], 4294967168 }
 0x80d   :  { %11806 = vsyncpa [#allocation3], 1 }

</bundles_post_ra>
